<compile_context>
chip_gen: v5e
topology: v5e:2x2
jax: 0.10.0
libtpu: 0.0.40
codegen_flags: <defaults>
</compile_context>

<pallas_src>
import jax
import jax.numpy as jnp
import numpy as np
from jax.experimental import pallas as pl
from jax.experimental.pallas import tpu as pltpu


def vae_encoder_kernel(xg_ref, w1_ref, b1_ref, w2_ref, b2_ref,
                       wh1_ref, bh1_ref, wmu2_ref, bmu2_ref,
                       wlv2_ref, blv2_ref, eps_ref,
                       out_ref, h1p_s, hid_s):
    latent, TB = eps_ref.shape
    c1 = w1_ref.shape[0]              # 32
    L = wh1_ref.shape[0]              # input_dim
    H = bh1_ref.shape[0] // 2         # 128 (per-head hidden width)

    w1 = w1_ref[...]                  # (32, 3) f32
    b1 = b1_ref[...]                  # (32, 1) f32
    b2 = b2_ref[...]                  # (64, 1) f32

    # --- Conv1d(1, 32, k=3, pad=1) + ReLU (VPU), staged zero-padded for conv2
    # h1p_s lane block lp = padded position, lanes = batch tile, bf16.
    zeros_edge = jnp.zeros((c1, TB), jnp.bfloat16)
    h1p_s[:, 0:TB] = zeros_edge                                   # lp = 0
    h1p_s[:, (L + 1) * TB:(L + 2) * TB] = zeros_edge              # lp = L+1
    for l in range(L):                                            # static unroll
        acc1 = (w1[:, 0:1] * xg_ref[l:l + 1, :]
                + w1[:, 1:2] * xg_ref[l + 1:l + 2, :]
                + w1[:, 2:3] * xg_ref[l + 2:l + 3, :])
        h1p_s[:, (l + 1) * TB:(l + 2) * TB] = (
            jnp.maximum(acc1 + b1, 0.0).astype(jnp.bfloat16))

    # --- Conv1d(32, 64, k=3, pad=1) + ReLU fused with the first FC layer ----
    #   hid[:, b] = sum_l wh1[l] @ relu(conv2(h1)[:, l, b])
    # No (64*L, TB) flatten buffer and no lane->sublane shuffle.
    hid_s[...] = jnp.zeros_like(hid_s)
    for l in range(L):
        a2 = jnp.dot(w2_ref[0], h1p_s[:, l * TB:(l + 1) * TB],
                     preferred_element_type=jnp.float32)
        a2 = a2 + jnp.dot(w2_ref[1], h1p_s[:, (l + 1) * TB:(l + 2) * TB],
                          preferred_element_type=jnp.float32)
        a2 = a2 + jnp.dot(w2_ref[2], h1p_s[:, (l + 2) * TB:(l + 3) * TB],
                          preferred_element_type=jnp.float32)
        h2_l = jnp.maximum(a2 + b2, 0.0).astype(jnp.bfloat16)     # (64, TB)
        hid_s[...] = hid_s[...] + jnp.dot(
            wh1_ref[l], h2_l, preferred_element_type=jnp.float32)

    # --- ReLU + second FC layers (mu / logvar heads split, no zero padding) --
    hid = jnp.maximum(hid_s[...] + bh1_ref[...], 0.0).astype(jnp.bfloat16)
    mu = jnp.dot(wmu2_ref[...], hid[0:H, :],
                 preferred_element_type=jnp.float32) + bmu2_ref[...]
    lv = jnp.dot(wlv2_ref[...], hid[H:2 * H, :],
                 preferred_element_type=jnp.float32) + blv2_ref[...]
    z = mu + eps_ref[...] * jnp.exp(0.5 * lv)

    out_ref[0:latent, :] = z
    out_ref[latent:2 * latent, :] = mu
    out_ref[2 * latent:3 * latent, :] = lv


def vae_encoder_forward(x, kparams, eps, tb=128):
    """x: (B, D) f32, eps: (B, latent) f32 (torch.randn_like equivalent).

    tb: batch tile (lane) width per grid step; keep a multiple of 128.
        (128 is fine everywhere; 256-512 is reasonable on v6e/v7x.)
    """
    B, L = x.shape
    latent = eps.shape[1]
    n_tiles = pl.cdiv(B, tb)
    B_pad = n_tiles * tb

    # layout plumbing only: pad batch to a lane-dense multiple of tb, pad the
    # sequence by 1 on each side, put (padded) position on sublanes.
    xg = jnp.pad(x, ((0, B_pad - B), (1, 1))).T          # (L+2, B_pad)
    eps_t = jnp.pad(eps, ((0, B_pad - B), (0, 0))).T     # (latent, B_pad)

    ins = (xg,
           kparams["w1"], kparams["b1"], kparams["w2"], kparams["b2"],
           kparams["wh1"], kparams["bh1"],
           kparams["wmu2"], kparams["bmu2"],
           kparams["wlv2"], kparams["blv2"],
           eps_t)

    const2 = lambda i: (0, 0)
    const3 = lambda i: (0, 0, 0)
    batch2 = lambda i: (0, i)

    in_specs = [
        pl.BlockSpec((L + 2, tb), batch2),                      # xg
        pl.BlockSpec(kparams["w1"].shape, const2),              # (32, 3)
        pl.BlockSpec(kparams["b1"].shape, const2),              # (32, 1)
        pl.BlockSpec(kparams["w2"].shape, const3),              # (3, 64, 32)
        pl.BlockSpec(kparams["b2"].shape, const2),              # (64, 1)
        pl.BlockSpec(kparams["wh1"].shape, const3),             # (L, 256, 64)
        pl.BlockSpec(kparams["bh1"].shape, const2),             # (256, 1)
        pl.BlockSpec(kparams["wmu2"].shape, const2),            # (latent, 128)
        pl.BlockSpec(kparams["bmu2"].shape, const2),            # (latent, 1)
        pl.BlockSpec(kparams["wlv2"].shape, const2),            # (latent, 128)
        pl.BlockSpec(kparams["blv2"].shape, const2),            # (latent, 1)
        pl.BlockSpec((latent, tb), batch2),                     # eps
    ]

    flops = (2 * B_pad * L * (32 * 3 + 64 * 32 * 3 + 256 * 64)
             + 2 * B_pad * 2 * latent * 128)
    bytes_accessed = (sum(int(np.prod(a.shape)) * a.dtype.itemsize for a in ins)
                      + 3 * latent * B_pad * 4)

    out = pl.pallas_call(
        vae_encoder_kernel,
        out_shape=jax.ShapeDtypeStruct((3 * latent, B_pad), jnp.float32),
        grid=(n_tiles,),
        in_specs=in_specs,
        out_specs=pl.BlockSpec((3 * latent, tb), batch2),
        scratch_shapes=[pltpu.VMEM((32, (L + 2) * tb), jnp.bfloat16),
                        pltpu.VMEM((256, tb), jnp.float32)],
        compiler_params=pltpu.CompilerParams(
            dimension_semantics=("parallel",),      # v7x: 2 TCs share the grid
            vmem_limit_bytes=32 * 1024 * 1024),
        cost_estimate=pl.CostEstimate(flops=flops,
                                      transcendentals=latent * B_pad,
                                      bytes_accessed=bytes_accessed),
    )(*ins)

    z = out[0:latent, :B].T
    mu = out[latent:2 * latent, :B].T
    lv = out[2 * latent:3 * latent, :B].T
    return z, mu, lv


def make_params(key, input_dim, latent_dim):
    """Deterministic synthetic parameters, in PyTorch weight shapes."""
    ks = jax.random.split(key, 12)
    f32 = jnp.float32
    return {
        "w1_t": jax.random.normal(ks[0], (32, 1, 3), f32) * 0.30,
        "b1_t": jax.random.normal(ks[1], (32,), f32) * 0.10,
        "w2_t": jax.random.normal(ks[2], (64, 32, 3), f32) * 0.10,
        "b2_t": jax.random.normal(ks[3], (64,), f32) * 0.10,
        "wmu1_t": jax.random.normal(ks[4], (128, 64 * input_dim), f32) * 0.03,
        "bmu1_t": jax.random.normal(ks[5], (128,), f32) * 0.10,
        "wmu2_t": jax.random.normal(ks[6], (latent_dim, 128), f32) * 0.08,
        "bmu2_t": jax.random.normal(ks[7], (latent_dim,), f32) * 0.10,
        "wlv1_t": jax.random.normal(ks[8], (128, 64 * input_dim), f32) * 0.03,
        "blv1_t": jax.random.normal(ks[9], (128,), f32) * 0.10,
        "wlv2_t": jax.random.normal(ks[10], (latent_dim, 128), f32) * 0.08,
        "blv2_t": jax.random.normal(ks[11], (latent_dim,), f32) * 0.10,
    }


def to_kernel_params(p, input_dim, latent_dim):
    """Reshape / pack torch-shaped params into the kernel layout (glue only)."""
    L = input_dim
    f32, bf16 = jnp.float32, jnp.bfloat16
    # PyTorch Flatten order is (channel, position): column index = c*L + l.
    # Regroup the first FC weights per position: wh1[l] = [Wmu1[:,:,l]; Wlv1[:,:,l]]
    wmu1 = p["wmu1_t"].reshape(128, 64, L)
    wlv1 = p["wlv1_t"].reshape(128, 64, L)
    wh1 = jnp.transpose(jnp.concatenate([wmu1, wlv1], axis=0), (2, 0, 1))  # (L,256,64)
    bh1 = jnp.concatenate([p["bmu1_t"], p["blv1_t"]])[:, None]             # (256,1)

    return {
        "w1": p["w1_t"][:, 0, :].astype(f32),                    # (32, 3)
        "b1": p["b1_t"][:, None].astype(f32),                    # (32, 1)
        "w2": jnp.transpose(p["w2_t"], (2, 0, 1)).astype(bf16),  # (3, 64, 32)
        "b2": p["b2_t"][:, None].astype(f32),                    # (64, 1)
        "wh1": wh1.astype(bf16),                                 # (L, 256, 64)
        "bh1": bh1.astype(f32),                                  # (256, 1)
        "wmu2": p["wmu2_t"].astype(bf16),                        # (latent, 128)
        "bmu2": p["bmu2_t"][:, None].astype(f32),                # (latent, 1)
        "wlv2": p["wlv2_t"].astype(bf16),                        # (latent, 128)
        "blv2": p["blv2_t"][:, None].astype(f32),                # (latent, 1)
    }


def reference_forward(x, p, eps):
    """Pure-JAX f32 reference reproducing the PyTorch module exactly."""
    B, L = x.shape
    xpad = jnp.pad(x, ((0, 0), (1, 1)))
    h1 = sum(p["w1_t"][:, 0, k][None, :, None] * xpad[:, None, k:k + L]
             for k in range(3)) + p["b1_t"][None, :, None]
    h1 = jnp.maximum(h1, 0.0)                                    # (B,32,L)
    h1p = jnp.pad(h1, ((0, 0), (0, 0), (1, 1)))
    h2 = sum(jnp.einsum("oc,bcl->bol", p["w2_t"][:, :, k], h1p[:, :, k:k + L])
             for k in range(3)) + p["b2_t"][None, :, None]
    h2 = jnp.maximum(h2, 0.0)                                    # (B,64,L)
    flat = h2.reshape(B, -1)
    hmu = jnp.maximum(flat @ p["wmu1_t"].T + p["bmu1_t"], 0.0)
    mu = hmu @ p["wmu2_t"].T + p["bmu2_t"]
    hlv = jnp.maximum(flat @ p["wlv1_t"].T + p["blv1_t"], 0.0)
    lv = hlv @ p["wlv2_t"].T + p["blv2_t"]
    std = jnp.exp(0.5 * lv)
    z = mu + eps * std
    return z, mu, lv


if __name__ == "__main__":
    B, input_dim, latent_dim = 2, 16, 8

    root = jax.random.PRNGKey(0)
    k_params, k_x, k_eps = jax.random.split(root, 3)

    params_t = make_params(k_params, input_dim, latent_dim)
    kparams = to_kernel_params(params_t, input_dim, latent_dim)

    x = jax.random.normal(k_x, (B, input_dim), jnp.float32)
    # torch.randn_like(std): eps drawn externally and passed in for determinism
    eps = jax.random.normal(k_eps, (B, latent_dim), jnp.float32)

    z, mu, logvar = vae_encoder_forward(x, kparams, eps)
    jax.block_until_ready((z, mu, logvar))

    z_ref, mu_ref, lv_ref = reference_forward(x, params_t, eps)
    # bf16 MXU operands with f32 accumulation -> loosened tolerances.
    np.testing.assert_allclose(np.asarray(mu), np.asarray(mu_ref),
                               rtol=3e-2, atol=2e-2)
    np.testing.assert_allclose(np.asarray(logvar), np.asarray(lv_ref),
                               rtol=3e-2, atol=2e-2)
    np.testing.assert_allclose(np.asarray(z), np.asarray(z_ref),
                               rtol=3e-2, atol=2e-2)

    assert z.shape == (B, latent_dim) and mu.shape == (B, latent_dim)
    assert logvar.shape == (B, latent_dim)
    print("KERNEL_OK")
</pallas_src>

<mosaic_0001>
module attributes {stable_mosaic.version = 11 : i64} {
  func.func @vae_encoder_kernel(%arg0: i32, %arg1: memref<18x128xf32, #tpu.memory_space<vmem>>, %arg2: memref<32x3xf32, #tpu.memory_space<vmem>>, %arg3: memref<32x1xf32, #tpu.memory_space<vmem>>, %arg4: memref<3x64x32xbf16, #tpu.memory_space<vmem>>, %arg5: memref<64x1xf32, #tpu.memory_space<vmem>>, %arg6: memref<16x256x64xbf16, #tpu.memory_space<vmem>>, %arg7: memref<256x1xf32, #tpu.memory_space<vmem>>, %arg8: memref<8x128xbf16, #tpu.memory_space<vmem>>, %arg9: memref<8x1xf32, #tpu.memory_space<vmem>>, %arg10: memref<8x128xbf16, #tpu.memory_space<vmem>>, %arg11: memref<8x1xf32, #tpu.memory_space<vmem>>, %arg12: memref<8x128xf32, #tpu.memory_space<vmem>>, %arg13: memref<24x128xf32, #tpu.memory_space<vmem>>, %arg14: memref<32x2304xbf16, #tpu.memory_space<vmem>>, %arg15: memref<256x128xf32, #tpu.memory_space<vmem>>) attributes {dimension_semantics = [#tpu.dimension_semantics<parallel>], iteration_bounds = array<i64: 1>, scalar_prefetch = 0 : i64, scratch_operands = 2 : i64, tpu.core_type = #tpu.core_type<tc>, window_params = [{transform_indices = @transform_0, window_bounds = array<i64: 18, 128>}, {pipeline_mode = #tpu.pipeline_mode<synchronous>, transform_indices = @transform_1, window_bounds = array<i64: 32, 3>}, {pipeline_mode = #tpu.pipeline_mode<synchronous>, transform_indices = @transform_2, window_bounds = array<i64: 32, 1>}, {pipeline_mode = #tpu.pipeline_mode<synchronous>, transform_indices = @transform_3, window_bounds = array<i64: 3, 64, 32>}, {pipeline_mode = #tpu.pipeline_mode<synchronous>, transform_indices = @transform_4, window_bounds = array<i64: 64, 1>}, {pipeline_mode = #tpu.pipeline_mode<synchronous>, transform_indices = @transform_5, window_bounds = array<i64: 16, 256, 64>}, {pipeline_mode = #tpu.pipeline_mode<synchronous>, transform_indices = @transform_6, window_bounds = array<i64: 256, 1>}, {pipeline_mode = #tpu.pipeline_mode<synchronous>, transform_indices = @transform_7, window_bounds = array<i64: 8, 128>}, {pipeline_mode = #tpu.pipeline_mode<synchronous>, transform_indices = @transform_8, window_bounds = array<i64: 8, 1>}, {pipeline_mode = #tpu.pipeline_mode<synchronous>, transform_indices = @transform_9, window_bounds = array<i64: 8, 128>}, {pipeline_mode = #tpu.pipeline_mode<synchronous>, transform_indices = @transform_10, window_bounds = array<i64: 8, 1>}, {transform_indices = @transform_11, window_bounds = array<i64: 8, 128>}, {transform_indices = @transform_12, window_bounds = array<i64: 24, 128>}]} {
    %c0 = arith.constant 0 : index
    %c0_0 = arith.constant 0 : index
    %0 = vector.load %arg2[%c0, %c0_0] : memref<32x3xf32, #tpu.memory_space<vmem>>, vector<32x3xf32>
    %c0_1 = arith.constant 0 : index
    %c0_2 = arith.constant 0 : index
    %1 = vector.load %arg3[%c0_1, %c0_2] : memref<32x1xf32, #tpu.memory_space<vmem>>, vector<32x1xf32>
    %c0_3 = arith.constant 0 : index
    %c0_4 = arith.constant 0 : index
    %2 = vector.load %arg5[%c0_3, %c0_4] : memref<64x1xf32, #tpu.memory_space<vmem>>, vector<64x1xf32>
    %cst = arith.constant 0.000000e+00 : bf16
    %3 = vector.broadcast %cst : bf16 to vector<32x128xbf16>
    %c0_5 = arith.constant 0 : index
    %c0_6 = arith.constant 0 : index
    %4 = vector.load %arg14[%c0_5, %c0_6] : memref<32x2304xbf16, #tpu.memory_space<vmem>>, vector<32x128xbf16>
    tpu.vector_store %arg14[%c0_5, %c0_6], %3 {strides = array<i32>} : memref<32x2304xbf16, #tpu.memory_space<vmem>>, vector<32x128xbf16>,
    %c0_7 = arith.constant 0 : index
    %c2176 = arith.constant 2176 : index
    %5 = vector.load %arg14[%c0_7, %c2176] : memref<32x2304xbf16, #tpu.memory_space<vmem>>, vector<32x128xbf16>
    tpu.vector_store %arg14[%c0_7, %c2176], %3 {strides = array<i32>} : memref<32x2304xbf16, #tpu.memory_space<vmem>>, vector<32x128xbf16>,
    %6 = vector.extract_strided_slice %0 {offsets = [0, 0], sizes = [32, 1], strides = [1, 1]} : vector<32x3xf32> to vector<32x1xf32>
    %c0_8 = arith.constant 0 : index
    %c0_9 = arith.constant 0 : index
    %7 = vector.load %arg1[%c0_8, %c0_9] : memref<18x128xf32, #tpu.memory_space<vmem>>, vector<1x128xf32>
    %8 = vector.broadcast %6 : vector<32x1xf32> to vector<32x128xf32>
    %9 = vector.broadcast %7 : vector<1x128xf32> to vector<32x128xf32>
    %10 = arith.mulf %8, %9 : vector<32x128xf32>
    %11 = vector.extract_strided_slice %0 {offsets = [0, 1], sizes = [32, 1], strides = [1, 1]} : vector<32x3xf32> to vector<32x1xf32>
    %c1 = arith.constant 1 : index
    %c0_10 = arith.constant 0 : index
    %12 = vector.load %arg1[%c1, %c0_10] : memref<18x128xf32, #tpu.memory_space<vmem>>, vector<1x128xf32>
    %13 = vector.broadcast %11 : vector<32x1xf32> to vector<32x128xf32>
    %14 = vector.broadcast %12 : vector<1x128xf32> to vector<32x128xf32>
    %15 = arith.mulf %13, %14 : vector<32x128xf32>
    %16 = arith.addf %10, %15 : vector<32x128xf32>
    %17 = vector.extract_strided_slice %0 {offsets = [0, 2], sizes = [32, 1], strides = [1, 1]} : vector<32x3xf32> to vector<32x1xf32>
    %c2 = arith.constant 2 : index
    %c0_11 = arith.constant 0 : index
    %18 = vector.load %arg1[%c2, %c0_11] : memref<18x128xf32, #tpu.memory_space<vmem>>, vector<1x128xf32>
    %19 = vector.broadcast %17 : vector<32x1xf32> to vector<32x128xf32>
    %20 = vector.broadcast %18 : vector<1x128xf32> to vector<32x128xf32>
    %21 = arith.mulf %19, %20 : vector<32x128xf32>
    %22 = arith.addf %16, %21 : vector<32x128xf32>
    %23 = vector.broadcast %1 : vector<32x1xf32> to vector<32x128xf32>
    %24 = arith.addf %22, %23 : vector<32x128xf32>
    %cst_12 = arith.constant 0.000000e+00 : f32
    %25 = vector.broadcast %cst_12 : f32 to vector<32x128xf32>
    %26 = arith.maximumf %24, %25 : vector<32x128xf32>
    %27 = arith.truncf %26 : vector<32x128xf32> to vector<32x128xbf16>
    %c0_13 = arith.constant 0 : index
    %c128 = arith.constant 128 : index
    %28 = vector.load %arg14[%c0_13, %c128] : memref<32x2304xbf16, #tpu.memory_space<vmem>>, vector<32x128xbf16>
    tpu.vector_store %arg14[%c0_13, %c128], %27 {strides = array<i32>} : memref<32x2304xbf16, #tpu.memory_space<vmem>>, vector<32x128xbf16>,
    %29 = vector.extract_strided_slice %0 {offsets = [0, 0], sizes = [32, 1], strides = [1, 1]} : vector<32x3xf32> to vector<32x1xf32>
    %c1_14 = arith.constant 1 : index
    %c0_15 = arith.constant 0 : index
    %30 = vector.load %arg1[%c1_14, %c0_15] : memref<18x128xf32, #tpu.memory_space<vmem>>, vector<1x128xf32>
    %31 = vector.broadcast %29 : vector<32x1xf32> to vector<32x128xf32>
    %32 = vector.broadcast %30 : vector<1x128xf32> to vector<32x128xf32>
    %33 = arith.mulf %31, %32 : vector<32x128xf32>
    %34 = vector.extract_strided_slice %0 {offsets = [0, 1], sizes = [32, 1], strides = [1, 1]} : vector<32x3xf32> to vector<32x1xf32>
    %c2_16 = arith.constant 2 : index
    %c0_17 = arith.constant 0 : index
    %35 = vector.load %arg1[%c2_16, %c0_17] : memref<18x128xf32, #tpu.memory_space<vmem>>, vector<1x128xf32>
    %36 = vector.broadcast %34 : vector<32x1xf32> to vector<32x128xf32>
    %37 = vector.broadcast %35 : vector<1x128xf32> to vector<32x128xf32>
    %38 = arith.mulf %36, %37 : vector<32x128xf32>
    %39 = arith.addf %33, %38 : vector<32x128xf32>
    %40 = vector.extract_strided_slice %0 {offsets = [0, 2], sizes = [32, 1], strides = [1, 1]} : vector<32x3xf32> to vector<32x1xf32>
    %c3 = arith.constant 3 : index
    %c0_18 = arith.constant 0 : index
    %41 = vector.load %arg1[%c3, %c0_18] : memref<18x128xf32, #tpu.memory_space<vmem>>, vector<1x128xf32>
    %42 = vector.broadcast %40 : vector<32x1xf32> to vector<32x128xf32>
    %43 = vector.broadcast %41 : vector<1x128xf32> to vector<32x128xf32>
    %44 = arith.mulf %42, %43 : vector<32x128xf32>
    %45 = arith.addf %39, %44 : vector<32x128xf32>
    %46 = vector.broadcast %1 : vector<32x1xf32> to vector<32x128xf32>
    %47 = arith.addf %45, %46 : vector<32x128xf32>
    %cst_19 = arith.constant 0.000000e+00 : f32
    %48 = vector.broadcast %cst_19 : f32 to vector<32x128xf32>
    %49 = arith.maximumf %47, %48 : vector<32x128xf32>
    %50 = arith.truncf %49 : vector<32x128xf32> to vector<32x128xbf16>
    %c0_20 = arith.constant 0 : index
    %c256 = arith.constant 256 : index
    %51 = vector.load %arg14[%c0_20, %c256] : memref<32x2304xbf16, #tpu.memory_space<vmem>>, vector<32x128xbf16>
    tpu.vector_store %arg14[%c0_20, %c256], %50 {strides = array<i32>} : memref<32x2304xbf16, #tpu.memory_space<vmem>>, vector<32x128xbf16>,
    %52 = vector.extract_strided_slice %0 {offsets = [0, 0], sizes = [32, 1], strides = [1, 1]} : vector<32x3xf32> to vector<32x1xf32>
    %c2_21 = arith.constant 2 : index
    %c0_22 = arith.constant 0 : index
    %53 = vector.load %arg1[%c2_21, %c0_22] : memref<18x128xf32, #tpu.memory_space<vmem>>, vector<1x128xf32>
    %54 = vector.broadcast %52 : vector<32x1xf32> to vector<32x128xf32>
    %55 = vector.broadcast %53 : vector<1x128xf32> to vector<32x128xf32>
    %56 = arith.mulf %54, %55 : vector<32x128xf32>
    %57 = vector.extract_strided_slice %0 {offsets = [0, 1], sizes = [32, 1], strides = [1, 1]} : vector<32x3xf32> to vector<32x1xf32>
    %c3_23 = arith.constant 3 : index
    %c0_24 = arith.constant 0 : index
    %58 = vector.load %arg1[%c3_23, %c0_24] : memref<18x128xf32, #tpu.memory_space<vmem>>, vector<1x128xf32>
    %59 = vector.broadcast %57 : vector<32x1xf32> to vector<32x128xf32>
    %60 = vector.broadcast %58 : vector<1x128xf32> to vector<32x128xf32>
    %61 = arith.mulf %59, %60 : vector<32x128xf32>
    %62 = arith.addf %56, %61 : vector<32x128xf32>
    %63 = vector.extract_strided_slice %0 {offsets = [0, 2], sizes = [32, 1], strides = [1, 1]} : vector<32x3xf32> to vector<32x1xf32>
    %c4 = arith.constant 4 : index
    %c0_25 = arith.constant 0 : index
    %64 = vector.load %arg1[%c4, %c0_25] : memref<18x128xf32, #tpu.memory_space<vmem>>, vector<1x128xf32>
    %65 = vector.broadcast %63 : vector<32x1xf32> to vector<32x128xf32>
    %66 = vector.broadcast %64 : vector<1x128xf32> to vector<32x128xf32>
    %67 = arith.mulf %65, %66 : vector<32x128xf32>
    %68 = arith.addf %62, %67 : vector<32x128xf32>
    %69 = vector.broadcast %1 : vector<32x1xf32> to vector<32x128xf32>
    %70 = arith.addf %68, %69 : vector<32x128xf32>
    %cst_26 = arith.constant 0.000000e+00 : f32
    %71 = vector.broadcast %cst_26 : f32 to vector<32x128xf32>
    %72 = arith.maximumf %70, %71 : vector<32x128xf32>
    %73 = arith.truncf %72 : vector<32x128xf32> to vector<32x128xbf16>
    %c0_27 = arith.constant 0 : index
    %c384 = arith.constant 384 : index
    %74 = vector.load %arg14[%c0_27, %c384] : memref<32x2304xbf16, #tpu.memory_space<vmem>>, vector<32x128xbf16>
    tpu.vector_store %arg14[%c0_27, %c384], %73 {strides = array<i32>} : memref<32x2304xbf16, #tpu.memory_space<vmem>>, vector<32x128xbf16>,
    %75 = vector.extract_strided_slice %0 {offsets = [0, 0], sizes = [32, 1], strides = [1, 1]} : vector<32x3xf32> to vector<32x1xf32>
    %c3_28 = arith.constant 3 : index
    %c0_29 = arith.constant 0 : index
    %76 = vector.load %arg1[%c3_28, %c0_29] : memref<18x128xf32, #tpu.memory_space<vmem>>, vector<1x128xf32>
    %77 = vector.broadcast %75 : vector<32x1xf32> to vector<32x128xf32>
    %78 = vector.broadcast %76 : vector<1x128xf32> to vector<32x128xf32>
    %79 = arith.mulf %77, %78 : vector<32x128xf32>
    %80 = vector.extract_strided_slice %0 {offsets = [0, 1], sizes = [32, 1], strides = [1, 1]} : vector<32x3xf32> to vector<32x1xf32>
    %c4_30 = arith.constant 4 : index
    %c0_31 = arith.constant 0 : index
    %81 = vector.load %arg1[%c4_30, %c0_31] : memref<18x128xf32, #tpu.memory_space<vmem>>, vector<1x128xf32>
    %82 = vector.broadcast %80 : vector<32x1xf32> to vector<32x128xf32>
    %83 = vector.broadcast %81 : vector<1x128xf32> to vector<32x128xf32>
    %84 = arith.mulf %82, %83 : vector<32x128xf32>
    %85 = arith.addf %79, %84 : vector<32x128xf32>
    %86 = vector.extract_strided_slice %0 {offsets = [0, 2], sizes = [32, 1], strides = [1, 1]} : vector<32x3xf32> to vector<32x1xf32>
    %c5 = arith.constant 5 : index
    %c0_32 = arith.constant 0 : index
    %87 = vector.load %arg1[%c5, %c0_32] : memref<18x128xf32, #tpu.memory_space<vmem>>, vector<1x128xf32>
    %88 = vector.broadcast %86 : vector<32x1xf32> to vector<32x128xf32>
    %89 = vector.broadcast %87 : vector<1x128xf32> to vector<32x128xf32>
    %90 = arith.mulf %88, %89 : vector<32x128xf32>
    %91 = arith.addf %85, %90 : vector<32x128xf32>
    %92 = vector.broadcast %1 : vector<32x1xf32> to vector<32x128xf32>
    %93 = arith.addf %91, %92 : vector<32x128xf32>
    %cst_33 = arith.constant 0.000000e+00 : f32
    %94 = vector.broadcast %cst_33 : f32 to vector<32x128xf32>
    %95 = arith.maximumf %93, %94 : vector<32x128xf32>
    %96 = arith.truncf %95 : vector<32x128xf32> to vector<32x128xbf16>
    %c0_34 = arith.constant 0 : index
    %c512 = arith.constant 512 : index
    %97 = vector.load %arg14[%c0_34, %c512] : memref<32x2304xbf16, #tpu.memory_space<vmem>>, vector<32x128xbf16>
    tpu.vector_store %arg14[%c0_34, %c512], %96 {strides = array<i32>} : memref<32x2304xbf16, #tpu.memory_space<vmem>>, vector<32x128xbf16>,
    %98 = vector.extract_strided_slice %0 {offsets = [0, 0], sizes = [32, 1], strides = [1, 1]} : vector<32x3xf32> to vector<32x1xf32>
    %c4_35 = arith.constant 4 : index
    %c0_36 = arith.constant 0 : index
    %99 = vector.load %arg1[%c4_35, %c0_36] : memref<18x128xf32, #tpu.memory_space<vmem>>, vector<1x128xf32>
    %100 = vector.broadcast %98 : vector<32x1xf32> to vector<32x128xf32>
    %101 = vector.broadcast %99 : vector<1x128xf32> to vector<32x128xf32>
    %102 = arith.mulf %100, %101 : vector<32x128xf32>
    %103 = vector.extract_strided_slice %0 {offsets = [0, 1], sizes = [32, 1], strides = [1, 1]} : vector<32x3xf32> to vector<32x1xf32>
    %c5_37 = arith.constant 5 : index
    %c0_38 = arith.constant 0 : index
    %104 = vector.load %arg1[%c5_37, %c0_38] : memref<18x128xf32, #tpu.memory_space<vmem>>, vector<1x128xf32>
    %105 = vector.broadcast %103 : vector<32x1xf32> to vector<32x128xf32>
    %106 = vector.broadcast %104 : vector<1x128xf32> to vector<32x128xf32>
    %107 = arith.mulf %105, %106 : vector<32x128xf32>
    %108 = arith.addf %102, %107 : vector<32x128xf32>
    %109 = vector.extract_strided_slice %0 {offsets = [0, 2], sizes = [32, 1], strides = [1, 1]} : vector<32x3xf32> to vector<32x1xf32>
    %c6 = arith.constant 6 : index
    %c0_39 = arith.constant 0 : index
    %110 = vector.load %arg1[%c6, %c0_39] : memref<18x128xf32, #tpu.memory_space<vmem>>, vector<1x128xf32>
    %111 = vector.broadcast %109 : vector<32x1xf32> to vector<32x128xf32>
    %112 = vector.broadcast %110 : vector<1x128xf32> to vector<32x128xf32>
    %113 = arith.mulf %111, %112 : vector<32x128xf32>
    %114 = arith.addf %108, %113 : vector<32x128xf32>
    %115 = vector.broadcast %1 : vector<32x1xf32> to vector<32x128xf32>
    %116 = arith.addf %114, %115 : vector<32x128xf32>
    %cst_40 = arith.constant 0.000000e+00 : f32
    %117 = vector.broadcast %cst_40 : f32 to vector<32x128xf32>
    %118 = arith.maximumf %116, %117 : vector<32x128xf32>
    %119 = arith.truncf %118 : vector<32x128xf32> to vector<32x128xbf16>
    %c0_41 = arith.constant 0 : index
    %c640 = arith.constant 640 : index
    %120 = vector.load %arg14[%c0_41, %c640] : memref<32x2304xbf16, #tpu.memory_space<vmem>>, vector<32x128xbf16>
    tpu.vector_store %arg14[%c0_41, %c640], %119 {strides = array<i32>} : memref<32x2304xbf16, #tpu.memory_space<vmem>>, vector<32x128xbf16>,
    %121 = vector.extract_strided_slice %0 {offsets = [0, 0], sizes = [32, 1], strides = [1, 1]} : vector<32x3xf32> to vector<32x1xf32>
    %c5_42 = arith.constant 5 : index
    %c0_43 = arith.constant 0 : index
    %122 = vector.load %arg1[%c5_42, %c0_43] : memref<18x128xf32, #tpu.memory_space<vmem>>, vector<1x128xf32>
    %123 = vector.broadcast %121 : vector<32x1xf32> to vector<32x128xf32>
    %124 = vector.broadcast %122 : vector<1x128xf32> to vector<32x128xf32>
    %125 = arith.mulf %123, %124 : vector<32x128xf32>
    %126 = vector.extract_strided_slice %0 {offsets = [0, 1], sizes = [32, 1], strides = [1, 1]} : vector<32x3xf32> to vector<32x1xf32>
    %c6_44 = arith.constant 6 : index
    %c0_45 = arith.constant 0 : index
    %127 = vector.load %arg1[%c6_44, %c0_45] : memref<18x128xf32, #tpu.memory_space<vmem>>, vector<1x128xf32>
    %128 = vector.broadcast %126 : vector<32x1xf32> to vector<32x128xf32>
    %129 = vector.broadcast %127 : vector<1x128xf32> to vector<32x128xf32>
    %130 = arith.mulf %128, %129 : vector<32x128xf32>
    %131 = arith.addf %125, %130 : vector<32x128xf32>
    %132 = vector.extract_strided_slice %0 {offsets = [0, 2], sizes = [32, 1], strides = [1, 1]} : vector<32x3xf32> to vector<32x1xf32>
    %c7 = arith.constant 7 : index
    %c0_46 = arith.constant 0 : index
    %133 = vector.load %arg1[%c7, %c0_46] : memref<18x128xf32, #tpu.memory_space<vmem>>, vector<1x128xf32>
    %134 = vector.broadcast %132 : vector<32x1xf32> to vector<32x128xf32>
    %135 = vector.broadcast %133 : vector<1x128xf32> to vector<32x128xf32>
    %136 = arith.mulf %134, %135 : vector<32x128xf32>
    %137 = arith.addf %131, %136 : vector<32x128xf32>
    %138 = vector.broadcast %1 : vector<32x1xf32> to vector<32x128xf32>
    %139 = arith.addf %137, %138 : vector<32x128xf32>
    %cst_47 = arith.constant 0.000000e+00 : f32
    %140 = vector.broadcast %cst_47 : f32 to vector<32x128xf32>
    %141 = arith.maximumf %139, %140 : vector<32x128xf32>
    %142 = arith.truncf %141 : vector<32x128xf32> to vector<32x128xbf16>
    %c0_48 = arith.constant 0 : index
    %c768 = arith.constant 768 : index
    %143 = vector.load %arg14[%c0_48, %c768] : memref<32x2304xbf16, #tpu.memory_space<vmem>>, vector<32x128xbf16>
    tpu.vector_store %arg14[%c0_48, %c768], %142 {strides = array<i32>} : memref<32x2304xbf16, #tpu.memory_space<vmem>>, vector<32x128xbf16>,
    %144 = vector.extract_strided_slice %0 {offsets = [0, 0], sizes = [32, 1], strides = [1, 1]} : vector<32x3xf32> to vector<32x1xf32>
    %c6_49 = arith.constant 6 : index
    %c0_50 = arith.constant 0 : index
    %145 = vector.load %arg1[%c6_49, %c0_50] : memref<18x128xf32, #tpu.memory_space<vmem>>, vector<1x128xf32>
    %146 = vector.broadcast %144 : vector<32x1xf32> to vector<32x128xf32>
    %147 = vector.broadcast %145 : vector<1x128xf32> to vector<32x128xf32>
    %148 = arith.mulf %146, %147 : vector<32x128xf32>
    %149 = vector.extract_strided_slice %0 {offsets = [0, 1], sizes = [32, 1], strides = [1, 1]} : vector<32x3xf32> to vector<32x1xf32>
    %c7_51 = arith.constant 7 : index
    %c0_52 = arith.constant 0 : index
    %150 = vector.load %arg1[%c7_51, %c0_52] : memref<18x128xf32, #tpu.memory_space<vmem>>, vector<1x128xf32>
    %151 = vector.broadcast %149 : vector<32x1xf32> to vector<32x128xf32>
    %152 = vector.broadcast %150 : vector<1x128xf32> to vector<32x128xf32>
    %153 = arith.mulf %151, %152 : vector<32x128xf32>
    %154 = arith.addf %148, %153 : vector<32x128xf32>
    %155 = vector.extract_strided_slice %0 {offsets = [0, 2], sizes = [32, 1], strides = [1, 1]} : vector<32x3xf32> to vector<32x1xf32>
    %c8 = arith.constant 8 : index
    %c0_53 = arith.constant 0 : index
    %156 = vector.load %arg1[%c8, %c0_53] : memref<18x128xf32, #tpu.memory_space<vmem>>, vector<1x128xf32>
    %157 = vector.broadcast %155 : vector<32x1xf32> to vector<32x128xf32>
    %158 = vector.broadcast %156 : vector<1x128xf32> to vector<32x128xf32>
    %159 = arith.mulf %157, %158 : vector<32x128xf32>
    %160 = arith.addf %154, %159 : vector<32x128xf32>
    %161 = vector.broadcast %1 : vector<32x1xf32> to vector<32x128xf32>
    %162 = arith.addf %160, %161 : vector<32x128xf32>
    %cst_54 = arith.constant 0.000000e+00 : f32
    %163 = vector.broadcast %cst_54 : f32 to vector<32x128xf32>
    %164 = arith.maximumf %162, %163 : vector<32x128xf32>
    %165 = arith.truncf %164 : vector<32x128xf32> to vector<32x128xbf16>
    %c0_55 = arith.constant 0 : index
    %c896 = arith.constant 896 : index
    %166 = vector.load %arg14[%c0_55, %c896] : memref<32x2304xbf16, #tpu.memory_space<vmem>>, vector<32x128xbf16>
    tpu.vector_store %arg14[%c0_55, %c896], %165 {strides = array<i32>} : memref<32x2304xbf16, #tpu.memory_space<vmem>>, vector<32x128xbf16>,
    %167 = vector.extract_strided_slice %0 {offsets = [0, 0], sizes = [32, 1], strides = [1, 1]} : vector<32x3xf32> to vector<32x1xf32>
    %c7_56 = arith.constant 7 : index
    %c0_57 = arith.constant 0 : index
    %168 = vector.load %arg1[%c7_56, %c0_57] : memref<18x128xf32, #tpu.memory_space<vmem>>, vector<1x128xf32>
    %169 = vector.broadcast %167 : vector<32x1xf32> to vector<32x128xf32>
    %170 = vector.broadcast %168 : vector<1x128xf32> to vector<32x128xf32>
    %171 = arith.mulf %169, %170 : vector<32x128xf32>
    %172 = vector.extract_strided_slice %0 {offsets = [0, 1], sizes = [32, 1], strides = [1, 1]} : vector<32x3xf32> to vector<32x1xf32>
    %c8_58 = arith.constant 8 : index
    %c0_59 = arith.constant 0 : index
    %173 = vector.load %arg1[%c8_58, %c0_59] : memref<18x128xf32, #tpu.memory_space<vmem>>, vector<1x128xf32>
    %174 = vector.broadcast %172 : vector<32x1xf32> to vector<32x128xf32>
    %175 = vector.broadcast %173 : vector<1x128xf32> to vector<32x128xf32>
    %176 = arith.mulf %174, %175 : vector<32x128xf32>
    %177 = arith.addf %171, %176 : vector<32x128xf32>
    %178 = vector.extract_strided_slice %0 {offsets = [0, 2], sizes = [32, 1], strides = [1, 1]} : vector<32x3xf32> to vector<32x1xf32>
    %c9 = arith.constant 9 : index
    %c0_60 = arith.constant 0 : index
    %179 = vector.load %arg1[%c9, %c0_60] : memref<18x128xf32, #tpu.memory_space<vmem>>, vector<1x128xf32>
    %180 = vector.broadcast %178 : vector<32x1xf32> to vector<32x128xf32>
    %181 = vector.broadcast %179 : vector<1x128xf32> to vector<32x128xf32>
    %182 = arith.mulf %180, %181 : vector<32x128xf32>
    %183 = arith.addf %177, %182 : vector<32x128xf32>
    %184 = vector.broadcast %1 : vector<32x1xf32> to vector<32x128xf32>
    %185 = arith.addf %183, %184 : vector<32x128xf32>
    %cst_61 = arith.constant 0.000000e+00 : f32
    %186 = vector.broadcast %cst_61 : f32 to vector<32x128xf32>
    %187 = arith.maximumf %185, %186 : vector<32x128xf32>
    %188 = arith.truncf %187 : vector<32x128xf32> to vector<32x128xbf16>
    %c0_62 = arith.constant 0 : index
    %c1024 = arith.constant 1024 : index
    %189 = vector.load %arg14[%c0_62, %c1024] : memref<32x2304xbf16, #tpu.memory_space<vmem>>, vector<32x128xbf16>
    tpu.vector_store %arg14[%c0_62, %c1024], %188 {strides = array<i32>} : memref<32x2304xbf16, #tpu.memory_space<vmem>>, vector<32x128xbf16>,
    %190 = vector.extract_strided_slice %0 {offsets = [0, 0], sizes = [32, 1], strides = [1, 1]} : vector<32x3xf32> to vector<32x1xf32>
    %c8_63 = arith.constant 8 : index
    %c0_64 = arith.constant 0 : index
    %191 = vector.load %arg1[%c8_63, %c0_64] : memref<18x128xf32, #tpu.memory_space<vmem>>, vector<1x128xf32>
    %192 = vector.broadcast %190 : vector<32x1xf32> to vector<32x128xf32>
    %193 = vector.broadcast %191 : vector<1x128xf32> to vector<32x128xf32>
    %194 = arith.mulf %192, %193 : vector<32x128xf32>
    %195 = vector.extract_strided_slice %0 {offsets = [0, 1], sizes = [32, 1], strides = [1, 1]} : vector<32x3xf32> to vector<32x1xf32>
    %c9_65 = arith.constant 9 : index
    %c0_66 = arith.constant 0 : index
    %196 = vector.load %arg1[%c9_65, %c0_66] : memref<18x128xf32, #tpu.memory_space<vmem>>, vector<1x128xf32>
    %197 = vector.broadcast %195 : vector<32x1xf32> to vector<32x128xf32>
    %198 = vector.broadcast %196 : vector<1x128xf32> to vector<32x128xf32>
    %199 = arith.mulf %197, %198 : vector<32x128xf32>
    %200 = arith.addf %194, %199 : vector<32x128xf32>
    %201 = vector.extract_strided_slice %0 {offsets = [0, 2], sizes = [32, 1], strides = [1, 1]} : vector<32x3xf32> to vector<32x1xf32>
    %c10 = arith.constant 10 : index
    %c0_67 = arith.constant 0 : index
    %202 = vector.load %arg1[%c10, %c0_67] : memref<18x128xf32, #tpu.memory_space<vmem>>, vector<1x128xf32>
    %203 = vector.broadcast %201 : vector<32x1xf32> to vector<32x128xf32>
    %204 = vector.broadcast %202 : vector<1x128xf32> to vector<32x128xf32>
    %205 = arith.mulf %203, %204 : vector<32x128xf32>
    %206 = arith.addf %200, %205 : vector<32x128xf32>
    %207 = vector.broadcast %1 : vector<32x1xf32> to vector<32x128xf32>
    %208 = arith.addf %206, %207 : vector<32x128xf32>
    %cst_68 = arith.constant 0.000000e+00 : f32
    %209 = vector.broadcast %cst_68 : f32 to vector<32x128xf32>
    %210 = arith.maximumf %208, %209 : vector<32x128xf32>
    %211 = arith.truncf %210 : vector<32x128xf32> to vector<32x128xbf16>
    %c0_69 = arith.constant 0 : index
    %c1152 = arith.constant 1152 : index
    %212 = vector.load %arg14[%c0_69, %c1152] : memref<32x2304xbf16, #tpu.memory_space<vmem>>, vector<32x128xbf16>
    tpu.vector_store %arg14[%c0_69, %c1152], %211 {strides = array<i32>} : memref<32x2304xbf16, #tpu.memory_space<vmem>>, vector<32x128xbf16>,
    %213 = vector.extract_strided_slice %0 {offsets = [0, 0], sizes = [32, 1], strides = [1, 1]} : vector<32x3xf32> to vector<32x1xf32>
    %c9_70 = arith.constant 9 : index
    %c0_71 = arith.constant 0 : index
    %214 = vector.load %arg1[%c9_70, %c0_71] : memref<18x128xf32, #tpu.memory_space<vmem>>, vector<1x128xf32>
    %215 = vector.broadcast %213 : vector<32x1xf32> to vector<32x128xf32>
    %216 = vector.broadcast %214 : vector<1x128xf32> to vector<32x128xf32>
    %217 = arith.mulf %215, %216 : vector<32x128xf32>
    %218 = vector.extract_strided_slice %0 {offsets = [0, 1], sizes = [32, 1], strides = [1, 1]} : vector<32x3xf32> to vector<32x1xf32>
    %c10_72 = arith.constant 10 : index
    %c0_73 = arith.constant 0 : index
    %219 = vector.load %arg1[%c10_72, %c0_73] : memref<18x128xf32, #tpu.memory_space<vmem>>, vector<1x128xf32>
    %220 = vector.broadcast %218 : vector<32x1xf32> to vector<32x128xf32>
    %221 = vector.broadcast %219 : vector<1x128xf32> to vector<32x128xf32>
    %222 = arith.mulf %220, %221 : vector<32x128xf32>
    %223 = arith.addf %217, %222 : vector<32x128xf32>
    %224 = vector.extract_strided_slice %0 {offsets = [0, 2], sizes = [32, 1], strides = [1, 1]} : vector<32x3xf32> to vector<32x1xf32>
    %c11 = arith.constant 11 : index
    %c0_74 = arith.constant 0 : index
    %225 = vector.load %arg1[%c11, %c0_74] : memref<18x128xf32, #tpu.memory_space<vmem>>, vector<1x128xf32>
    %226 = vector.broadcast %224 : vector<32x1xf32> to vector<32x128xf32>
    %227 = vector.broadcast %225 : vector<1x128xf32> to vector<32x128xf32>
    %228 = arith.mulf %226, %227 : vector<32x128xf32>
    %229 = arith.addf %223, %228 : vector<32x128xf32>
    %230 = vector.broadcast %1 : vector<32x1xf32> to vector<32x128xf32>
    %231 = arith.addf %229, %230 : vector<32x128xf32>
    %cst_75 = arith.constant 0.000000e+00 : f32
    %232 = vector.broadcast %cst_75 : f32 to vector<32x128xf32>
    %233 = arith.maximumf %231, %232 : vector<32x128xf32>
    %234 = arith.truncf %233 : vector<32x128xf32> to vector<32x128xbf16>
    %c0_76 = arith.constant 0 : index
    %c1280 = arith.constant 1280 : index
    %235 = vector.load %arg14[%c0_76, %c1280] : memref<32x2304xbf16, #tpu.memory_space<vmem>>, vector<32x128xbf16>
    tpu.vector_store %arg14[%c0_76, %c1280], %234 {strides = array<i32>} : memref<32x2304xbf16, #tpu.memory_space<vmem>>, vector<32x128xbf16>,
    %236 = vector.extract_strided_slice %0 {offsets = [0, 0], sizes = [32, 1], strides = [1, 1]} : vector<32x3xf32> to vector<32x1xf32>
    %c10_77 = arith.constant 10 : index
    %c0_78 = arith.constant 0 : index
    %237 = vector.load %arg1[%c10_77, %c0_78] : memref<18x128xf32, #tpu.memory_space<vmem>>, vector<1x128xf32>
    %238 = vector.broadcast %236 : vector<32x1xf32> to vector<32x128xf32>
    %239 = vector.broadcast %237 : vector<1x128xf32> to vector<32x128xf32>
    %240 = arith.mulf %238, %239 : vector<32x128xf32>
    %241 = vector.extract_strided_slice %0 {offsets = [0, 1], sizes = [32, 1], strides = [1, 1]} : vector<32x3xf32> to vector<32x1xf32>
    %c11_79 = arith.constant 11 : index
    %c0_80 = arith.constant 0 : index
    %242 = vector.load %arg1[%c11_79, %c0_80] : memref<18x128xf32, #tpu.memory_space<vmem>>, vector<1x128xf32>
    %243 = vector.broadcast %241 : vector<32x1xf32> to vector<32x128xf32>
    %244 = vector.broadcast %242 : vector<1x128xf32> to vector<32x128xf32>
    %245 = arith.mulf %243, %244 : vector<32x128xf32>
    %246 = arith.addf %240, %245 : vector<32x128xf32>
    %247 = vector.extract_strided_slice %0 {offsets = [0, 2], sizes = [32, 1], strides = [1, 1]} : vector<32x3xf32> to vector<32x1xf32>
    %c12 = arith.constant 12 : index
    %c0_81 = arith.constant 0 : index
    %248 = vector.load %arg1[%c12, %c0_81] : memref<18x128xf32, #tpu.memory_space<vmem>>, vector<1x128xf32>
    %249 = vector.broadcast %247 : vector<32x1xf32> to vector<32x128xf32>
    %250 = vector.broadcast %248 : vector<1x128xf32> to vector<32x128xf32>
    %251 = arith.mulf %249, %250 : vector<32x128xf32>
    %252 = arith.addf %246, %251 : vector<32x128xf32>
    %253 = vector.broadcast %1 : vector<32x1xf32> to vector<32x128xf32>
    %254 = arith.addf %252, %253 : vector<32x128xf32>
    %cst_82 = arith.constant 0.000000e+00 : f32
    %255 = vector.broadcast %cst_82 : f32 to vector<32x128xf32>
    %256 = arith.maximumf %254, %255 : vector<32x128xf32>
    %257 = arith.truncf %256 : vector<32x128xf32> to vector<32x128xbf16>
    %c0_83 = arith.constant 0 : index
    %c1408 = arith.constant 1408 : index
    %258 = vector.load %arg14[%c0_83, %c1408] : memref<32x2304xbf16, #tpu.memory_space<vmem>>, vector<32x128xbf16>
    tpu.vector_store %arg14[%c0_83, %c1408], %257 {strides = array<i32>} : memref<32x2304xbf16, #tpu.memory_space<vmem>>, vector<32x128xbf16>,
    %259 = vector.extract_strided_slice %0 {offsets = [0, 0], sizes = [32, 1], strides = [1, 1]} : vector<32x3xf32> to vector<32x1xf32>
    %c11_84 = arith.constant 11 : index
    %c0_85 = arith.constant 0 : index
    %260 = vector.load %arg1[%c11_84, %c0_85] : memref<18x128xf32, #tpu.memory_space<vmem>>, vector<1x128xf32>
    %261 = vector.broadcast %259 : vector<32x1xf32> to vector<32x128xf32>
    %262 = vector.broadcast %260 : vector<1x128xf32> to vector<32x128xf32>
    %263 = arith.mulf %261, %262 : vector<32x128xf32>
    %264 = vector.extract_strided_slice %0 {offsets = [0, 1], sizes = [32, 1], strides = [1, 1]} : vector<32x3xf32> to vector<32x1xf32>
    %c12_86 = arith.constant 12 : index
    %c0_87 = arith.constant 0 : index
    %265 = vector.load %arg1[%c12_86, %c0_87] : memref<18x128xf32, #tpu.memory_space<vmem>>, vector<1x128xf32>
    %266 = vector.broadcast %264 : vector<32x1xf32> to vector<32x128xf32>
    %267 = vector.broadcast %265 : vector<1x128xf32> to vector<32x128xf32>
    %268 = arith.mulf %266, %267 : vector<32x128xf32>
    %269 = arith.addf %263, %268 : vector<32x128xf32>
    %270 = vector.extract_strided_slice %0 {offsets = [0, 2], sizes = [32, 1], strides = [1, 1]} : vector<32x3xf32> to vector<32x1xf32>
    %c13 = arith.constant 13 : index
    %c0_88 = arith.constant 0 : index
    %271 = vector.load %arg1[%c13, %c0_88] : memref<18x128xf32, #tpu.memory_space<vmem>>, vector<1x128xf32>
    %272 = vector.broadcast %270 : vector<32x1xf32> to vector<32x128xf32>
    %273 = vector.broadcast %271 : vector<1x128xf32> to vector<32x128xf32>
    %274 = arith.mulf %272, %273 : vector<32x128xf32>
    %275 = arith.addf %269, %274 : vector<32x128xf32>
    %276 = vector.broadcast %1 : vector<32x1xf32> to vector<32x128xf32>
    %277 = arith.addf %275, %276 : vector<32x128xf32>
    %cst_89 = arith.constant 0.000000e+00 : f32
    %278 = vector.broadcast %cst_89 : f32 to vector<32x128xf32>
    %279 = arith.maximumf %277, %278 : vector<32x128xf32>
    %280 = arith.truncf %279 : vector<32x128xf32> to vector<32x128xbf16>
    %c0_90 = arith.constant 0 : index
    %c1536 = arith.constant 1536 : index
    %281 = vector.load %arg14[%c0_90, %c1536] : memref<32x2304xbf16, #tpu.memory_space<vmem>>, vector<32x128xbf16>
    tpu.vector_store %arg14[%c0_90, %c1536], %280 {strides = array<i32>} : memref<32x2304xbf16, #tpu.memory_space<vmem>>, vector<32x128xbf16>,
    %282 = vector.extract_strided_slice %0 {offsets = [0, 0], sizes = [32, 1], strides = [1, 1]} : vector<32x3xf32> to vector<32x1xf32>
    %c12_91 = arith.constant 12 : index
    %c0_92 = arith.constant 0 : index
    %283 = vector.load %arg1[%c12_91, %c0_92] : memref<18x128xf32, #tpu.memory_space<vmem>>, vector<1x128xf32>
    %284 = vector.broadcast %282 : vector<32x1xf32> to vector<32x128xf32>
    %285 = vector.broadcast %283 : vector<1x128xf32> to vector<32x128xf32>
    %286 = arith.mulf %284, %285 : vector<32x128xf32>
    %287 = vector.extract_strided_slice %0 {offsets = [0, 1], sizes = [32, 1], strides = [1, 1]} : vector<32x3xf32> to vector<32x1xf32>
    %c13_93 = arith.constant 13 : index
    %c0_94 = arith.constant 0 : index
    %288 = vector.load %arg1[%c13_93, %c0_94] : memref<18x128xf32, #tpu.memory_space<vmem>>, vector<1x128xf32>
    %289 = vector.broadcast %287 : vector<32x1xf32> to vector<32x128xf32>
    %290 = vector.broadcast %288 : vector<1x128xf32> to vector<32x128xf32>
    %291 = arith.mulf %289, %290 : vector<32x128xf32>
    %292 = arith.addf %286, %291 : vector<32x128xf32>
    %293 = vector.extract_strided_slice %0 {offsets = [0, 2], sizes = [32, 1], strides = [1, 1]} : vector<32x3xf32> to vector<32x1xf32>
    %c14 = arith.constant 14 : index
    %c0_95 = arith.constant 0 : index
    %294 = vector.load %arg1[%c14, %c0_95] : memref<18x128xf32, #tpu.memory_space<vmem>>, vector<1x128xf32>
    %295 = vector.broadcast %293 : vector<32x1xf32> to vector<32x128xf32>
    %296 = vector.broadcast %294 : vector<1x128xf32> to vector<32x128xf32>
    %297 = arith.mulf %295, %296 : vector<32x128xf32>
    %298 = arith.addf %292, %297 : vector<32x128xf32>
    %299 = vector.broadcast %1 : vector<32x1xf32> to vector<32x128xf32>
    %300 = arith.addf %298, %299 : vector<32x128xf32>
    %cst_96 = arith.constant 0.000000e+00 : f32
    %301 = vector.broadcast %cst_96 : f32 to vector<32x128xf32>
    %302 = arith.maximumf %300, %301 : vector<32x128xf32>
    %303 = arith.truncf %302 : vector<32x128xf32> to vector<32x128xbf16>
    %c0_97 = arith.constant 0 : index
    %c1664 = arith.constant 1664 : index
    %304 = vector.load %arg14[%c0_97, %c1664] : memref<32x2304xbf16, #tpu.memory_space<vmem>>, vector<32x128xbf16>
    tpu.vector_store %arg14[%c0_97, %c1664], %303 {strides = array<i32>} : memref<32x2304xbf16, #tpu.memory_space<vmem>>, vector<32x128xbf16>,
    %305 = vector.extract_strided_slice %0 {offsets = [0, 0], sizes = [32, 1], strides = [1, 1]} : vector<32x3xf32> to vector<32x1xf32>
    %c13_98 = arith.constant 13 : index
    %c0_99 = arith.constant 0 : index
    %306 = vector.load %arg1[%c13_98, %c0_99] : memref<18x128xf32, #tpu.memory_space<vmem>>, vector<1x128xf32>
    %307 = vector.broadcast %305 : vector<32x1xf32> to vector<32x128xf32>
    %308 = vector.broadcast %306 : vector<1x128xf32> to vector<32x128xf32>
    %309 = arith.mulf %307, %308 : vector<32x128xf32>
    %310 = vector.extract_strided_slice %0 {offsets = [0, 1], sizes = [32, 1], strides = [1, 1]} : vector<32x3xf32> to vector<32x1xf32>
    %c14_100 = arith.constant 14 : index
    %c0_101 = arith.constant 0 : index
    %311 = vector.load %arg1[%c14_100, %c0_101] : memref<18x128xf32, #tpu.memory_space<vmem>>, vector<1x128xf32>
    %312 = vector.broadcast %310 : vector<32x1xf32> to vector<32x128xf32>
    %313 = vector.broadcast %311 : vector<1x128xf32> to vector<32x128xf32>
    %314 = arith.mulf %312, %313 : vector<32x128xf32>
    %315 = arith.addf %309, %314 : vector<32x128xf32>
    %316 = vector.extract_strided_slice %0 {offsets = [0, 2], sizes = [32, 1], strides = [1, 1]} : vector<32x3xf32> to vector<32x1xf32>
    %c15 = arith.constant 15 : index
    %c0_102 = arith.constant 0 : index
    %317 = vector.load %arg1[%c15, %c0_102] : memref<18x128xf32, #tpu.memory_space<vmem>>, vector<1x128xf32>
    %318 = vector.broadcast %316 : vector<32x1xf32> to vector<32x128xf32>
    %319 = vector.broadcast %317 : vector<1x128xf32> to vector<32x128xf32>
    %320 = arith.mulf %318, %319 : vector<32x128xf32>
    %321 = arith.addf %315, %320 : vector<32x128xf32>
    %322 = vector.broadcast %1 : vector<32x1xf32> to vector<32x128xf32>
    %323 = arith.addf %321, %322 : vector<32x128xf32>
    %cst_103 = arith.constant 0.000000e+00 : f32
    %324 = vector.broadcast %cst_103 : f32 to vector<32x128xf32>
    %325 = arith.maximumf %323, %324 : vector<32x128xf32>
    %326 = arith.truncf %325 : vector<32x128xf32> to vector<32x128xbf16>
    %c0_104 = arith.constant 0 : index
    %c1792 = arith.constant 1792 : index
    %327 = vector.load %arg14[%c0_104, %c1792] : memref<32x2304xbf16, #tpu.memory_space<vmem>>, vector<32x128xbf16>
    tpu.vector_store %arg14[%c0_104, %c1792], %326 {strides = array<i32>} : memref<32x2304xbf16, #tpu.memory_space<vmem>>, vector<32x128xbf16>,
    %328 = vector.extract_strided_slice %0 {offsets = [0, 0], sizes = [32, 1], strides = [1, 1]} : vector<32x3xf32> to vector<32x1xf32>
    %c14_105 = arith.constant 14 : index
    %c0_106 = arith.constant 0 : index
    %329 = vector.load %arg1[%c14_105, %c0_106] : memref<18x128xf32, #tpu.memory_space<vmem>>, vector<1x128xf32>
    %330 = vector.broadcast %328 : vector<32x1xf32> to vector<32x128xf32>
    %331 = vector.broadcast %329 : vector<1x128xf32> to vector<32x128xf32>
    %332 = arith.mulf %330, %331 : vector<32x128xf32>
    %333 = vector.extract_strided_slice %0 {offsets = [0, 1], sizes = [32, 1], strides = [1, 1]} : vector<32x3xf32> to vector<32x1xf32>
    %c15_107 = arith.constant 15 : index
    %c0_108 = arith.constant 0 : index
    %334 = vector.load %arg1[%c15_107, %c0_108] : memref<18x128xf32, #tpu.memory_space<vmem>>, vector<1x128xf32>
    %335 = vector.broadcast %333 : vector<32x1xf32> to vector<32x128xf32>
    %336 = vector.broadcast %334 : vector<1x128xf32> to vector<32x128xf32>
    %337 = arith.mulf %335, %336 : vector<32x128xf32>
    %338 = arith.addf %332, %337 : vector<32x128xf32>
    %339 = vector.extract_strided_slice %0 {offsets = [0, 2], sizes = [32, 1], strides = [1, 1]} : vector<32x3xf32> to vector<32x1xf32>
    %c16 = arith.constant 16 : index
    %c0_109 = arith.constant 0 : index
    %340 = vector.load %arg1[%c16, %c0_109] : memref<18x128xf32, #tpu.memory_space<vmem>>, vector<1x128xf32>
    %341 = vector.broadcast %339 : vector<32x1xf32> to vector<32x128xf32>
    %342 = vector.broadcast %340 : vector<1x128xf32> to vector<32x128xf32>
    %343 = arith.mulf %341, %342 : vector<32x128xf32>
    %344 = arith.addf %338, %343 : vector<32x128xf32>
    %345 = vector.broadcast %1 : vector<32x1xf32> to vector<32x128xf32>
    %346 = arith.addf %344, %345 : vector<32x128xf32>
    %cst_110 = arith.constant 0.000000e+00 : f32
    %347 = vector.broadcast %cst_110 : f32 to vector<32x128xf32>
    %348 = arith.maximumf %346, %347 : vector<32x128xf32>
    %349 = arith.truncf %348 : vector<32x128xf32> to vector<32x128xbf16>
    %c0_111 = arith.constant 0 : index
    %c1920 = arith.constant 1920 : index
    %350 = vector.load %arg14[%c0_111, %c1920] : memref<32x2304xbf16, #tpu.memory_space<vmem>>, vector<32x128xbf16>
    tpu.vector_store %arg14[%c0_111, %c1920], %349 {strides = array<i32>} : memref<32x2304xbf16, #tpu.memory_space<vmem>>, vector<32x128xbf16>,
    %351 = vector.extract_strided_slice %0 {offsets = [0, 0], sizes = [32, 1], strides = [1, 1]} : vector<32x3xf32> to vector<32x1xf32>
    %c15_112 = arith.constant 15 : index
    %c0_113 = arith.constant 0 : index
    %352 = vector.load %arg1[%c15_112, %c0_113] : memref<18x128xf32, #tpu.memory_space<vmem>>, vector<1x128xf32>
    %353 = vector.broadcast %351 : vector<32x1xf32> to vector<32x128xf32>
    %354 = vector.broadcast %352 : vector<1x128xf32> to vector<32x128xf32>
    %355 = arith.mulf %353, %354 : vector<32x128xf32>
    %356 = vector.extract_strided_slice %0 {offsets = [0, 1], sizes = [32, 1], strides = [1, 1]} : vector<32x3xf32> to vector<32x1xf32>
    %c16_114 = arith.constant 16 : index
    %c0_115 = arith.constant 0 : index
    %357 = vector.load %arg1[%c16_114, %c0_115] : memref<18x128xf32, #tpu.memory_space<vmem>>, vector<1x128xf32>
    %358 = vector.broadcast %356 : vector<32x1xf32> to vector<32x128xf32>
    %359 = vector.broadcast %357 : vector<1x128xf32> to vector<32x128xf32>
    %360 = arith.mulf %358, %359 : vector<32x128xf32>
    %361 = arith.addf %355, %360 : vector<32x128xf32>
    %362 = vector.extract_strided_slice %0 {offsets = [0, 2], sizes = [32, 1], strides = [1, 1]} : vector<32x3xf32> to vector<32x1xf32>
    %c17 = arith.constant 17 : index
    %c0_116 = arith.constant 0 : index
    %363 = vector.load %arg1[%c17, %c0_116] : memref<18x128xf32, #tpu.memory_space<vmem>>, vector<1x128xf32>
    %364 = vector.broadcast %362 : vector<32x1xf32> to vector<32x128xf32>
    %365 = vector.broadcast %363 : vector<1x128xf32> to vector<32x128xf32>
    %366 = arith.mulf %364, %365 : vector<32x128xf32>
    %367 = arith.addf %361, %366 : vector<32x128xf32>
    %368 = vector.broadcast %1 : vector<32x1xf32> to vector<32x128xf32>
    %369 = arith.addf %367, %368 : vector<32x128xf32>
    %cst_117 = arith.constant 0.000000e+00 : f32
    %370 = vector.broadcast %cst_117 : f32 to vector<32x128xf32>
    %371 = arith.maximumf %369, %370 : vector<32x128xf32>
    %372 = arith.truncf %371 : vector<32x128xf32> to vector<32x128xbf16>
    %c0_118 = arith.constant 0 : index
    %c2048 = arith.constant 2048 : index
    %373 = vector.load %arg14[%c0_118, %c2048] : memref<32x2304xbf16, #tpu.memory_space<vmem>>, vector<32x128xbf16>
    tpu.vector_store %arg14[%c0_118, %c2048], %372 {strides = array<i32>} : memref<32x2304xbf16, #tpu.memory_space<vmem>>, vector<32x128xbf16>,
    %cst_119 = arith.constant 0.000000e+00 : f32
    %374 = vector.broadcast %cst_119 : f32 to vector<256x128xf32>
    %c0_120 = arith.constant 0 : index
    %c0_121 = arith.constant 0 : index
    %375 = vector.load %arg15[%c0_120, %c0_121] : memref<256x128xf32, #tpu.memory_space<vmem>>, vector<256x128xf32>
    tpu.vector_store %arg15[%c0_120, %c0_121], %374 {strides = array<i32>} : memref<256x128xf32, #tpu.memory_space<vmem>>, vector<256x128xf32>,
    %c0_122 = arith.constant 0 : index
    %c0_123 = arith.constant 0 : index
    %c0_124 = arith.constant 0 : index
    %376 = vector.load %arg4[%c0_122, %c0_123, %c0_124] : memref<3x64x32xbf16, #tpu.memory_space<vmem>>, vector<1x64x32xbf16>
    %377 = vector.shape_cast %376 : vector<1x64x32xbf16> to vector<64x32xbf16>
    %c0_125 = arith.constant 0 : index
    %c0_126 = arith.constant 0 : index
    %378 = vector.load %arg14[%c0_125, %c0_126] : memref<32x2304xbf16, #tpu.memory_space<vmem>>, vector<32x128xbf16>
    %cst_127 = arith.constant dense<0.000000e+00> : vector<64x128xf32>
    %379 = tpu.matmul %377, %378, %cst_127 {dimension_numbers = #tpu.dot_dimension_numbers<[1], [0], [0], [1], [0, 0, 1, 1], [], []>} : vector<64x32xbf16>, vector<32x128xbf16>, vector<64x128xf32> -> vector<64x128xf32>
    %c1_128 = arith.constant 1 : index
    %c0_129 = arith.constant 0 : index
    %c0_130 = arith.constant 0 : index
    %380 = vector.load %arg4[%c1_128, %c0_129, %c0_130] : memref<3x64x32xbf16, #tpu.memory_space<vmem>>, vector<1x64x32xbf16>
    %381 = vector.shape_cast %380 : vector<1x64x32xbf16> to vector<64x32xbf16>
    %c0_131 = arith.constant 0 : index
    %c128_132 = arith.constant 128 : index
    %382 = vector.load %arg14[%c0_131, %c128_132] : memref<32x2304xbf16, #tpu.memory_space<vmem>>, vector<32x128xbf16>
    %cst_133 = arith.constant dense<0.000000e+00> : vector<64x128xf32>
    %383 = tpu.matmul %381, %382, %cst_133 {dimension_numbers = #tpu.dot_dimension_numbers<[1], [0], [0], [1], [0, 0, 1, 1], [], []>} : vector<64x32xbf16>, vector<32x128xbf16>, vector<64x128xf32> -> vector<64x128xf32>
    %384 = arith.addf %379, %383 : vector<64x128xf32>
    %c2_134 = arith.constant 2 : index
    %c0_135 = arith.constant 0 : index
    %c0_136 = arith.constant 0 : index
    %385 = vector.load %arg4[%c2_134, %c0_135, %c0_136] : memref<3x64x32xbf16, #tpu.memory_space<vmem>>, vector<1x64x32xbf16>
    %386 = vector.shape_cast %385 : vector<1x64x32xbf16> to vector<64x32xbf16>
    %c0_137 = arith.constant 0 : index
    %c256_138 = arith.constant 256 : index
    %387 = vector.load %arg14[%c0_137, %c256_138] : memref<32x2304xbf16, #tpu.memory_space<vmem>>, vector<32x128xbf16>
    %cst_139 = arith.constant dense<0.000000e+00> : vector<64x128xf32>
    %388 = tpu.matmul %386, %387, %cst_139 {dimension_numbers = #tpu.dot_dimension_numbers<[1], [0], [0], [1], [0, 0, 1, 1], [], []>} : vector<64x32xbf16>, vector<32x128xbf16>, vector<64x128xf32> -> vector<64x128xf32>
    %389 = arith.addf %384, %388 : vector<64x128xf32>
    %390 = vector.broadcast %2 : vector<64x1xf32> to vector<64x128xf32>
    %391 = arith.addf %389, %390 : vector<64x128xf32>
    %cst_140 = arith.constant 0.000000e+00 : f32
    %392 = vector.broadcast %cst_140 : f32 to vector<64x128xf32>
    %393 = arith.maximumf %391, %392 : vector<64x128xf32>
    %394 = arith.truncf %393 : vector<64x128xf32> to vector<64x128xbf16>
    %c0_141 = arith.constant 0 : index
    %c0_142 = arith.constant 0 : index
    %395 = vector.load %arg15[%c0_141, %c0_142] : memref<256x128xf32, #tpu.memory_space<vmem>>, vector<256x128xf32>
    %c0_143 = arith.constant 0 : index
    %c0_144 = arith.constant 0 : index
    %c0_145 = arith.constant 0 : index
    %396 = vector.load %arg6[%c0_143, %c0_144, %c0_145] : memref<16x256x64xbf16, #tpu.memory_space<vmem>>, vector<1x256x64xbf16>
    %397 = vector.shape_cast %396 : vector<1x256x64xbf16> to vector<256x64xbf16>
    %cst_146 = arith.constant dense<0.000000e+00> : vector<256x128xf32>
    %398 = tpu.matmul %397, %394, %cst_146 {dimension_numbers = #tpu.dot_dimension_numbers<[1], [0], [0], [1], [0, 0, 1, 1], [], []>} : vector<256x64xbf16>, vector<64x128xbf16>, vector<256x128xf32> -> vector<256x128xf32>
    %399 = arith.addf %395, %398 : vector<256x128xf32>
    %c0_147 = arith.constant 0 : index
    %c0_148 = arith.constant 0 : index
    %400 = vector.load %arg15[%c0_147, %c0_148] : memref<256x128xf32, #tpu.memory_space<vmem>>, vector<256x128xf32>
    tpu.vector_store %arg15[%c0_147, %c0_148], %399 {strides = array<i32>} : memref<256x128xf32, #tpu.memory_space<vmem>>, vector<256x128xf32>,
    %c0_149 = arith.constant 0 : index
    %c0_150 = arith.constant 0 : index
    %c0_151 = arith.constant 0 : index
    %401 = vector.load %arg4[%c0_149, %c0_150, %c0_151] : memref<3x64x32xbf16, #tpu.memory_space<vmem>>, vector<1x64x32xbf16>
    %402 = vector.shape_cast %401 : vector<1x64x32xbf16> to vector<64x32xbf16>
    %c0_152 = arith.constant 0 : index
    %c128_153 = arith.constant 128 : index
    %403 = vector.load %arg14[%c0_152, %c128_153] : memref<32x2304xbf16, #tpu.memory_space<vmem>>, vector<32x128xbf16>
    %cst_154 = arith.constant dense<0.000000e+00> : vector<64x128xf32>
    %404 = tpu.matmul %402, %403, %cst_154 {dimension_numbers = #tpu.dot_dimension_numbers<[1], [0], [0], [1], [0, 0, 1, 1], [], []>} : vector<64x32xbf16>, vector<32x128xbf16>, vector<64x128xf32> -> vector<64x128xf32>
    %c1_155 = arith.constant 1 : index
    %c0_156 = arith.constant 0 : index
    %c0_157 = arith.constant 0 : index
    %405 = vector.load %arg4[%c1_155, %c0_156, %c0_157] : memref<3x64x32xbf16, #tpu.memory_space<vmem>>, vector<1x64x32xbf16>
    %406 = vector.shape_cast %405 : vector<1x64x32xbf16> to vector<64x32xbf16>
    %c0_158 = arith.constant 0 : index
    %c256_159 = arith.constant 256 : index
    %407 = vector.load %arg14[%c0_158, %c256_159] : memref<32x2304xbf16, #tpu.memory_space<vmem>>, vector<32x128xbf16>
    %cst_160 = arith.constant dense<0.000000e+00> : vector<64x128xf32>
    %408 = tpu.matmul %406, %407, %cst_160 {dimension_numbers = #tpu.dot_dimension_numbers<[1], [0], [0], [1], [0, 0, 1, 1], [], []>} : vector<64x32xbf16>, vector<32x128xbf16>, vector<64x128xf32> -> vector<64x128xf32>
    %409 = arith.addf %404, %408 : vector<64x128xf32>
    %c2_161 = arith.constant 2 : index
    %c0_162 = arith.constant 0 : index
    %c0_163 = arith.constant 0 : index
    %410 = vector.load %arg4[%c2_161, %c0_162, %c0_163] : memref<3x64x32xbf16, #tpu.memory_space<vmem>>, vector<1x64x32xbf16>
    %411 = vector.shape_cast %410 : vector<1x64x32xbf16> to vector<64x32xbf16>
    %c0_164 = arith.constant 0 : index
    %c384_165 = arith.constant 384 : index
    %412 = vector.load %arg14[%c0_164, %c384_165] : memref<32x2304xbf16, #tpu.memory_space<vmem>>, vector<32x128xbf16>
    %cst_166 = arith.constant dense<0.000000e+00> : vector<64x128xf32>
    %413 = tpu.matmul %411, %412, %cst_166 {dimension_numbers = #tpu.dot_dimension_numbers<[1], [0], [0], [1], [0, 0, 1, 1], [], []>} : vector<64x32xbf16>, vector<32x128xbf16>, vector<64x128xf32> -> vector<64x128xf32>
    %414 = arith.addf %409, %413 : vector<64x128xf32>
    %415 = vector.broadcast %2 : vector<64x1xf32> to vector<64x128xf32>
    %416 = arith.addf %414, %415 : vector<64x128xf32>
    %cst_167 = arith.constant 0.000000e+00 : f32
    %417 = vector.broadcast %cst_167 : f32 to vector<64x128xf32>
    %418 = arith.maximumf %416, %417 : vector<64x128xf32>
    %419 = arith.truncf %418 : vector<64x128xf32> to vector<64x128xbf16>
    %c0_168 = arith.constant 0 : index
    %c0_169 = arith.constant 0 : index
    %420 = vector.load %arg15[%c0_168, %c0_169] : memref<256x128xf32, #tpu.memory_space<vmem>>, vector<256x128xf32>
    %c1_170 = arith.constant 1 : index
    %c0_171 = arith.constant 0 : index
    %c0_172 = arith.constant 0 : index
    %421 = vector.load %arg6[%c1_170, %c0_171, %c0_172] : memref<16x256x64xbf16, #tpu.memory_space<vmem>>, vector<1x256x64xbf16>
    %422 = vector.shape_cast %421 : vector<1x256x64xbf16> to vector<256x64xbf16>
    %cst_173 = arith.constant dense<0.000000e+00> : vector<256x128xf32>
    %423 = tpu.matmul %422, %419, %cst_173 {dimension_numbers = #tpu.dot_dimension_numbers<[1], [0], [0], [1], [0, 0, 1, 1], [], []>} : vector<256x64xbf16>, vector<64x128xbf16>, vector<256x128xf32> -> vector<256x128xf32>
    %424 = arith.addf %420, %423 : vector<256x128xf32>
    %c0_174 = arith.constant 0 : index
    %c0_175 = arith.constant 0 : index
    %425 = vector.load %arg15[%c0_174, %c0_175] : memref<256x128xf32, #tpu.memory_space<vmem>>, vector<256x128xf32>
    tpu.vector_store %arg15[%c0_174, %c0_175], %424 {strides = array<i32>} : memref<256x128xf32, #tpu.memory_space<vmem>>, vector<256x128xf32>,
    %c0_176 = arith.constant 0 : index
    %c0_177 = arith.constant 0 : index
    %c0_178 = arith.constant 0 : index
    %426 = vector.load %arg4[%c0_176, %c0_177, %c0_178] : memref<3x64x32xbf16, #tpu.memory_space<vmem>>, vector<1x64x32xbf16>
    %427 = vector.shape_cast %426 : vector<1x64x32xbf16> to vector<64x32xbf16>
    %c0_179 = arith.constant 0 : index
    %c256_180 = arith.constant 256 : index
    %428 = vector.load %arg14[%c0_179, %c256_180] : memref<32x2304xbf16, #tpu.memory_space<vmem>>, vector<32x128xbf16>
    %cst_181 = arith.constant dense<0.000000e+00> : vector<64x128xf32>
    %429 = tpu.matmul %427, %428, %cst_181 {dimension_numbers = #tpu.dot_dimension_numbers<[1], [0], [0], [1], [0, 0, 1, 1], [], []>} : vector<64x32xbf16>, vector<32x128xbf16>, vector<64x128xf32> -> vector<64x128xf32>
    %c1_182 = arith.constant 1 : index
    %c0_183 = arith.constant 0 : index
    %c0_184 = arith.constant 0 : index
    %430 = vector.load %arg4[%c1_182, %c0_183, %c0_184] : memref<3x64x32xbf16, #tpu.memory_space<vmem>>, vector<1x64x32xbf16>
    %431 = vector.shape_cast %430 : vector<1x64x32xbf16> to vector<64x32xbf16>
    %c0_185 = arith.constant 0 : index
    %c384_186 = arith.constant 384 : index
    %432 = vector.load %arg14[%c0_185, %c384_186] : memref<32x2304xbf16, #tpu.memory_space<vmem>>, vector<32x128xbf16>
    %cst_187 = arith.constant dense<0.000000e+00> : vector<64x128xf32>
    %433 = tpu.matmul %431, %432, %cst_187 {dimension_numbers = #tpu.dot_dimension_numbers<[1], [0], [0], [1], [0, 0, 1, 1], [], []>} : vector<64x32xbf16>, vector<32x128xbf16>, vector<64x128xf32> -> vector<64x128xf32>
    %434 = arith.addf %429, %433 : vector<64x128xf32>
    %c2_188 = arith.constant 2 : index
    %c0_189 = arith.constant 0 : index
    %c0_190 = arith.constant 0 : index
    %435 = vector.load %arg4[%c2_188, %c0_189, %c0_190] : memref<3x64x32xbf16, #tpu.memory_space<vmem>>, vector<1x64x32xbf16>
    %436 = vector.shape_cast %435 : vector<1x64x32xbf16> to vector<64x32xbf16>
    %c0_191 = arith.constant 0 : index
    %c512_192 = arith.constant 512 : index
    %437 = vector.load %arg14[%c0_191, %c512_192] : memref<32x2304xbf16, #tpu.memory_space<vmem>>, vector<32x128xbf16>
    %cst_193 = arith.constant dense<0.000000e+00> : vector<64x128xf32>
    %438 = tpu.matmul %436, %437, %cst_193 {dimension_numbers = #tpu.dot_dimension_numbers<[1], [0], [0], [1], [0, 0, 1, 1], [], []>} : vector<64x32xbf16>, vector<32x128xbf16>, vector<64x128xf32> -> vector<64x128xf32>
    %439 = arith.addf %434, %438 : vector<64x128xf32>
    %440 = vector.broadcast %2 : vector<64x1xf32> to vector<64x128xf32>
    %441 = arith.addf %439, %440 : vector<64x128xf32>
    %cst_194 = arith.constant 0.000000e+00 : f32
    %442 = vector.broadcast %cst_194 : f32 to vector<64x128xf32>
    %443 = arith.maximumf %441, %442 : vector<64x128xf32>
    %444 = arith.truncf %443 : vector<64x128xf32> to vector<64x128xbf16>
    %c0_195 = arith.constant 0 : index
    %c0_196 = arith.constant 0 : index
    %445 = vector.load %arg15[%c0_195, %c0_196] : memref<256x128xf32, #tpu.memory_space<vmem>>, vector<256x128xf32>
    %c2_197 = arith.constant 2 : index
    %c0_198 = arith.constant 0 : index
    %c0_199 = arith.constant 0 : index
    %446 = vector.load %arg6[%c2_197, %c0_198, %c0_199] : memref<16x256x64xbf16, #tpu.memory_space<vmem>>, vector<1x256x64xbf16>
    %447 = vector.shape_cast %446 : vector<1x256x64xbf16> to vector<256x64xbf16>
    %cst_200 = arith.constant dense<0.000000e+00> : vector<256x128xf32>
    %448 = tpu.matmul %447, %444, %cst_200 {dimension_numbers = #tpu.dot_dimension_numbers<[1], [0], [0], [1], [0, 0, 1, 1], [], []>} : vector<256x64xbf16>, vector<64x128xbf16>, vector<256x128xf32> -> vector<256x128xf32>
    %449 = arith.addf %445, %448 : vector<256x128xf32>
    %c0_201 = arith.constant 0 : index
    %c0_202 = arith.constant 0 : index
    %450 = vector.load %arg15[%c0_201, %c0_202] : memref<256x128xf32, #tpu.memory_space<vmem>>, vector<256x128xf32>
    tpu.vector_store %arg15[%c0_201, %c0_202], %449 {strides = array<i32>} : memref<256x128xf32, #tpu.memory_space<vmem>>, vector<256x128xf32>,
    %c0_203 = arith.constant 0 : index
    %c0_204 = arith.constant 0 : index
    %c0_205 = arith.constant 0 : index
    %451 = vector.load %arg4[%c0_203, %c0_204, %c0_205] : memref<3x64x32xbf16, #tpu.memory_space<vmem>>, vector<1x64x32xbf16>
    %452 = vector.shape_cast %451 : vector<1x64x32xbf16> to vector<64x32xbf16>
    %c0_206 = arith.constant 0 : index
    %c384_207 = arith.constant 384 : index
    %453 = vector.load %arg14[%c0_206, %c384_207] : memref<32x2304xbf16, #tpu.memory_space<vmem>>, vector<32x128xbf16>
    %cst_208 = arith.constant dense<0.000000e+00> : vector<64x128xf32>
    %454 = tpu.matmul %452, %453, %cst_208 {dimension_numbers = #tpu.dot_dimension_numbers<[1], [0], [0], [1], [0, 0, 1, 1], [], []>} : vector<64x32xbf16>, vector<32x128xbf16>, vector<64x128xf32> -> vector<64x128xf32>
    %c1_209 = arith.constant 1 : index
    %c0_210 = arith.constant 0 : index
    %c0_211 = arith.constant 0 : index
    %455 = vector.load %arg4[%c1_209, %c0_210, %c0_211] : memref<3x64x32xbf16, #tpu.memory_space<vmem>>, vector<1x64x32xbf16>
    %456 = vector.shape_cast %455 : vector<1x64x32xbf16> to vector<64x32xbf16>
    %c0_212 = arith.constant 0 : index
    %c512_213 = arith.constant 512 : index
    %457 = vector.load %arg14[%c0_212, %c512_213] : memref<32x2304xbf16, #tpu.memory_space<vmem>>, vector<32x128xbf16>
    %cst_214 = arith.constant dense<0.000000e+00> : vector<64x128xf32>
    %458 = tpu.matmul %456, %457, %cst_214 {dimension_numbers = #tpu.dot_dimension_numbers<[1], [0], [0], [1], [0, 0, 1, 1], [], []>} : vector<64x32xbf16>, vector<32x128xbf16>, vector<64x128xf32> -> vector<64x128xf32>
    %459 = arith.addf %454, %458 : vector<64x128xf32>
    %c2_215 = arith.constant 2 : index
    %c0_216 = arith.constant 0 : index
    %c0_217 = arith.constant 0 : index
    %460 = vector.load %arg4[%c2_215, %c0_216, %c0_217] : memref<3x64x32xbf16, #tpu.memory_space<vmem>>, vector<1x64x32xbf16>
    %461 = vector.shape_cast %460 : vector<1x64x32xbf16> to vector<64x32xbf16>
    %c0_218 = arith.constant 0 : index
    %c640_219 = arith.constant 640 : index
    %462 = vector.load %arg14[%c0_218, %c640_219] : memref<32x2304xbf16, #tpu.memory_space<vmem>>, vector<32x128xbf16>
    %cst_220 = arith.constant dense<0.000000e+00> : vector<64x128xf32>
    %463 = tpu.matmul %461, %462, %cst_220 {dimension_numbers = #tpu.dot_dimension_numbers<[1], [0], [0], [1], [0, 0, 1, 1], [], []>} : vector<64x32xbf16>, vector<32x128xbf16>, vector<64x128xf32> -> vector<64x128xf32>
    %464 = arith.addf %459, %463 : vector<64x128xf32>
    %465 = vector.broadcast %2 : vector<64x1xf32> to vector<64x128xf32>
    %466 = arith.addf %464, %465 : vector<64x128xf32>
    %cst_221 = arith.constant 0.000000e+00 : f32
    %467 = vector.broadcast %cst_221 : f32 to vector<64x128xf32>
    %468 = arith.maximumf %466, %467 : vector<64x128xf32>
    %469 = arith.truncf %468 : vector<64x128xf32> to vector<64x128xbf16>
    %c0_222 = arith.constant 0 : index
    %c0_223 = arith.constant 0 : index
    %470 = vector.load %arg15[%c0_222, %c0_223] : memref<256x128xf32, #tpu.memory_space<vmem>>, vector<256x128xf32>
    %c3_224 = arith.constant 3 : index
    %c0_225 = arith.constant 0 : index
    %c0_226 = arith.constant 0 : index
    %471 = vector.load %arg6[%c3_224, %c0_225, %c0_226] : memref<16x256x64xbf16, #tpu.memory_space<vmem>>, vector<1x256x64xbf16>
    %472 = vector.shape_cast %471 : vector<1x256x64xbf16> to vector<256x64xbf16>
    %cst_227 = arith.constant dense<0.000000e+00> : vector<256x128xf32>
    %473 = tpu.matmul %472, %469, %cst_227 {dimension_numbers = #tpu.dot_dimension_numbers<[1], [0], [0], [1], [0, 0, 1, 1], [], []>} : vector<256x64xbf16>, vector<64x128xbf16>, vector<256x128xf32> -> vector<256x128xf32>
    %474 = arith.addf %470, %473 : vector<256x128xf32>
    %c0_228 = arith.constant 0 : index
    %c0_229 = arith.constant 0 : index
    %475 = vector.load %arg15[%c0_228, %c0_229] : memref<256x128xf32, #tpu.memory_space<vmem>>, vector<256x128xf32>
    tpu.vector_store %arg15[%c0_228, %c0_229], %474 {strides = array<i32>} : memref<256x128xf32, #tpu.memory_space<vmem>>, vector<256x128xf32>,
    %c0_230 = arith.constant 0 : index
    %c0_231 = arith.constant 0 : index
    %c0_232 = arith.constant 0 : index
    %476 = vector.load %arg4[%c0_230, %c0_231, %c0_232] : memref<3x64x32xbf16, #tpu.memory_space<vmem>>, vector<1x64x32xbf16>
    %477 = vector.shape_cast %476 : vector<1x64x32xbf16> to vector<64x32xbf16>
    %c0_233 = arith.constant 0 : index
    %c512_234 = arith.constant 512 : index
    %478 = vector.load %arg14[%c0_233, %c512_234] : memref<32x2304xbf16, #tpu.memory_space<vmem>>, vector<32x128xbf16>
    %cst_235 = arith.constant dense<0.000000e+00> : vector<64x128xf32>
    %479 = tpu.matmul %477, %478, %cst_235 {dimension_numbers = #tpu.dot_dimension_numbers<[1], [0], [0], [1], [0, 0, 1, 1], [], []>} : vector<64x32xbf16>, vector<32x128xbf16>, vector<64x128xf32> -> vector<64x128xf32>
    %c1_236 = arith.constant 1 : index
    %c0_237 = arith.constant 0 : index
    %c0_238 = arith.constant 0 : index
    %480 = vector.load %arg4[%c1_236, %c0_237, %c0_238] : memref<3x64x32xbf16, #tpu.memory_space<vmem>>, vector<1x64x32xbf16>
    %481 = vector.shape_cast %480 : vector<1x64x32xbf16> to vector<64x32xbf16>
    %c0_239 = arith.constant 0 : index
    %c640_240 = arith.constant 640 : index
    %482 = vector.load %arg14[%c0_239, %c640_240] : memref<32x2304xbf16, #tpu.memory_space<vmem>>, vector<32x128xbf16>
    %cst_241 = arith.constant dense<0.000000e+00> : vector<64x128xf32>
    %483 = tpu.matmul %481, %482, %cst_241 {dimension_numbers = #tpu.dot_dimension_numbers<[1], [0], [0], [1], [0, 0, 1, 1], [], []>} : vector<64x32xbf16>, vector<32x128xbf16>, vector<64x128xf32> -> vector<64x128xf32>
    %484 = arith.addf %479, %483 : vector<64x128xf32>
    %c2_242 = arith.constant 2 : index
    %c0_243 = arith.constant 0 : index
    %c0_244 = arith.constant 0 : index
    %485 = vector.load %arg4[%c2_242, %c0_243, %c0_244] : memref<3x64x32xbf16, #tpu.memory_space<vmem>>, vector<1x64x32xbf16>
    %486 = vector.shape_cast %485 : vector<1x64x32xbf16> to vector<64x32xbf16>
    %c0_245 = arith.constant 0 : index
    %c768_246 = arith.constant 768 : index
    %487 = vector.load %arg14[%c0_245, %c768_246] : memref<32x2304xbf16, #tpu.memory_space<vmem>>, vector<32x128xbf16>
    %cst_247 = arith.constant dense<0.000000e+00> : vector<64x128xf32>
    %488 = tpu.matmul %486, %487, %cst_247 {dimension_numbers = #tpu.dot_dimension_numbers<[1], [0], [0], [1], [0, 0, 1, 1], [], []>} : vector<64x32xbf16>, vector<32x128xbf16>, vector<64x128xf32> -> vector<64x128xf32>
    %489 = arith.addf %484, %488 : vector<64x128xf32>
    %490 = vector.broadcast %2 : vector<64x1xf32> to vector<64x128xf32>
    %491 = arith.addf %489, %490 : vector<64x128xf32>
    %cst_248 = arith.constant 0.000000e+00 : f32
    %492 = vector.broadcast %cst_248 : f32 to vector<64x128xf32>
    %493 = arith.maximumf %491, %492 : vector<64x128xf32>
    %494 = arith.truncf %493 : vector<64x128xf32> to vector<64x128xbf16>
    %c0_249 = arith.constant 0 : index
    %c0_250 = arith.constant 0 : index
    %495 = vector.load %arg15[%c0_249, %c0_250] : memref<256x128xf32, #tpu.memory_space<vmem>>, vector<256x128xf32>
    %c4_251 = arith.constant 4 : index
    %c0_252 = arith.constant 0 : index
    %c0_253 = arith.constant 0 : index
    %496 = vector.load %arg6[%c4_251, %c0_252, %c0_253] : memref<16x256x64xbf16, #tpu.memory_space<vmem>>, vector<1x256x64xbf16>
    %497 = vector.shape_cast %496 : vector<1x256x64xbf16> to vector<256x64xbf16>
    %cst_254 = arith.constant dense<0.000000e+00> : vector<256x128xf32>
    %498 = tpu.matmul %497, %494, %cst_254 {dimension_numbers = #tpu.dot_dimension_numbers<[1], [0], [0], [1], [0, 0, 1, 1], [], []>} : vector<256x64xbf16>, vector<64x128xbf16>, vector<256x128xf32> -> vector<256x128xf32>
    %499 = arith.addf %495, %498 : vector<256x128xf32>
    %c0_255 = arith.constant 0 : index
    %c0_256 = arith.constant 0 : index
    %500 = vector.load %arg15[%c0_255, %c0_256] : memref<256x128xf32, #tpu.memory_space<vmem>>, vector<256x128xf32>
    tpu.vector_store %arg15[%c0_255, %c0_256], %499 {strides = array<i32>} : memref<256x128xf32, #tpu.memory_space<vmem>>, vector<256x128xf32>,
    %c0_257 = arith.constant 0 : index
    %c0_258 = arith.constant 0 : index
    %c0_259 = arith.constant 0 : index
    %501 = vector.load %arg4[%c0_257, %c0_258, %c0_259] : memref<3x64x32xbf16, #tpu.memory_space<vmem>>, vector<1x64x32xbf16>
    %502 = vector.shape_cast %501 : vector<1x64x32xbf16> to vector<64x32xbf16>
    %c0_260 = arith.constant 0 : index
    %c640_261 = arith.constant 640 : index
    %503 = vector.load %arg14[%c0_260, %c640_261] : memref<32x2304xbf16, #tpu.memory_space<vmem>>, vector<32x128xbf16>
    %cst_262 = arith.constant dense<0.000000e+00> : vector<64x128xf32>
    %504 = tpu.matmul %502, %503, %cst_262 {dimension_numbers = #tpu.dot_dimension_numbers<[1], [0], [0], [1], [0, 0, 1, 1], [], []>} : vector<64x32xbf16>, vector<32x128xbf16>, vector<64x128xf32> -> vector<64x128xf32>
    %c1_263 = arith.constant 1 : index
    %c0_264 = arith.constant 0 : index
    %c0_265 = arith.constant 0 : index
    %505 = vector.load %arg4[%c1_263, %c0_264, %c0_265] : memref<3x64x32xbf16, #tpu.memory_space<vmem>>, vector<1x64x32xbf16>
    %506 = vector.shape_cast %505 : vector<1x64x32xbf16> to vector<64x32xbf16>
    %c0_266 = arith.constant 0 : index
    %c768_267 = arith.constant 768 : index
    %507 = vector.load %arg14[%c0_266, %c768_267] : memref<32x2304xbf16, #tpu.memory_space<vmem>>, vector<32x128xbf16>
    %cst_268 = arith.constant dense<0.000000e+00> : vector<64x128xf32>
    %508 = tpu.matmul %506, %507, %cst_268 {dimension_numbers = #tpu.dot_dimension_numbers<[1], [0], [0], [1], [0, 0, 1, 1], [], []>} : vector<64x32xbf16>, vector<32x128xbf16>, vector<64x128xf32> -> vector<64x128xf32>
    %509 = arith.addf %504, %508 : vector<64x128xf32>
    %c2_269 = arith.constant 2 : index
    %c0_270 = arith.constant 0 : index
    %c0_271 = arith.constant 0 : index
    %510 = vector.load %arg4[%c2_269, %c0_270, %c0_271] : memref<3x64x32xbf16, #tpu.memory_space<vmem>>, vector<1x64x32xbf16>
    %511 = vector.shape_cast %510 : vector<1x64x32xbf16> to vector<64x32xbf16>
    %c0_272 = arith.constant 0 : index
    %c896_273 = arith.constant 896 : index
    %512 = vector.load %arg14[%c0_272, %c896_273] : memref<32x2304xbf16, #tpu.memory_space<vmem>>, vector<32x128xbf16>
    %cst_274 = arith.constant dense<0.000000e+00> : vector<64x128xf32>
    %513 = tpu.matmul %511, %512, %cst_274 {dimension_numbers = #tpu.dot_dimension_numbers<[1], [0], [0], [1], [0, 0, 1, 1], [], []>} : vector<64x32xbf16>, vector<32x128xbf16>, vector<64x128xf32> -> vector<64x128xf32>
    %514 = arith.addf %509, %513 : vector<64x128xf32>
    %515 = vector.broadcast %2 : vector<64x1xf32> to vector<64x128xf32>
    %516 = arith.addf %514, %515 : vector<64x128xf32>
    %cst_275 = arith.constant 0.000000e+00 : f32
    %517 = vector.broadcast %cst_275 : f32 to vector<64x128xf32>
    %518 = arith.maximumf %516, %517 : vector<64x128xf32>
    %519 = arith.truncf %518 : vector<64x128xf32> to vector<64x128xbf16>
    %c0_276 = arith.constant 0 : index
    %c0_277 = arith.constant 0 : index
    %520 = vector.load %arg15[%c0_276, %c0_277] : memref<256x128xf32, #tpu.memory_space<vmem>>, vector<256x128xf32>
    %c5_278 = arith.constant 5 : index
    %c0_279 = arith.constant 0 : index
    %c0_280 = arith.constant 0 : index
    %521 = vector.load %arg6[%c5_278, %c0_279, %c0_280] : memref<16x256x64xbf16, #tpu.memory_space<vmem>>, vector<1x256x64xbf16>
    %522 = vector.shape_cast %521 : vector<1x256x64xbf16> to vector<256x64xbf16>
    %cst_281 = arith.constant dense<0.000000e+00> : vector<256x128xf32>
    %523 = tpu.matmul %522, %519, %cst_281 {dimension_numbers = #tpu.dot_dimension_numbers<[1], [0], [0], [1], [0, 0, 1, 1], [], []>} : vector<256x64xbf16>, vector<64x128xbf16>, vector<256x128xf32> -> vector<256x128xf32>
    %524 = arith.addf %520, %523 : vector<256x128xf32>
    %c0_282 = arith.constant 0 : index
    %c0_283 = arith.constant 0 : index
    %525 = vector.load %arg15[%c0_282, %c0_283] : memref<256x128xf32, #tpu.memory_space<vmem>>, vector<256x128xf32>
    tpu.vector_store %arg15[%c0_282, %c0_283], %524 {strides = array<i32>} : memref<256x128xf32, #tpu.memory_space<vmem>>, vector<256x128xf32>,
    %c0_284 = arith.constant 0 : index
    %c0_285 = arith.constant 0 : index
    %c0_286 = arith.constant 0 : index
    %526 = vector.load %arg4[%c0_284, %c0_285, %c0_286] : memref<3x64x32xbf16, #tpu.memory_space<vmem>>, vector<1x64x32xbf16>
    %527 = vector.shape_cast %526 : vector<1x64x32xbf16> to vector<64x32xbf16>
    %c0_287 = arith.constant 0 : index
    %c768_288 = arith.constant 768 : index
    %528 = vector.load %arg14[%c0_287, %c768_288] : memref<32x2304xbf16, #tpu.memory_space<vmem>>, vector<32x128xbf16>
    %cst_289 = arith.constant dense<0.000000e+00> : vector<64x128xf32>
    %529 = tpu.matmul %527, %528, %cst_289 {dimension_numbers = #tpu.dot_dimension_numbers<[1], [0], [0], [1], [0, 0, 1, 1], [], []>} : vector<64x32xbf16>, vector<32x128xbf16>, vector<64x128xf32> -> vector<64x128xf32>
    %c1_290 = arith.constant 1 : index
    %c0_291 = arith.constant 0 : index
    %c0_292 = arith.constant 0 : index
    %530 = vector.load %arg4[%c1_290, %c0_291, %c0_292] : memref<3x64x32xbf16, #tpu.memory_space<vmem>>, vector<1x64x32xbf16>
    %531 = vector.shape_cast %530 : vector<1x64x32xbf16> to vector<64x32xbf16>
    %c0_293 = arith.constant 0 : index
    %c896_294 = arith.constant 896 : index
    %532 = vector.load %arg14[%c0_293, %c896_294] : memref<32x2304xbf16, #tpu.memory_space<vmem>>, vector<32x128xbf16>
    %cst_295 = arith.constant dense<0.000000e+00> : vector<64x128xf32>
    %533 = tpu.matmul %531, %532, %cst_295 {dimension_numbers = #tpu.dot_dimension_numbers<[1], [0], [0], [1], [0, 0, 1, 1], [], []>} : vector<64x32xbf16>, vector<32x128xbf16>, vector<64x128xf32> -> vector<64x128xf32>
    %534 = arith.addf %529, %533 : vector<64x128xf32>
    %c2_296 = arith.constant 2 : index
    %c0_297 = arith.constant 0 : index
    %c0_298 = arith.constant 0 : index
    %535 = vector.load %arg4[%c2_296, %c0_297, %c0_298] : memref<3x64x32xbf16, #tpu.memory_space<vmem>>, vector<1x64x32xbf16>
    %536 = vector.shape_cast %535 : vector<1x64x32xbf16> to vector<64x32xbf16>
    %c0_299 = arith.constant 0 : index
    %c1024_300 = arith.constant 1024 : index
    %537 = vector.load %arg14[%c0_299, %c1024_300] : memref<32x2304xbf16, #tpu.memory_space<vmem>>, vector<32x128xbf16>
    %cst_301 = arith.constant dense<0.000000e+00> : vector<64x128xf32>
    %538 = tpu.matmul %536, %537, %cst_301 {dimension_numbers = #tpu.dot_dimension_numbers<[1], [0], [0], [1], [0, 0, 1, 1], [], []>} : vector<64x32xbf16>, vector<32x128xbf16>, vector<64x128xf32> -> vector<64x128xf32>
    %539 = arith.addf %534, %538 : vector<64x128xf32>
    %540 = vector.broadcast %2 : vector<64x1xf32> to vector<64x128xf32>
    %541 = arith.addf %539, %540 : vector<64x128xf32>
    %cst_302 = arith.constant 0.000000e+00 : f32
    %542 = vector.broadcast %cst_302 : f32 to vector<64x128xf32>
    %543 = arith.maximumf %541, %542 : vector<64x128xf32>
    %544 = arith.truncf %543 : vector<64x128xf32> to vector<64x128xbf16>
    %c0_303 = arith.constant 0 : index
    %c0_304 = arith.constant 0 : index
    %545 = vector.load %arg15[%c0_303, %c0_304] : memref<256x128xf32, #tpu.memory_space<vmem>>, vector<256x128xf32>
    %c6_305 = arith.constant 6 : index
    %c0_306 = arith.constant 0 : index
    %c0_307 = arith.constant 0 : index
    %546 = vector.load %arg6[%c6_305, %c0_306, %c0_307] : memref<16x256x64xbf16, #tpu.memory_space<vmem>>, vector<1x256x64xbf16>
    %547 = vector.shape_cast %546 : vector<1x256x64xbf16> to vector<256x64xbf16>
    %cst_308 = arith.constant dense<0.000000e+00> : vector<256x128xf32>
    %548 = tpu.matmul %547, %544, %cst_308 {dimension_numbers = #tpu.dot_dimension_numbers<[1], [0], [0], [1], [0, 0, 1, 1], [], []>} : vector<256x64xbf16>, vector<64x128xbf16>, vector<256x128xf32> -> vector<256x128xf32>
    %549 = arith.addf %545, %548 : vector<256x128xf32>
    %c0_309 = arith.constant 0 : index
    %c0_310 = arith.constant 0 : index
    %550 = vector.load %arg15[%c0_309, %c0_310] : memref<256x128xf32, #tpu.memory_space<vmem>>, vector<256x128xf32>
    tpu.vector_store %arg15[%c0_309, %c0_310], %549 {strides = array<i32>} : memref<256x128xf32, #tpu.memory_space<vmem>>, vector<256x128xf32>,
    %c0_311 = arith.constant 0 : index
    %c0_312 = arith.constant 0 : index
    %c0_313 = arith.constant 0 : index
    %551 = vector.load %arg4[%c0_311, %c0_312, %c0_313] : memref<3x64x32xbf16, #tpu.memory_space<vmem>>, vector<1x64x32xbf16>
    %552 = vector.shape_cast %551 : vector<1x64x32xbf16> to vector<64x32xbf16>
    %c0_314 = arith.constant 0 : index
    %c896_315 = arith.constant 896 : index
    %553 = vector.load %arg14[%c0_314, %c896_315] : memref<32x2304xbf16, #tpu.memory_space<vmem>>, vector<32x128xbf16>
    %cst_316 = arith.constant dense<0.000000e+00> : vector<64x128xf32>
    %554 = tpu.matmul %552, %553, %cst_316 {dimension_numbers = #tpu.dot_dimension_numbers<[1], [0], [0], [1], [0, 0, 1, 1], [], []>} : vector<64x32xbf16>, vector<32x128xbf16>, vector<64x128xf32> -> vector<64x128xf32>
    %c1_317 = arith.constant 1 : index
    %c0_318 = arith.constant 0 : index
    %c0_319 = arith.constant 0 : index
    %555 = vector.load %arg4[%c1_317, %c0_318, %c0_319] : memref<3x64x32xbf16, #tpu.memory_space<vmem>>, vector<1x64x32xbf16>
    %556 = vector.shape_cast %555 : vector<1x64x32xbf16> to vector<64x32xbf16>
    %c0_320 = arith.constant 0 : index
    %c1024_321 = arith.constant 1024 : index
    %557 = vector.load %arg14[%c0_320, %c1024_321] : memref<32x2304xbf16, #tpu.memory_space<vmem>>, vector<32x128xbf16>
    %cst_322 = arith.constant dense<0.000000e+00> : vector<64x128xf32>
    %558 = tpu.matmul %556, %557, %cst_322 {dimension_numbers = #tpu.dot_dimension_numbers<[1], [0], [0], [1], [0, 0, 1, 1], [], []>} : vector<64x32xbf16>, vector<32x128xbf16>, vector<64x128xf32> -> vector<64x128xf32>
    %559 = arith.addf %554, %558 : vector<64x128xf32>
    %c2_323 = arith.constant 2 : index
    %c0_324 = arith.constant 0 : index
    %c0_325 = arith.constant 0 : index
    %560 = vector.load %arg4[%c2_323, %c0_324, %c0_325] : memref<3x64x32xbf16, #tpu.memory_space<vmem>>, vector<1x64x32xbf16>
    %561 = vector.shape_cast %560 : vector<1x64x32xbf16> to vector<64x32xbf16>
    %c0_326 = arith.constant 0 : index
    %c1152_327 = arith.constant 1152 : index
    %562 = vector.load %arg14[%c0_326, %c1152_327] : memref<32x2304xbf16, #tpu.memory_space<vmem>>, vector<32x128xbf16>
    %cst_328 = arith.constant dense<0.000000e+00> : vector<64x128xf32>
    %563 = tpu.matmul %561, %562, %cst_328 {dimension_numbers = #tpu.dot_dimension_numbers<[1], [0], [0], [1], [0, 0, 1, 1], [], []>} : vector<64x32xbf16>, vector<32x128xbf16>, vector<64x128xf32> -> vector<64x128xf32>
    %564 = arith.addf %559, %563 : vector<64x128xf32>
    %565 = vector.broadcast %2 : vector<64x1xf32> to vector<64x128xf32>
    %566 = arith.addf %564, %565 : vector<64x128xf32>
    %cst_329 = arith.constant 0.000000e+00 : f32
    %567 = vector.broadcast %cst_329 : f32 to vector<64x128xf32>
    %568 = arith.maximumf %566, %567 : vector<64x128xf32>
    %569 = arith.truncf %568 : vector<64x128xf32> to vector<64x128xbf16>
    %c0_330 = arith.constant 0 : index
    %c0_331 = arith.constant 0 : index
    %570 = vector.load %arg15[%c0_330, %c0_331] : memref<256x128xf32, #tpu.memory_space<vmem>>, vector<256x128xf32>
    %c7_332 = arith.constant 7 : index
    %c0_333 = arith.constant 0 : index
    %c0_334 = arith.constant 0 : index
    %571 = vector.load %arg6[%c7_332, %c0_333, %c0_334] : memref<16x256x64xbf16, #tpu.memory_space<vmem>>, vector<1x256x64xbf16>
    %572 = vector.shape_cast %571 : vector<1x256x64xbf16> to vector<256x64xbf16>
    %cst_335 = arith.constant dense<0.000000e+00> : vector<256x128xf32>
    %573 = tpu.matmul %572, %569, %cst_335 {dimension_numbers = #tpu.dot_dimension_numbers<[1], [0], [0], [1], [0, 0, 1, 1], [], []>} : vector<256x64xbf16>, vector<64x128xbf16>, vector<256x128xf32> -> vector<256x128xf32>
    %574 = arith.addf %570, %573 : vector<256x128xf32>
    %c0_336 = arith.constant 0 : index
    %c0_337 = arith.constant 0 : index
    %575 = vector.load %arg15[%c0_336, %c0_337] : memref<256x128xf32, #tpu.memory_space<vmem>>, vector<256x128xf32>
    tpu.vector_store %arg15[%c0_336, %c0_337], %574 {strides = array<i32>} : memref<256x128xf32, #tpu.memory_space<vmem>>, vector<256x128xf32>,
    %c0_338 = arith.constant 0 : index
    %c0_339 = arith.constant 0 : index
    %c0_340 = arith.constant 0 : index
    %576 = vector.load %arg4[%c0_338, %c0_339, %c0_340] : memref<3x64x32xbf16, #tpu.memory_space<vmem>>, vector<1x64x32xbf16>
    %577 = vector.shape_cast %576 : vector<1x64x32xbf16> to vector<64x32xbf16>
    %c0_341 = arith.constant 0 : index
    %c1024_342 = arith.constant 1024 : index
    %578 = vector.load %arg14[%c0_341, %c1024_342] : memref<32x2304xbf16, #tpu.memory_space<vmem>>, vector<32x128xbf16>
    %cst_343 = arith.constant dense<0.000000e+00> : vector<64x128xf32>
    %579 = tpu.matmul %577, %578, %cst_343 {dimension_numbers = #tpu.dot_dimension_numbers<[1], [0], [0], [1], [0, 0, 1, 1], [], []>} : vector<64x32xbf16>, vector<32x128xbf16>, vector<64x128xf32> -> vector<64x128xf32>
    %c1_344 = arith.constant 1 : index
    %c0_345 = arith.constant 0 : index
    %c0_346 = arith.constant 0 : index
    %580 = vector.load %arg4[%c1_344, %c0_345, %c0_346] : memref<3x64x32xbf16, #tpu.memory_space<vmem>>, vector<1x64x32xbf16>
    %581 = vector.shape_cast %580 : vector<1x64x32xbf16> to vector<64x32xbf16>
    %c0_347 = arith.constant 0 : index
    %c1152_348 = arith.constant 1152 : index
    %582 = vector.load %arg14[%c0_347, %c1152_348] : memref<32x2304xbf16, #tpu.memory_space<vmem>>, vector<32x128xbf16>
    %cst_349 = arith.constant dense<0.000000e+00> : vector<64x128xf32>
    %583 = tpu.matmul %581, %582, %cst_349 {dimension_numbers = #tpu.dot_dimension_numbers<[1], [0], [0], [1], [0, 0, 1, 1], [], []>} : vector<64x32xbf16>, vector<32x128xbf16>, vector<64x128xf32> -> vector<64x128xf32>
    %584 = arith.addf %579, %583 : vector<64x128xf32>
    %c2_350 = arith.constant 2 : index
    %c0_351 = arith.constant 0 : index
    %c0_352 = arith.constant 0 : index
    %585 = vector.load %arg4[%c2_350, %c0_351, %c0_352] : memref<3x64x32xbf16, #tpu.memory_space<vmem>>, vector<1x64x32xbf16>
    %586 = vector.shape_cast %585 : vector<1x64x32xbf16> to vector<64x32xbf16>
    %c0_353 = arith.constant 0 : index
    %c1280_354 = arith.constant 1280 : index
    %587 = vector.load %arg14[%c0_353, %c1280_354] : memref<32x2304xbf16, #tpu.memory_space<vmem>>, vector<32x128xbf16>
    %cst_355 = arith.constant dense<0.000000e+00> : vector<64x128xf32>
    %588 = tpu.matmul %586, %587, %cst_355 {dimension_numbers = #tpu.dot_dimension_numbers<[1], [0], [0], [1], [0, 0, 1, 1], [], []>} : vector<64x32xbf16>, vector<32x128xbf16>, vector<64x128xf32> -> vector<64x128xf32>
    %589 = arith.addf %584, %588 : vector<64x128xf32>
    %590 = vector.broadcast %2 : vector<64x1xf32> to vector<64x128xf32>
    %591 = arith.addf %589, %590 : vector<64x128xf32>
    %cst_356 = arith.constant 0.000000e+00 : f32
    %592 = vector.broadcast %cst_356 : f32 to vector<64x128xf32>
    %593 = arith.maximumf %591, %592 : vector<64x128xf32>
    %594 = arith.truncf %593 : vector<64x128xf32> to vector<64x128xbf16>
    %c0_357 = arith.constant 0 : index
    %c0_358 = arith.constant 0 : index
    %595 = vector.load %arg15[%c0_357, %c0_358] : memref<256x128xf32, #tpu.memory_space<vmem>>, vector<256x128xf32>
    %c8_359 = arith.constant 8 : index
    %c0_360 = arith.constant 0 : index
    %c0_361 = arith.constant 0 : index
    %596 = vector.load %arg6[%c8_359, %c0_360, %c0_361] : memref<16x256x64xbf16, #tpu.memory_space<vmem>>, vector<1x256x64xbf16>
    %597 = vector.shape_cast %596 : vector<1x256x64xbf16> to vector<256x64xbf16>
    %cst_362 = arith.constant dense<0.000000e+00> : vector<256x128xf32>
    %598 = tpu.matmul %597, %594, %cst_362 {dimension_numbers = #tpu.dot_dimension_numbers<[1], [0], [0], [1], [0, 0, 1, 1], [], []>} : vector<256x64xbf16>, vector<64x128xbf16>, vector<256x128xf32> -> vector<256x128xf32>
    %599 = arith.addf %595, %598 : vector<256x128xf32>
    %c0_363 = arith.constant 0 : index
    %c0_364 = arith.constant 0 : index
    %600 = vector.load %arg15[%c0_363, %c0_364] : memref<256x128xf32, #tpu.memory_space<vmem>>, vector<256x128xf32>
    tpu.vector_store %arg15[%c0_363, %c0_364], %599 {strides = array<i32>} : memref<256x128xf32, #tpu.memory_space<vmem>>, vector<256x128xf32>,
    %c0_365 = arith.constant 0 : index
    %c0_366 = arith.constant 0 : index
    %c0_367 = arith.constant 0 : index
    %601 = vector.load %arg4[%c0_365, %c0_366, %c0_367] : memref<3x64x32xbf16, #tpu.memory_space<vmem>>, vector<1x64x32xbf16>
    %602 = vector.shape_cast %601 : vector<1x64x32xbf16> to vector<64x32xbf16>
    %c0_368 = arith.constant 0 : index
    %c1152_369 = arith.constant 1152 : index
    %603 = vector.load %arg14[%c0_368, %c1152_369] : memref<32x2304xbf16, #tpu.memory_space<vmem>>, vector<32x128xbf16>
    %cst_370 = arith.constant dense<0.000000e+00> : vector<64x128xf32>
    %604 = tpu.matmul %602, %603, %cst_370 {dimension_numbers = #tpu.dot_dimension_numbers<[1], [0], [0], [1], [0, 0, 1, 1], [], []>} : vector<64x32xbf16>, vector<32x128xbf16>, vector<64x128xf32> -> vector<64x128xf32>
    %c1_371 = arith.constant 1 : index
    %c0_372 = arith.constant 0 : index
    %c0_373 = arith.constant 0 : index
    %605 = vector.load %arg4[%c1_371, %c0_372, %c0_373] : memref<3x64x32xbf16, #tpu.memory_space<vmem>>, vector<1x64x32xbf16>
    %606 = vector.shape_cast %605 : vector<1x64x32xbf16> to vector<64x32xbf16>
    %c0_374 = arith.constant 0 : index
    %c1280_375 = arith.constant 1280 : index
    %607 = vector.load %arg14[%c0_374, %c1280_375] : memref<32x2304xbf16, #tpu.memory_space<vmem>>, vector<32x128xbf16>
    %cst_376 = arith.constant dense<0.000000e+00> : vector<64x128xf32>
    %608 = tpu.matmul %606, %607, %cst_376 {dimension_numbers = #tpu.dot_dimension_numbers<[1], [0], [0], [1], [0, 0, 1, 1], [], []>} : vector<64x32xbf16>, vector<32x128xbf16>, vector<64x128xf32> -> vector<64x128xf32>
    %609 = arith.addf %604, %608 : vector<64x128xf32>
    %c2_377 = arith.constant 2 : index
    %c0_378 = arith.constant 0 : index
    %c0_379 = arith.constant 0 : index
    %610 = vector.load %arg4[%c2_377, %c0_378, %c0_379] : memref<3x64x32xbf16, #tpu.memory_space<vmem>>, vector<1x64x32xbf16>
    %611 = vector.shape_cast %610 : vector<1x64x32xbf16> to vector<64x32xbf16>
    %c0_380 = arith.constant 0 : index
    %c1408_381 = arith.constant 1408 : index
    %612 = vector.load %arg14[%c0_380, %c1408_381] : memref<32x2304xbf16, #tpu.memory_space<vmem>>, vector<32x128xbf16>
    %cst_382 = arith.constant dense<0.000000e+00> : vector<64x128xf32>
    %613 = tpu.matmul %611, %612, %cst_382 {dimension_numbers = #tpu.dot_dimension_numbers<[1], [0], [0], [1], [0, 0, 1, 1], [], []>} : vector<64x32xbf16>, vector<32x128xbf16>, vector<64x128xf32> -> vector<64x128xf32>
    %614 = arith.addf %609, %613 : vector<64x128xf32>
    %615 = vector.broadcast %2 : vector<64x1xf32> to vector<64x128xf32>
    %616 = arith.addf %614, %615 : vector<64x128xf32>
    %cst_383 = arith.constant 0.000000e+00 : f32
    %617 = vector.broadcast %cst_383 : f32 to vector<64x128xf32>
    %618 = arith.maximumf %616, %617 : vector<64x128xf32>
    %619 = arith.truncf %618 : vector<64x128xf32> to vector<64x128xbf16>
    %c0_384 = arith.constant 0 : index
    %c0_385 = arith.constant 0 : index
    %620 = vector.load %arg15[%c0_384, %c0_385] : memref<256x128xf32, #tpu.memory_space<vmem>>, vector<256x128xf32>
    %c9_386 = arith.constant 9 : index
    %c0_387 = arith.constant 0 : index
    %c0_388 = arith.constant 0 : index
    %621 = vector.load %arg6[%c9_386, %c0_387, %c0_388] : memref<16x256x64xbf16, #tpu.memory_space<vmem>>, vector<1x256x64xbf16>
    %622 = vector.shape_cast %621 : vector<1x256x64xbf16> to vector<256x64xbf16>
    %cst_389 = arith.constant dense<0.000000e+00> : vector<256x128xf32>
    %623 = tpu.matmul %622, %619, %cst_389 {dimension_numbers = #tpu.dot_dimension_numbers<[1], [0], [0], [1], [0, 0, 1, 1], [], []>} : vector<256x64xbf16>, vector<64x128xbf16>, vector<256x128xf32> -> vector<256x128xf32>
    %624 = arith.addf %620, %623 : vector<256x128xf32>
    %c0_390 = arith.constant 0 : index
    %c0_391 = arith.constant 0 : index
    %625 = vector.load %arg15[%c0_390, %c0_391] : memref<256x128xf32, #tpu.memory_space<vmem>>, vector<256x128xf32>
    tpu.vector_store %arg15[%c0_390, %c0_391], %624 {strides = array<i32>} : memref<256x128xf32, #tpu.memory_space<vmem>>, vector<256x128xf32>,
    %c0_392 = arith.constant 0 : index
    %c0_393 = arith.constant 0 : index
    %c0_394 = arith.constant 0 : index
    %626 = vector.load %arg4[%c0_392, %c0_393, %c0_394] : memref<3x64x32xbf16, #tpu.memory_space<vmem>>, vector<1x64x32xbf16>
    %627 = vector.shape_cast %626 : vector<1x64x32xbf16> to vector<64x32xbf16>
    %c0_395 = arith.constant 0 : index
    %c1280_396 = arith.constant 1280 : index
    %628 = vector.load %arg14[%c0_395, %c1280_396] : memref<32x2304xbf16, #tpu.memory_space<vmem>>, vector<32x128xbf16>
    %cst_397 = arith.constant dense<0.000000e+00> : vector<64x128xf32>
    %629 = tpu.matmul %627, %628, %cst_397 {dimension_numbers = #tpu.dot_dimension_numbers<[1], [0], [0], [1], [0, 0, 1, 1], [], []>} : vector<64x32xbf16>, vector<32x128xbf16>, vector<64x128xf32> -> vector<64x128xf32>
    %c1_398 = arith.constant 1 : index
    %c0_399 = arith.constant 0 : index
    %c0_400 = arith.constant 0 : index
    %630 = vector.load %arg4[%c1_398, %c0_399, %c0_400] : memref<3x64x32xbf16, #tpu.memory_space<vmem>>, vector<1x64x32xbf16>
    %631 = vector.shape_cast %630 : vector<1x64x32xbf16> to vector<64x32xbf16>
    %c0_401 = arith.constant 0 : index
    %c1408_402 = arith.constant 1408 : index
    %632 = vector.load %arg14[%c0_401, %c1408_402] : memref<32x2304xbf16, #tpu.memory_space<vmem>>, vector<32x128xbf16>
    %cst_403 = arith.constant dense<0.000000e+00> : vector<64x128xf32>
    %633 = tpu.matmul %631, %632, %cst_403 {dimension_numbers = #tpu.dot_dimension_numbers<[1], [0], [0], [1], [0, 0, 1, 1], [], []>} : vector<64x32xbf16>, vector<32x128xbf16>, vector<64x128xf32> -> vector<64x128xf32>
    %634 = arith.addf %629, %633 : vector<64x128xf32>
    %c2_404 = arith.constant 2 : index
    %c0_405 = arith.constant 0 : index
    %c0_406 = arith.constant 0 : index
    %635 = vector.load %arg4[%c2_404, %c0_405, %c0_406] : memref<3x64x32xbf16, #tpu.memory_space<vmem>>, vector<1x64x32xbf16>
    %636 = vector.shape_cast %635 : vector<1x64x32xbf16> to vector<64x32xbf16>
    %c0_407 = arith.constant 0 : index
    %c1536_408 = arith.constant 1536 : index
    %637 = vector.load %arg14[%c0_407, %c1536_408] : memref<32x2304xbf16, #tpu.memory_space<vmem>>, vector<32x128xbf16>
    %cst_409 = arith.constant dense<0.000000e+00> : vector<64x128xf32>
    %638 = tpu.matmul %636, %637, %cst_409 {dimension_numbers = #tpu.dot_dimension_numbers<[1], [0], [0], [1], [0, 0, 1, 1], [], []>} : vector<64x32xbf16>, vector<32x128xbf16>, vector<64x128xf32> -> vector<64x128xf32>
    %639 = arith.addf %634, %638 : vector<64x128xf32>
    %640 = vector.broadcast %2 : vector<64x1xf32> to vector<64x128xf32>
    %641 = arith.addf %639, %640 : vector<64x128xf32>
    %cst_410 = arith.constant 0.000000e+00 : f32
    %642 = vector.broadcast %cst_410 : f32 to vector<64x128xf32>
    %643 = arith.maximumf %641, %642 : vector<64x128xf32>
    %644 = arith.truncf %643 : vector<64x128xf32> to vector<64x128xbf16>
    %c0_411 = arith.constant 0 : index
    %c0_412 = arith.constant 0 : index
    %645 = vector.load %arg15[%c0_411, %c0_412] : memref<256x128xf32, #tpu.memory_space<vmem>>, vector<256x128xf32>
    %c10_413 = arith.constant 10 : index
    %c0_414 = arith.constant 0 : index
    %c0_415 = arith.constant 0 : index
    %646 = vector.load %arg6[%c10_413, %c0_414, %c0_415] : memref<16x256x64xbf16, #tpu.memory_space<vmem>>, vector<1x256x64xbf16>
    %647 = vector.shape_cast %646 : vector<1x256x64xbf16> to vector<256x64xbf16>
    %cst_416 = arith.constant dense<0.000000e+00> : vector<256x128xf32>
    %648 = tpu.matmul %647, %644, %cst_416 {dimension_numbers = #tpu.dot_dimension_numbers<[1], [0], [0], [1], [0, 0, 1, 1], [], []>} : vector<256x64xbf16>, vector<64x128xbf16>, vector<256x128xf32> -> vector<256x128xf32>
    %649 = arith.addf %645, %648 : vector<256x128xf32>
    %c0_417 = arith.constant 0 : index
    %c0_418 = arith.constant 0 : index
    %650 = vector.load %arg15[%c0_417, %c0_418] : memref<256x128xf32, #tpu.memory_space<vmem>>, vector<256x128xf32>
    tpu.vector_store %arg15[%c0_417, %c0_418], %649 {strides = array<i32>} : memref<256x128xf32, #tpu.memory_space<vmem>>, vector<256x128xf32>,
    %c0_419 = arith.constant 0 : index
    %c0_420 = arith.constant 0 : index
    %c0_421 = arith.constant 0 : index
    %651 = vector.load %arg4[%c0_419, %c0_420, %c0_421] : memref<3x64x32xbf16, #tpu.memory_space<vmem>>, vector<1x64x32xbf16>
    %652 = vector.shape_cast %651 : vector<1x64x32xbf16> to vector<64x32xbf16>
    %c0_422 = arith.constant 0 : index
    %c1408_423 = arith.constant 1408 : index
    %653 = vector.load %arg14[%c0_422, %c1408_423] : memref<32x2304xbf16, #tpu.memory_space<vmem>>, vector<32x128xbf16>
    %cst_424 = arith.constant dense<0.000000e+00> : vector<64x128xf32>
    %654 = tpu.matmul %652, %653, %cst_424 {dimension_numbers = #tpu.dot_dimension_numbers<[1], [0], [0], [1], [0, 0, 1, 1], [], []>} : vector<64x32xbf16>, vector<32x128xbf16>, vector<64x128xf32> -> vector<64x128xf32>
    %c1_425 = arith.constant 1 : index
    %c0_426 = arith.constant 0 : index
    %c0_427 = arith.constant 0 : index
    %655 = vector.load %arg4[%c1_425, %c0_426, %c0_427] : memref<3x64x32xbf16, #tpu.memory_space<vmem>>, vector<1x64x32xbf16>
    %656 = vector.shape_cast %655 : vector<1x64x32xbf16> to vector<64x32xbf16>
    %c0_428 = arith.constant 0 : index
    %c1536_429 = arith.constant 1536 : index
    %657 = vector.load %arg14[%c0_428, %c1536_429] : memref<32x2304xbf16, #tpu.memory_space<vmem>>, vector<32x128xbf16>
    %cst_430 = arith.constant dense<0.000000e+00> : vector<64x128xf32>
    %658 = tpu.matmul %656, %657, %cst_430 {dimension_numbers = #tpu.dot_dimension_numbers<[1], [0], [0], [1], [0, 0, 1, 1], [], []>} : vector<64x32xbf16>, vector<32x128xbf16>, vector<64x128xf32> -> vector<64x128xf32>
    %659 = arith.addf %654, %658 : vector<64x128xf32>
    %c2_431 = arith.constant 2 : index
    %c0_432 = arith.constant 0 : index
    %c0_433 = arith.constant 0 : index
    %660 = vector.load %arg4[%c2_431, %c0_432, %c0_433] : memref<3x64x32xbf16, #tpu.memory_space<vmem>>, vector<1x64x32xbf16>
    %661 = vector.shape_cast %660 : vector<1x64x32xbf16> to vector<64x32xbf16>
    %c0_434 = arith.constant 0 : index
    %c1664_435 = arith.constant 1664 : index
    %662 = vector.load %arg14[%c0_434, %c1664_435] : memref<32x2304xbf16, #tpu.memory_space<vmem>>, vector<32x128xbf16>
    %cst_436 = arith.constant dense<0.000000e+00> : vector<64x128xf32>
    %663 = tpu.matmul %661, %662, %cst_436 {dimension_numbers = #tpu.dot_dimension_numbers<[1], [0], [0], [1], [0, 0, 1, 1], [], []>} : vector<64x32xbf16>, vector<32x128xbf16>, vector<64x128xf32> -> vector<64x128xf32>
    %664 = arith.addf %659, %663 : vector<64x128xf32>
    %665 = vector.broadcast %2 : vector<64x1xf32> to vector<64x128xf32>
    %666 = arith.addf %664, %665 : vector<64x128xf32>
    %cst_437 = arith.constant 0.000000e+00 : f32
    %667 = vector.broadcast %cst_437 : f32 to vector<64x128xf32>
    %668 = arith.maximumf %666, %667 : vector<64x128xf32>
    %669 = arith.truncf %668 : vector<64x128xf32> to vector<64x128xbf16>
    %c0_438 = arith.constant 0 : index
    %c0_439 = arith.constant 0 : index
    %670 = vector.load %arg15[%c0_438, %c0_439] : memref<256x128xf32, #tpu.memory_space<vmem>>, vector<256x128xf32>
    %c11_440 = arith.constant 11 : index
    %c0_441 = arith.constant 0 : index
    %c0_442 = arith.constant 0 : index
    %671 = vector.load %arg6[%c11_440, %c0_441, %c0_442] : memref<16x256x64xbf16, #tpu.memory_space<vmem>>, vector<1x256x64xbf16>
    %672 = vector.shape_cast %671 : vector<1x256x64xbf16> to vector<256x64xbf16>
    %cst_443 = arith.constant dense<0.000000e+00> : vector<256x128xf32>
    %673 = tpu.matmul %672, %669, %cst_443 {dimension_numbers = #tpu.dot_dimension_numbers<[1], [0], [0], [1], [0, 0, 1, 1], [], []>} : vector<256x64xbf16>, vector<64x128xbf16>, vector<256x128xf32> -> vector<256x128xf32>
    %674 = arith.addf %670, %673 : vector<256x128xf32>
    %c0_444 = arith.constant 0 : index
    %c0_445 = arith.constant 0 : index
    %675 = vector.load %arg15[%c0_444, %c0_445] : memref<256x128xf32, #tpu.memory_space<vmem>>, vector<256x128xf32>
    tpu.vector_store %arg15[%c0_444, %c0_445], %674 {strides = array<i32>} : memref<256x128xf32, #tpu.memory_space<vmem>>, vector<256x128xf32>,
    %c0_446 = arith.constant 0 : index
    %c0_447 = arith.constant 0 : index
    %c0_448 = arith.constant 0 : index
    %676 = vector.load %arg4[%c0_446, %c0_447, %c0_448] : memref<3x64x32xbf16, #tpu.memory_space<vmem>>, vector<1x64x32xbf16>
    %677 = vector.shape_cast %676 : vector<1x64x32xbf16> to vector<64x32xbf16>
    %c0_449 = arith.constant 0 : index
    %c1536_450 = arith.constant 1536 : index
    %678 = vector.load %arg14[%c0_449, %c1536_450] : memref<32x2304xbf16, #tpu.memory_space<vmem>>, vector<32x128xbf16>
    %cst_451 = arith.constant dense<0.000000e+00> : vector<64x128xf32>
    %679 = tpu.matmul %677, %678, %cst_451 {dimension_numbers = #tpu.dot_dimension_numbers<[1], [0], [0], [1], [0, 0, 1, 1], [], []>} : vector<64x32xbf16>, vector<32x128xbf16>, vector<64x128xf32> -> vector<64x128xf32>
    %c1_452 = arith.constant 1 : index
    %c0_453 = arith.constant 0 : index
    %c0_454 = arith.constant 0 : index
    %680 = vector.load %arg4[%c1_452, %c0_453, %c0_454] : memref<3x64x32xbf16, #tpu.memory_space<vmem>>, vector<1x64x32xbf16>
    %681 = vector.shape_cast %680 : vector<1x64x32xbf16> to vector<64x32xbf16>
    %c0_455 = arith.constant 0 : index
    %c1664_456 = arith.constant 1664 : index
    %682 = vector.load %arg14[%c0_455, %c1664_456] : memref<32x2304xbf16, #tpu.memory_space<vmem>>, vector<32x128xbf16>
    %cst_457 = arith.constant dense<0.000000e+00> : vector<64x128xf32>
    %683 = tpu.matmul %681, %682, %cst_457 {dimension_numbers = #tpu.dot_dimension_numbers<[1], [0], [0], [1], [0, 0, 1, 1], [], []>} : vector<64x32xbf16>, vector<32x128xbf16>, vector<64x128xf32> -> vector<64x128xf32>
    %684 = arith.addf %679, %683 : vector<64x128xf32>
    %c2_458 = arith.constant 2 : index
    %c0_459 = arith.constant 0 : index
    %c0_460 = arith.constant 0 : index
    %685 = vector.load %arg4[%c2_458, %c0_459, %c0_460] : memref<3x64x32xbf16, #tpu.memory_space<vmem>>, vector<1x64x32xbf16>
    %686 = vector.shape_cast %685 : vector<1x64x32xbf16> to vector<64x32xbf16>
    %c0_461 = arith.constant 0 : index
    %c1792_462 = arith.constant 1792 : index
    %687 = vector.load %arg14[%c0_461, %c1792_462] : memref<32x2304xbf16, #tpu.memory_space<vmem>>, vector<32x128xbf16>
    %cst_463 = arith.constant dense<0.000000e+00> : vector<64x128xf32>
    %688 = tpu.matmul %686, %687, %cst_463 {dimension_numbers = #tpu.dot_dimension_numbers<[1], [0], [0], [1], [0, 0, 1, 1], [], []>} : vector<64x32xbf16>, vector<32x128xbf16>, vector<64x128xf32> -> vector<64x128xf32>
    %689 = arith.addf %684, %688 : vector<64x128xf32>
    %690 = vector.broadcast %2 : vector<64x1xf32> to vector<64x128xf32>
    %691 = arith.addf %689, %690 : vector<64x128xf32>
    %cst_464 = arith.constant 0.000000e+00 : f32
    %692 = vector.broadcast %cst_464 : f32 to vector<64x128xf32>
    %693 = arith.maximumf %691, %692 : vector<64x128xf32>
    %694 = arith.truncf %693 : vector<64x128xf32> to vector<64x128xbf16>
    %c0_465 = arith.constant 0 : index
    %c0_466 = arith.constant 0 : index
    %695 = vector.load %arg15[%c0_465, %c0_466] : memref<256x128xf32, #tpu.memory_space<vmem>>, vector<256x128xf32>
    %c12_467 = arith.constant 12 : index
    %c0_468 = arith.constant 0 : index
    %c0_469 = arith.constant 0 : index
    %696 = vector.load %arg6[%c12_467, %c0_468, %c0_469] : memref<16x256x64xbf16, #tpu.memory_space<vmem>>, vector<1x256x64xbf16>
    %697 = vector.shape_cast %696 : vector<1x256x64xbf16> to vector<256x64xbf16>
    %cst_470 = arith.constant dense<0.000000e+00> : vector<256x128xf32>
    %698 = tpu.matmul %697, %694, %cst_470 {dimension_numbers = #tpu.dot_dimension_numbers<[1], [0], [0], [1], [0, 0, 1, 1], [], []>} : vector<256x64xbf16>, vector<64x128xbf16>, vector<256x128xf32> -> vector<256x128xf32>
    %699 = arith.addf %695, %698 : vector<256x128xf32>
    %c0_471 = arith.constant 0 : index
    %c0_472 = arith.constant 0 : index
    %700 = vector.load %arg15[%c0_471, %c0_472] : memref<256x128xf32, #tpu.memory_space<vmem>>, vector<256x128xf32>
    tpu.vector_store %arg15[%c0_471, %c0_472], %699 {strides = array<i32>} : memref<256x128xf32, #tpu.memory_space<vmem>>, vector<256x128xf32>,
    %c0_473 = arith.constant 0 : index
    %c0_474 = arith.constant 0 : index
    %c0_475 = arith.constant 0 : index
    %701 = vector.load %arg4[%c0_473, %c0_474, %c0_475] : memref<3x64x32xbf16, #tpu.memory_space<vmem>>, vector<1x64x32xbf16>
    %702 = vector.shape_cast %701 : vector<1x64x32xbf16> to vector<64x32xbf16>
    %c0_476 = arith.constant 0 : index
    %c1664_477 = arith.constant 1664 : index
    %703 = vector.load %arg14[%c0_476, %c1664_477] : memref<32x2304xbf16, #tpu.memory_space<vmem>>, vector<32x128xbf16>
    %cst_478 = arith.constant dense<0.000000e+00> : vector<64x128xf32>
    %704 = tpu.matmul %702, %703, %cst_478 {dimension_numbers = #tpu.dot_dimension_numbers<[1], [0], [0], [1], [0, 0, 1, 1], [], []>} : vector<64x32xbf16>, vector<32x128xbf16>, vector<64x128xf32> -> vector<64x128xf32>
    %c1_479 = arith.constant 1 : index
    %c0_480 = arith.constant 0 : index
    %c0_481 = arith.constant 0 : index
    %705 = vector.load %arg4[%c1_479, %c0_480, %c0_481] : memref<3x64x32xbf16, #tpu.memory_space<vmem>>, vector<1x64x32xbf16>
    %706 = vector.shape_cast %705 : vector<1x64x32xbf16> to vector<64x32xbf16>
    %c0_482 = arith.constant 0 : index
    %c1792_483 = arith.constant 1792 : index
    %707 = vector.load %arg14[%c0_482, %c1792_483] : memref<32x2304xbf16, #tpu.memory_space<vmem>>, vector<32x128xbf16>
    %cst_484 = arith.constant dense<0.000000e+00> : vector<64x128xf32>
    %708 = tpu.matmul %706, %707, %cst_484 {dimension_numbers = #tpu.dot_dimension_numbers<[1], [0], [0], [1], [0, 0, 1, 1], [], []>} : vector<64x32xbf16>, vector<32x128xbf16>, vector<64x128xf32> -> vector<64x128xf32>
    %709 = arith.addf %704, %708 : vector<64x128xf32>
    %c2_485 = arith.constant 2 : index
    %c0_486 = arith.constant 0 : index
    %c0_487 = arith.constant 0 : index
    %710 = vector.load %arg4[%c2_485, %c0_486, %c0_487] : memref<3x64x32xbf16, #tpu.memory_space<vmem>>, vector<1x64x32xbf16>
    %711 = vector.shape_cast %710 : vector<1x64x32xbf16> to vector<64x32xbf16>
    %c0_488 = arith.constant 0 : index
    %c1920_489 = arith.constant 1920 : index
    %712 = vector.load %arg14[%c0_488, %c1920_489] : memref<32x2304xbf16, #tpu.memory_space<vmem>>, vector<32x128xbf16>
    %cst_490 = arith.constant dense<0.000000e+00> : vector<64x128xf32>
    %713 = tpu.matmul %711, %712, %cst_490 {dimension_numbers = #tpu.dot_dimension_numbers<[1], [0], [0], [1], [0, 0, 1, 1], [], []>} : vector<64x32xbf16>, vector<32x128xbf16>, vector<64x128xf32> -> vector<64x128xf32>
    %714 = arith.addf %709, %713 : vector<64x128xf32>
    %715 = vector.broadcast %2 : vector<64x1xf32> to vector<64x128xf32>
    %716 = arith.addf %714, %715 : vector<64x128xf32>
    %cst_491 = arith.constant 0.000000e+00 : f32
    %717 = vector.broadcast %cst_491 : f32 to vector<64x128xf32>
    %718 = arith.maximumf %716, %717 : vector<64x128xf32>
    %719 = arith.truncf %718 : vector<64x128xf32> to vector<64x128xbf16>
    %c0_492 = arith.constant 0 : index
    %c0_493 = arith.constant 0 : index
    %720 = vector.load %arg15[%c0_492, %c0_493] : memref<256x128xf32, #tpu.memory_space<vmem>>, vector<256x128xf32>
    %c13_494 = arith.constant 13 : index
    %c0_495 = arith.constant 0 : index
    %c0_496 = arith.constant 0 : index
    %721 = vector.load %arg6[%c13_494, %c0_495, %c0_496] : memref<16x256x64xbf16, #tpu.memory_space<vmem>>, vector<1x256x64xbf16>
    %722 = vector.shape_cast %721 : vector<1x256x64xbf16> to vector<256x64xbf16>
    %cst_497 = arith.constant dense<0.000000e+00> : vector<256x128xf32>
    %723 = tpu.matmul %722, %719, %cst_497 {dimension_numbers = #tpu.dot_dimension_numbers<[1], [0], [0], [1], [0, 0, 1, 1], [], []>} : vector<256x64xbf16>, vector<64x128xbf16>, vector<256x128xf32> -> vector<256x128xf32>
    %724 = arith.addf %720, %723 : vector<256x128xf32>
    %c0_498 = arith.constant 0 : index
    %c0_499 = arith.constant 0 : index
    %725 = vector.load %arg15[%c0_498, %c0_499] : memref<256x128xf32, #tpu.memory_space<vmem>>, vector<256x128xf32>
    tpu.vector_store %arg15[%c0_498, %c0_499], %724 {strides = array<i32>} : memref<256x128xf32, #tpu.memory_space<vmem>>, vector<256x128xf32>,
    %c0_500 = arith.constant 0 : index
    %c0_501 = arith.constant 0 : index
    %c0_502 = arith.constant 0 : index
    %726 = vector.load %arg4[%c0_500, %c0_501, %c0_502] : memref<3x64x32xbf16, #tpu.memory_space<vmem>>, vector<1x64x32xbf16>
    %727 = vector.shape_cast %726 : vector<1x64x32xbf16> to vector<64x32xbf16>
    %c0_503 = arith.constant 0 : index
    %c1792_504 = arith.constant 1792 : index
    %728 = vector.load %arg14[%c0_503, %c1792_504] : memref<32x2304xbf16, #tpu.memory_space<vmem>>, vector<32x128xbf16>
    %cst_505 = arith.constant dense<0.000000e+00> : vector<64x128xf32>
    %729 = tpu.matmul %727, %728, %cst_505 {dimension_numbers = #tpu.dot_dimension_numbers<[1], [0], [0], [1], [0, 0, 1, 1], [], []>} : vector<64x32xbf16>, vector<32x128xbf16>, vector<64x128xf32> -> vector<64x128xf32>
    %c1_506 = arith.constant 1 : index
    %c0_507 = arith.constant 0 : index
    %c0_508 = arith.constant 0 : index
    %730 = vector.load %arg4[%c1_506, %c0_507, %c0_508] : memref<3x64x32xbf16, #tpu.memory_space<vmem>>, vector<1x64x32xbf16>
    %731 = vector.shape_cast %730 : vector<1x64x32xbf16> to vector<64x32xbf16>
    %c0_509 = arith.constant 0 : index
    %c1920_510 = arith.constant 1920 : index
    %732 = vector.load %arg14[%c0_509, %c1920_510] : memref<32x2304xbf16, #tpu.memory_space<vmem>>, vector<32x128xbf16>
    %cst_511 = arith.constant dense<0.000000e+00> : vector<64x128xf32>
    %733 = tpu.matmul %731, %732, %cst_511 {dimension_numbers = #tpu.dot_dimension_numbers<[1], [0], [0], [1], [0, 0, 1, 1], [], []>} : vector<64x32xbf16>, vector<32x128xbf16>, vector<64x128xf32> -> vector<64x128xf32>
    %734 = arith.addf %729, %733 : vector<64x128xf32>
    %c2_512 = arith.constant 2 : index
    %c0_513 = arith.constant 0 : index
    %c0_514 = arith.constant 0 : index
    %735 = vector.load %arg4[%c2_512, %c0_513, %c0_514] : memref<3x64x32xbf16, #tpu.memory_space<vmem>>, vector<1x64x32xbf16>
    %736 = vector.shape_cast %735 : vector<1x64x32xbf16> to vector<64x32xbf16>
    %c0_515 = arith.constant 0 : index
    %c2048_516 = arith.constant 2048 : index
    %737 = vector.load %arg14[%c0_515, %c2048_516] : memref<32x2304xbf16, #tpu.memory_space<vmem>>, vector<32x128xbf16>
    %cst_517 = arith.constant dense<0.000000e+00> : vector<64x128xf32>
    %738 = tpu.matmul %736, %737, %cst_517 {dimension_numbers = #tpu.dot_dimension_numbers<[1], [0], [0], [1], [0, 0, 1, 1], [], []>} : vector<64x32xbf16>, vector<32x128xbf16>, vector<64x128xf32> -> vector<64x128xf32>
    %739 = arith.addf %734, %738 : vector<64x128xf32>
    %740 = vector.broadcast %2 : vector<64x1xf32> to vector<64x128xf32>
    %741 = arith.addf %739, %740 : vector<64x128xf32>
    %cst_518 = arith.constant 0.000000e+00 : f32
    %742 = vector.broadcast %cst_518 : f32 to vector<64x128xf32>
    %743 = arith.maximumf %741, %742 : vector<64x128xf32>
    %744 = arith.truncf %743 : vector<64x128xf32> to vector<64x128xbf16>
    %c0_519 = arith.constant 0 : index
    %c0_520 = arith.constant 0 : index
    %745 = vector.load %arg15[%c0_519, %c0_520] : memref<256x128xf32, #tpu.memory_space<vmem>>, vector<256x128xf32>
    %c14_521 = arith.constant 14 : index
    %c0_522 = arith.constant 0 : index
    %c0_523 = arith.constant 0 : index
    %746 = vector.load %arg6[%c14_521, %c0_522, %c0_523] : memref<16x256x64xbf16, #tpu.memory_space<vmem>>, vector<1x256x64xbf16>
    %747 = vector.shape_cast %746 : vector<1x256x64xbf16> to vector<256x64xbf16>
    %cst_524 = arith.constant dense<0.000000e+00> : vector<256x128xf32>
    %748 = tpu.matmul %747, %744, %cst_524 {dimension_numbers = #tpu.dot_dimension_numbers<[1], [0], [0], [1], [0, 0, 1, 1], [], []>} : vector<256x64xbf16>, vector<64x128xbf16>, vector<256x128xf32> -> vector<256x128xf32>
    %749 = arith.addf %745, %748 : vector<256x128xf32>
    %c0_525 = arith.constant 0 : index
    %c0_526 = arith.constant 0 : index
    %750 = vector.load %arg15[%c0_525, %c0_526] : memref<256x128xf32, #tpu.memory_space<vmem>>, vector<256x128xf32>
    tpu.vector_store %arg15[%c0_525, %c0_526], %749 {strides = array<i32>} : memref<256x128xf32, #tpu.memory_space<vmem>>, vector<256x128xf32>,
    %c0_527 = arith.constant 0 : index
    %c0_528 = arith.constant 0 : index
    %c0_529 = arith.constant 0 : index
    %751 = vector.load %arg4[%c0_527, %c0_528, %c0_529] : memref<3x64x32xbf16, #tpu.memory_space<vmem>>, vector<1x64x32xbf16>
    %752 = vector.shape_cast %751 : vector<1x64x32xbf16> to vector<64x32xbf16>
    %c0_530 = arith.constant 0 : index
    %c1920_531 = arith.constant 1920 : index
    %753 = vector.load %arg14[%c0_530, %c1920_531] : memref<32x2304xbf16, #tpu.memory_space<vmem>>, vector<32x128xbf16>
    %cst_532 = arith.constant dense<0.000000e+00> : vector<64x128xf32>
    %754 = tpu.matmul %752, %753, %cst_532 {dimension_numbers = #tpu.dot_dimension_numbers<[1], [0], [0], [1], [0, 0, 1, 1], [], []>} : vector<64x32xbf16>, vector<32x128xbf16>, vector<64x128xf32> -> vector<64x128xf32>
    %c1_533 = arith.constant 1 : index
    %c0_534 = arith.constant 0 : index
    %c0_535 = arith.constant 0 : index
    %755 = vector.load %arg4[%c1_533, %c0_534, %c0_535] : memref<3x64x32xbf16, #tpu.memory_space<vmem>>, vector<1x64x32xbf16>
    %756 = vector.shape_cast %755 : vector<1x64x32xbf16> to vector<64x32xbf16>
    %c0_536 = arith.constant 0 : index
    %c2048_537 = arith.constant 2048 : index
    %757 = vector.load %arg14[%c0_536, %c2048_537] : memref<32x2304xbf16, #tpu.memory_space<vmem>>, vector<32x128xbf16>
    %cst_538 = arith.constant dense<0.000000e+00> : vector<64x128xf32>
    %758 = tpu.matmul %756, %757, %cst_538 {dimension_numbers = #tpu.dot_dimension_numbers<[1], [0], [0], [1], [0, 0, 1, 1], [], []>} : vector<64x32xbf16>, vector<32x128xbf16>, vector<64x128xf32> -> vector<64x128xf32>
    %759 = arith.addf %754, %758 : vector<64x128xf32>
    %c2_539 = arith.constant 2 : index
    %c0_540 = arith.constant 0 : index
    %c0_541 = arith.constant 0 : index
    %760 = vector.load %arg4[%c2_539, %c0_540, %c0_541] : memref<3x64x32xbf16, #tpu.memory_space<vmem>>, vector<1x64x32xbf16>
    %761 = vector.shape_cast %760 : vector<1x64x32xbf16> to vector<64x32xbf16>
    %c0_542 = arith.constant 0 : index
    %c2176_543 = arith.constant 2176 : index
    %762 = vector.load %arg14[%c0_542, %c2176_543] : memref<32x2304xbf16, #tpu.memory_space<vmem>>, vector<32x128xbf16>
    %cst_544 = arith.constant dense<0.000000e+00> : vector<64x128xf32>
    %763 = tpu.matmul %761, %762, %cst_544 {dimension_numbers = #tpu.dot_dimension_numbers<[1], [0], [0], [1], [0, 0, 1, 1], [], []>} : vector<64x32xbf16>, vector<32x128xbf16>, vector<64x128xf32> -> vector<64x128xf32>
    %764 = arith.addf %759, %763 : vector<64x128xf32>
    %765 = vector.broadcast %2 : vector<64x1xf32> to vector<64x128xf32>
    %766 = arith.addf %764, %765 : vector<64x128xf32>
    %cst_545 = arith.constant 0.000000e+00 : f32
    %767 = vector.broadcast %cst_545 : f32 to vector<64x128xf32>
    %768 = arith.maximumf %766, %767 : vector<64x128xf32>
    %769 = arith.truncf %768 : vector<64x128xf32> to vector<64x128xbf16>
    %c0_546 = arith.constant 0 : index
    %c0_547 = arith.constant 0 : index
    %770 = vector.load %arg15[%c0_546, %c0_547] : memref<256x128xf32, #tpu.memory_space<vmem>>, vector<256x128xf32>
    %c15_548 = arith.constant 15 : index
    %c0_549 = arith.constant 0 : index
    %c0_550 = arith.constant 0 : index
    %771 = vector.load %arg6[%c15_548, %c0_549, %c0_550] : memref<16x256x64xbf16, #tpu.memory_space<vmem>>, vector<1x256x64xbf16>
    %772 = vector.shape_cast %771 : vector<1x256x64xbf16> to vector<256x64xbf16>
    %cst_551 = arith.constant dense<0.000000e+00> : vector<256x128xf32>
    %773 = tpu.matmul %772, %769, %cst_551 {dimension_numbers = #tpu.dot_dimension_numbers<[1], [0], [0], [1], [0, 0, 1, 1], [], []>} : vector<256x64xbf16>, vector<64x128xbf16>, vector<256x128xf32> -> vector<256x128xf32>
    %774 = arith.addf %770, %773 : vector<256x128xf32>
    %c0_552 = arith.constant 0 : index
    %c0_553 = arith.constant 0 : index
    %775 = vector.load %arg15[%c0_552, %c0_553] : memref<256x128xf32, #tpu.memory_space<vmem>>, vector<256x128xf32>
    tpu.vector_store %arg15[%c0_552, %c0_553], %774 {strides = array<i32>} : memref<256x128xf32, #tpu.memory_space<vmem>>, vector<256x128xf32>,
    %c0_554 = arith.constant 0 : index
    %c0_555 = arith.constant 0 : index
    %776 = vector.load %arg15[%c0_554, %c0_555] : memref<256x128xf32, #tpu.memory_space<vmem>>, vector<256x128xf32>
    %c0_556 = arith.constant 0 : index
    %c0_557 = arith.constant 0 : index
    %777 = vector.load %arg7[%c0_556, %c0_557] : memref<256x1xf32, #tpu.memory_space<vmem>>, vector<256x1xf32>
    %778 = vector.broadcast %777 : vector<256x1xf32> to vector<256x128xf32>
    %779 = arith.addf %776, %778 : vector<256x128xf32>
    %cst_558 = arith.constant 0.000000e+00 : f32
    %780 = vector.broadcast %cst_558 : f32 to vector<256x128xf32>
    %781 = arith.maximumf %779, %780 : vector<256x128xf32>
    %782 = arith.truncf %781 : vector<256x128xf32> to vector<256x128xbf16>
    %c0_559 = arith.constant 0 : index
    %c0_560 = arith.constant 0 : index
    %783 = vector.load %arg8[%c0_559, %c0_560] : memref<8x128xbf16, #tpu.memory_space<vmem>>, vector<8x128xbf16>
    %784 = vector.extract_strided_slice %782 {offsets = [0, 0], sizes = [128, 128], strides = [1, 1]} : vector<256x128xbf16> to vector<128x128xbf16>
    %cst_561 = arith.constant dense<0.000000e+00> : vector<8x128xf32>
    %785 = tpu.matmul %783, %784, %cst_561 {dimension_numbers = #tpu.dot_dimension_numbers<[1], [0], [0], [1], [0, 0, 1, 1], [], []>} : vector<8x128xbf16>, vector<128x128xbf16>, vector<8x128xf32> -> vector<8x128xf32>
    %c0_562 = arith.constant 0 : index
    %c0_563 = arith.constant 0 : index
    %786 = vector.load %arg9[%c0_562, %c0_563] : memref<8x1xf32, #tpu.memory_space<vmem>>, vector<8x1xf32>
    %787 = vector.broadcast %786 : vector<8x1xf32> to vector<8x128xf32>
    %788 = arith.addf %785, %787 : vector<8x128xf32>
    %c0_564 = arith.constant 0 : index
    %c0_565 = arith.constant 0 : index
    %789 = vector.load %arg10[%c0_564, %c0_565] : memref<8x128xbf16, #tpu.memory_space<vmem>>, vector<8x128xbf16>
    %790 = vector.extract_strided_slice %782 {offsets = [128, 0], sizes = [128, 128], strides = [1, 1]} : vector<256x128xbf16> to vector<128x128xbf16>
    %cst_566 = arith.constant dense<0.000000e+00> : vector<8x128xf32>
    %791 = tpu.matmul %789, %790, %cst_566 {dimension_numbers = #tpu.dot_dimension_numbers<[1], [0], [0], [1], [0, 0, 1, 1], [], []>} : vector<8x128xbf16>, vector<128x128xbf16>, vector<8x128xf32> -> vector<8x128xf32>
    %c0_567 = arith.constant 0 : index
    %c0_568 = arith.constant 0 : index
    %792 = vector.load %arg11[%c0_567, %c0_568] : memref<8x1xf32, #tpu.memory_space<vmem>>, vector<8x1xf32>
    %793 = vector.broadcast %792 : vector<8x1xf32> to vector<8x128xf32>
    %794 = arith.addf %791, %793 : vector<8x128xf32>
    %c0_569 = arith.constant 0 : index
    %c0_570 = arith.constant 0 : index
    %795 = vector.load %arg12[%c0_569, %c0_570] : memref<8x128xf32, #tpu.memory_space<vmem>>, vector<8x128xf32>
    %cst_571 = arith.constant 5.000000e-01 : f32
    %796 = vector.broadcast %cst_571 : f32 to vector<8x128xf32>
    %797 = arith.mulf %796, %794 : vector<8x128xf32>
    %798 = math.exp %797 : vector<8x128xf32>
    %799 = arith.mulf %795, %798 : vector<8x128xf32>
    %800 = arith.addf %788, %799 : vector<8x128xf32>
    %c0_572 = arith.constant 0 : index
    %c0_573 = arith.constant 0 : index
    %801 = vector.load %arg13[%c0_572, %c0_573] : memref<24x128xf32, #tpu.memory_space<vmem>>, vector<8x128xf32>
    tpu.vector_store %arg13[%c0_572, %c0_573], %800 {strides = array<i32>} : memref<24x128xf32, #tpu.memory_space<vmem>>, vector<8x128xf32>,
    %c8_574 = arith.constant 8 : index
    %c0_575 = arith.constant 0 : index
    %802 = vector.load %arg13[%c8_574, %c0_575] : memref<24x128xf32, #tpu.memory_space<vmem>>, vector<8x128xf32>
    tpu.vector_store %arg13[%c8_574, %c0_575], %788 {strides = array<i32>} : memref<24x128xf32, #tpu.memory_space<vmem>>, vector<8x128xf32>,
    %c16_576 = arith.constant 16 : index
    %c0_577 = arith.constant 0 : index
    %803 = vector.load %arg13[%c16_576, %c0_577] : memref<24x128xf32, #tpu.memory_space<vmem>>, vector<8x128xf32>
    tpu.vector_store %arg13[%c16_576, %c0_577], %794 {strides = array<i32>} : memref<24x128xf32, #tpu.memory_space<vmem>>, vector<8x128xf32>,
    return
  }
  func.func @transform_0(%arg0: i32) -> (i32, i32) {
    %c0_i32 = arith.constant 0 : i32
    %c0_i32_0 = arith.constant 0 : i32
    return %c0_i32, %arg0 : i32, i32
  }
  func.func @transform_1(%arg0: i32) -> (i32, i32) {
    %c0_i32 = arith.constant 0 : i32
    %c0_i32_0 = arith.constant 0 : i32
    %c0_i32_1 = arith.constant 0 : i32
    return %c0_i32, %c0_i32_0 : i32, i32
  }
  func.func @transform_2(%arg0: i32) -> (i32, i32) {
    %c0_i32 = arith.constant 0 : i32
    %c0_i32_0 = arith.constant 0 : i32
    %c0_i32_1 = arith.constant 0 : i32
    return %c0_i32, %c0_i32_0 : i32, i32
  }
  func.func @transform_3(%arg0: i32) -> (i32, i32, i32) {
    %c0_i32 = arith.constant 0 : i32
    %c0_i32_0 = arith.constant 0 : i32
    %c0_i32_1 = arith.constant 0 : i32
    %c0_i32_2 = arith.constant 0 : i32
    return %c0_i32, %c0_i32_0, %c0_i32_1 : i32, i32, i32
  }
  func.func @transform_4(%arg0: i32) -> (i32, i32) {
    %c0_i32 = arith.constant 0 : i32
    %c0_i32_0 = arith.constant 0 : i32
    %c0_i32_1 = arith.constant 0 : i32
    return %c0_i32, %c0_i32_0 : i32, i32
  }
  func.func @transform_5(%arg0: i32) -> (i32, i32, i32) {
    %c0_i32 = arith.constant 0 : i32
    %c0_i32_0 = arith.constant 0 : i32
    %c0_i32_1 = arith.constant 0 : i32
    %c0_i32_2 = arith.constant 0 : i32
    return %c0_i32, %c0_i32_0, %c0_i32_1 : i32, i32, i32
  }
  func.func @transform_6(%arg0: i32) -> (i32, i32) {
    %c0_i32 = arith.constant 0 : i32
    %c0_i32_0 = arith.constant 0 : i32
    %c0_i32_1 = arith.constant 0 : i32
    return %c0_i32, %c0_i32_0 : i32, i32
  }
  func.func @transform_7(%arg0: i32) -> (i32, i32) {
    %c0_i32 = arith.constant 0 : i32
    %c0_i32_0 = arith.constant 0 : i32
    %c0_i32_1 = arith.constant 0 : i32
    return %c0_i32, %c0_i32_0 : i32, i32
  }
  func.func @transform_8(%arg0: i32) -> (i32, i32) {
    %c0_i32 = arith.constant 0 : i32
    %c0_i32_0 = arith.constant 0 : i32
    %c0_i32_1 = arith.constant 0 : i32
    return %c0_i32, %c0_i32_0 : i32, i32
  }
  func.func @transform_9(%arg0: i32) -> (i32, i32) {
    %c0_i32 = arith.constant 0 : i32
    %c0_i32_0 = arith.constant 0 : i32
    %c0_i32_1 = arith.constant 0 : i32
    return %c0_i32, %c0_i32_0 : i32, i32
  }
  func.func @transform_10(%arg0: i32) -> (i32, i32) {
    %c0_i32 = arith.constant 0 : i32
    %c0_i32_0 = arith.constant 0 : i32
    %c0_i32_1 = arith.constant 0 : i32
    return %c0_i32, %c0_i32_0 : i32, i32
  }
  func.func @transform_11(%arg0: i32) -> (i32, i32) {
    %c0_i32 = arith.constant 0 : i32
    %c0_i32_0 = arith.constant 0 : i32
    return %c0_i32, %arg0 : i32, i32
  }
  func.func @transform_12(%arg0: i32) -> (i32, i32) {
    %c0_i32 = arith.constant 0 : i32
    %c0_i32_0 = arith.constant 0 : i32
    return %c0_i32, %arg0 : i32, i32
  }
}

</mosaic_0001>

<bundles_post_ra>
// kernel: tpu_custom_call.1
= control target key start
LH: loop header
LB: loop body
LE: loop exit
PB: predicated region body
PF: predicated region fallthrough
CT: control target
= control target key end

     0   :  { %v15429_v2 = vmov 2   ;;  %v15430_v3 = vmov 1   ;;  %v15431_v4 = vmov 0   ;;  %s20079_s0 = inlined_call_operand.vmem [shape: f32[18,128], index: 0, kind: input, shape index: {}]   ;;  %s20080_s1 = inlined_call_operand.vmem [shape: f32[32,3], index: 1, kind: input, shape index: {}]   ;;  %s20081_s2 = inlined_call_operand.vmem [shape: f32[32,1], index: 2, kind: input, shape index: {}]   ;;  %s20082_s3 = inlined_call_operand.vmem [shape: bf16[3,64,32], index: 3, kind: input, shape index: {}]   ;;  %s20083_s4 = inlined_call_operand.vmem [shape: f32[64,1], index: 4, kind: input, shape index: {}]   ;;  %s20084_s5 = inlined_call_operand.vmem [shape: bf16[16,256,64], index: 5, kind: input, shape index: {}]   ;;  %s20085_s6 = inlined_call_operand.vmem [shape: f32[256,1], index: 6, kind: input, shape index: {}]   ;;  %s20086_s7 = inlined_call_operand.vmem [shape: bf16[8,128], index: 7, kind: input, shape index: {}]   ;;  %s20087_s8 = inlined_call_operand.vmem [shape: f32[8,1], index: 8, kind: input, shape index: {}]   ;;  %s20088_s9 = inlined_call_operand.vmem [shape: bf16[8,128], index: 9, kind: input, shape index: {}]   ;;  %s20089_s10 = inlined_call_operand.vmem [shape: f32[8,1], index: 10, kind: input, shape index: {}]   ;;  %s20090_s11 = inlined_call_operand.vmem [shape: f32[8,128], index: 11, kind: input, shape index: {}]   ;;  %s20091_s12 = inlined_call_operand.hbm [shape: f32[24,128], index: 12, kind: output, shape index: {}]  }
   0x1   :  { %v45_v0 = vld [vmem:[%s20080_s1 + $0x10] sm:$0xff]  ;;  %v44_v1 = vld [vmem:[%s20080_s1 + $0x8] sm:$0xff]  ;;  %15344 = vset.pattern.permute.xlu2 %v15429_v2  ;;  %15347 = vset.pattern.permute.xlu0 %v15430_v3  ;;  %59 = vst [vmem:[#allocation2] sm:$0xf] %v15431_v4  ;;  %v46_v5 = vld [vmem:[%s20080_s1 + $0x18] sm:$0xff] }
   0x2   :  { %15343 = vset.pattern.permute.xlu1 %v15430_v3  ;;  %129 = vperm.xlu2 %15344, %v45_v0   ;;  %60 = vst [vmem:[#allocation2 + $0x48] sm:$0xf] %v15431_v4  ;;  %v43_v6 = vld [vmem:[%s20080_s1] sm:$0xff] }
   0x3   :  { %103 = vperm.xlu1 %15343, %v45_v0   ;;  %99 = vperm.xlu0 %15347, %v44_v1   ;;  %61 = vst [vmem:[#allocation2 + $0x90] sm:$0xf] %v15431_v4 }
   0x4   :  { %62 = vst [vmem:[#allocation2 + $0xd8] sm:$0xf] %v15431_v4 }
   0x5   :  { %63 = vst [vmem:[#allocation2 + $0x44] sm:$0xf] %v15431_v4 }
   0x6   :  { %64 = vst [vmem:[#allocation2 + $0x8c] sm:$0xf] %v15431_v4 }
   0x7   :  { %65 = vst [vmem:[#allocation2 + $0xd4] sm:$0xf] %v15431_v4 }
   0x8   :  { %66 = vst [vmem:[#allocation2 + $0x11c] sm:$0xf] %v15431_v4 }
   0xa   :  { %133 = vperm.xlu2 %15344, %v46_v5  }
   0xb   :  { %107 = vperm.xlu1 %15343, %v46_v5   ;;  %15348 = vset.pattern.permute.xlu0 %v15431_v4 }
   0xc   :  { %80 = vperm.xlu0 %15348, %v45_v0  }
  0x12   :  { %15346 = vset.pattern.permute.xlu2 %v15430_v3 }
  0x13   :  { %15345 = vset.pattern.permute.xlu1 %v15431_v4  ;;  %95 = vperm.xlu2 %15346, %v43_v6  }
  0x14   :  { %85 = vperm.xlu0 %15348, %v46_v5   ;;  %75 = vperm.xlu1 %15345, %v44_v1  }
  0x15   :  { %17 = vsyncpa [#allocation5], 0  ;;  %v47_v7 = vld [vmem:[%s20081_s2] sm:$0xff]  ;;  %v49_v8 = vld [vmem:[%s20081_s2 + $0x10] sm:$0xff]  ;;  %vm900_vm0 = vcmask 261120   ;;  %vm1313_vm1 = vcmask 523264  }
  0x16   :  { %v50_v9 = vld [vmem:[%s20081_s2 + $0x18] sm:$0xff]  ;;  %v56_v10 = vld [vmem:[%s20083_s4 + $0x28] sm:$0xff]  ;;  %v57_v12 = vld [vmem:[%s20083_s4 + $0x30] sm:$0xff]  ;;  %s11421_s23 = sshll.u32 %s20091_s12, 4  ;;  %s15433_s24 = smov 128   ;;  %s11422_s23 = int_to_ptr.hbm [resolvable:$true] %s11421_s23 }
  0x17   :  { %v48_v11 = vld [vmem:[%s20081_s2 + $0x8] sm:$0xff]  ;;  %v51_v13 = vld [vmem:[%s20083_s4] sm:$0xff]  ;;  %v58_v14 = vld [vmem:[%s20083_s4 + $0x38] sm:$0xff]  ;;  %s15434_s25 = smov 8  }
  0x18   :  { %v55_v15 = vld [vmem:[%s20083_s4 + $0x20] sm:$0xff]  ;;  %v11013_v16 = vld [vmem:[%s20085_s6 + $0xf8] sm:$0xff]  ;;  %v53_v17 = vld [vmem:[%s20083_s4 + $0x10] sm:$0xff] }
  0x19   :  { %v54_v18 = vld [vmem:[%s20083_s4 + $0x18] sm:$0xff]  ;;  %v11008_v19 = vld [vmem:[%s20085_s6 + $0xd0] sm:$0xff]  ;;  %v52_v20 = vld [vmem:[%s20083_s4 + $0x8] sm:$0xff] }
  0x1a   :  { %v11012_v21 = vld [vmem:[%s20085_s6 + $0xf0] sm:$0xff]  ;;  %v10997_v22 = vld [vmem:[%s20085_s6 + $0x78] sm:$0xff]  ;;  %v11010_v25 = vld [vmem:[%s20085_s6 + $0xe0] sm:$0xff] }
  0x1b   :  { %15350 = vset.pattern.permute.xlu2 %v15429_v2  ;;  %v11491_v23 = vld [vmem:[#allocation2 + $0x90] sm:$0xf]  ;;  %v14798_v24 = vld [vmem:[#allocation2 + $0xd4] sm:$0xf0]  ;;  %v11011_v26 = vld [vmem:[%s20085_s6 + $0xe8] sm:$0xff] }
  0x1c   :  { %15349 = vset.pattern.permute.xlu1 %v15429_v2  ;;  %70 = vperm.xlu0 %15348, %v43_v6   ;;  %v11492_v27 = vor.u32 %v14798_v24, %v11491_v23  ;;  %v11487_v28 = vld [vmem:[#allocation2] sm:$0xf]  ;;  %v14797_v29 = vld [vmem:[#allocation2 + $0x44] sm:$0xf0]  ;;  %v11009_v33 = vld [vmem:[%s20085_s6 + $0xd8] sm:$0xff] }
  0x1d   :  { %121 = vperm.xlu1 %15349, %v43_v6   ;;  %125 = vperm.xlu2 %15350, %v44_v1   ;;  %v11488_v30 = vor.u32 %v14797_v29, %v11487_v28  ;;  %v14793_v31 = vld [vmem:[%s20082_s3] sm:$0xff]  ;;  %v10996_v34 = vld [vmem:[%s20085_s6 + $0x70] sm:$0xff]  ;;  %v11005_v35 = vld [vmem:[%s20085_s6 + $0xb8] sm:$0xff] }
  0x1e   :  { %992 = vmatpush.bf16.msra.mxu1 %v11492_v27  ;;  %v10994_v32 = vld [vmem:[%s20085_s6 + $0x60] sm:$0xff]  ;;  %v11007_v37 = vld [vmem:[%s20085_s6 + $0xc8] sm:$0xff]  ;;  %v11004_v42 = vld [vmem:[%s20085_s6 + $0xb0] sm:$0xff] }
  0x1f   :  { %v11006_v36 = vld [vmem:[%s20085_s6 + $0xc0] sm:$0xff]  ;;  %v14794_v39 = vld [vmem:[%s20082_s3 + $0x8] sm:$0xff]  ;;  %v10992_v45 = vld [vmem:[%s20085_s6 + $0x50] sm:$0xff] }
  0x20   :  { %v11002_v40 = vld [vmem:[%s20085_s6 + $0xa0] sm:$0xff]  ;;  %v10995_v41 = vld [vmem:[%s20085_s6 + $0x68] sm:$0xff]  ;;  %v10993_v46 = vld [vmem:[%s20085_s6 + $0x58] sm:$0xff] }
  0x21   :  { %v10991_v43 = vld [vmem:[%s20085_s6 + $0x48] sm:$0xff]  ;;  %v14795_v47 = vld [vmem:[%s20082_s3 + $0x10] sm:$0xff]  ;;  %v10990_v50 = vld [vmem:[%s20085_s6 + $0x40] sm:$0xff] }
  0x22   :  { %993 = vmatpush.bf16.msra.mxu1 %v11488_v30  ;;  %v10988_v48 = vld [vmem:[%s20085_s6 + $0x30] sm:$0xff]  ;;  %v11003_v49 = vld [vmem:[%s20085_s6 + $0xa8] sm:$0xff]  ;;  %v15636_v54 = vld [vmem:[%s20079_s0 + $0x2] ss:$0 sm:$0xff] }
  0x23   :  { %v15641_v55 = vld [vmem:[%s20079_s0 + $0x3] ss:$0 sm:$0xff]  ;;  %v15646_v56 = vld [vmem:[%s20079_s0 + $0x4] ss:$0 sm:$0xff]  ;;  %v15651_v57 = vld [vmem:[%s20079_s0 + $0x5] ss:$0 sm:$0xff] }
  0x24   :  { %147 = vperm.xlu0 %15348, %v47_v7   ;;  %v15656_v58 = vld [vmem:[%s20079_s0 + $0x6] ss:$0 sm:$0xff]  ;;  %v15661_v59 = vld [vmem:[%s20079_s0 + $0x1] ss:$0 sm:$0xff]  ;;  %v10999_v60 = vld [vmem:[%s20085_s6 + $0x88] sm:$0xff] }
  0x25   :  { %15351 = vset.pattern.permute.xlu1 %v15431_v4  ;;  %15352 = vset.pattern.permute.xlu2 %v15431_v4  ;;  %v15673_v62 = vld [vmem:[%s20079_s0 + $0x2] ss:$0 sm:$0xff]  ;;  %v15682_v0 = vld [vmem:[%s20079_s0 + $0x7] ss:$0 sm:$0xff]  ;;  %v11000_v1 = vld [vmem:[%s20085_s6 + $0x90] sm:$0xff] }
  0x26   :  { %157 = vperm.xlu1 %15351, %v49_v8   ;;  %162 = vperm.xlu2 %15352, %v50_v9   ;;  %20104 = vst [vmem:[#allocation9_spill] sm:$0xff] %v15682_v0  ;;  %v15698_v4 = vld [vmem:[%s20079_s0 + $0x3] ss:$0 sm:$0xff]  ;;  %v15707_v6 = vld [vmem:[%s20079_s0 + $0x4] ss:$0 sm:$0xff]  ;;  %v11001_v8 = vld [vmem:[%s20085_s6 + $0x98] sm:$0xff] }
  0x27   :  { %11493 = vmatmul.msk.bf16.vlgmr.msra.gmra.mxu1 %vm900_vm0, %v14793_v31  ;;  %v15719_v9 = vld [vmem:[%s20079_s0] ss:$0 sm:$0xff]  ;;  %v15777_v24 = vld [vmem:[%s20079_s0 + $0x4] ss:$0 sm:$0xff]  ;;  %v15366_v31 = vld [vmem:[%s20079_s0 + $0x5] ss:$0 sm:$0xff] }
  0x2c   :  { %1136 = vperm.xlu0 %15348, %v56_v10   ;;  %v15724_v10 = vld [vmem:[%s20079_s0 + $0x1] ss:$0 sm:$0xff] }
  0x2e   :  { %152 = vperm.xlu1 %15351, %v48_v11   ;;  %1141 = vperm.xlu2 %15352, %v57_v12  }
  0x34   :  { %1111 = vperm.xlu0 %15348, %v51_v13  }
  0x36   :  { %1146 = vperm.xlu1 %15351, %v58_v14   ;;  %1131 = vperm.xlu2 %15352, %v55_v15  }
  0x37   :  { %11494 = vmatmul.msk.bf16.gmra.mxu1 %vm900_vm0, %v14794_v39 }
  0x3c   :  { %11171 = vperm.xlu0 %15348, %v11013_v16  }
  0x3e   :  { %1121 = vperm.xlu1 %15351, %v53_v17   ;;  %1126 = vperm.xlu2 %15352, %v54_v18   ;;  %v15753_v17 = vld [vmem:[%s20079_s0 + $0x2] ss:$0 sm:$0xff] }
  0x44   :  { %11146 = vperm.xlu0 %15348, %v11008_v19   ;;  %v15762_v19 = vld [vmem:[%s20079_s0 + $0x3] ss:$0 sm:$0xff] }
  0x46   :  { %1116 = vperm.xlu1 %15351, %v52_v20   ;;  %11166 = vperm.xlu2 %15352, %v11012_v21  }
  0x47   :  { %11495 = vmatmul.msk.bf16.gmra.mxu1 %vm900_vm0, %v14795_v47  ;;  %v10984_v47 = vld [vmem:[%s20085_s6 + $0x10] sm:$0xff] }
  0x4c   :  { %11091 = vperm.xlu0 %15348, %v10997_v22  }
  0x4e   :  { %11156 = vperm.xlu1 %15351, %v11010_v25   ;;  %11161 = vperm.xlu2 %15352, %v11011_v26  }
  0x54   :  { %11076 = vperm.xlu0 %15348, %v10994_v32   ;;  %v15805_v32 = vld [vmem:[%s20079_s0 + $0x5] ss:$0 sm:$0xff] }
  0x55   :  { %20108 = vst [vmem:[#allocation13_spill] sm:$0xff] %v15805_v32 }
  0x56   :  { %11151 = vperm.xlu1 %15351, %v11009_v33   ;;  %11086 = vperm.xlu2 %15352, %v10996_v34   ;;  %v15810_v33 = vld [vmem:[%s20079_s0 + $0x6] ss:$0 sm:$0xff] }
  0x5c   :  { %11131 = vperm.xlu0 %15348, %v11005_v35   ;;  %v15588_v38 = vpop.permute.xlu2 %129 }
  0x5d   :  { %20102 = vst [vmem:[#allocation7_spill] sm:$0xff] %v15588_v38  ;;  %v15668_v61 = vmul.f32 %v15636_v54, %v15588_v38  ;;  %v15677_v63 = vmul.f32 %v15641_v55, %v15588_v38  ;;  %v15702_v5 = vmul.f32 %v15646_v56, %v15588_v38  ;;  %v15711_v7 = vmul.f32 %v15651_v57, %v15588_v38 }
  0x5e   :  { %11136 = vperm.xlu1 %15351, %v11006_v36   ;;  %11141 = vperm.xlu2 %15352, %v11007_v37   ;;  %v15736_v13 = vmul.f32 %v15656_v58, %v15588_v38  ;;  %v15781_v25 = vmul.f32 %v15682_v0, %v15588_v38 }
  0x64   :  { %11116 = vperm.xlu0 %15348, %v11002_v40   ;;  %v15606_v44 = vpop.permute.xlu2 %133  ;;  %v15827_v40 = vld [vmem:[%s20079_s0 + $0x7] ss:$0 sm:$0xff] }
  0x65   :  { %20103 = vst [vmem:[#allocation8_spill] sm:$0xff] %v15606_v44  ;;  %v15689_v2 = vmul.f32 %v15636_v54, %v15606_v44  ;;  %v15693_v3 = vmul.f32 %v15641_v55, %v15606_v44  ;;  %v15728_v11 = vmul.f32 %v15646_v56, %v15606_v44  ;;  %v15732_v12 = vmul.f32 %v15651_v57, %v15606_v44 }
  0x66   :  { %11081 = vperm.xlu1 %15351, %v10995_v41   ;;  %11126 = vperm.xlu2 %15352, %v11004_v42   ;;  %v15740_v14 = vmul.f32 %v15656_v58, %v15606_v44  ;;  %v15785_v26 = vmul.f32 %v15682_v0, %v15606_v44  ;;  %v14796_v41 = vld [vmem:[%s20082_s3 + $0x18] sm:$0xff] }
  0x67   :  { %v10989_v0 = vld [vmem:[%s20085_s6 + $0x38] sm:$0xff]  ;;  %11496 = vmatmul.msk.bf16.gmra.mxu1 %vm900_vm0, %v14796_v41 }
  0x68   :  { %20105 = vst [vmem:[#allocation10_spill] sm:$0xff] %v15740_v14 }
  0x69   :  { %20106 = vst [vmem:[#allocation11_spill] sm:$0xff] %v15785_v26  ;;  %v10998_v26 = vld [vmem:[%s20085_s6 + $0x80] sm:$0xff] }
  0x6c   :  { %11061 = vperm.xlu0 %15348, %v10991_v43  }
  0x6d   :  { %v15626_v51 = vpop.permute.xlu2 %95 }
  0x6e   :  { %11066 = vperm.xlu1 %15351, %v10992_v45   ;;  %11071 = vperm.xlu2 %15352, %v10993_v46   ;;  %v15744_v15 = vmul.f32 %v15661_v59, %v15626_v51  ;;  %v15748_v16 = vmul.f32 %v15673_v62, %v15626_v51  ;;  %v15757_v18 = vmul.f32 %v15698_v4, %v15626_v51 }
  0x6f   :  { %v15766_v20 = vmul.f32 %v15707_v6, %v15626_v51 }
  0x74   :  { %11046 = vperm.xlu0 %15348, %v10988_v48  }
  0x75   :  { %v15629_v52 = vpop.permute.xlu1 %103  ;;  %v15631_v53 = vpop.permute.xlu0 %99 }
  0x76   :  { %11121 = vperm.xlu1 %15351, %v11003_v49   ;;  %11056 = vperm.xlu2 %15352, %v10990_v50   ;;  %v113_v22 = vmul.f32 %v15661_v59, %v15629_v52  ;;  %v191_v23 = vmul.f32 %v15673_v62, %v15629_v52  ;;  %v15791_v28 = vmul.f32 %v15661_v59, %v15631_v53 }
  0x77   :  { %v15795_v29 = vmul.f32 %v15673_v62, %v15631_v53  ;;  %v233_v30 = vmul.f32 %v15698_v4, %v15629_v52  ;;  %v15812_v34 = vpop.permute.xlu2 %125  ;;  %v15820_v37 = vmul.f32 %v15698_v4, %v15631_v53  ;;  %v275_v39 = vmul.f32 %v15707_v6, %v15629_v52 }
  0x78   :  { %v15834_v42 = vmul.f32 %v15636_v54, %v15812_v34  ;;  %v15838_v43 = vmul.f32 %v15641_v55, %v15812_v34  ;;  %v15849_v48 = vmul.f32 %v15646_v56, %v15812_v34  ;;  %v15853_v49 = vmul.f32 %v15707_v6, %v15631_v53 }
  0x79   :  { %v15857_v50 = vmul.f32 %v15651_v57, %v15812_v34  ;;  %v359_v38 = vmul.f32 %v15810_v33, %v15629_v52 }
  0x7a   :  { %20109 = vst [vmem:[#allocation14_spill] sm:$0xff] %v15834_v42 }
  0x7b   :  { %20110 = vst [vmem:[#allocation15_spill] sm:$0xff] %v15838_v43 }
  0x7c   :  { %11101 = vperm.xlu0 %15348, %v10999_v60   ;;  %20111 = vst [vmem:[#allocation16_spill] sm:$0xff] %v15849_v48 }
  0x7d   :  { %v15768_v21 = vpop.permute.xlu1 %107  ;;  %20112 = vst [vmem:[#allocation17_spill] sm:$0xff] %v15857_v50 }
  0x7e   :  { %v15787_v27 = vpop.permute.xlu0 %80  ;;  %11106 = vperm.xlu1 %15351, %v11000_v1   ;;  %11111 = vperm.xlu2 %15352, %v11001_v8   ;;  %v317_v1 = vmul.f32 %v15366_v31, %v15629_v52  ;;  %v15863_v8 = vmul.f32 %v15366_v31, %v15631_v53  ;;  %v114_v50 = vmul.f32 %v15661_v59, %v15768_v21 }
  0x7f   :  { %20107 = vst [vmem:[#allocation12_spill] sm:$0xff] %v15787_v27  ;;  %v91_v35 = vmul.f32 %v15719_v9, %v15787_v27  ;;  %v185_v36 = vmul.f32 %v15724_v10, %v15787_v27  ;;  %v227_v45 = vmul.f32 %v15753_v17, %v15787_v27  ;;  %v269_v46 = vmul.f32 %v15762_v19, %v15787_v27 }
  0x80   :  { %v311_v60 = vmul.f32 %v15777_v24, %v15787_v27  ;;  %20113 = vst [vmem:[#allocation18_spill] sm:$0xff] %v15863_v8  ;;  %v353_v44 = vmul.f32 %v15805_v32, %v15787_v27  ;;  %v15879_v8 = vmul.f32 %v15827_v40, %v15629_v52  ;;  %v192_v27 = vmul.f32 %v15673_v62, %v15768_v21 }
  0x81   :  { %v117_v48 = vadd.f32 %v113_v22, %v91_v35  ;;  %v195_v14 = vadd.f32 %v191_v23, %v185_v36  ;;  %v237_v32 = vadd.f32 %v233_v30, %v227_v45  ;;  %v279_v43 = vadd.f32 %v275_v39, %v269_v46 }
  0x82   :  { %v234_v42 = vmul.f32 %v15698_v4, %v15768_v21  ;;  %v276_v59 = vmul.f32 %v15707_v6, %v15768_v21  ;;  %v15889_v22 = vmul.f32 %v15366_v31, %v15768_v21  ;;  %v321_v23 = vadd.f32 %v317_v1, %v311_v60 }
  0x83   :  { %v15897_v62 = vmul.f32 %v15656_v58, %v15812_v34  ;;  %v15901_v4 = vmul.f32 %v15810_v33, %v15768_v21  ;;  %v363_v30 = vadd.f32 %v359_v38, %v353_v44  ;;  %v15906_v39 = vadd.f32 %v15668_v61, %v117_v48  ;;  %v10983_v61 = vld [vmem:[%s20085_s6 + $0x8] sm:$0xff] }
  0x84   :  { %11026 = vperm.xlu0 %15348, %v10984_v47   ;;  %v15916_v45 = vadd.f32 %v15702_v5, %v237_v32  ;;  %v15921_v44 = vadd.f32 %v15711_v7, %v279_v43  ;;  %v15931_v48 = vadd.f32 %v15736_v13, %v321_v23  ;;  %v15934_v7 = vmul.f32 %v15366_v31, %v15626_v51  ;;  %v10986_v43 = vld [vmem:[%s20085_s6 + $0x20] sm:$0xff]  ;;  %v15951_v31 = vpop.permute.xlu2 %162 }
  0x85   :  { %v15949_v13 = vmul.f32 %v15810_v33, %v15631_v53 }
  0x86   :  { %v15891_v35 = vpop.permute.xlu0 %85  ;;  %v15893_v36 = vpop.permute.xlu1 %75  ;;  %11051 = vperm.xlu1 %15351, %v10989_v0   ;;  %11096 = vperm.xlu2 %15352, %v10998_v26   ;;  %v15911_v0 = vadd.f32 %v15677_v63, %v195_v14 }
  0x87   :  { %v92_v6 = vmul.f32 %v15719_v9, %v15891_v35  ;;  %v186_v41 = vmul.f32 %v15724_v10, %v15891_v35  ;;  %v228_v26 = vmul.f32 %v15753_v17, %v15891_v35  ;;  %v270_v38 = vmul.f32 %v15762_v19, %v15891_v35 }
  0x88   :  { %v90_v63 = vmul.f32 %v15719_v9, %v15893_v36  ;;  %v184_v14 = vmul.f32 %v15724_v10, %v15893_v36 }
  0x89   :  { %v118_v46 = vadd.f32 %v114_v50, %v92_v6  ;;  %v196_v47 = vadd.f32 %v192_v27, %v186_v41  ;;  %v238_v5 = vadd.f32 %v234_v42, %v228_v26  ;;  %v280_v32 = vadd.f32 %v276_v59, %v270_v38  ;;  %v10987_v27 = vld [vmem:[%s20085_s6 + $0x28] sm:$0xff] }
  0x8a   :  { %v15945_v42 = vadd.f32 %v15781_v25, %v363_v30  ;;  %v226_v59 = vmul.f32 %v15753_v17, %v15893_v36  ;;  %v116_v30 = vadd.f32 %v15791_v28, %v90_v63  ;;  %v194_v6 = vadd.f32 %v15795_v29, %v184_v14 }
  0x8b   :  { %v144_v50 = vadd.f32 %v15689_v2, %v118_v46  ;;  %v206_v60 = vadd.f32 %v15693_v3, %v196_v47  ;;  %v248_v1 = vadd.f32 %v15728_v11, %v238_v5  ;;  %v290_v23 = vadd.f32 %v15732_v12, %v280_v32 }
  0x8c   :  { %11021 = vperm.xlu0 %15348, %v10983_v61   ;;  %v268_v2 = vmul.f32 %v15762_v19, %v15893_v36  ;;  %v312_v12 = vmul.f32 %v15777_v24, %v15891_v35 }
  0x8d   :  { %v168_v3 = vadd.f32 %v15951_v31, %v144_v50  ;;  %v210_v25 = vadd.f32 %v206_v60, %v15951_v31  ;;  %v252_v11 = vadd.f32 %v248_v1, %v15951_v31  ;;  %v294_v26 = vadd.f32 %v290_v23, %v15951_v31 }
  0x8e   :  { %11036 = vperm.xlu1 %15351, %v10986_v43   ;;  %v15963_v41 = vpop.permute.xlu0 %70  ;;  %11041 = vperm.xlu2 %15352, %v10987_v27  }
  0x8f   :  { %v15969_v38 = vpop.permute.xlu1 %121  ;;  %v172_v61 = vmax.f32 %v168_v3, 0.0  ;;  %v214_v46 = vmax.f32 %v210_v25, 0.0  ;;  %v89_v28 = vmul.f32 %v15719_v9, %v15963_v41  ;;  %v183_v29 = vmul.f32 %v15724_v10, %v15963_v41 }
  0x90   :  { %v137_v47 = vmul.f32 %v15636_v54, %v15969_v38  ;;  %v199_v63 = vmul.f32 %v15641_v55, %v15969_v38  ;;  %v256_v14 = vmax.f32 %v252_v11, 0.0  ;;  %v225_v5 = vmul.f32 %v15753_v17, %v15963_v41  ;;  %v10985_v55 = vld [vmem:[%s20085_s6 + $0x18] sm:$0xff]  ;;  %v10982_v17 = vld [vmem:[%s20085_s6] sm:$0xff] }
  0x91   :  { %v176_v32 = vpack.c.bf16 %v172_v61, %v172_v61  ;;  %v218_v43 = vpack.c.bf16 %v214_v46, %v214_v46  ;;  %v115_v27 = vadd.f32 %v15744_v15, %v89_v28  ;;  %v193_v50 = vadd.f32 %v15748_v16, %v183_v29  ;;  %v20115_v61 = vld [vmem:[#allocation15_spill] sm:$0xff]  ;;  %v20117_v29 = vld [vmem:[#allocation18_spill] sm:$0xff] }
  0x92   :  { %v260_v9 = vpack.c.bf16 %v256_v14, %v256_v14  ;;  %v235_v60 = vadd.f32 %v15757_v18, %v225_v5  ;;  %v241_v10 = vmul.f32 %v15646_v56, %v15969_v38  ;;  %v298_v54 = vmax.f32 %v294_v26, 0.0  ;;  %v20118_v14 = vld [vmem:[#allocation10_spill] sm:$0xff] }
  0x93   :  { %180 = vst [vmem:[#allocation2 + $0xdc] sm:$0xf] %v176_v32  ;;  %v236_v15 = vadd.f32 %v15820_v37, %v226_v59  ;;  %v267_v16 = vmul.f32 %v15762_v19, %v15963_v41  ;;  %v278_v18 = vadd.f32 %v15853_v49, %v268_v2  ;;  %v310_v56 = vmul.f32 %v15777_v24, %v15893_v36  ;;  %v20114_v2 = vld [vmem:[#allocation14_spill] sm:$0xff] }
  0x94   :  { %222 = vst [vmem:[#allocation2 + $0xe0] sm:$0xf] %v218_v43  ;;  %v302_v1 = vpack.c.bf16 %v298_v54, %v298_v54  ;;  %v283_v23 = vmul.f32 %v15651_v57, %v15969_v38  ;;  %v322_v3 = vadd.f32 %v15889_v22, %v312_v12  ;;  %v309_v25 = vmul.f32 %v15777_v24, %v15963_v41  ;;  %v20116_v57 = vld [vmem:[#allocation13_spill] sm:$0xff] }
  0x95   :  { %v141_v11 = vadd.f32 %v137_v47, %v115_v27  ;;  %v203_v37 = vadd.f32 %v199_v63, %v193_v50  ;;  %264 = vst [vmem:[#allocation2 + $0xe4] sm:$0xf] %v260_v9  ;;  %v245_v59 = vadd.f32 %v241_v10, %v235_v60  ;;  %v277_v19 = vadd.f32 %v15766_v20, %v267_v16 }
  0x96   :  { %11031 = vperm.xlu1 %15351, %v10985_v55   ;;  %v16004_v49 = vpop.permute.xlu0 %147  ;;  %11016 = vperm.xlu2 %15352, %v10982_v17   ;;  %v142_v26 = vadd.f32 %v20114_v2, %v116_v30  ;;  %v204_v46 = vadd.f32 %v20115_v61, %v194_v6  ;;  %306 = vst [vmem:[#allocation2 + $0xe8] sm:$0xf] %v302_v1 }
  0x97   :  { %v354_v22 = vmul.f32 %v20116_v57, %v15891_v35  ;;  %v165_v24 = vadd.f32 %v16004_v49, %v141_v11  ;;  %v207_v12 = vadd.f32 %v203_v37, %v16004_v49  ;;  %v249_v28 = vadd.f32 %v245_v59, %v16004_v49 }
  0x98   :  { %v320_v20 = vadd.f32 %v20117_v29, %v310_v56  ;;  %v16014_v47 = vpop.permute.xlu1 %157  ;;  %v287_v63 = vadd.f32 %v283_v23, %v277_v19  ;;  %v332_v5 = vadd.f32 %v20118_v14, %v322_v3  ;;  %v319_v30 = vadd.f32 %v15934_v7, %v309_v25  ;;  %v20119_v19 = vld [vmem:[#allocation16_spill] sm:$0xff] }
  0x99   :  { %v325_v6 = vmul.f32 %v15656_v58, %v15969_v38  ;;  %v167_v32 = vadd.f32 %v16014_v47, %v15906_v39  ;;  %v209_v43 = vadd.f32 %v15911_v0, %v16014_v47  ;;  %v169_v27 = vmax.f32 %v165_v24, 0.0  ;;  %v11339_v58 = vld [vmem:[%s20089_s10] sm:$0xff]  ;;  %v20120_v24 = vld [vmem:[#allocation17_spill] sm:$0xff] }
  0x9a   :  { %v211_v50 = vmax.f32 %v207_v12, 0.0  ;;  %v251_v9 = vadd.f32 %v15916_v45, %v16014_v47  ;;  %v253_v60 = vmax.f32 %v249_v28, 0.0  ;;  %v293_v10 = vadd.f32 %v15921_v44, %v16014_v47  ;;  %v11271_v39 = vld [vmem:[%s20087_s8] sm:$0xff]  ;;  %s15432_s8 = smov [#allocation4]  }
  0x9b   :  { %v291_v7 = vadd.f32 %v287_v63, %v16004_v49  ;;  %v171_v0 = vmax.f32 %v167_v32, 0.0  ;;  %v213_v54 = vmax.f32 %v209_v43, 0.0  ;;  %v173_v55 = vpack.c.bf16 %v169_v27, %v169_v27  ;;  %v20121_v63 = vld [vmem:[#allocation11_spill] sm:$0xff]  ;;  %s11419_s10 = sshll.u32 %s15432_s8, 4  ;;  %s11420_s10 = int_to_ptr.vmem [resolvable:$true] %s11419_s10 }
  0x9c   :  { %v215_v17 = vpack.c.bf16 %v211_v50, %v211_v50  ;;  %v255_v16 = vmax.f32 %v251_v9, 0.0  ;;  %v297_v45 = vmax.f32 %v293_v10, 0.0  ;;  %v16036_v56 = vadd.f32 %v332_v5, %v15951_v31 }
  0x9d   :  { %v364_v44 = vadd.f32 %v15901_v4, %v354_v22  ;;  %v175_v1 = vpack.c.bf16 %v171_v0, %v171_v0  ;;  %v217_v23 = vpack.c.bf16 %v213_v54, %v213_v54  ;;  %177 = vst [vmem:[#allocation2 + $0x4] sm:$0xf] %v173_v55  ;;  %v257_v3 = vpack.c.bf16 %v253_v60, %v253_v60 }
  0x9e   :  { %v329_v25 = vadd.f32 %v325_v6, %v319_v30  ;;  %11342 = vperm.xlu1 %15351, %v11339_v58   ;;  %11274 = vperm.xlu2 %15352, %v11271_v39   ;;  %219 = vst [vmem:[#allocation2 + $0x8] sm:$0xf] %v215_v17  ;;  %v259_v11 = vpack.c.bf16 %v255_v16, %v255_v16  ;;  %v295_v37 = vmax.f32 %v291_v7, 0.0  ;;  %v14804_v7 = vld [vmem:[#allocation2 + $0xd8] sm:$0xf0] }
  0x9f   :  { %v335_v59 = vadd.f32 %v15931_v48, %v16014_v47  ;;  %179 = vst [vmem:[#allocation2 + $0x94] sm:$0xf] %v175_v1  ;;  %v246_v2 = vadd.f32 %v20119_v19, %v236_v15  ;;  %v301_v61 = vpack.c.bf16 %v297_v45, %v297_v45  ;;  %v288_v12 = vadd.f32 %v20120_v24, %v278_v18  ;;  %v14832_v58 = vld [vmem:[#allocation2 + $0xd8] sm:$0xf0]  ;;  %v16071_v17 = vld [vmem:[%s20079_s0 + $0x8] ss:$0 sm:$0xff] }
  0xa0   :  { %v351_v4 = vmul.f32 %v20116_v57, %v15963_v41  ;;  %v16045_v22 = vpop.permute.xlu1 %152  ;;  %221 = vst [vmem:[#allocation2 + $0x98] sm:$0xf] %v217_v23  ;;  %v330_v28 = vadd.f32 %v15897_v62, %v320_v20  ;;  %v333_v29 = vadd.f32 %v329_v25, %v16004_v49  ;;  %v374_v14 = vadd.f32 %v20121_v63, %v364_v44  ;;  %v16076_v16 = vld [vmem:[%s20079_s0 + $0x8] ss:$0 sm:$0xff]  ;;  %v20123_v23 = vld [vmem:[#allocation12_spill] sm:$0xff] }
  0xa1   :  { %v16052_v48 = vadd.f32 %v15945_v42, %v16014_v47  ;;  %v166_v15 = vadd.f32 %v16045_v22, %v142_v26  ;;  %v208_v18 = vadd.f32 %v204_v46, %v16045_v22  ;;  %263 = vst [vmem:[#allocation2 + $0x9c] sm:$0xf] %v259_v11  ;;  %v250_v5 = vadd.f32 %v246_v2, %v16045_v22  ;;  %v15371_v42 = vld [vmem:[%s20079_s0 + $0x6] ss:$0 sm:$0xff]  ;;  %v20122_v44 = vld [vmem:[#allocation9_spill] sm:$0xff] }
  0xa2   :  { %v292_v30 = vadd.f32 %v288_v12, %v16045_v22  ;;  %261 = vst [vmem:[#allocation2 + $0xc] sm:$0xf] %v257_v3  ;;  %v299_v6 = vpack.c.bf16 %v295_v37, %v295_v37  ;;  %v339_v62 = vmax.f32 %v335_v59, 0.0  ;;  %v340_v20 = vmax.f32 %v16036_v56, 0.0  ;;  %v14866_v59 = vld [vmem:[#allocation2 + $0xdc] sm:$0xf0] }
  0xa3   :  { %v334_v32 = vadd.f32 %v330_v28, %v16045_v22  ;;  %v170_v43 = vmax.f32 %v166_v15, 0.0  ;;  %v212_v26 = vmax.f32 %v208_v18, 0.0  ;;  %v254_v27 = vmax.f32 %v250_v5, 0.0  ;;  %305 = vst [vmem:[#allocation2 + $0xa0] sm:$0xf] %v301_v61 }
  0xa4   :  { %v296_v46 = vmax.f32 %v292_v30, 0.0  ;;  %v337_v50 = vmax.f32 %v333_v29, 0.0  ;;  %v378_v9 = vadd.f32 %v374_v14, %v15951_v31  ;;  %v352_v60 = vmul.f32 %v20116_v57, %v15893_v36  ;;  %303 = vst [vmem:[#allocation2 + $0x10] sm:$0xf] %v299_v6  ;;  %v20124_v6 = vld [vmem:[#allocation7_spill] sm:$0xff] }
  0xa5   :  { %v357_v10 = vmul.f32 %v15810_v33, %v15626_v51  ;;  %v174_v39 = vpack.c.bf16 %v170_v43, %v170_v43  ;;  %v216_v0 = vpack.c.bf16 %v212_v26, %v212_v26  ;;  %v258_v54 = vpack.c.bf16 %v254_v27, %v254_v27  ;;  %v11459_v26 = vld [vmem:[#allocation2 + $0x4] sm:$0xf]  ;;  %v14810_v27 = vld [vmem:[#allocation2 + $0xdc] sm:$0xf0] }
  0xa6   :  { %v338_v55 = vmax.f32 %v334_v32, 0.0  ;;  %v11463_v57 = vld [vmem:[#allocation2 + $0x94] sm:$0xf]  ;;  %v300_v56 = vpack.c.bf16 %v296_v46, %v296_v46  ;;  %v367_v1 = vmul.f32 %v20122_v44, %v15969_v38  ;;  %v395_v3 = vmul.f32 %v15371_v42, %v20123_v23 }
  0xa7   :  { %v11671_v45 = vld [vmem:[#allocation2 + $0x94] sm:$0xf]  ;;  %v361_v33 = vadd.f32 %v357_v10, %v351_v4  ;;  %v11464_v25 = vor.u32 %v14804_v7, %v11463_v57  ;;  %v11883_v37 = vld [vmem:[#allocation2 + $0x98] sm:$0xf]  ;;  %178 = vst [vmem:[#allocation2 + $0x4c] sm:$0xf] %v174_v39  ;;  %v343_v19 = vpack.c.bf16 %v339_v62, %v339_v62  ;;  %v396_v2 = vmul.f32 %v15371_v42, %v15891_v35 }
  0xa8   :  { %v11672_v11 = vor.u32 %v14832_v58, %v11671_v45  ;;  %v11884_v61 = vor.u32 %v14866_v59, %v11883_v37  ;;  %220 = vst [vmem:[#allocation2 + $0x50] sm:$0xf] %v216_v0  ;;  %v344_v24 = vpack.c.bf16 %v340_v20, %v340_v20  ;;  %v341_v12 = vpack.c.bf16 %v337_v50, %v337_v50  ;;  %v11527_v15 = vld [vmem:[#allocation2 + $0x98] sm:$0xf]  ;;  %v20125_v20 = vld [vmem:[#allocation8_spill] sm:$0xff] }
  0xa9   :  { %v402_v4 = vmul.f32 %v15827_v40, %v15768_v21  ;;  %919 = vmatpush.bf16.msra.mxu0 %v11464_v25  ;;  %262 = vst [vmem:[#allocation2 + $0x54] sm:$0xf] %v258_v54  ;;  %v342_v28 = vpack.c.bf16 %v338_v55, %v338_v55  ;;  %v381_v29 = vmax.f32 %v16052_v48, 0.0  ;;  %v382_v63 = vmax.f32 %v378_v9, 0.0  ;;  %v11667_v10 = vld [vmem:[#allocation2 + $0x4] sm:$0xf] }
  0xaa   :  { %1662 = vmatpush.bf16.msrb.mxu1 %v11672_v11  ;;  %v362_v14 = vadd.f32 %v15949_v13, %v352_v60  ;;  %2291 = vmatpush.bf16.msra.mxu2 %v11884_v61  ;;  %304 = vst [vmem:[#allocation2 + $0x58] sm:$0xf] %v300_v56  ;;  %v368_v18 = vmul.f32 %v20122_v44, %v15812_v34  ;;  %v16096_v13 = vld [vmem:[%s20079_s0 + $0x7] ss:$0 sm:$0xff]  ;;  %v11707_v58 = vld [vmem:[#allocation2 + $0x9c] sm:$0xf] }
  0xab   :  { %v371_v5 = vadd.f32 %v367_v1, %v361_v33  ;;  %v406_v30 = vadd.f32 %v402_v4, %v396_v2  ;;  %347 = vst [vmem:[#allocation2 + $0xa4] sm:$0xf] %v343_v19  ;;  %v411_v62 = vmul.f32 %v16071_v17, %v20124_v6  ;;  %v412_v32 = vmul.f32 %v16071_v17, %v20125_v20  ;;  %v11643_v11 = vld [vmem:[#allocation2 + $0x98] sm:$0xf]  ;;  %v14844_v19 = vld [vmem:[#allocation2 + $0xe0] sm:$0xf0] }
  0xac   :  { %v393_v48 = vmul.f32 %v15371_v42, %v15963_v41  ;;  %v16100_v43 = vmul.f32 %v16076_v16, %v15629_v52  ;;  %348 = vst [vmem:[#allocation2 + $0xec] sm:$0xf] %v344_v24  ;;  %v405_v50 = vadd.f32 %v15879_v8, %v395_v3  ;;  %v394_v9 = vmul.f32 %v15371_v42, %v15893_v36  ;;  %v14799_v8 = vld [vmem:[%s20082_s3 + $0x20] sm:$0xff]  ;;  %v11879_v3 = vld [vmem:[#allocation2 + $0x8] sm:$0xf] }
  0xad   :  { %v375_v46 = vadd.f32 %v371_v5, %v16004_v49  ;;  %v399_v60 = vmul.f32 %v15827_v40, %v15626_v51  ;;  %v11528_v7 = vor.u32 %v14810_v27, %v11527_v15  ;;  %345 = vst [vmem:[#allocation2 + $0x14] sm:$0xf] %v341_v12  ;;  %v385_v39 = vpack.c.bf16 %v381_v29, %v381_v29  ;;  %v14827_v2 = vld [vmem:[%s20082_s3] sm:$0xff]  ;;  %v11639_v27 = vld [vmem:[#allocation2 + $0x8] sm:$0xf] }
  0xae   :  { %v386_v0 = vpack.c.bf16 %v382_v63, %v382_v63  ;;  %v400_v54 = vmul.f32 %v15827_v40, %v15631_v53  ;;  %v14803_v55 = vld [vmem:[#allocation2 + $0x48] sm:$0xf0]  ;;  %346 = vst [vmem:[#allocation2 + $0x5c] sm:$0xf] %v342_v28  ;;  %v372_v42 = vadd.f32 %v368_v18, %v362_v14  ;;  %v416_v45 = vadd.f32 %v412_v32, %v406_v30  ;;  %v14838_v61 = vld [vmem:[#allocation2 + $0xdc] sm:$0xf0] }
  0xaf   :  { %v14831_v57 = vld [vmem:[#allocation2 + $0x48] sm:$0xf0]  ;;  %v403_v56 = vadd.f32 %v399_v60, %v393_v48  ;;  %v409_v33 = vmul.f32 %v16071_v17, %v15969_v38  ;;  %v11460_v44 = vor.u32 %v14803_v55, %v11459_v26  ;;  %v14865_v25 = vld [vmem:[#allocation2 + $0x4c] sm:$0xf0]  ;;  %v410_v40 = vmul.f32 %v16071_v17, %v15812_v34  ;;  %v11855_v63 = vld [vmem:[#allocation2 + $0x9c] sm:$0xf] }
  0xb0   :  { %v11668_v1 = vor.u32 %v14831_v57, %v11667_v10  ;;  %v404_v37 = vadd.f32 %v400_v54, %v394_v9  ;;  %v11880_v59 = vor.u32 %v14865_v25, %v11879_v3  ;;  %v376_v24 = vadd.f32 %v372_v42, %v16045_v22  ;;  %v14809_v29 = vld [vmem:[#allocation2 + $0x4c] sm:$0xf0]  ;;  %v14843_v18 = vld [vmem:[#allocation2 + $0x50] sm:$0xf0]  ;;  %v11523_v48 = vld [vmem:[#allocation2 + $0x8] sm:$0xf] }
  0xb1   :  { %v379_v12 = vmax.f32 %v375_v46, 0.0  ;;  %v415_v4 = vadd.f32 %v411_v62, %v405_v50  ;;  %920 = vmatpush.bf16.msra.mxu0 %v11460_v44  ;;  %v11708_v28 = vor.u32 %v14844_v19, %v11707_v58  ;;  %v14837_v14 = vld [vmem:[#allocation2 + $0x4c] sm:$0xf0]  ;;  %v413_v15 = vadd.f32 %v409_v33, %v403_v56  ;;  %v15376_v62 = vld [vmem:[%s20079_s0 + $0x9] ss:$0 sm:$0xff] }
  0xb2   :  { %1663 = vmatpush.bf16.msrb.mxu1 %v11668_v1  ;;  %v437_v17 = vmul.f32 %v16096_v13, %v20123_v23  ;;  %2292 = vmatpush.bf16.msra.mxu2 %v11880_v59  ;;  %v11644_v5 = vor.u32 %v14838_v61, %v11643_v11  ;;  %v420_v32 = vadd.f32 %v416_v45, %v15951_v31  ;;  %v14872_v26 = vld [vmem:[#allocation2 + $0xe0] sm:$0xf0]  ;;  %v380_v55 = vmax.f32 %v376_v24, 0.0  ;;  %v14871_v33 = vld [vmem:[#allocation2 + $0x50] sm:$0xf0] }
  0xb3   :  { %v419_v30 = vadd.f32 %v415_v4, %v16014_v47  ;;  %v383_v46 = vpack.c.bf16 %v379_v12, %v379_v12  ;;  %v414_v50 = vadd.f32 %v410_v40, %v404_v37  ;;  %v417_v9 = vadd.f32 %v413_v15, %v16004_v49  ;;  %389 = vst [vmem:[#allocation2 + $0xa8] sm:$0xf] %v385_v39  ;;  %v11851_v40 = vld [vmem:[#allocation2 + $0xc] sm:$0xf]  ;;  %v15377_v12 = vld [vmem:[%s20079_s0 + $0x8] ss:$0 sm:$0xff] }
  0xb4   :  { %v438_v60 = vmul.f32 %v16096_v13, %v15891_v35  ;;  %11465 = vmatmul.msk.bf16.vlgmr.msra.gmra.mxu0 %vm900_vm0, %v14799_v8  ;;  %v11524_v10 = vor.u32 %v14809_v29, %v11523_v48  ;;  %v11856_v58 = vor.u32 %v14872_v26, %v11855_v63  ;;  %v11640_v54 = vor.u32 %v14837_v14, %v11639_v27  ;;  %v15378_v4 = vld [vmem:[%s20079_s0 + $0x9] ss:$0 sm:$0xff] }
  0xb5   :  { %1078 = vmatpush.bf16.msrb.mxu0 %v11528_v7  ;;  %11673 = vmatmul.msk.bf16.vlgmr.msrb.gmra.mxu1 %vm900_vm0, %v14827_v2  ;;  %v11703_v7 = vld [vmem:[#allocation2 + $0xc] sm:$0xf]  ;;  %v418_v42 = vadd.f32 %v414_v50, %v16045_v22  ;;  %v444_v45 = vmul.f32 %v16076_v16, %v15768_v21  ;;  %v447_v56 = vadd.f32 %v16100_v43, %v437_v17  ;;  %v423_v44 = vmax.f32 %v419_v30, 0.0 }
  0xb6   :  { %1747 = vmatpush.bf16.msra.mxu1 %v11708_v28  ;;  %v11704_v57 = vor.u32 %v14843_v18, %v11703_v7  ;;  %390 = vst [vmem:[#allocation2 + $0xf0] sm:$0xf] %v386_v0  ;;  %v384_v8 = vpack.c.bf16 %v380_v55, %v380_v55  ;;  %v453_v1 = vmul.f32 %v15376_v62, %v20124_v6  ;;  %v424_v39 = vmax.f32 %v420_v32, 0.0  ;;  %v14828_v7 = vld [vmem:[%s20082_s3 + $0x8] sm:$0xff] }
  0xb7   :  { %v454_v3 = vmul.f32 %v15376_v62, %v20125_v20  ;;  %387 = vst [vmem:[#allocation2 + $0x18] sm:$0xf] %v383_v46  ;;  %v421_v25 = vmax.f32 %v417_v9, 0.0  ;;  %v422_v11 = vmax.f32 %v418_v42, 0.0  ;;  %v448_v37 = vadd.f32 %v444_v45, %v438_v60 }
  0xb8   :  { %388 = vst [vmem:[#allocation2 + $0x60] sm:$0xf] %v384_v8  ;;  %v427_v43 = vpack.c.bf16 %v423_v44, %v423_v44  ;;  %v457_v59 = vadd.f32 %v453_v1, %v447_v56  ;;  %v435_v0 = vmul.f32 %v16096_v13, %v15963_v41  ;;  %v11852_v19 = vor.u32 %v14871_v33, %v11851_v40 }
  0xb9   :  { %1079 = vmatpush.bf16.msrb.mxu0 %v11524_v10  ;;  %v428_v2 = vpack.c.bf16 %v424_v39, %v424_v39  ;;  %v425_v61 = vpack.c.bf16 %v421_v25, %v421_v25  ;;  %v426_v24 = vpack.c.bf16 %v422_v11, %v422_v11  ;;  %v458_v28 = vadd.f32 %v454_v3, %v448_v37  ;;  %v14800_v10 = vld [vmem:[%s20082_s3 + $0x28] sm:$0xff] }
  0xba   :  { %1748 = vmatpush.bf16.msra.mxu1 %v11704_v57  ;;  %431 = vst [vmem:[#allocation2 + $0xac] sm:$0xf] %v427_v43  ;;  %v461_v29 = vadd.f32 %v457_v59, %v16014_v47  ;;  %v436_v63 = vmul.f32 %v16096_v13, %v15893_v36  ;;  %v441_v14 = vmul.f32 %v16076_v16, %v15626_v51  ;;  %v15380_v11 = vld [vmem:[%s20079_s0 + $0x9] ss:$0 sm:$0xff]  ;;  %v15381_v59 = vld [vmem:[%s20079_s0 + $0xa] ss:$0 sm:$0xff] }
  0xbb   :  { %432 = vst [vmem:[#allocation2 + $0xf4] sm:$0xf] %v428_v2  ;;  %v442_v15 = vmul.f32 %v16076_v16, %v15631_v53  ;;  %v451_v17 = vmul.f32 %v15376_v62, %v15969_v38  ;;  %v452_v18 = vmul.f32 %v15376_v62, %v15812_v34  ;;  %v479_v13 = vmul.f32 %v15377_v12, %v20123_v23  ;;  %v15379_v16 = vld [vmem:[%s20079_s0 + $0xa] ss:$0 sm:$0xff] }
  0xbc   :  { %429 = vst [vmem:[#allocation2 + $0x1c] sm:$0xf] %v425_v61  ;;  %v445_v30 = vadd.f32 %v441_v14, %v435_v0  ;;  %v480_v48 = vmul.f32 %v15377_v12, %v15891_v35  ;;  %v485_v26 = vmul.f32 %v15378_v4, %v15629_v52  ;;  %v465_v27 = vmax.f32 %v461_v29, 0.0  ;;  %v15382_v29 = vld [vmem:[%s20079_s0 + $0xb] ss:$0 sm:$0xff] }
  0xbd   :  { %1589 = vmatpush.bf16.msra.mxu0 %v11644_v5  ;;  %v462_v5 = vadd.f32 %v458_v28, %v15951_v31  ;;  %430 = vst [vmem:[#allocation2 + $0x64] sm:$0xf] %v426_v24  ;;  %v446_v32 = vadd.f32 %v442_v15, %v436_v63  ;;  %v486_v9 = vmul.f32 %v15378_v4, %v15768_v21 }
  0xbe   :  { %2218 = vmatpush.bf16.msrb.mxu1 %v11856_v58  ;;  %v455_v62 = vadd.f32 %v451_v17, %v445_v30  ;;  %v489_v60 = vadd.f32 %v485_v26, %v479_v13  ;;  %v469_v58 = vpack.c.bf16 %v465_v27, %v465_v27  ;;  %v495_v45 = vmul.f32 %v15379_v16, %v20124_v6 }
  0xbf   :  { %v466_v46 = vmax.f32 %v462_v5, 0.0  ;;  %v456_v50 = vadd.f32 %v452_v18, %v446_v32  ;;  %v490_v42 = vadd.f32 %v486_v9, %v480_v48  ;;  %v496_v56 = vmul.f32 %v15379_v16, %v20125_v20 }
  0xc0   :  { %v459_v55 = vadd.f32 %v455_v62, %v16004_v49  ;;  %473 = vst [vmem:[#allocation2 + $0xb0] sm:$0xf] %v469_v58  ;;  %v477_v33 = vmul.f32 %v15377_v12, %v15963_v41  ;;  %v499_v8 = vadd.f32 %v495_v45, %v489_v60  ;;  %v478_v44 = vmul.f32 %v15377_v12, %v15893_v36 }
  0xc1   :  { %1590 = vmatpush.bf16.msra.mxu0 %v11640_v54  ;;  %v470_v54 = vpack.c.bf16 %v466_v46, %v466_v46  ;;  %v460_v57 = vadd.f32 %v456_v50, %v16045_v22  ;;  %v500_v3 = vadd.f32 %v496_v56, %v490_v42  ;;  %v483_v39 = vmul.f32 %v15378_v4, %v15626_v51 }
  0xc2   :  { %2219 = vmatpush.bf16.msrb.mxu1 %v11852_v19  ;;  %v463_v1 = vmax.f32 %v459_v55, 0.0  ;;  %v493_v25 = vmul.f32 %v15379_v16, %v15969_v38  ;;  %v503_v40 = vadd.f32 %v499_v8, %v16014_v47  ;;  %v484_v43 = vmul.f32 %v15378_v4, %v15631_v53  ;;  %v15384_v8 = vld [vmem:[%s20079_s0 + $0xb] ss:$0 sm:$0xff] }
  0xc3   :  { %474 = vst [vmem:[#allocation2 + $0xf8] sm:$0xf] %v470_v54  ;;  %v464_v37 = vmax.f32 %v460_v57, 0.0  ;;  %v504_v19 = vadd.f32 %v500_v3, %v15951_v31  ;;  %v487_v2 = vadd.f32 %v483_v39, %v477_v33  ;;  %v494_v28 = vmul.f32 %v15379_v16, %v15812_v34 }
  0xc4   :  { %11466 = vmatmul.msk.bf16.gmra.mxu0 %vm900_vm0, %v14800_v10  ;;  %v467_v0 = vpack.c.bf16 %v463_v1, %v463_v1  ;;  %v507_v24 = vmax.f32 %v503_v40, 0.0  ;;  %v488_v12 = vadd.f32 %v484_v43, %v478_v44  ;;  %v521_v14 = vmul.f32 %v15380_v11, %v20123_v23  ;;  %v14801_v44 = vld [vmem:[%s20082_s3 + $0x30] sm:$0xff] }
  0xc5   :  { %11674 = vmatmul.msk.bf16.gmra.mxu1 %vm900_vm0, %v14828_v7  ;;  %v468_v61 = vpack.c.bf16 %v464_v37, %v464_v37  ;;  %v508_v63 = vmax.f32 %v504_v19, 0.0  ;;  %v497_v4 = vadd.f32 %v493_v25, %v487_v2  ;;  %v522_v15 = vmul.f32 %v15380_v11, %v15891_v35  ;;  %v15383_v7 = vld [vmem:[%s20079_s0 + $0xa] ss:$0 sm:$0xff]  ;;  %v14829_v1 = vld [vmem:[%s20082_s3 + $0x10] sm:$0xff] }
  0xc6   :  { %471 = vst [vmem:[#allocation2 + $0x20] sm:$0xf] %v467_v0  ;;  %v511_v17 = vpack.c.bf16 %v507_v24, %v507_v24  ;;  %v498_v18 = vadd.f32 %v494_v28, %v488_v12  ;;  %v527_v5 = vmul.f32 %v15381_v59, %v15629_v52  ;;  %v528_v13 = vmul.f32 %v15381_v59, %v15768_v21 }
  0xc7   :  { %472 = vst [vmem:[#allocation2 + $0x68] sm:$0xf] %v468_v61  ;;  %v512_v30 = vpack.c.bf16 %v508_v63, %v508_v63  ;;  %v501_v32 = vadd.f32 %v497_v4, %v16004_v49  ;;  %v537_v16 = vmul.f32 %v15382_v29, %v20124_v6  ;;  %v538_v62 = vmul.f32 %v15382_v29, %v20125_v20 }
  0xc8   :  { %515 = vst [vmem:[#allocation2 + $0xb4] sm:$0xf] %v511_v17  ;;  %v502_v48 = vadd.f32 %v498_v18, %v16045_v22  ;;  %v531_v26 = vadd.f32 %v527_v5, %v521_v14  ;;  %v532_v46 = vadd.f32 %v528_v13, %v522_v15  ;;  %v519_v60 = vmul.f32 %v15380_v11, %v15963_v41 }
  0xc9   :  { %516 = vst [vmem:[#allocation2 + $0xfc] sm:$0xf] %v512_v30  ;;  %v505_v27 = vmax.f32 %v501_v32, 0.0  ;;  %v520_v10 = vmul.f32 %v15380_v11, %v15893_v36  ;;  %v525_v55 = vmul.f32 %v15381_v59, %v15626_v51  ;;  %v526_v57 = vmul.f32 %v15381_v59, %v15631_v53  ;;  %v15385_v11 = vld [vmem:[%s20079_s0 + $0xc] ss:$0 sm:$0xff] }
  0xca   :  { %v506_v50 = vmax.f32 %v502_v48, 0.0  ;;  %v541_v9 = vadd.f32 %v537_v16, %v531_v26  ;;  %v542_v54 = vadd.f32 %v538_v62, %v532_v46  ;;  %v535_v56 = vmul.f32 %v15382_v29, %v15969_v38 }
  0xcb   :  { %v509_v58 = vpack.c.bf16 %v505_v27, %v505_v27  ;;  %v536_v33 = vmul.f32 %v15382_v29, %v15812_v34  ;;  %v529_v39 = vadd.f32 %v525_v55, %v519_v60  ;;  %v530_v25 = vadd.f32 %v526_v57, %v520_v10  ;;  %v15388_v55 = vld [vmem:[%s20079_s0 + $0xd] ss:$0 sm:$0xff] }
  0xcc   :  { %v510_v42 = vpack.c.bf16 %v506_v50, %v506_v50  ;;  %v545_v45 = vadd.f32 %v541_v9, %v16014_v47  ;;  %v546_v3 = vadd.f32 %v542_v54, %v15951_v31  ;;  %v563_v40 = vmul.f32 %v15383_v7, %v20123_v23  ;;  %v15386_v50 = vld [vmem:[%s20079_s0 + $0xb] ss:$0 sm:$0xff]  ;;  %v15387_v9 = vld [vmem:[%s20079_s0 + $0xc] ss:$0 sm:$0xff] }
  0xcd   :  { %513 = vst [vmem:[#allocation2 + $0x24] sm:$0xf] %v509_v58  ;;  %v564_v43 = vmul.f32 %v15383_v7, %v15891_v35  ;;  %v539_v59 = vadd.f32 %v535_v56, %v529_v39  ;;  %v540_v0 = vadd.f32 %v536_v33, %v530_v25  ;;  %v569_v61 = vmul.f32 %v15384_v8, %v15629_v52 }
  0xce   :  { %v549_v37 = vmax.f32 %v545_v45, 0.0  ;;  %514 = vst [vmem:[#allocation2 + $0x6c] sm:$0xf] %v510_v42  ;;  %v550_v19 = vmax.f32 %v546_v3, 0.0  ;;  %v570_v24 = vmul.f32 %v15384_v8, %v15768_v21  ;;  %v579_v28 = vmul.f32 %v15385_v11, %v20124_v6 }
  0xcf   :  { %v543_v12 = vadd.f32 %v539_v59, %v16004_v49  ;;  %v580_v29 = vmul.f32 %v15385_v11, %v20125_v20  ;;  %v544_v4 = vadd.f32 %v540_v0, %v16045_v22  ;;  %v573_v14 = vadd.f32 %v569_v61, %v563_v40 }
  0xd0   :  { %v553_v2 = vpack.c.bf16 %v549_v37, %v549_v37  ;;  %v554_v63 = vpack.c.bf16 %v550_v19, %v550_v19  ;;  %v574_v15 = vadd.f32 %v570_v24, %v564_v43  ;;  %v561_v18 = vmul.f32 %v15383_v7, %v15963_v41  ;;  %v14802_v19 = vld [vmem:[%s20082_s3 + $0x38] sm:$0xff] }
  0xd1   :  { %v547_v17 = vmax.f32 %v543_v12, 0.0  ;;  %v562_v5 = vmul.f32 %v15383_v7, %v15893_v36  ;;  %v567_v30 = vmul.f32 %v15384_v8, %v15626_v51  ;;  %v548_v32 = vmax.f32 %v544_v4, 0.0 }
  0xd2   :  { %557 = vst [vmem:[#allocation2 + $0xb8] sm:$0xf] %v553_v2  ;;  %v583_v13 = vadd.f32 %v579_v28, %v573_v14  ;;  %v584_v48 = vadd.f32 %v580_v29, %v574_v15  ;;  %v568_v26 = vmul.f32 %v15384_v8, %v15631_v53  ;;  %v577_v46 = vmul.f32 %v15385_v11, %v15969_v38  ;;  %v14830_v2 = vld [vmem:[%s20082_s3 + $0x18] sm:$0xff]  ;;  %v16266_v29 = vpop.f32.mrf.mxu1  ;;  %v15389_v15 = vld [vmem:[%s20079_s0 + $0xc] ss:$0 sm:$0xff] }
  0xd3   :  { %558 = vst [vmem:[#allocation2 + $0x100] sm:$0xf] %v554_v63  ;;  %v551_v16 = vpack.c.bf16 %v547_v17, %v547_v17  ;;  %v571_v27 = vadd.f32 %v567_v30, %v561_v18  ;;  %v578_v62 = vmul.f32 %v15385_v11, %v15812_v34  ;;  %v552_v60 = vpack.c.bf16 %v548_v32, %v548_v32  ;;  %v15390_v30 = vld [vmem:[%s20079_s0 + $0xd] ss:$0 sm:$0xff] }
  0xd4   :  { %11467 = vmatmul.msk.bf16.gmra.mxu0 %vm900_vm0, %v14801_v44  ;;  %v587_v10 = vadd.f32 %v583_v13, %v16014_v47  ;;  %v588_v7 = vadd.f32 %v584_v48, %v15951_v31  ;;  %v572_v58 = vadd.f32 %v568_v26, %v562_v5  ;;  %v605_v33 = vmul.f32 %v15386_v50, %v20123_v23 }
  0xd5   :  { %11675 = vmatmul.msk.bf16.gmra.mxu1 %vm900_vm0, %v14829_v1  ;;  %555 = vst [vmem:[#allocation2 + $0x28] sm:$0xf] %v551_v16  ;;  %v581_v54 = vadd.f32 %v577_v46, %v571_v27  ;;  %v606_v8 = vmul.f32 %v15386_v50, %v15891_v35  ;;  %v611_v44 = vmul.f32 %v15387_v9, %v15629_v52  ;;  %v15391_v27 = vld [vmem:[%s20079_s0 + $0xe] ss:$0 sm:$0xff] }
  0xd6   :  { %556 = vst [vmem:[#allocation2 + $0x70] sm:$0xf] %v552_v60  ;;  %v591_v57 = vmax.f32 %v587_v10, 0.0  ;;  %v592_v42 = vmax.f32 %v588_v7, 0.0  ;;  %v582_v45 = vadd.f32 %v578_v62, %v572_v58  ;;  %v612_v25 = vmul.f32 %v15387_v9, %v15768_v21 }
  0xd7   :  { %v585_v56 = vadd.f32 %v581_v54, %v16004_v49  ;;  %v615_v37 = vadd.f32 %v611_v44, %v605_v33  ;;  %v621_v40 = vmul.f32 %v15388_v55, %v20124_v6  ;;  %v622_v0 = vmul.f32 %v15388_v55, %v20125_v20 }
  0xd8   :  { %v595_v1 = vpack.c.bf16 %v591_v57, %v591_v57  ;;  %v596_v3 = vpack.c.bf16 %v592_v42, %v592_v42  ;;  %v586_v39 = vadd.f32 %v582_v45, %v16045_v22  ;;  %v616_v59 = vadd.f32 %v612_v25, %v606_v8 }
  0xd9   :  { %v589_v11 = vmax.f32 %v585_v56, 0.0  ;;  %v625_v24 = vadd.f32 %v621_v40, %v615_v37  ;;  %v603_v12 = vmul.f32 %v15386_v50, %v15963_v41  ;;  %v604_v28 = vmul.f32 %v15386_v50, %v15893_v36  ;;  %v15393_v40 = vld [vmem:[%s20079_s0 + $0xe] ss:$0 sm:$0xff] }
  0xda   :  { %599 = vst [vmem:[#allocation2 + $0xbc] sm:$0xf] %v595_v1  ;;  %v590_v43 = vmax.f32 %v586_v39, 0.0  ;;  %v626_v4 = vadd.f32 %v622_v0, %v616_v59  ;;  %v609_v14 = vmul.f32 %v15387_v9, %v15626_v51  ;;  %v610_v18 = vmul.f32 %v15387_v9, %v15631_v53 }
  0xdb   :  { %600 = vst [vmem:[#allocation2 + $0x104] sm:$0xf] %v596_v3  ;;  %v593_v61 = vpack.c.bf16 %v589_v11, %v589_v11  ;;  %v629_v17 = vadd.f32 %v625_v24, %v16014_v47  ;;  %v619_v5 = vmul.f32 %v15388_v55, %v15969_v38  ;;  %v620_v16 = vmul.f32 %v15388_v55, %v15812_v34  ;;  %v15392_v3 = vld [vmem:[%s20079_s0 + $0xd] ss:$0 sm:$0xff] }
  0xdc   :  { %v594_v63 = vpack.c.bf16 %v590_v43, %v590_v43  ;;  %v630_v32 = vadd.f32 %v626_v4, %v15951_v31  ;;  %v613_v13 = vadd.f32 %v609_v14, %v603_v12  ;;  %v614_v26 = vadd.f32 %v610_v18, %v604_v28  ;;  %v16303_v43 = vpop.f32.mrf.mxu1 }
  0xdd   :  { %597 = vst [vmem:[#allocation2 + $0x2c] sm:$0xf] %v593_v61  ;;  %v633_v48 = vmax.f32 %v629_v17, 0.0  ;;  %v647_v50 = vmul.f32 %v15389_v15, %v20123_v23  ;;  %v648_v9 = vmul.f32 %v15389_v15, %v15891_v35  ;;  %v653_v7 = vmul.f32 %v15390_v30, %v15629_v52  ;;  %v15394_v61 = vld [vmem:[%s20079_s0 + $0xf] ss:$0 sm:$0xff] }
  0xde   :  { %598 = vst [vmem:[#allocation2 + $0x74] sm:$0xf] %v594_v63  ;;  %v634_v46 = vmax.f32 %v630_v32, 0.0  ;;  %v623_v62 = vadd.f32 %v619_v5, %v613_v13  ;;  %v624_v10 = vadd.f32 %v620_v16, %v614_v26  ;;  %v654_v57 = vmul.f32 %v15390_v30, %v15768_v21  ;;  %v14805_v16 = vld [vmem:[%s20082_s3 + $0x40] sm:$0xff] }
  0xdf   :  { %v637_v60 = vpack.c.bf16 %v633_v48, %v633_v48  ;;  %v657_v42 = vadd.f32 %v653_v7, %v647_v50  ;;  %v663_v45 = vmul.f32 %v15391_v27, %v20124_v6  ;;  %v664_v56 = vmul.f32 %v15391_v27, %v20125_v20 }
  0xe0   :  { %v638_v58 = vpack.c.bf16 %v634_v46, %v634_v46  ;;  %v627_v54 = vadd.f32 %v623_v62, %v16004_v49  ;;  %v628_v55 = vadd.f32 %v624_v10, %v16045_v22  ;;  %v658_v8 = vadd.f32 %v654_v57, %v648_v9  ;;  %v14878_v46 = vld [vmem:[#allocation2 + $0xe4] sm:$0xf0] }
  0xe1   :  { %641 = vst [vmem:[#allocation2 + $0xc0] sm:$0xf] %v637_v60  ;;  %v645_v44 = vmul.f32 %v15389_v15, %v15963_v41  ;;  %v646_v1 = vmul.f32 %v15389_v15, %v15893_v36  ;;  %v667_v25 = vadd.f32 %v663_v45, %v657_v42  ;;  %v651_v11 = vmul.f32 %v15390_v30, %v15626_v51  ;;  %v11919_v15 = vld [vmem:[#allocation2 + $0xa0] sm:$0xf] }
  0xe2   :  { %642 = vst [vmem:[#allocation2 + $0x108] sm:$0xf] %v638_v58  ;;  %v631_v33 = vmax.f32 %v627_v54, 0.0  ;;  %v632_v39 = vmax.f32 %v628_v55, 0.0  ;;  %v652_v37 = vmul.f32 %v15390_v30, %v15631_v53  ;;  %v668_v0 = vadd.f32 %v664_v56, %v658_v8 }
  0xe3   :  { %v671_v12 = vadd.f32 %v667_v25, %v16014_v47  ;;  %v655_v63 = vadd.f32 %v651_v11, %v645_v44  ;;  %v689_v14 = vmul.f32 %v15392_v3, %v20123_v23  ;;  %v690_v18 = vmul.f32 %v15392_v3, %v15891_v35  ;;  %v14877_v44 = vld [vmem:[#allocation2 + $0x54] sm:$0xf0] }
  0xe4   :  { %11468 = vmatmul.msk.bf16.gmra.mxu0 %vm900_vm0, %v14802_v19  ;;  %v635_v59 = vpack.c.bf16 %v631_v33, %v631_v33  ;;  %v661_v19 = vmul.f32 %v15391_v27, %v15969_v38  ;;  %v636_v24 = vpack.c.bf16 %v632_v39, %v632_v39  ;;  %v672_v28 = vadd.f32 %v668_v0, %v15951_v31 }
  0xe5   :  { %11676 = vmatmul.msk.bf16.gmra.mxu1 %vm900_vm0, %v14830_v2  ;;  %v662_v2 = vmul.f32 %v15391_v27, %v15812_v34  ;;  %v656_v4 = vadd.f32 %v652_v37, %v646_v1  ;;  %v675_v17 = vmax.f32 %v671_v12, 0.0  ;;  %v695_v5 = vmul.f32 %v15393_v40, %v15629_v52  ;;  %v14839_v27 = vld [vmem:[%s20082_s3 + $0x40] sm:$0xff]  ;;  %v16338_v37 = vpop.f32.mrf.mxu1  ;;  %v15396_v12 = vld [vmem:[%s20079_s0 + $0xf] ss:$0 sm:$0xff] }
  0xe6   :  { %639 = vst [vmem:[#allocation2 + $0x30] sm:$0xf] %v635_v59  ;;  %v696_v30 = vmul.f32 %v15393_v40, %v15768_v21  ;;  %v676_v32 = vmax.f32 %v672_v28, 0.0  ;;  %v665_v13 = vadd.f32 %v661_v19, %v655_v63  ;;  %v705_v26 = vmul.f32 %v15394_v61, %v20124_v6 }
  0xe7   :  { %640 = vst [vmem:[#allocation2 + $0x78] sm:$0xf] %v636_v24  ;;  %v666_v48 = vadd.f32 %v662_v2, %v656_v4  ;;  %v679_v62 = vpack.c.bf16 %v675_v17, %v675_v17  ;;  %v699_v50 = vadd.f32 %v695_v5, %v689_v14  ;;  %v706_v60 = vmul.f32 %v15394_v61, %v20125_v20  ;;  %v11915_v2 = vld [vmem:[#allocation2 + $0x10] sm:$0xf] }
  0xe8   :  { %v700_v9 = vadd.f32 %v696_v30, %v690_v18  ;;  %v11920_v10 = vor.u32 %v14878_v46, %v11919_v15  ;;  %v680_v7 = vpack.c.bf16 %v676_v32, %v676_v32  ;;  %v669_v58 = vadd.f32 %v665_v13, %v16004_v49  ;;  %v15397_v14 = vld [vmem:[%s20079_s0 + $0x10] ss:$0 sm:$0xff] }
  0xe9   :  { %683 = vst [vmem:[#allocation2 + $0xc4] sm:$0xf] %v679_v62  ;;  %v670_v54 = vadd.f32 %v666_v48, %v16045_v22  ;;  %v709_v57 = vadd.f32 %v705_v26, %v699_v50  ;;  %v687_v42 = vmul.f32 %v15392_v3, %v15963_v41  ;;  %v688_v56 = vmul.f32 %v15392_v3, %v15893_v36  ;;  %v15395_v3 = vld [vmem:[%s20079_s0 + $0xe] ss:$0 sm:$0xff] }
  0xea   :  { %v710_v55 = vadd.f32 %v706_v60, %v700_v9  ;;  %684 = vst [vmem:[#allocation2 + $0x10c] sm:$0xf] %v680_v7  ;;  %v673_v45 = vmax.f32 %v669_v58, 0.0  ;;  %v693_v33 = vmul.f32 %v15393_v40, %v15626_v51  ;;  %v694_v8 = vmul.f32 %v15393_v40, %v15631_v53 }
  0xeb   :  { %v674_v1 = vmax.f32 %v670_v54, 0.0  ;;  %v713_v39 = vadd.f32 %v709_v57, %v16014_v47  ;;  %v703_v11 = vmul.f32 %v15394_v61, %v15969_v38  ;;  %v704_v19 = vmul.f32 %v15394_v61, %v15812_v34 }
  0xec   :  { %v714_v25 = vadd.f32 %v710_v55, %v15951_v31  ;;  %v677_v40 = vpack.c.bf16 %v673_v45, %v673_v45  ;;  %v697_v59 = vadd.f32 %v693_v33, %v687_v42  ;;  %v698_v0 = vadd.f32 %v694_v8, %v688_v56  ;;  %v15398_v55 = vld [vmem:[%s20079_s0 + $0xf] ss:$0 sm:$0xff] }
  0xed   :  { %v678_v24 = vpack.c.bf16 %v674_v1, %v674_v1  ;;  %v11916_v28 = vor.u32 %v14877_v44, %v11915_v2  ;;  %v717_v15 = vmax.f32 %v713_v39, 0.0  ;;  %v731_v18 = vmul.f32 %v15395_v3, %v20123_v23  ;;  %v16364_v8 = vpop.f32.mrf.mxu1  ;;  %v15399_v39 = vld [vmem:[%s20079_s0 + $0x10] ss:$0 sm:$0xff] }
  0xee   :  { %681 = vst [vmem:[#allocation2 + $0x34] sm:$0xf] %v677_v40  ;;  %v707_v63 = vadd.f32 %v703_v11, %v697_v59  ;;  %v708_v4 = vadd.f32 %v704_v19, %v698_v0  ;;  %v718_v17 = vmax.f32 %v714_v25, 0.0  ;;  %v732_v61 = vmul.f32 %v15395_v3, %v15891_v35  ;;  %v14806_v25 = vld [vmem:[%s20082_s3 + $0x48] sm:$0xff]  ;;  %v15400_v19 = vld [vmem:[%s20079_s0 + $0x11] ss:$0 sm:$0xff] }
  0xef   :  { %682 = vst [vmem:[#allocation2 + $0x7c] sm:$0xf] %v678_v24  ;;  %v721_v32 = vpack.c.bf16 %v717_v15, %v717_v15  ;;  %v737_v48 = vmul.f32 %v15396_v12, %v15629_v52  ;;  %v738_v26 = vmul.f32 %v15396_v12, %v15768_v21  ;;  %v747_v46 = vmul.f32 %v15397_v14, %v20124_v6  ;;  %v14840_v11 = vld [vmem:[%s20082_s3 + $0x48] sm:$0xff] }
  0xf0   :  { %v711_v5 = vadd.f32 %v707_v63, %v16004_v49  ;;  %v712_v30 = vadd.f32 %v708_v4, %v16045_v22  ;;  %v722_v13 = vpack.c.bf16 %v718_v17, %v718_v17  ;;  %v748_v62 = vmul.f32 %v15397_v14, %v20125_v20 }
  0xf1   :  { %725 = vst [vmem:[#allocation2 + $0xc8] sm:$0xf] %v721_v32  ;;  %v741_v50 = vadd.f32 %v737_v48, %v731_v18  ;;  %v742_v9 = vadd.f32 %v738_v26, %v732_v61  ;;  %v729_v60 = vmul.f32 %v15395_v3, %v15963_v41  ;;  %v735_v54 = vmul.f32 %v15396_v12, %v15626_v51 }
  0xf2   :  { %726 = vst [vmem:[#allocation2 + $0x110] sm:$0xf] %v722_v13  ;;  %v736_v57 = vmul.f32 %v15396_v12, %v15631_v53  ;;  %v745_v56 = vmul.f32 %v15397_v14, %v15969_v38  ;;  %v746_v33 = vmul.f32 %v15397_v14, %v15812_v34  ;;  %v773_v0 = vmul.f32 %v15398_v55, %v20123_v23 }
  0xf3   :  { %v751_v42 = vadd.f32 %v747_v46, %v741_v50  ;;  %v752_v45 = vadd.f32 %v748_v62, %v742_v9  ;;  %v739_v44 = vadd.f32 %v735_v54, %v729_v60  ;;  %v779_v4 = vmul.f32 %v15399_v39, %v15629_v52 }
  0xf4   :  { %11529 = vmatmul.msk.bf16.vlgmr.msrb.gmra.mxu0 %vm900_vm0, %v14805_v16  ;;  %v715_v16 = vmax.f32 %v711_v5, 0.0  ;;  %v780_v14 = vmul.f32 %v15399_v39, %v15768_v21  ;;  %v789_v5 = vmul.f32 %v15400_v19, %v20124_v6  ;;  %v771_v52 = vmul.f32 %v15398_v55, %v15963_v41 }
  0xf5   :  { %11709 = vmatmul.msk.bf16.vlgmr.msra.gmra.mxu1 %vm900_vm0, %v14839_v27  ;;  %v716_v27 = vmax.f32 %v712_v30, 0.0  ;;  %v756_v40 = vadd.f32 %v752_v45, %v15951_v31  ;;  %v749_v59 = vadd.f32 %v745_v56, %v739_v44  ;;  %v783_v61 = vadd.f32 %v779_v4, %v773_v0  ;;  %v16396_v62 = vpop.f32.mrf.mxu1  ;;  %v14842_v56 = vld [vmem:[%s20082_s3 + $0x58] sm:$0xff]  ;;  %v14833_v44 = vld [vmem:[%s20082_s3 + $0x20] sm:$0xff]  ;;  %v12063_v0 = vld [vmem:[#allocation2 + $0x10] sm:$0xf] }
  0xf6   :  { %2376 = vmatpush.bf16.msra.mxu1 %v11920_v10  ;;  %v730_v10 = vmul.f32 %v15395_v3, %v15893_v36  ;;  %v719_v7 = vpack.c.bf16 %v715_v16, %v715_v16  ;;  %v755_v3 = vadd.f32 %v751_v42, %v16014_v47  ;;  %v772_v21 = vmul.f32 %v15398_v55, %v15893_v36 }
  0xf7   :  { %v720_v58 = vpack.c.bf16 %v716_v27, %v716_v27  ;;  %v760_v24 = vmax.f32 %v756_v40, 0.0  ;;  %v753_v63 = vadd.f32 %v749_v59, %v16004_v49  ;;  %v793_v48 = vadd.f32 %v789_v5, %v783_v61  ;;  %v14905_v59 = vld [vmem:[#allocation2 + $0x54] sm:$0xf0] }
  0xf8   :  { %v740_v1 = vadd.f32 %v736_v57, %v730_v10  ;;  %723 = vst [vmem:[#allocation2 + $0x38] sm:$0xf] %v719_v7  ;;  %v759_v2 = vmax.f32 %v755_v3, 0.0  ;;  %v777_v26 = vmul.f32 %v15399_v39, %v15626_v51  ;;  %v778_v16 = vmul.f32 %v15399_v39, %v15631_v53  ;;  %v12067_v39 = vld [vmem:[#allocation2 + $0xa0] sm:$0xf] }
  0xf9   :  { %724 = vst [vmem:[#allocation2 + $0x80] sm:$0xf] %v720_v58  ;;  %v764_v15 = vpack.c.bf16 %v760_v24, %v760_v24  ;;  %v757_v18 = vmax.f32 %v753_v63, 0.0  ;;  %v787_v6 = vmul.f32 %v15400_v19, %v15969_v38  ;;  %v797_v41 = vadd.f32 %v793_v48, %v16014_v47  ;;  %v14807_v47 = vld [vmem:[%s20082_s3 + $0x50] sm:$0xff]  ;;  %v14906_v3 = vld [vmem:[#allocation2 + $0xe4] sm:$0xf0] }
  0xfa   :  { %2377 = vmatpush.bf16.msra.mxu1 %v11916_v28  ;;  %v750_v12 = vadd.f32 %v746_v33, %v740_v1  ;;  %v774_v28 = vmul.f32 %v15398_v55, %v15891_v35  ;;  %v763_v23 = vpack.c.bf16 %v759_v2, %v759_v2  ;;  %v790_v35 = vmul.f32 %v15400_v19, %v20125_v20  ;;  %v14867_v1 = vld [vmem:[%s20082_s3 + $0x20] sm:$0xff] }
  0xfb   :  { %768 = vst [vmem:[#allocation2 + $0x114] sm:$0xf] %v764_v15  ;;  %v761_v13 = vpack.c.bf16 %v757_v18, %v757_v18  ;;  %v788_v20 = vmul.f32 %v15400_v19, %v15812_v34  ;;  %v781_v50 = vadd.f32 %v777_v26, %v771_v52  ;;  %v782_v9 = vadd.f32 %v778_v16, %v772_v21  ;;  %v14861_v15 = vld [vmem:[%s20082_s3] sm:$0xff]  ;;  %v14869_v18 = vld [vmem:[%s20082_s3 + $0x30] sm:$0xff]  ;;  %v14836_v52 = vld [vmem:[%s20082_s3 + $0x38] sm:$0xff] }
  0xfc   :  { %v754_v17 = vadd.f32 %v750_v12, %v16045_v22  ;;  %767 = vst [vmem:[#allocation2 + $0xcc] sm:$0xf] %v763_v23  ;;  %v784_v32 = vadd.f32 %v780_v14, %v774_v28  ;;  %v801_v60 = vmax.f32 %v797_v41, 0.0  ;;  %v12068_v40 = vor.u32 %v14906_v3, %v12067_v39  ;;  %v14834_v12 = vld [vmem:[%s20082_s3 + $0x28] sm:$0xff]  ;;  %11885 = vmatmul.msk.bf16.vlgmr.msra.gmra.mxu2 %vm900_vm0, %v14861_v15  ;;  %v14870_v21 = vld [vmem:[%s20082_s3 + $0x38] sm:$0xff] }
  0xfd   :  { %765 = vst [vmem:[#allocation2 + $0x3c] sm:$0xf] %v761_v13  ;;  %v791_v51 = vadd.f32 %v787_v6, %v781_v50  ;;  %v792_v53 = vadd.f32 %v788_v20, %v782_v9  ;;  %v16408_v42 = vpop.f32.mrf.mxu1  ;;  %v12064_v19 = vor.u32 %v14905_v59, %v12063_v0  ;;  %v14868_v28 = vld [vmem:[%s20082_s3 + $0x28] sm:$0xff]  ;;  %v14873_v6 = vld [vmem:[%s20082_s3 + $0x40] sm:$0xff]  ;;  %v14876_v39 = vld [vmem:[%s20082_s3 + $0x58] sm:$0xff] }
  0xfe   :  { %v758_v30 = vmax.f32 %v754_v17, 0.0  ;;  %v794_v46 = vadd.f32 %v790_v35, %v784_v32  ;;  %v805_v7 = vpack.c.bf16 %v801_v60, %v801_v60  ;;  %v14835_v17 = vld [vmem:[%s20082_s3 + $0x30] sm:$0xff]  ;;  %v14862_v32 = vld [vmem:[%s20082_s3 + $0x8] sm:$0xff]  ;;  %v12131_v20 = vld [vmem:[#allocation2 + $0xa4] sm:$0xf] }
  0xff   :  { %v795_v58 = vadd.f32 %v791_v51, %v16004_v49  ;;  %v796_v34 = vadd.f32 %v792_v53, %v16045_v22  ;;  %v14808_v22 = vld [vmem:[%s20082_s3 + $0x58] sm:$0xff]  ;;  %v14912_v9 = vld [vmem:[#allocation2 + $0xe8] sm:$0xf0] }
 0x100   :  { %v762_v27 = vpack.c.bf16 %v758_v30, %v758_v30  ;;  %v798_v36 = vadd.f32 %v794_v46, %v15951_v31  ;;  %809 = vst [vmem:[#allocation2 + $0xd0] sm:$0xf] %v805_v7  ;;  %v14841_v31 = vld [vmem:[%s20082_s3 + $0x50] sm:$0xff]  ;;  %v12132_v60 = vor.u32 %v14912_v9, %v12131_v20  ;;  %v14911_v51 = vld [vmem:[#allocation2 + $0x58] sm:$0xf0] }
 0x101   :  { %v799_v54 = vmax.f32 %v795_v58, 0.0  ;;  %v800_v57 = vmax.f32 %v796_v34, 0.0  ;;  %v14864_v58 = vld [vmem:[%s20082_s3 + $0x18] sm:$0xff] }
 0x102   :  { %766 = vst [vmem:[#allocation2 + $0x84] sm:$0xf] %v762_v27  ;;  %v802_v10 = vmax.f32 %v798_v36, 0.0  ;;  %v14863_v27 = vld [vmem:[%s20082_s3 + $0x10] sm:$0xff] }
 0x103   :  { %v803_v55 = vpack.c.bf16 %v799_v54, %v799_v54  ;;  %v804_v45 = vpack.c.bf16 %v800_v57, %v800_v57  ;;  %v14875_v57 = vld [vmem:[%s20082_s3 + $0x50] sm:$0xff] }
 0x104   :  { %11530 = vmatmul.msk.bf16.gmra.mxu0 %vm900_vm0, %v14806_v25  ;;  %v806_v38 = vpack.c.bf16 %v802_v10, %v802_v10  ;;  %v12127_v10 = vld [vmem:[#allocation2 + $0x14] sm:$0xf] }
 0x105   :  { %11710 = vmatmul.msk.bf16.gmra.mxu1 %vm900_vm0, %v14840_v11  ;;  %807 = vst [vmem:[#allocation2 + $0x40] sm:$0xf] %v803_v55  ;;  %v16412_v49 = vpop.f32.mrf.mxu1  ;;  %v12128_v53 = vor.u32 %v14911_v51, %v12127_v10 }
 0x106   :  { %810 = vst [vmem:[#allocation2 + $0x118] sm:$0xf] %v806_v38  ;;  %v14874_v38 = vld [vmem:[%s20082_s3 + $0x48] sm:$0xff] }
 0x107   :  { %808 = vst [vmem:[#allocation2 + $0x88] sm:$0xf] %v804_v45 }
 0x10c   :  { %11886 = vmatmul.msk.bf16.gmra.mxu2 %vm900_vm0, %v14862_v32 }
 0x10d   :  { %v16422_v33 = vpop.f32.mrf.mxu1 }
 0x114   :  { %11531 = vmatmul.msk.bf16.gmra.mxu0 %vm900_vm0, %v14807_v47 }
 0x115   :  { %11711 = vmatmul.msk.bf16.gmra.mxu1 %vm900_vm0, %v14841_v31 }
 0x11c   :  { %11887 = vmatmul.msk.bf16.gmra.mxu2 %vm900_vm0, %v14863_v27  ;;  %v16544_v27 = vpop.permute.xlu0 %1136 }
 0x124   :  { %11532 = vmatmul.msk.bf16.gmra.mxu0 %vm900_vm0, %v14808_v22 }
 0x125   :  { %11712 = vmatmul.msk.bf16.gmra.mxu1 %vm900_vm0, %v14842_v56 }
 0x12c   :  { %11888 = vmatmul.msk.bf16.gmra.mxu2 %vm900_vm0, %v14864_v58  ;;  %v14934_v58 = vld [vmem:[#allocation2 + $0xe4] sm:$0xf0] }
 0x131   :  { %v922_v25 = vpop.f32.mrf.mxu0 }
 0x132   :  { %v16430_v11 = vpop.f32.mrf.mxu1  ;;  %v996_v46 = vadd.f32 %v16266_v29, %v922_v25 }
 0x134   :  { %11645 = vmatmul.msk.bf16.vlgmr.msra.gmra.mxu0 %vm900_vm0, %v14833_v44  ;;  %v16521_v44 = vpop.permute.xlu2 %1141 }
 0x135   :  { %11857 = vmatmul.msk.bf16.vlgmr.msrb.gmra.mxu1 %vm900_vm0, %v14867_v1  ;;  %v16523_v1 = vpop.permute.xlu1 %1146 }
 0x136   :  { %2847 = vmatpush.bf16.msrb.mxu1 %v12068_v40 }
 0x139   :  { %v16434_v2 = vpop.f32.mrf.mxu0 }
 0x13a   :  { %2848 = vmatpush.bf16.msrb.mxu1 %v12064_v19  ;;  %v16436_v24 = vpop.f32.mrf.mxu1 }
 0x13c   :  { %v16532_v59 = vpop.permute.xlu2 %1131 }
 0x141   :  { %v16444_v63 = vpop.f32.mrf.mxu0 }
 0x142   :  { %v16446_v4 = vpop.f32.mrf.mxu1 }
 0x144   :  { %11646 = vmatmul.msk.bf16.gmra.mxu0 %vm900_vm0, %v14834_v12  ;;  %v16535_v12 = vpop.permute.xlu1 %1121 }
 0x145   :  { %11858 = vmatmul.msk.bf16.gmra.mxu1 %vm900_vm0, %v14868_v28 }
 0x149   :  { %v16450_v14 = vpop.f32.mrf.mxu0 }
 0x14a   :  { %v16452_v23 = vpop.f32.mrf.mxu1 }
 0x151   :  { %v932_v61 = vpop.f32.mrf.mxu0 }
 0x152   :  { %v16464_v5 = vpop.f32.mrf.mxu1  ;;  %v1006_v28 = vadd.f32 %v16396_v62, %v932_v61  ;;  %v998_v61 = vadd.f32 %v16303_v43, %v16434_v2 }
 0x154   :  { %11647 = vmatmul.msk.bf16.gmra.mxu0 %vm900_vm0, %v14835_v17 }
 0x155   :  { %11859 = vmatmul.msk.bf16.gmra.mxu1 %vm900_vm0, %v14869_v18 }
 0x159   :  { %v934_v35 = vpop.f32.mrf.mxu0 }
 0x15a   :  { %v16468_v30 = vpop.f32.mrf.mxu1  ;;  %v1008_v0 = vadd.f32 %v16408_v42, %v934_v35  ;;  %v1001_v42 = vadd.f32 %v16338_v37, %v16444_v63  ;;  %v14901_v37 = vld [vmem:[%s20082_s3 + $0x20] sm:$0xff] }
 0x15b   :  { %v12307_v63 = vld [vmem:[#allocation2 + $0xa0] sm:$0xf] }
 0x161   :  { %v937_v13 = vpop.f32.mrf.mxu0 }
 0x162   :  { %v16480_v48 = vpop.f32.mrf.mxu1  ;;  %v1011_v40 = vadd.f32 %v16412_v49, %v937_v13  ;;  %v1003_v49 = vadd.f32 %v16364_v8, %v16450_v14 }
 0x164   :  { %11648 = vmatmul.msk.bf16.gmra.mxu0 %vm900_vm0, %v14836_v52 }
 0x165   :  { %11860 = vmatmul.msk.bf16.gmra.mxu1 %vm900_vm0, %v14870_v21 }
 0x169   :  { %v939_v26 = vpop.f32.mrf.mxu0 }
 0x16a   :  { %v16484_v16 = vpop.f32.mrf.mxu1  ;;  %v1013_v15 = vadd.f32 %v16422_v33, %v939_v26 }
 0x171   :  { %v1081_v41 = vpop.f32.mrf.mxu0 }
 0x172   :  { %v16494_v50 = vpop.f32.mrf.mxu1  ;;  %v16496_v36 = vadd.f32 %v1081_v41, %v996_v46 }
 0x175   :  { %11921 = vmatmul.msk.bf16.vlgmr.msra.gmra.mxu1 %vm900_vm0, %v14873_v6  ;;  %v16553_v6 = vpop.permute.xlu2 %1126 }
 0x176   :  { %3005 = vmatpush.bf16.msra.mxu1 %v12132_v60 }
 0x179   :  { %v1083_v29 = vpop.f32.mrf.mxu0 }
 0x17a   :  { %3006 = vmatpush.bf16.msra.mxu1 %v12128_v53  ;;  %v16499_v7 = vpop.f32.mrf.mxu1  ;;  %v1102_v20 = vadd.f32 %v1083_v29, %v998_v61  ;;  %v12308_v29 = vor.u32 %v14934_v58, %v12307_v63  ;;  %v12091_v61 = vld [vmem:[#allocation2 + $0xc] sm:$0xf] }
 0x181   :  { %v1086_v34 = vpop.f32.mrf.mxu0 }
 0x182   :  { %v16508_v54 = vpop.f32.mrf.mxu1  ;;  %v1103_v26 = vadd.f32 %v1086_v34, %v1001_v42 }
 0x184   :  { %v1151_v43 = vadd.f32 %v16535_v12, %v1103_v26 }
 0x185   :  { %11922 = vmatmul.msk.bf16.gmra.mxu1 %vm900_vm0, %v14874_v38  ;;  %v16561_v38 = vpop.permute.xlu1 %1116 }
 0x186   :  { %v1150_v34 = vadd.f32 %v16561_v38, %v1102_v20 }
 0x189   :  { %v1088_v47 = vpop.f32.mrf.mxu0 }
 0x18a   :  { %v16511_v31 = vpop.f32.mrf.mxu1  ;;  %v1104_v35 = vadd.f32 %v1088_v47, %v1003_v49  ;;  %v12095_v49 = vld [vmem:[#allocation2 + $0x9c] sm:$0xf] }
 0x18c   :  { %v1152_v41 = vadd.f32 %v16553_v6, %v1104_v35  ;;  %v14811_v35 = vld [vmem:[%s20084_s5] sm:$0xff] }
 0x191   :  { %v1091_v55 = vpop.f32.mrf.mxu0 }
 0x192   :  { %v16516_v45 = vpop.f32.mrf.mxu1  ;;  %v1105_v52 = vadd.f32 %v1091_v55, %v1006_v28  ;;  %v14933_v55 = vld [vmem:[#allocation2 + $0x54] sm:$0xf0]  ;;  %v1158_v28 = vmax.f32 %v1150_v34, 0.0 }
 0x194   :  { %v1153_v8 = vadd.f32 %v16532_v59, %v1105_v52 }
 0x195   :  { %11923 = vmatmul.msk.bf16.gmra.mxu1 %vm900_vm0, %v14875_v57 }
 0x196   :  { %v1161_v2 = vmax.f32 %v1153_v8, 0.0 }
 0x199   :  { %v1093_v22 = vpop.f32.mrf.mxu0 }
 0x19a   :  { %v16519_v56 = vpop.f32.mrf.mxu1  ;;  %v1106_v17 = vadd.f32 %v1093_v22, %v1008_v0  ;;  %v1160_v22 = vmax.f32 %v1152_v41, 0.0 }
 0x19c   :  { %v1154_v62 = vadd.f32 %v16544_v27, %v1106_v17 }
 0x19e   :  { %v1162_v60 = vmax.f32 %v1154_v62, 0.0 }
 0x1a0   :  { %v1167_v57 = vpack.c.bf16 %v1162_v60, %v1161_v2 }
 0x1a1   :  { %v1096_v25 = vpop.f32.mrf.mxu0 }
 0x1a2   :  { %v16528_v3 = vpop.f32.mrf.mxu1  ;;  %v1107_v19 = vadd.f32 %v1096_v25, %v1011_v40  ;;  %v1159_v25 = vmax.f32 %v1151_v43, 0.0  ;;  %v12303_v40 = vld [vmem:[#allocation2 + $0x10] sm:$0xf] }
 0x1a3   :  { %v12304_v0 = vor.u32 %v14933_v55, %v12303_v40 }
 0x1a4   :  { %v1155_v13 = vadd.f32 %v16521_v44, %v1107_v19  ;;  %v1166_v19 = vpack.c.bf16 %v1160_v22, %v1159_v25 }
 0x1a5   :  { %11924 = vmatmul.msk.bf16.gmra.mxu1 %vm900_vm0, %v14876_v39  ;;  %v16566_v39 = vpop.permute.xlu0 %1111 }
 0x1a6   :  { %v1163_v14 = vmax.f32 %v1155_v13, 0.0  ;;  %v14900_v13 = vld [vmem:[#allocation2 + $0xe0] sm:$0xf0] }
 0x1a7   :  { %v12096_v42 = vor.u32 %v14900_v13, %v12095_v49 }
 0x1a9   :  { %v1098_v18 = vpop.f32.mrf.mxu0 }
 0x1aa   :  { %v16539_v32 = vpop.f32.mrf.mxu1  ;;  %v1108_v21 = vadd.f32 %v1098_v18, %v1013_v15 }
 0x1ac   :  { %v1156_v33 = vadd.f32 %v16523_v1, %v1108_v21 }
 0x1ae   :  { %v1164_v46 = vmax.f32 %v1156_v33, 0.0  ;;  %v14899_v33 = vld [vmem:[#allocation2 + $0x50] sm:$0xf0] }
 0x1b0   :  { %v1168_v9 = vpack.c.bf16 %v1164_v46, %v1163_v14  ;;  %v12092_v14 = vor.u32 %v14899_v33, %v12091_v61  ;;  %v14815_v61 = vld [vmem:[%s20084_s5 + $0x20] sm:$0xff] }
 0x1b1   :  { %v1592_v51 = vpop.f32.mrf.mxu0 }
 0x1b2   :  { %v2221_v10 = vpop.f32.mrf.mxu1  ;;  %v1666_v53 = vadd.f32 %v16430_v11, %v1592_v51  ;;  %1366 = vmatpush.bf16.msra.mxu3 %v1168_v9  ;;  %v1149_v11 = vadd.f32 %v16566_v39, %v16496_v36  ;;  %v14812_v9 = vld [vmem:[%s20084_s5 + $0x8] sm:$0xff] }
 0x1b4   :  { %v1770_v47 = vadd.f32 %v16494_v50, %v1666_v53  ;;  %v1157_v17 = vmax.f32 %v1149_v11, 0.0  ;;  %v14813_v53 = vld [vmem:[%s20084_s5 + $0x10] sm:$0xff] }
 0x1b5   :  { %12069 = vmatmul.msk.bf16.vlgmr.msrb.gmra.mxu1 %vm900_vm0, %v14901_v37  ;;  %v2294_v37 = vpop.f32.mrf.mxu2 }
 0x1b6   :  { %3549 = vmatpush.bf16.msrb.mxu1 %v12308_v29  ;;  %1367 = vmatpush.bf16.msra.mxu3 %v1167_v57  ;;  %v1778_v52 = vadd.f32 %v1770_v47, %v16566_v39  ;;  %v1165_v36 = vpack.c.bf16 %v1158_v28, %v1157_v17  ;;  %v2295_v51 = vadd.f32 %v2294_v37, %v2221_v10  ;;  %v12343_v37 = vld [vmem:[#allocation2 + $0xa8] sm:$0xf] }
 0x1b9   :  { %v1594_v15 = vpop.f32.mrf.mxu0 }
 0x1ba   :  { %3550 = vmatpush.bf16.msrb.mxu1 %v12304_v0  ;;  %v16570_v50 = vpop.f32.mrf.mxu1  ;;  %v1668_v18 = vadd.f32 %v16436_v24, %v1594_v15  ;;  %1368 = vmatpush.bf16.msra.mxu3 %v1166_v19  ;;  %v1786_v24 = vmax.f32 %v1778_v52, 0.0 }
 0x1bc   :  { %v1771_v21 = vadd.f32 %v16499_v7, %v1668_v18 }
 0x1bd   :  { %v16600_v57 = vpop.f32.mrf.mxu2 }
 0x1be   :  { %v1779_v62 = vadd.f32 %v1771_v21, %v16561_v38  ;;  %1369 = vmatpush.bf16.msra.mxu3 %v1165_v36 }
 0x1c0   :  { %v1787_v26 = vmax.f32 %v1779_v62, 0.0 }
 0x1c1   :  { %11597 = vmatmul.msk.bf16.vlgmr.msra.gmra.mxu3 %vm1313_vm1, %v14811_v35  ;;  %v1597_v8 = vpop.f32.mrf.mxu0 }
 0x1c2   :  { %2920 = vmatpush.bf16.msrb.mxu3 %v12096_v42  ;;  %v16580_v7 = vpop.f32.mrf.mxu1  ;;  %v1794_v46 = vpack.c.bf16 %v1787_v26, %v1786_v24  ;;  %v1671_v19 = vadd.f32 %v16446_v4, %v1597_v8  ;;  %v12279_v24 = vld [vmem:[#allocation2 + $0xa4] sm:$0xf]  ;;  %v14940_v26 = vld [vmem:[#allocation2 + $0xe8] sm:$0xf0] }
 0x1c3   :  { %v12280_v8 = vor.u32 %v14940_v26, %v12279_v24 }
 0x1c6   :  { %2921 = vmatpush.bf16.msrb.mxu3 %v12092_v14  ;;  %v14845_v14 = vld [vmem:[%s20084_s5 + $0x80] sm:$0xff] }
 0x1c9   :  { %v1599_v20 = vpop.f32.mrf.mxu0 }
 0x1ca   :  { %v16582_v41 = vpop.f32.mrf.mxu1  ;;  %v1673_v25 = vadd.f32 %v16452_v23, %v1599_v20  ;;  %v14939_v20 = vld [vmem:[#allocation2 + $0x58] sm:$0xf0] }
 0x1d1   :  { %11598 = vmatmul.msk.bf16.gmra.mxu3 %vm1313_vm1, %v14812_v9  ;;  %v1602_v63 = vpop.f32.mrf.mxu0 }
 0x1d2   :  { %v16588_v60 = vpop.f32.mrf.mxu1  ;;  %v1676_v10 = vadd.f32 %v16464_v5, %v1602_v63  ;;  %v14814_v5 = vld [vmem:[%s20084_s5 + $0x18] sm:$0xff]  ;;  %v12275_v63 = vld [vmem:[#allocation2 + $0x14] sm:$0xf] }
 0x1d9   :  { %v1604_v43 = vpop.f32.mrf.mxu0 }
 0x1da   :  { %v16590_v2 = vpop.f32.mrf.mxu1  ;;  %v1678_v47 = vadd.f32 %v16468_v30, %v1604_v43  ;;  %v14946_v43 = vld [vmem:[#allocation2 + $0xec] sm:$0xf0] }
 0x1dc   :  { %v1775_v40 = vadd.f32 %v16519_v56, %v1678_v47  ;;  %v12339_v47 = vld [vmem:[#allocation2 + $0x18] sm:$0xf] }
 0x1de   :  { %v1783_v23 = vadd.f32 %v1775_v40, %v16544_v27 }
 0x1e1   :  { %11599 = vmatmul.msk.bf16.gmra.mxu3 %vm1313_vm1, %v14813_v53  ;;  %v1607_v58 = vpop.f32.mrf.mxu0  ;;  %v12344_v53 = vor.u32 %v14946_v43, %v12343_v37  ;;  %v14974_v43 = vld [vmem:[#allocation2 + $0xec] sm:$0xf0] }
 0x1e2   :  { %v16596_v29 = vpop.f32.mrf.mxu1  ;;  %v1681_v34 = vadd.f32 %v16480_v48, %v1607_v58  ;;  %v1774_v48 = vadd.f32 %v16516_v45, %v1676_v10  ;;  %v14945_v58 = vld [vmem:[#allocation2 + $0x5c] sm:$0xf0] }
 0x1e3   :  { %v12340_v10 = vor.u32 %v14945_v58, %v12339_v47  ;;  %v14819_v58 = vld [vmem:[%s20084_s5 + $0x40] sm:$0xff] }
 0x1e4   :  { %v1776_v55 = vadd.f32 %v16528_v3, %v1681_v34  ;;  %v1773_v3 = vadd.f32 %v16511_v31, %v1673_v25  ;;  %v1782_v4 = vadd.f32 %v1774_v48, %v16532_v59  ;;  %v1791_v31 = vmax.f32 %v1783_v23, 0.0  ;;  %v14817_v48 = vld [vmem:[%s20084_s5 + $0x30] sm:$0xff]  ;;  %v14849_v47 = vld [vmem:[%s20084_s5 + $0xa0] sm:$0xff] }
 0x1e6   :  { %v1784_v30 = vadd.f32 %v1776_v55, %v16521_v44  ;;  %v1781_v18 = vadd.f32 %v1773_v3, %v16553_v6  ;;  %v1790_v36 = vmax.f32 %v1782_v4, 0.0 }
 0x1e8   :  { %v1792_v15 = vmax.f32 %v1784_v30, 0.0  ;;  %v1796_v13 = vpack.c.bf16 %v1791_v31, %v1790_v36  ;;  %v14847_v30 = vld [vmem:[%s20084_s5 + $0x90] sm:$0xff] }
 0x1e9   :  { %v1609_v22 = vpop.f32.mrf.mxu0 }
 0x1ea   :  { %v16604_v11 = vpop.f32.mrf.mxu1  ;;  %v1683_v0 = vadd.f32 %v16484_v16, %v1609_v22  ;;  %v1772_v16 = vadd.f32 %v16508_v54, %v1671_v19  ;;  %v1789_v54 = vmax.f32 %v1781_v18, 0.0  ;;  %v14846_v22 = vld [vmem:[%s20084_s5 + $0x88] sm:$0xff] }
 0x1ec   :  { %v1777_v28 = vadd.f32 %v16539_v32, %v1683_v0  ;;  %v2299_v32 = vpop.f32.mrf.mxu2  ;;  %v1780_v21 = vadd.f32 %v1772_v16, %v16535_v12 }
 0x1ed   :  { %v2300_v18 = vadd.f32 %v2299_v32, %v16580_v7 }
 0x1ee   :  { %v1785_v56 = vadd.f32 %v1777_v28, %v16523_v1  ;;  %v1788_v42 = vmax.f32 %v1780_v21, 0.0  ;;  %v2297_v21 = vadd.f32 %v16600_v57, %v16570_v50 }
 0x1f0   :  { %v1793_v45 = vmax.f32 %v1785_v56, 0.0  ;;  %v1795_v62 = vpack.c.bf16 %v1789_v54, %v1788_v42  ;;  %v14848_v54 = vld [vmem:[%s20084_s5 + $0x98] sm:$0xff] }
 0x1f1   :  { %11600 = vmatmul.msk.bf16.gmra.mxu3 %vm1313_vm1, %v14814_v5 }
 0x1f2   :  { %v2379_v17 = vpop.f32.mrf.mxu1  ;;  %v1797_v52 = vpack.c.bf16 %v1793_v45, %v1792_v15 }
 0x1f3   :  { %v16623_v49 = vadd.f32 %v2379_v17, %v2295_v51  ;;  %v12276_v51 = vor.u32 %v14939_v20, %v12275_v63  ;;  %v12491_v63 = vld [vmem:[#allocation2 + $0xa8] sm:$0xf] }
 0x1f4   :  { %1995 = vmatpush.bf16.msrb.mxu0 %v1797_v52  ;;  %v2301_v33 = vpop.f32.mrf.mxu2 }
 0x1f5   :  { %v2302_v15 = vadd.f32 %v2301_v33, %v16582_v41  ;;  %v14818_v41 = vld [vmem:[%s20084_s5 + $0x38] sm:$0xff] }
 0x1f8   :  { %1996 = vmatpush.bf16.msrb.mxu0 %v1796_v13 }
 0x1fa   :  { %v16626_v35 = vpop.f32.mrf.mxu1 }
 0x1fb   :  { %v2400_v50 = vadd.f32 %v16626_v35, %v2297_v21 }
 0x1fc   :  { %1997 = vmatpush.bf16.msrb.mxu0 %v1795_v62  ;;  %v2304_v34 = vpop.f32.mrf.mxu2 }
 0x1fd   :  { %v2305_v56 = vadd.f32 %v2304_v34, %v16588_v60  ;;  %v14879_v34 = vld [vmem:[%s20084_s5 + $0x100] sm:$0xff] }
 0x200   :  { %1998 = vmatpush.bf16.msrb.mxu0 %v1794_v46  ;;  %v14816_v46 = vld [vmem:[%s20084_s5 + $0x28] sm:$0xff] }
 0x201   :  { %11601 = vmatmul.msk.bf16.gmra.mxu3 %vm1313_vm1, %v14815_v61  ;;  %v2408_v61 = vadd.f32 %v2400_v50, %v16561_v38 }
 0x202   :  { %v2384_v9 = vpop.f32.mrf.mxu1 }
 0x203   :  { %11809 = vmatmul.msk.bf16.vlgmr.msrb.gmra.mxu0 %vm1313_vm1, %v14845_v14  ;;  %v2407_v14 = vadd.f32 %v16623_v49, %v16566_v39  ;;  %v14973_v49 = vld [vmem:[#allocation2 + $0x5c] sm:$0xf0] }
 0x204   :  { %3476 = vmatpush.bf16.msra.mxu0 %v12280_v8  ;;  %v2306_v25 = vpop.f32.mrf.mxu2 }
 0x205   :  { %v2307_v23 = vadd.f32 %v2306_v25, %v16590_v2  ;;  %v2415_v37 = vmax.f32 %v2407_v14, 0.0 }
 0x208   :  { %3477 = vmatpush.bf16.msra.mxu0 %v12276_v51 }
 0x20a   :  { %v2386_v55 = vpop.f32.mrf.mxu1 }
 0x20b   :  { %v2402_v36 = vadd.f32 %v2386_v55, %v2302_v15  ;;  %v12487_v55 = vld [vmem:[#allocation2 + $0x18] sm:$0xf]  ;;  %v14851_v15 = vld [vmem:[%s20084_s5 + $0xb0] sm:$0xff] }
 0x20c   :  { %3634 = vmatpush.bf16.msrb.mxu0 %v12344_v53  ;;  %v2309_v19 = vpop.f32.mrf.mxu2  ;;  %v12492_v53 = vor.u32 %v14974_v43, %v12491_v63  ;;  %v14855_v63 = vld [vmem:[%s20084_s5 + $0xd0] sm:$0xff] }
 0x20d   :  { %v2310_v5 = vadd.f32 %v2309_v19, %v16596_v29  ;;  %v2410_v57 = vadd.f32 %v2402_v36, %v16553_v6  ;;  %v12551_v19 = vld [vmem:[#allocation2 + $0x1c] sm:$0xf] }
 0x20f   :  { %v2418_v8 = vmax.f32 %v2410_v57, 0.0 }
 0x210   :  { %3635 = vmatpush.bf16.msrb.mxu0 %v12340_v10  ;;  %v12555_v10 = vld [vmem:[#allocation2 + $0xac] sm:$0xf] }
 0x211   :  { %11602 = vmatmul.msk.bf16.gmra.mxu3 %vm1313_vm1, %v14816_v46  ;;  %v12488_v46 = vor.u32 %v14973_v49, %v12487_v55  ;;  %v14886_v55 = vld [vmem:[%s20084_s5 + $0x138] sm:$0xff] }
 0x212   :  { %v2389_v40 = vpop.f32.mrf.mxu1 }
 0x213   :  { %11810 = vmatmul.msk.bf16.gmra.mxu0 %vm1313_vm1, %v14846_v22  ;;  %v2403_v52 = vadd.f32 %v2389_v40, %v2305_v56  ;;  %v14980_v22 = vld [vmem:[#allocation2 + $0xf0] sm:$0xf0]  ;;  %v14979_v40 = vld [vmem:[#allocation2 + $0x60] sm:$0xf0] }
 0x214   :  { %v2311_v3 = vpop.f32.mrf.mxu2  ;;  %v12556_v25 = vor.u32 %v14980_v22, %v12555_v10  ;;  %v14826_v10 = vld [vmem:[%s20084_s5 + $0x78] sm:$0xff] }
 0x215   :  { %v2312_v4 = vadd.f32 %v2311_v3, %v16604_v11  ;;  %v2401_v11 = vadd.f32 %v2384_v9, %v2300_v18  ;;  %v2411_v13 = vadd.f32 %v2403_v52, %v16532_v59  ;;  %v2416_v9 = vmax.f32 %v2408_v61, 0.0  ;;  %v14850_v3 = vld [vmem:[%s20084_s5 + $0xa8] sm:$0xff]  ;;  %v14822_v18 = vld [vmem:[%s20084_s5 + $0x58] sm:$0xff] }
 0x216   :  { %v14882_v52 = vld [vmem:[%s20084_s5 + $0x118] sm:$0xff] }
 0x217   :  { %v2409_v33 = vadd.f32 %v2401_v11, %v16535_v12  ;;  %v2419_v24 = vmax.f32 %v2411_v13, 0.0  ;;  %v2423_v51 = vpack.c.bf16 %v2416_v9, %v2415_v37  ;;  %v14825_v9 = vld [vmem:[%s20084_s5 + $0x70] sm:$0xff] }
 0x218   :  { %v14885_v37 = vld [vmem:[%s20084_s5 + $0x130] sm:$0xff] }
 0x219   :  { %v2417_v35 = vmax.f32 %v2409_v33, 0.0  ;;  %v14854_v33 = vld [vmem:[%s20084_s5 + $0xc8] sm:$0xff] }
 0x21a   :  { %v2391_v0 = vpop.f32.mrf.mxu1 }
 0x21b   :  { %v2404_v45 = vadd.f32 %v2391_v0, %v2307_v23  ;;  %v2424_v20 = vpack.c.bf16 %v2418_v8, %v2417_v35 }
 0x21d   :  { %v2412_v2 = vadd.f32 %v2404_v45, %v16544_v27 }
 0x21f   :  { %v2420_v62 = vmax.f32 %v2412_v2, 0.0  ;;  %v14823_v2 = vld [vmem:[%s20084_s5 + $0x60] sm:$0xff] }
 0x221   :  { %11603 = vmatmul.msk.bf16.gmra.mxu3 %vm1313_vm1, %v14817_v48  ;;  %v2425_v26 = vpack.c.bf16 %v2420_v62, %v2419_v24  ;;  %v12552_v48 = vor.u32 %v14979_v40, %v12551_v19  ;;  %v14884_v62 = vld [vmem:[%s20084_s5 + $0x128] sm:$0xff] }
 0x222   :  { %v2394_v28 = vpop.f32.mrf.mxu1  ;;  %v14908_v40 = vld [vmem:[%s20082_s3 + $0x48] sm:$0xff] }
 0x223   :  { %11811 = vmatmul.msk.bf16.gmra.mxu0 %vm1313_vm1, %v14847_v30  ;;  %v2405_v16 = vadd.f32 %v2394_v28, %v2310_v5  ;;  %v14820_v28 = vld [vmem:[%s20084_s5 + $0x48] sm:$0xff] }
 0x224   :  { %v14880_v5 = vld [vmem:[%s20084_s5 + $0x108] sm:$0xff] }
 0x225   :  { %v2413_v31 = vadd.f32 %v2405_v16, %v16521_v44  ;;  %v14821_v16 = vld [vmem:[%s20084_s5 + $0x50] sm:$0xff] }
 0x227   :  { %v2421_v7 = vmax.f32 %v2413_v31, 0.0  ;;  %v14852_v31 = vld [vmem:[%s20084_s5 + $0xb8] sm:$0xff] }
 0x22a   :  { %v2396_v17 = vpop.f32.mrf.mxu1 }
 0x22b   :  { %v2406_v29 = vadd.f32 %v2396_v17, %v2312_v4  ;;  %v14881_v4 = vld [vmem:[%s20084_s5 + $0x110] sm:$0xff] }
 0x22d   :  { %v2414_v60 = vadd.f32 %v2406_v29, %v16523_v1  ;;  %v14902_v29 = vld [vmem:[%s20082_s3 + $0x28] sm:$0xff] }
 0x22e   :  { %12070 = vmatmul.msk.bf16.gmra.mxu1 %vm900_vm0, %v14902_v29 }
 0x22f   :  { %v2422_v32 = vmax.f32 %v2414_v60, 0.0  ;;  %v14883_v60 = vld [vmem:[%s20084_s5 + $0x120] sm:$0xff] }
 0x231   :  { %v2426_v42 = vpack.c.bf16 %v2422_v32, %v2421_v7  ;;  %11604 = vmatmul.msk.bf16.gmra.mxu3 %vm1313_vm1, %v14818_v41  ;;  %v14853_v41 = vld [vmem:[%s20084_s5 + $0xc0] sm:$0xff]  ;;  %v14903_v7 = vld [vmem:[%s20082_s3 + $0x30] sm:$0xff] }
 0x233   :  { %2624 = vmatpush.bf16.msrb.mxu2 %v2426_v42  ;;  %11812 = vmatmul.msk.bf16.gmra.mxu0 %vm1313_vm1, %v14848_v54  ;;  %v14824_v42 = vld [vmem:[%s20084_s5 + $0x68] sm:$0xff] }
 0x237   :  { %2625 = vmatpush.bf16.msrb.mxu2 %v2425_v26  ;;  %v14904_v26 = vld [vmem:[%s20082_s3 + $0x38] sm:$0xff] }
 0x23b   :  { %2626 = vmatpush.bf16.msrb.mxu2 %v2424_v20 }
 0x23e   :  { %12071 = vmatmul.msk.bf16.gmra.mxu1 %vm900_vm0, %v14903_v7 }
 0x23f   :  { %2627 = vmatpush.bf16.msrb.mxu2 %v2423_v51 }
 0x241   :  { %11605 = vmatmul.msk.bf16.gmra.mxu3 %vm1313_vm1, %v14819_v58 }
 0x242   :  { %12021 = vmatmul.msk.bf16.vlgmr.msrb.gmra.mxu2 %vm1313_vm1, %v14879_v34 }
 0x243   :  { %4105 = vmatpush.bf16.msra.mxu2 %v12492_v53  ;;  %11813 = vmatmul.msk.bf16.gmra.mxu0 %vm1313_vm1, %v14849_v47  ;;  %v14907_v53 = vld [vmem:[%s20082_s3 + $0x40] sm:$0xff] }
 0x244   :  { %v1371_v0 = vpop.f32.mrf.mxu3 }
 0x247   :  { %4106 = vmatpush.bf16.msra.mxu2 %v12488_v46  ;;  %v14856_v46 = vld [vmem:[%s20084_s5 + $0xd8] sm:$0xff] }
 0x24b   :  { %4263 = vmatpush.bf16.msrb.mxu2 %v12556_v25 }
 0x24c   :  { %v1373_v30 = vpop.f32.mrf.mxu3 }
 0x24e   :  { %12072 = vmatmul.msk.bf16.gmra.mxu1 %vm900_vm0, %v14904_v26 }
 0x24f   :  { %4264 = vmatpush.bf16.msrb.mxu2 %v12552_v48 }
 0x251   :  { %11606 = vmatmul.msk.bf16.gmra.mxu3 %vm1313_vm1, %v14820_v28  ;;  %v14887_v28 = vld [vmem:[%s20084_s5 + $0x140] sm:$0xff] }
 0x252   :  { %12022 = vmatmul.msk.bf16.gmra.mxu2 %vm1313_vm1, %v14880_v5  ;;  %v14895_v5 = vld [vmem:[%s20082_s3] sm:$0xff] }
 0x253   :  { %11814 = vmatmul.msk.bf16.gmra.mxu0 %vm1313_vm1, %v14850_v3  ;;  %v14857_v3 = vld [vmem:[%s20084_s5 + $0xe0] sm:$0xff] }
 0x254   :  { %v1376_v23 = vpop.f32.mrf.mxu3 }
 0x25c   :  { %v1378_v56 = vpop.f32.mrf.mxu3 }
 0x25e   :  { %12133 = vmatmul.msk.bf16.vlgmr.msra.gmra.mxu1 %vm900_vm0, %v14907_v53 }
 0x261   :  { %11607 = vmatmul.msk.bf16.gmra.mxu3 %vm1313_vm1, %v14821_v16  ;;  %v14909_v16 = vld [vmem:[%s20082_s3 + $0x50] sm:$0xff] }
 0x262   :  { %12023 = vmatmul.msk.bf16.gmra.mxu2 %vm1313_vm1, %v14881_v4 }
 0x263   :  { %11815 = vmatmul.msk.bf16.gmra.mxu0 %vm1313_vm1, %v14851_v15 }
 0x264   :  { %v1381_v45 = vpop.f32.mrf.mxu3 }
 0x26c   :  { %v1383_v17 = vpop.f32.mrf.mxu3 }
 0x26e   :  { %12134 = vmatmul.msk.bf16.gmra.mxu1 %vm900_vm0, %v14908_v40 }
 0x271   :  { %11608 = vmatmul.msk.bf16.gmra.mxu3 %vm1313_vm1, %v14822_v18 }
 0x272   :  { %12024 = vmatmul.msk.bf16.gmra.mxu2 %vm1313_vm1, %v14882_v52 }
 0x273   :  { %11816 = vmatmul.msk.bf16.gmra.mxu0 %vm1313_vm1, %v14852_v31 }
 0x274   :  { %v1386_v21 = vpop.f32.mrf.mxu3 }
 0x27c   :  { %v1388_v36 = vpop.f32.mrf.mxu3 }
 0x27e   :  { %12135 = vmatmul.msk.bf16.gmra.mxu1 %vm900_vm0, %v14909_v16  ;;  %v14891_v16 = vld [vmem:[%s20084_s5 + $0x160] sm:$0xff] }
 0x280   :  { %v2000_v11 = vpop.f32.mrf.mxu0 }
 0x281   :  { %v16739_v13 = vadd.f32 %v2000_v11, %v1371_v0  ;;  %11609 = vmatmul.msk.bf16.gmra.mxu3 %vm1313_vm1, %v14823_v2  ;;  %v14858_v2 = vld [vmem:[%s20084_s5 + $0xe8] sm:$0xff]  ;;  %v14910_v11 = vld [vmem:[%s20082_s3 + $0x58] sm:$0xff] }
 0x282   :  { %12025 = vmatmul.msk.bf16.gmra.mxu2 %vm1313_vm1, %v14883_v60 }
 0x283   :  { %11817 = vmatmul.msk.bf16.gmra.mxu0 %vm1313_vm1, %v14853_v41 }
 0x284   :  { %v1391_v32 = vpop.f32.mrf.mxu3 }
 0x288   :  { %v2002_v54 = vpop.f32.mrf.mxu0 }
 0x289   :  { %v2081_v50 = vadd.f32 %v2002_v54, %v1373_v30 }
 0x28c   :  { %v1393_v57 = vpop.f32.mrf.mxu3 }
 0x28e   :  { %12136 = vmatmul.msk.bf16.gmra.mxu1 %vm900_vm0, %v14910_v11  ;;  %v12515_v11 = vld [vmem:[#allocation2 + $0x14] sm:$0xf] }
 0x290   :  { %v2005_v24 = vpop.f32.mrf.mxu0 }
 0x291   :  { %v16757_v61 = vadd.f32 %v2005_v24, %v1376_v23  ;;  %11610 = vmatmul.msk.bf16.gmra.mxu3 %vm1313_vm1, %v14824_v42  ;;  %v14897_v24 = vld [vmem:[%s20082_s3 + $0x10] sm:$0xff] }
 0x292   :  { %12026 = vmatmul.msk.bf16.gmra.mxu2 %vm1313_vm1, %v14884_v62 }
 0x293   :  { %11818 = vmatmul.msk.bf16.gmra.mxu0 %vm1313_vm1, %v14854_v33  ;;  %v14889_v33 = vld [vmem:[%s20084_s5 + $0x150] sm:$0xff] }
 0x294   :  { %v1396_v8 = vpop.f32.mrf.mxu3 }
 0x298   :  { %v2007_v14 = vpop.f32.mrf.mxu0 }
 0x299   :  { %v16766_v35 = vadd.f32 %v2007_v14, %v1378_v56 }
 0x29c   :  { %v1398_v20 = vpop.f32.mrf.mxu3 }
 0x2a0   :  { %v2010_v51 = vpop.f32.mrf.mxu0 }
 0x2a1   :  { %v16777_v43 = vadd.f32 %v2010_v51, %v1381_v45  ;;  %11611 = vmatmul.msk.bf16.gmra.mxu3 %vm1313_vm1, %v14825_v9  ;;  %v16890_v9 = vpop.f32.mrf.mxu1 }
 0x2a2   :  { %12027 = vmatmul.msk.bf16.gmra.mxu2 %vm1313_vm1, %v14885_v37 }
 0x2a3   :  { %11819 = vmatmul.msk.bf16.gmra.mxu0 %vm1313_vm1, %v14855_v63 }
 0x2a4   :  { %v1401_v58 = vpop.f32.mrf.mxu3 }
 0x2a8   :  { %v2012_v34 = vpop.f32.mrf.mxu0 }
 0x2a9   :  { %v16786_v49 = vadd.f32 %v2012_v34, %v1383_v17  ;;  %v14890_v34 = vld [vmem:[%s20084_s5 + $0x158] sm:$0xff] }
 0x2ac   :  { %v16788_v47 = vpop.f32.mrf.mxu3 }
 0x2b0   :  { %v2015_v22 = vpop.f32.mrf.mxu0 }
 0x2b1   :  { %v16799_v25 = vadd.f32 %v2015_v22, %v1386_v21  ;;  %11612 = vmatmul.msk.bf16.gmra.mxu3 %vm1313_vm1, %v14826_v10  ;;  %v14888_v21 = vld [vmem:[%s20084_s5 + $0x148] sm:$0xff]  ;;  %v14860_v10 = vld [vmem:[%s20084_s5 + $0xf8] sm:$0xff] }
 0x2b2   :  { %12028 = vmatmul.msk.bf16.gmra.mxu2 %vm1313_vm1, %v14886_v55 }
 0x2b3   :  { %11820 = vmatmul.msk.bf16.gmra.mxu0 %vm1313_vm1, %v14856_v46 }
 0x2b4   :  { %v1406_v0 = vpop.f32.mrf.mxu3 }
 0x2b8   :  { %v2017_v19 = vpop.f32.mrf.mxu0 }
 0x2b9   :  { %v16808_v48 = vadd.f32 %v2017_v19, %v1388_v36  ;;  %v14896_v36 = vld [vmem:[%s20082_s3 + $0x8] sm:$0xff] }
 0x2bc   :  { %v16810_v30 = vpop.f32.mrf.mxu3 }
 0x2c0   :  { %v2020_v23 = vpop.f32.mrf.mxu0 }
 0x2c1   :  { %v16821_v56 = vadd.f32 %v2020_v23, %v1391_v32  ;;  %12097 = vmatmul.msk.bf16.vlgmr.msrb.gmra.mxu3 %vm900_vm0, %v14895_v5 }
 0x2c2   :  { %12029 = vmatmul.msk.bf16.gmra.mxu2 %vm1313_vm1, %v14887_v28 }
 0x2c3   :  { %11821 = vmatmul.msk.bf16.gmra.mxu0 %vm1313_vm1, %v14857_v3 }
 0x2c4   :  { %v16830_v4 = vpop.f32.mrf.mxu3 }
 0x2c5   :  { %v2629_v15 = vpop.f32.mrf.mxu2 }
 0x2c6   :  { %v16833_v45 = vadd.f32 %v2629_v15, %v16739_v13  ;;  %v12519_v15 = vld [vmem:[#allocation2 + $0xa4] sm:$0xf] }
 0x2c8   :  { %v2022_v17 = vpop.f32.mrf.mxu0 }
 0x2c9   :  { %v16835_v18 = vadd.f32 %v2022_v17, %v1393_v57 }
 0x2cc   :  { %v16837_v52 = vpop.f32.mrf.mxu3 }
 0x2cd   :  { %v2631_v31 = vpop.f32.mrf.mxu2 }
 0x2ce   :  { %v16839_v29 = vadd.f32 %v2631_v31, %v2081_v50  ;;  %v14968_v31 = vld [vmem:[#allocation2 + $0xe8] sm:$0xf0] }
 0x2d0   :  { %v2025_v60 = vpop.f32.mrf.mxu0 }
 0x2d1   :  { %v16850_v41 = vadd.f32 %v2025_v60, %v1396_v8  ;;  %12098 = vmatmul.msk.bf16.gmra.mxu3 %vm900_vm0, %v14896_v36 }
 0x2d2   :  { %12030 = vmatmul.msk.bf16.gmra.mxu2 %vm1313_vm1, %v14888_v21  ;;  %v12520_v21 = vor.u32 %v14968_v31, %v12519_v15 }
 0x2d3   :  { %11822 = vmatmul.msk.bf16.gmra.mxu0 %vm1313_vm1, %v14858_v2 }
 0x2d4   :  { %v16859_v13 = vpop.f32.mrf.mxu3 }
 0x2d5   :  { %v2634_v7 = vpop.f32.mrf.mxu2 }
 0x2d6   :  { %v16862_v32 = vadd.f32 %v2634_v7, %v16757_v61  ;;  %v14859_v61 = vld [vmem:[%s20084_s5 + $0xf0] sm:$0xff] }
 0x2d8   :  { %v2027_v54 = vpop.f32.mrf.mxu0 }
 0x2d9   :  { %v16864_v50 = vadd.f32 %v2027_v54, %v1398_v20 }
 0x2dc   :  { %v16866_v57 = vpop.f32.mrf.mxu3 }
 0x2dd   :  { %v2636_v42 = vpop.f32.mrf.mxu2 }
 0x2de   :  { %v16869_v62 = vadd.f32 %v2636_v42, %v16766_v35 }
 0x2e0   :  { %v2030_v26 = vpop.f32.mrf.mxu0 }
 0x2e1   :  { %v16880_v8 = vadd.f32 %v2030_v26, %v1401_v58  ;;  %12099 = vmatmul.msk.bf16.gmra.mxu3 %vm900_vm0, %v14897_v24 }
 0x2e2   :  { %12031 = vmatmul.msk.bf16.gmra.mxu2 %vm1313_vm1, %v14889_v33 }
 0x2e3   :  { %11823 = vmatmul.msk.bf16.gmra.mxu0 %vm1313_vm1, %v14859_v61  ;;  %v14892_v61 = vld [vmem:[%s20084_s5 + $0x168] sm:$0xff] }
 0x2e4   :  { %v16885_v14 = vpop.f32.mrf.mxu3 }
 0x2e5   :  { %v2639_v35 = vpop.f32.mrf.mxu2 }
 0x2e6   :  { %v16888_v20 = vadd.f32 %v2639_v35, %v16777_v43  ;;  %v14898_v43 = vld [vmem:[%s20082_s3 + $0x18] sm:$0xff] }
 0x2e8   :  { %v2032_v37 = vpop.f32.mrf.mxu0 }
 0x2e9   :  { %v16893_v63 = vadd.f32 %v2032_v37, %v16788_v47 }
 0x2ec   :  { %v16895_v51 = vpop.f32.mrf.mxu3 }
 0x2ed   :  { %v2641_v53 = vpop.f32.mrf.mxu2 }
 0x2ee   :  { %v16898_v58 = vadd.f32 %v2641_v53, %v16786_v49  ;;  %v16913_v49 = vpop.f32.mrf.mxu1 }
 0x2f0   :  { %v2035_v47 = vpop.f32.mrf.mxu0 }
 0x2f1   :  { %v16909_v55 = vadd.f32 %v2035_v47, %v1406_v0  ;;  %12100 = vmatmul.msk.bf16.gmra.mxu3 %vm900_vm0, %v14898_v43 }
 0x2f2   :  { %12032 = vmatmul.msk.bf16.gmra.mxu2 %vm1313_vm1, %v14890_v34 }
 0x2f3   :  { %11824 = vmatmul.msk.bf16.gmra.mxu0 %vm1313_vm1, %v14860_v10 }
 0x2f4   :  { %v16916_v46 = vpop.f32.mrf.mxu3 }
 0x2f5   :  { %v2644_v22 = vpop.f32.mrf.mxu2 }
 0x2f6   :  { %v16919_v40 = vadd.f32 %v2644_v22, %v16799_v25  ;;  %v16924_v0 = vpop.f32.mrf.mxu1  ;;  %v14935_v25 = vld [vmem:[%s20082_s3 + $0x20] sm:$0xff] }
 0x2f8   :  { %v2037_v19 = vpop.f32.mrf.mxu0 }
 0x2f9   :  { %v16922_v28 = vadd.f32 %v2037_v19, %v16810_v30  ;;  %v14893_v19 = vld [vmem:[%s20084_s5 + $0x170] sm:$0xff] }
 0x2fc   :  { %v16926_v5 = vpop.f32.mrf.mxu3 }
 0x2fd   :  { %v2646_v3 = vpop.f32.mrf.mxu2 }
 0x2fe   :  { %v16929_v23 = vadd.f32 %v2646_v3, %v16808_v48  ;;  %v14967_v48 = vld [vmem:[#allocation2 + $0x58] sm:$0xf0]  ;;  %v16947_v7 = vpop.f32.mrf.mxu1  ;;  %v14937_v3 = vld [vmem:[%s20082_s3 + $0x30] sm:$0xff] }
 0x2ff   :  { %v12516_v54 = vor.u32 %v14967_v48, %v12515_v11  ;;  %v14894_v11 = vld [vmem:[%s20084_s5 + $0x178] sm:$0xff] }
 0x300   :  { %v2040_v17 = vpop.f32.mrf.mxu0 }
 0x301   :  { %v16938_v30 = vadd.f32 %v2040_v17, %v16830_v4 }
 0x302   :  { %12033 = vmatmul.msk.bf16.gmra.mxu2 %vm1313_vm1, %v14891_v16 }
 0x303   :  { %12281 = vmatmul.msk.bf16.vlgmr.msra.gmra.mxu0 %vm900_vm0, %v14935_v25  ;;  %v14929_v25 = vld [vmem:[%s20082_s3] sm:$0xff] }
 0x304   :  { %4178 = vmatpush.bf16.msra.mxu0 %v12520_v21  ;;  %v16942_v36 = vpop.f32.mrf.mxu3  ;;  %12309 = vmatmul.msk.bf16.vlgmr.msrb.gmra.mxu1 %vm900_vm0, %v14929_v25  ;;  %v14969_v25 = vld [vmem:[%s20082_s3 + $0x20] sm:$0xff] }
 0x305   :  { %v2649_v2 = vpop.f32.mrf.mxu2 }
 0x306   :  { %v16945_v60 = vadd.f32 %v2649_v2, %v16821_v56  ;;  %v14936_v56 = vld [vmem:[%s20082_s3 + $0x28] sm:$0xff]  ;;  %v16962_v26 = vpop.f32.mrf.mxu1 }
 0x308   :  { %4179 = vmatpush.bf16.msra.mxu0 %v12516_v54  ;;  %v16949_v4 = vpop.f32.mrf.mxu0 }
 0x30c   :  { %v16951_v42 = vpop.f32.mrf.mxu3 }
 0x30d   :  { %v2651_v33 = vpop.f32.mrf.mxu2 }
 0x30e   :  { %v16954_v24 = vadd.f32 %v2651_v33, %v16835_v18  ;;  %v16976_v10 = vpop.f32.mrf.mxu1  ;;  %v14938_v33 = vld [vmem:[%s20082_s3 + $0x38] sm:$0xff] }
 0x310   :  { %v2045_v35 = vpop.f32.mrf.mxu0 }
 0x311   :  { %v16965_v37 = vadd.f32 %v2045_v35, %v16859_v13 }
 0x312   :  { %12034 = vmatmul.msk.bf16.gmra.mxu2 %vm1313_vm1, %v14892_v61 }
 0x313   :  { %12282 = vmatmul.msk.bf16.gmra.mxu0 %vm900_vm0, %v14936_v56 }
 0x314   :  { %v16969_v18 = vpop.f32.mrf.mxu3 }
 0x315   :  { %v2654_v53 = vpop.f32.mrf.mxu2 }
 0x316   :  { %v16972_v34 = vadd.f32 %v2654_v53, %v16850_v41 }
 0x318   :  { %v16974_v43 = vpop.f32.mrf.mxu0 }
 0x31c   :  { %v16978_v47 = vpop.f32.mrf.mxu3 }
 0x31d   :  { %20126 = vst [vmem:[#allocation14_spill] sm:$0xff] %v16978_v47  ;;  %v2656_v22 = vpop.f32.mrf.mxu2 }
 0x31e   :  { %v16981_v13 = vadd.f32 %v2656_v22, %v16864_v50  ;;  %v16997_v50 = vpop.f32.mrf.mxu1 }
 0x320   :  { %v2050_v41 = vpop.f32.mrf.mxu0 }
 0x321   :  { %v16990_v16 = vadd.f32 %v2050_v41, %v16885_v14 }
 0x322   :  { %12035 = vmatmul.msk.bf16.gmra.mxu2 %vm1313_vm1, %v14893_v19 }
 0x323   :  { %12283 = vmatmul.msk.bf16.gmra.mxu0 %vm900_vm0, %v14937_v3 }
 0x324   :  { %v17000_v15 = vpop.f32.mrf.mxu3 }
 0x325   :  { %v2659_v17 = vpop.f32.mrf.mxu2 }
 0x326   :  { %v17003_v31 = vadd.f32 %v2659_v17, %v16880_v8  ;;  %v17015_v54 = vpop.f32.mrf.mxu1  ;;  %v12703_v17 = vld [vmem:[#allocation2 + $0xac] sm:$0xf] }
 0x328   :  { %v17005_v14 = vpop.f32.mrf.mxu0 }
 0x32c   :  { %v17007_v21 = vpop.f32.mrf.mxu3 }
 0x32d   :  { %20127 = vst [vmem:[#allocation15_spill] sm:$0xff] %v17007_v21  ;;  %v2661_v48 = vpop.f32.mrf.mxu2 }
 0x32e   :  { %v17010_v2 = vadd.f32 %v2661_v48, %v16893_v63  ;;  %v14930_v63 = vld [vmem:[%s20082_s3 + $0x8] sm:$0xff]  ;;  %v3008_v22 = vpop.f32.mrf.mxu1  ;;  %v15008_v48 = vld [vmem:[#allocation2 + $0xf0] sm:$0xf0] }
 0x32f   :  { %12310 = vmatmul.msk.bf16.gmra.mxu1 %vm900_vm0, %v14930_v63  ;;  %v15007_v63 = vld [vmem:[#allocation2 + $0x60] sm:$0xf0] }
 0x330   :  { %v2055_v8 = vpop.f32.mrf.mxu0 }
 0x331   :  { %v17021_v61 = vadd.f32 %v2055_v8, %v16916_v46 }
 0x332   :  { %12036 = vmatmul.msk.bf16.gmra.mxu2 %vm1313_vm1, %v14894_v11 }
 0x333   :  { %12284 = vmatmul.msk.bf16.gmra.mxu0 %vm900_vm0, %v14938_v33  ;;  %v12704_v33 = vor.u32 %v15008_v48, %v12703_v17 }
 0x334   :  { %v17029_v56 = vpop.f32.mrf.mxu3 }
 0x335   :  { %v2664_v35 = vpop.f32.mrf.mxu2 }
 0x336   :  { %v17032_v53 = vadd.f32 %v2664_v35, %v16909_v55  ;;  %v14941_v55 = vld [vmem:[%s20082_s3 + $0x40] sm:$0xff]  ;;  %v14931_v35 = vld [vmem:[%s20082_s3 + $0x10] sm:$0xff] }
 0x338   :  { %20128 = vst [vmem:[#allocation13_spill] sm:$0xff] %v17032_v53  ;;  %v17034_v19 = vpop.f32.mrf.mxu0 }
 0x33c   :  { %v17036_v46 = vpop.f32.mrf.mxu3 }
 0x33d   :  { %20129 = vst [vmem:[#allocation18_spill] sm:$0xff] %v17036_v46  ;;  %v2666_v3 = vpop.f32.mrf.mxu2 }
 0x33e   :  { %v17039_v41 = vadd.f32 %v2666_v3, %v16922_v28  ;;  %v17051_v28 = vpop.f32.mrf.mxu1  ;;  %v12699_v3 = vld [vmem:[#allocation2 + $0x1c] sm:$0xf] }
 0x33f   :  { %12311 = vmatmul.msk.bf16.gmra.mxu1 %vm900_vm0, %v14931_v35  ;;  %v12700_v48 = vor.u32 %v15007_v63, %v12699_v3 }
 0x340   :  { %20130 = vst [vmem:[#allocation10_spill] sm:$0xff] %v17039_v41  ;;  %v2060_v11 = vpop.f32.mrf.mxu0 }
 0x341   :  { %v17048_v8 = vadd.f32 %v2060_v11, %v16942_v36 }
 0x342   :  { %12493 = vmatmul.msk.bf16.vlgmr.msra.gmra.mxu2 %vm900_vm0, %v14969_v25 }
 0x343   :  { %4734 = vmatpush.bf16.msra.mxu2 %v12704_v33  ;;  %12345 = vmatmul.msk.bf16.vlgmr.msrb.gmra.mxu0 %vm900_vm0, %v14941_v55  ;;  %v2097_v33 = vadd.f32 %v16949_v4, %v16837_v52  ;;  %v14932_v52 = vld [vmem:[%s20082_s3 + $0x18] sm:$0xff] }
 0x344   :  { %v2923_v17 = vpop.f32.mrf.mxu3 }
 0x345   :  { %v2669_v46 = vpop.f32.mrf.mxu2  ;;  %v2924_v25 = vadd.f32 %v2923_v17, %v16890_v9  ;;  %v14942_v9 = vld [vmem:[%s20082_s3 + $0x48] sm:$0xff] }
 0x346   :  { %v17059_v36 = vadd.f32 %v2669_v46, %v16938_v30  ;;  %v17068_v55 = vpop.f32.mrf.mxu1  ;;  %v14970_v30 = vld [vmem:[%s20082_s3 + $0x28] sm:$0xff] }
 0x347   :  { %4735 = vmatpush.bf16.msra.mxu2 %v12700_v48  ;;  %v17062_v11 = vadd.f32 %v3008_v22, %v2924_v25 }
 0x348   :  { %20131 = vst [vmem:[#allocation16_spill] sm:$0xff] %v17059_v36  ;;  %v17064_v21 = vpop.f32.mrf.mxu0 }
 0x34c   :  { %v17070_v35 = vpop.f32.mrf.mxu3 }
 0x34d   :  { %v2671_v47 = vpop.f32.mrf.mxu2 }
 0x34e   :  { %v17072_v41 = vadd.f32 %v2671_v47, %v2097_v33  ;;  %v3015_v3 = vpop.f32.mrf.mxu1 }
 0x34f   :  { %12312 = vmatmul.msk.bf16.gmra.mxu1 %vm900_vm0, %v14932_v52 }
 0x350   :  { %20132 = vst [vmem:[#allocation17_spill] sm:$0xff] %v17072_v41  ;;  %v2065_v22 = vpop.f32.mrf.mxu0 }
 0x351   :  { %v17081_v46 = vadd.f32 %v2065_v22, %v16969_v18  ;;  %v2099_v18 = vadd.f32 %v16974_v43, %v16866_v57 }
 0x352   :  { %12494 = vmatmul.msk.bf16.gmra.mxu2 %vm900_vm0, %v14970_v30  ;;  %v14971_v30 = vld [vmem:[%s20082_s3 + $0x30] sm:$0xff] }
 0x353   :  { %12346 = vmatmul.msk.bf16.gmra.mxu0 %vm900_vm0, %v14942_v9 }
 0x354   :  { %v2928_v47 = vpop.f32.mrf.mxu3 }
 0x355   :  { %v2674_v4 = vpop.f32.mrf.mxu2 }
 0x356   :  { %v17090_v63 = vadd.f32 %v2674_v4, %v16965_v37  ;;  %v3018_v9 = vpop.f32.mrf.mxu1  ;;  %v14943_v37 = vld [vmem:[%s20082_s3 + $0x50] sm:$0xff] }
 0x358   :  { %20133 = vst [vmem:[#allocation11_spill] sm:$0xff] %v17090_v63  ;;  %v17092_v17 = vpop.f32.mrf.mxu0 }
 0x359   :  { %20134 = vst [vmem:[#allocation9_spill] sm:$0xff] %v17092_v17  ;;  %v2101_v17 = vadd.f32 %v17005_v14, %v16895_v51 }
 0x35c   :  { %v2930_v25 = vpop.f32.mrf.mxu3 }
 0x35d   :  { %v2676_v48 = vpop.f32.mrf.mxu2 }
 0x35e   :  { %v17096_v33 = vadd.f32 %v2676_v48, %v2099_v18  ;;  %v3020_v48 = vpop.f32.mrf.mxu1 }
 0x360   :  { %20135 = vst [vmem:[#allocation12_spill] sm:$0xff] %v17096_v33  ;;  %v2070_v22 = vpop.f32.mrf.mxu0 }
 0x361   :  { %v17105_v52 = vadd.f32 %v2070_v22, %v17000_v15  ;;  %v14972_v15 = vld [vmem:[%s20082_s3 + $0x38] sm:$0xff] }
 0x362   :  { %12495 = vmatmul.msk.bf16.gmra.mxu2 %vm900_vm0, %v14971_v30  ;;  %v14944_v30 = vld [vmem:[%s20082_s3 + $0x58] sm:$0xff] }
 0x363   :  { %12347 = vmatmul.msk.bf16.gmra.mxu0 %vm900_vm0, %v14943_v37 }
 0x364   :  { %v2933_v43 = vpop.f32.mrf.mxu3 }
 0x365   :  { %v2679_v57 = vpop.f32.mrf.mxu2 }
 0x366   :  { %v17110_v4 = vadd.f32 %v2679_v57, %v16990_v16  ;;  %v3023_v22 = vpop.f32.mrf.mxu1 }
 0x368   :  { %20136 = vst [vmem:[#allocation7_spill] sm:$0xff] %v17110_v4  ;;  %v17112_v18 = vpop.f32.mrf.mxu0 }
 0x369   :  { %20137 = vst [vmem:[#allocation8_spill] sm:$0xff] %v17112_v18 }
 0x36c   :  { %v2935_v41 = vpop.f32.mrf.mxu3 }
 0x36d   :  { %v2681_v33 = vpop.f32.mrf.mxu2  ;;  %v2936_v18 = vadd.f32 %v2935_v41, %v16976_v10  ;;  %v12767_v10 = vld [vmem:[#allocation2 + $0xb0] sm:$0xf] }
 0x36e   :  { %v17116_v63 = vadd.f32 %v2681_v33, %v2101_v17  ;;  %v3025_v41 = vpop.f32.mrf.mxu1 }
 0x36f   :  { %v3033_v36 = vadd.f32 %v3020_v48, %v2936_v18 }
 0x370   :  { %20138 = vst [vmem:[#allocation19_spill] sm:$0xff] %v17116_v63  ;;  %v2075_v16 = vpop.f32.mrf.mxu0 }
 0x371   :  { %v17125_v37 = vadd.f32 %v2075_v16, %v17029_v56  ;;  %v2103_v56 = vadd.f32 %v17034_v19, %v16926_v5  ;;  %v2934_v16 = vadd.f32 %v2933_v43, %v16962_v26  ;;  %v2929_v5 = vadd.f32 %v2928_v47, %v16924_v0  ;;  %v15013_v47 = vld [vmem:[#allocation2 + $0x64] sm:$0xf0] }
 0x372   :  { %12496 = vmatmul.msk.bf16.gmra.mxu2 %vm900_vm0, %v14972_v15  ;;  %v3041_v18 = vadd.f32 %v3033_v36, %v16544_v27 }
 0x373   :  { %12348 = vmatmul.msk.bf16.gmra.mxu0 %vm900_vm0, %v14944_v30  ;;  %v2931_v30 = vadd.f32 %v2930_v25, %v16947_v7  ;;  %v3032_v19 = vadd.f32 %v3018_v9, %v2934_v16  ;;  %v14963_v7 = vld [vmem:[%s20082_s3] sm:$0xff]  ;;  %v3030_v9 = vadd.f32 %v17068_v55, %v2929_v5 }
 0x374   :  { %v2938_v14 = vpop.f32.mrf.mxu3 }
 0x375   :  { %v2684_v51 = vpop.f32.mrf.mxu2  ;;  %v2939_v33 = vadd.f32 %v2938_v14, %v16997_v50  ;;  %v14975_v50 = vld [vmem:[%s20082_s3 + $0x40] sm:$0xff]  ;;  %v3040_v48 = vadd.f32 %v3032_v19, %v16532_v59  ;;  %v3038_v55 = vadd.f32 %v3030_v9, %v16535_v12 }
 0x376   :  { %v17130_v17 = vadd.f32 %v2684_v51, %v17021_v61 }
 0x377   :  { %v3034_v15 = vadd.f32 %v3023_v22, %v2939_v33  ;;  %v15014_v22 = vld [vmem:[#allocation2 + $0xf4] sm:$0xf0]  ;;  %v3046_v5 = vmax.f32 %v3038_v55, 0.0 }
 0x378   :  { %v17133_v57 = vpop.f32.mrf.mxu0  ;;  %v12768_v25 = vor.u32 %v15014_v22, %v12767_v10  ;;  %v14976_v22 = vld [vmem:[%s20082_s3 + $0x48] sm:$0xff] }
 0x379   :  { %20139 = vst [vmem:[#allocation20_spill] sm:$0xff] %v17133_v57  ;;  %v3042_v26 = vadd.f32 %v3034_v15, %v16521_v44  ;;  %v3049_v15 = vmax.f32 %v3041_v18, 0.0 }
 0x37b   :  { %v3050_v51 = vmax.f32 %v3042_v26, 0.0 }
 0x37c   :  { %v2940_v4 = vpop.f32.mrf.mxu3 }
 0x37d   :  { %v2686_v63 = vpop.f32.mrf.mxu2  ;;  %v2941_v61 = vadd.f32 %v2940_v4, %v17015_v54  ;;  %v2926_v54 = vadd.f32 %v17070_v35, %v16913_v49  ;;  %v3031_v4 = vadd.f32 %v3015_v3, %v2931_v30  ;;  %v12763_v49 = vld [vmem:[#allocation2 + $0x20] sm:$0xf]  ;;  %v3048_v30 = vmax.f32 %v3040_v48, 0.0 }
 0x37e   :  { %v17140_v53 = vadd.f32 %v2686_v63, %v2103_v56  ;;  %v12764_v33 = vor.u32 %v15013_v47, %v12763_v49  ;;  %v15001_v47 = vld [vmem:[#allocation2 + $0x5c] sm:$0xf0] }
 0x37f   :  { %v3035_v43 = vadd.f32 %v3025_v41, %v2941_v61  ;;  %v3029_v35 = vadd.f32 %v17051_v28, %v2926_v54  ;;  %v3039_v36 = vadd.f32 %v3031_v4, %v16553_v6  ;;  %v3054_v10 = vpack.c.bf16 %v3049_v15, %v3048_v30  ;;  %v14914_v15 = vld [vmem:[%s20084_s5 + $0x188] sm:$0xff] }
 0x380   :  { %20140 = vst [vmem:[#allocation21_spill] sm:$0xff] %v17140_v53  ;;  %v17153_v63 = vpop.f32.mrf.mxu0  ;;  %v3036_v41 = vadd.f32 %v17062_v11, %v16566_v39  ;;  %v14964_v11 = vld [vmem:[%s20082_s3 + $0x8] sm:$0xff] }
 0x381   :  { %v3043_v0 = vadd.f32 %v3035_v43, %v16523_v1  ;;  %v3047_v28 = vmax.f32 %v3039_v36, 0.0 }
 0x382   :  { %12557 = vmatmul.msk.bf16.vlgmr.msrb.gmra.mxu2 %vm900_vm0, %v14975_v50  ;;  %v3037_v50 = vadd.f32 %v3029_v35, %v16561_v38  ;;  %v3044_v54 = vmax.f32 %v3036_v41, 0.0 }
 0x383   :  { %4892 = vmatpush.bf16.msrb.mxu2 %v12768_v25  ;;  %v3051_v14 = vmax.f32 %v3043_v0, 0.0  ;;  %12521 = vmatmul.msk.bf16.vlgmr.msra.gmra.mxu0 %vm900_vm0, %v14963_v7  ;;  %v3053_v43 = vpack.c.bf16 %v3047_v28, %v3046_v5  ;;  %v12731_v25 = vld [vmem:[#allocation2 + $0xa8] sm:$0xf]  ;;  %v14913_v0 = vld [vmem:[%s20084_s5 + $0x180] sm:$0xff]  ;;  %v14978_v28 = vld [vmem:[%s20082_s3 + $0x58] sm:$0xff] }
 0x384   :  { %v3045_v7 = vmax.f32 %v3037_v50, 0.0 }
 0x385   :  { %v2689_v3 = vpop.f32.mrf.mxu2  ;;  %v3055_v16 = vpack.c.bf16 %v3051_v14, %v3050_v51  ;;  %v12727_v51 = vld [vmem:[#allocation2 + $0x18] sm:$0xf] }
 0x386   :  { %v17164_v56 = vadd.f32 %v2689_v3, %v17048_v8  ;;  %v2105_v8 = vadd.f32 %v17064_v21, %v16951_v42  ;;  %v3052_v42 = vpack.c.bf16 %v3045_v7, %v3044_v54  ;;  %v15002_v21 = vld [vmem:[#allocation2 + $0xec] sm:$0xf0]  ;;  %v12728_v14 = vor.u32 %v15001_v47, %v12727_v51  ;;  %v15003_v7 = vld [vmem:[%s20082_s3 + $0x20] sm:$0xff]  ;;  %v12943_v54 = vld [vmem:[#allocation2 + $0xac] sm:$0xf] }
 0x387   :  { %4893 = vmatpush.bf16.msrb.mxu2 %v12764_v33  ;;  %3253 = vmatpush.bf16.msra.mxu3 %v3055_v16  ;;  %v12732_v18 = vor.u32 %v15002_v21, %v12731_v25  ;;  %v14977_v3 = vld [vmem:[%s20082_s3 + $0x50] sm:$0xff]  ;;  %v12939_v47 = vld [vmem:[#allocation2 + $0x1c] sm:$0xf] }
 0x388   :  { %v17167_v61 = vpop.f32.mrf.mxu0  ;;  %v14965_v33 = vld [vmem:[%s20082_s3 + $0x10] sm:$0xff] }
 0x389   :  { %v15036_v25 = vld [vmem:[#allocation2 + $0xf0] sm:$0xf0] }
 0x38b   :  { %3254 = vmatpush.bf16.msra.mxu3 %v3054_v10 }
 0x38d   :  { %v2691_v19 = vpop.f32.mrf.mxu2 }
 0x38e   :  { %v17174_v26 = vadd.f32 %v2691_v19, %v2105_v8 }
 0x38f   :  { %3255 = vmatpush.bf16.msra.mxu3 %v3053_v43 }
 0x390   :  { %20141 = vst [vmem:[#allocation22_spill] sm:$0xff] %v17174_v26  ;;  %v17182_v4 = vpop.f32.mrf.mxu0 }
 0x392   :  { %12558 = vmatmul.msk.bf16.gmra.mxu2 %vm900_vm0, %v14976_v22 }
 0x393   :  { %3256 = vmatpush.bf16.msra.mxu3 %v3052_v42  ;;  %12522 = vmatmul.msk.bf16.gmra.mxu0 %vm900_vm0, %v14964_v11  ;;  %v12944_v42 = vor.u32 %v15036_v25, %v12943_v54 }
 0x395   :  { %v2694_v9 = vpop.f32.mrf.mxu2 }
 0x396   :  { %v17190_v48 = vadd.f32 %v2694_v9, %v17081_v46  ;;  %12233 = vmatmul.msk.bf16.vlgmr.msra.gmra.mxu3 %vm1313_vm1, %v14913_v0  ;;  %v3552_v46 = vpop.f32.mrf.mxu1  ;;  %v14916_v0 = vld [vmem:[%s20084_s5 + $0x198] sm:$0xff] }
 0x397   :  { %4807 = vmatpush.bf16.msrb.mxu3 %v12732_v18  ;;  %v3553_v16 = vadd.f32 %v3552_v46, %v17153_v63  ;;  %v14966_v63 = vld [vmem:[%s20082_s3 + $0x18] sm:$0xff] }
 0x398   :  { %20142 = vst [vmem:[#allocation23_spill] sm:$0xff] %v17190_v48  ;;  %v17193_v49 = vpop.f32.mrf.mxu0 }
 0x39b   :  { %4808 = vmatpush.bf16.msrb.mxu3 %v12728_v14 }
 0x39d   :  { %v17195_v35 = vpop.f32.mrf.mxu2 }
 0x39e   :  { %20143 = vst [vmem:[#allocation24_spill] sm:$0xff] %v17195_v35  ;;  %v3554_v19 = vpop.f32.mrf.mxu1 }
 0x3a0   :  { %v17203_v36 = vpop.f32.mrf.mxu0 }
 0x3a2   :  { %12559 = vmatmul.msk.bf16.gmra.mxu2 %vm900_vm0, %v14977_v3 }
 0x3a3   :  { %12523 = vmatmul.msk.bf16.gmra.mxu0 %vm900_vm0, %v14965_v33 }
 0x3a5   :  { %v2699_v55 = vpop.f32.mrf.mxu2 }
 0x3a6   :  { %v17212_v30 = vadd.f32 %v2699_v55, %v17105_v52  ;;  %12234 = vmatmul.msk.bf16.gmra.mxu3 %vm1313_vm1, %v14914_v15  ;;  %v14915_v52 = vld [vmem:[%s20084_s5 + $0x190] sm:$0xff] }
 0x3a8   :  { %20144 = vst [vmem:[#allocation25_spill] sm:$0xff] %v17212_v30  ;;  %v3491_v50 = vpop.f32.mrf.mxu0 }
 0x3ac   :  { %v3557_v21 = vpop.f32.mrf.mxu1 }
 0x3ad   :  { %v17215_v10 = vpop.f32.mrf.mxu2 }
 0x3ae   :  { %20145 = vst [vmem:[#allocation26_spill] sm:$0xff] %v17215_v10 }
 0x3b0   :  { %v3494_v41 = vpop.f32.mrf.mxu0 }
 0x3b2   :  { %12560 = vmatmul.msk.bf16.gmra.mxu2 %vm900_vm0, %v14978_v28 }
 0x3b3   :  { %12524 = vmatmul.msk.bf16.gmra.mxu0 %vm900_vm0, %v14966_v63 }
 0x3b4   :  { %v3559_v3 = vpop.f32.mrf.mxu1 }
 0x3b5   :  { %v2704_v8 = vpop.f32.mrf.mxu2 }
 0x3b6   :  { %v17229_v5 = vadd.f32 %v2704_v8, %v17125_v37  ;;  %12235 = vmatmul.msk.bf16.gmra.mxu3 %vm1313_vm1, %v14915_v52  ;;  %v15035_v37 = vld [vmem:[#allocation2 + $0x60] sm:$0xf0] }
 0x3b7   :  { %v12940_v51 = vor.u32 %v15035_v37, %v12939_v47  ;;  %v14919_v47 = vld [vmem:[%s20084_s5 + $0x1b0] sm:$0xff] }
 0x3b8   :  { %20146 = vst [vmem:[#allocation27_spill] sm:$0xff] %v17229_v5  ;;  %v3496_v43 = vpop.f32.mrf.mxu0 }
 0x3bc   :  { %v3562_v55 = vpop.f32.mrf.mxu1 }
 0x3bd   :  { %v17232_v22 = vpop.f32.mrf.mxu2  ;;  %v3563_v57 = vadd.f32 %v3562_v55, %v17203_v36 }
 0x3be   :  { %20147 = vst [vmem:[#allocation28_spill] sm:$0xff] %v17232_v22 }
 0x3c0   :  { %v3637_v11 = vpop.f32.mrf.mxu0 }
 0x3c1   :  { %v17237_v18 = vadd.f32 %v3637_v11, %v3553_v16  ;;  %v14917_v16 = vld [vmem:[%s20084_s5 + $0x1a0] sm:$0xff] }
 0x3c2   :  { %12705 = vmatmul.msk.bf16.vlgmr.msra.gmra.mxu2 %vm900_vm0, %v15003_v7  ;;  %v14918_v7 = vld [vmem:[%s20084_s5 + $0x1a8] sm:$0xff] }
 0x3c3   :  { %5436 = vmatpush.bf16.msra.mxu2 %v12944_v42 }
 0x3c4   :  { %v3564_v52 = vpop.f32.mrf.mxu1 }
 0x3c5   :  { %v4108_v9 = vpop.f32.mrf.mxu2 }
 0x3c6   :  { %12236 = vmatmul.msk.bf16.gmra.mxu3 %vm1313_vm1, %v14916_v0 }
 0x3c7   :  { %5437 = vmatpush.bf16.msra.mxu2 %v12940_v51 }
 0x3c8   :  { %v3639_v14 = vpop.f32.mrf.mxu0 }
 0x3cc   :  { %v3567_v11 = vpop.f32.mrf.mxu1 }
 0x3cd   :  { %v17244_v33 = vpop.f32.mrf.mxu2  ;;  %v3568_v0 = vadd.f32 %v3567_v11, %v3494_v41  ;;  %v3558_v41 = vadd.f32 %v3557_v21, %v17182_v4 }
 0x3d0   :  { %v3642_v46 = vpop.f32.mrf.mxu0 }
 0x3d1   :  { %v3659_v55 = vadd.f32 %v3642_v46, %v3558_v41 }
 0x3d4   :  { %v3569_v51 = vpop.f32.mrf.mxu1 }
 0x3d5   :  { %v17249_v15 = vpop.f32.mrf.mxu2  ;;  %v3570_v35 = vadd.f32 %v3569_v51, %v3496_v43  ;;  %v12915_v51 = vld [vmem:[#allocation2 + $0xb0] sm:$0xf] }
 0x3d6   :  { %12237 = vmatmul.msk.bf16.gmra.mxu3 %vm1313_vm1, %v14917_v16  ;;  %v3565_v16 = vadd.f32 %v3564_v52, %v3491_v50  ;;  %v3555_v50 = vadd.f32 %v3554_v19, %v17167_v61  ;;  %v3667_v61 = vadd.f32 %v3659_v55, %v16535_v12 }
 0x3d8   :  { %v3644_v28 = vpop.f32.mrf.mxu0 }
 0x3dd   :  { %v17252_v63 = vpop.f32.mrf.mxu2 }
 0x3e0   :  { %v3647_v8 = vpop.f32.mrf.mxu0 }
 0x3e1   :  { %v3661_v11 = vadd.f32 %v3647_v8, %v3563_v57 }
 0x3e5   :  { %v17257_v54 = vpop.f32.mrf.mxu2 }
 0x3e6   :  { %12238 = vmatmul.msk.bf16.gmra.mxu3 %vm1313_vm1, %v14918_v7  ;;  %v3560_v7 = vadd.f32 %v3559_v3, %v17193_v49  ;;  %v3669_v49 = vadd.f32 %v3661_v11, %v16532_v59 }
 0x3e8   :  { %v3649_v25 = vpop.f32.mrf.mxu0  ;;  %v3660_v52 = vadd.f32 %v3644_v28, %v3560_v7  ;;  %v15042_v7 = vld [vmem:[#allocation2 + $0xf4] sm:$0xf0] }
 0x3e9   :  { %v3662_v26 = vadd.f32 %v3649_v25, %v3565_v16  ;;  %v12916_v11 = vor.u32 %v15042_v7, %v12915_v51  ;;  %v14949_v51 = vld [vmem:[%s20084_s5 + $0x210] sm:$0xff] }
 0x3ea   :  { %v3668_v57 = vadd.f32 %v3660_v52, %v16553_v6  ;;  %v12979_v52 = vld [vmem:[#allocation2 + $0xb4] sm:$0xf] }
 0x3eb   :  { %v3670_v48 = vadd.f32 %v3662_v26, %v16544_v27 }
 0x3ec   :  { %v3676_v21 = vmax.f32 %v3668_v57, 0.0  ;;  %v15047_v57 = vld [vmem:[#allocation2 + $0x68] sm:$0xf0] }
 0x3ed   :  { %v17260_v42 = vpop.f32.mrf.mxu2  ;;  %v3678_v4 = vmax.f32 %v3670_v48, 0.0  ;;  %v3675_v48 = vmax.f32 %v3667_v61, 0.0 }
 0x3f0   :  { %v3652_v37 = vpop.f32.mrf.mxu0 }
 0x3f1   :  { %v3663_v10 = vadd.f32 %v3652_v37, %v3568_v0  ;;  %v3658_v37 = vadd.f32 %v3639_v14, %v3555_v50  ;;  %v3665_v14 = vadd.f32 %v17237_v18, %v16566_v39  ;;  %v14947_v18 = vld [vmem:[%s20084_s5 + $0x200] sm:$0xff]  ;;  %v15041_v50 = vld [vmem:[#allocation2 + $0x64] sm:$0xf0] }
 0x3f3   :  { %v3671_v5 = vadd.f32 %v3663_v10, %v16521_v44  ;;  %v3666_v19 = vadd.f32 %v3658_v37, %v16561_v38  ;;  %v14921_v37 = vld [vmem:[%s20084_s5 + $0x1c0] sm:$0xff] }
 0x3f5   :  { %v17265_v22 = vpop.f32.mrf.mxu2  ;;  %v3679_v3 = vmax.f32 %v3671_v5, 0.0  ;;  %v3674_v8 = vmax.f32 %v3666_v19, 0.0  ;;  %v14948_v19 = vld [vmem:[%s20084_s5 + $0x208] sm:$0xff] }
 0x3f6   :  { %12239 = vmatmul.msk.bf16.gmra.mxu3 %vm1313_vm1, %v14919_v47  ;;  %v3673_v47 = vmax.f32 %v3665_v14, 0.0  ;;  %v14922_v14 = vld [vmem:[%s20084_s5 + $0x1c8] sm:$0xff] }
 0x3f8   :  { %v3654_v53 = vpop.f32.mrf.mxu0  ;;  %v3681_v16 = vpack.c.bf16 %v3674_v8, %v3673_v47 }
 0x3f9   :  { %v3664_v30 = vadd.f32 %v3654_v53, %v3570_v35  ;;  %v3677_v35 = vmax.f32 %v3669_v49, 0.0 }
 0x3fb   :  { %v3672_v36 = vadd.f32 %v3664_v30, %v16523_v1  ;;  %v14920_v30 = vld [vmem:[%s20084_s5 + $0x1b8] sm:$0xff]  ;;  %v3683_v5 = vpack.c.bf16 %v3678_v4, %v3677_v35 }
 0x3fd   :  { %v17275_v43 = vpop.f32.mrf.mxu2  ;;  %v3680_v25 = vmax.f32 %v3672_v36, 0.0  ;;  %v12911_v36 = vld [vmem:[#allocation2 + $0x20] sm:$0xf] }
 0x3fe   :  { %v12912_v49 = vor.u32 %v15041_v50, %v12911_v36 }
 0x3ff   :  { %v3684_v10 = vpack.c.bf16 %v3680_v25, %v3679_v3  ;;  %v15048_v3 = vld [vmem:[#allocation2 + $0xf8] sm:$0xf0] }
 0x400   :  { %v4181_v53 = vpop.f32.mrf.mxu0  ;;  %v12980_v25 = vor.u32 %v15048_v3, %v12979_v52 }
 0x401   :  { %3882 = vmatpush.bf16.msra.mxu1 %v3684_v10  ;;  %v4182_v26 = vadd.f32 %v4181_v53, %v4108_v9  ;;  %v3682_v9 = vpack.c.bf16 %v3676_v21, %v3675_v48  ;;  %v12975_v10 = vld [vmem:[#allocation2 + $0x24] sm:$0xf] }
 0x402   :  { %v12976_v53 = vor.u32 %v15047_v57, %v12975_v10 }
 0x405   :  { %v4266_v46 = vpop.f32.mrf.mxu2  ;;  %3883 = vmatpush.bf16.msra.mxu1 %v3683_v5 }
 0x406   :  { %v17286_v28 = vadd.f32 %v4266_v46, %v4182_v26  ;;  %12240 = vmatmul.msk.bf16.gmra.mxu3 %vm1313_vm1, %v14920_v30 }
 0x408   :  { %v17289_v0 = vpop.f32.mrf.mxu0 }
 0x409   :  { %3884 = vmatpush.bf16.msra.mxu1 %v3682_v9 }
 0x40d   :  { %v17291_v41 = vpop.f32.mrf.mxu2  ;;  %3885 = vmatpush.bf16.msra.mxu1 %v3681_v16 }
 0x410   :  { %12445 = vmatmul.msk.bf16.vlgmr.msra.gmra.mxu1 %vm1313_vm1, %v14947_v18  ;;  %v4186_v55 = vpop.f32.mrf.mxu0 }
 0x411   :  { %5363 = vmatpush.bf16.msrb.mxu1 %v12916_v11  ;;  %v14923_v11 = vld [vmem:[%s20084_s5 + $0x1d0] sm:$0xff] }
 0x415   :  { %5364 = vmatpush.bf16.msrb.mxu1 %v12912_v49  ;;  %v4271_v4 = vpop.f32.mrf.mxu2 }
 0x416   :  { %12241 = vmatmul.msk.bf16.gmra.mxu3 %vm1313_vm1, %v14921_v37 }
 0x418   :  { %v4188_v61 = vpop.f32.mrf.mxu0 }
 0x419   :  { %5521 = vmatpush.bf16.msra.mxu1 %v12980_v25  ;;  %v3258_v35 = vpop.f32.mrf.mxu3  ;;  %v4189_v37 = vadd.f32 %v4188_v61, %v17252_v63  ;;  %v15004_v61 = vld [vmem:[%s20082_s3 + $0x28] sm:$0xff] }
 0x41a   :  { %v17302_v26 = vadd.f32 %v3258_v35, %v16833_v45  ;;  %12706 = vmatmul.msk.bf16.gmra.mxu2 %vm900_vm0, %v15004_v61 }
 0x41d   :  { %5522 = vmatpush.bf16.msra.mxu1 %v12976_v53  ;;  %v4273_v30 = vpop.f32.mrf.mxu2 }
 0x420   :  { %12446 = vmatmul.msk.bf16.gmra.mxu1 %vm1313_vm1, %v14948_v19  ;;  %v4191_v21 = vpop.f32.mrf.mxu0  ;;  %v4289_v19 = vadd.f32 %v4273_v30, %v4189_v37  ;;  %v14981_v37 = vld [vmem:[%s20084_s5 + $0x280] sm:$0xff] }
 0x421   :  { %v3260_v5 = vpop.f32.mrf.mxu3  ;;  %v4192_v36 = vadd.f32 %v4191_v21, %v17257_v54 }
 0x422   :  { %v17309_v46 = vadd.f32 %v3260_v5, %v16839_v29  ;;  %v4297_v30 = vadd.f32 %v4289_v19, %v16553_v6 }
 0x425   :  { %v4276_v48 = vpop.f32.mrf.mxu2 }
 0x426   :  { %12242 = vmatmul.msk.bf16.gmra.mxu3 %vm1313_vm1, %v14922_v14  ;;  %v4290_v53 = vadd.f32 %v4276_v48, %v4192_v36 }
 0x428   :  { %v4193_v45 = vpop.f32.mrf.mxu0 }
 0x429   :  { %v3263_v8 = vpop.f32.mrf.mxu3  ;;  %v4194_v50 = vadd.f32 %v4193_v45, %v17260_v42  ;;  %v4187_v42 = vadd.f32 %v4186_v55, %v17249_v15  ;;  %v4298_v15 = vadd.f32 %v4290_v53, %v16532_v59  ;;  %v13191_v53 = vld [vmem:[#allocation2 + $0xb8] sm:$0xf] }
 0x42a   :  { %v17316_v9 = vadd.f32 %v3263_v8, %v16862_v32 }
 0x42b   :  { %v4288_v21 = vadd.f32 %v4271_v4, %v4187_v42  ;;  %v14925_v42 = vld [vmem:[%s20084_s5 + $0x1e0] sm:$0xff] }
 0x42d   :  { %v4278_v47 = vpop.f32.mrf.mxu2  ;;  %v4296_v8 = vadd.f32 %v4288_v21, %v16535_v12 }
 0x42e   :  { %v4291_v57 = vadd.f32 %v4278_v47, %v4194_v50  ;;  %v4306_v47 = vmax.f32 %v4298_v15, 0.0  ;;  %v14952_v15 = vld [vmem:[%s20084_s5 + $0x228] sm:$0xff] }
 0x430   :  { %12447 = vmatmul.msk.bf16.gmra.mxu1 %vm1313_vm1, %v14949_v51  ;;  %v4196_v29 = vpop.f32.mrf.mxu0  ;;  %v4305_v51 = vmax.f32 %v4297_v30, 0.0 }
 0x431   :  { %v3265_v16 = vpop.f32.mrf.mxu3  ;;  %v4197_v32 = vadd.f32 %v4196_v29, %v17265_v22  ;;  %v14950_v22 = vld [vmem:[%s20084_s5 + $0x218] sm:$0xff] }
 0x432   :  { %v17323_v7 = vadd.f32 %v3265_v16, %v16869_v62  ;;  %v4294_v16 = vadd.f32 %v17286_v28, %v16566_v39 }
 0x434   :  { %v4302_v36 = vmax.f32 %v4294_v16, 0.0  ;;  %v15010_v16 = vld [vmem:[%s20082_s3 + $0x48] sm:$0xff] }
 0x435   :  { %v4281_v18 = vpop.f32.mrf.mxu2 }
 0x436   :  { %12243 = vmatmul.msk.bf16.gmra.mxu3 %vm1313_vm1, %v14923_v11  ;;  %v4292_v49 = vadd.f32 %v4281_v18, %v4197_v32  ;;  %v4304_v11 = vmax.f32 %v4296_v8, 0.0 }
 0x438   :  { %v4198_v52 = vpop.f32.mrf.mxu0  ;;  %v4300_v54 = vadd.f32 %v4292_v49, %v16521_v44  ;;  %v4311_v50 = vpack.c.bf16 %v4305_v51, %v4304_v11  ;;  %v13127_v49 = vld [vmem:[#allocation2 + $0xb4] sm:$0xf] }
 0x439   :  { %v3268_v3 = vpop.f32.mrf.mxu3  ;;  %v4199_v25 = vadd.f32 %v4198_v52, %v17275_v43  ;;  %v4184_v43 = vadd.f32 %v17289_v0, %v17244_v33  ;;  %v14924_v33 = vld [vmem:[%s20084_s5 + $0x1d8] sm:$0xff]  ;;  %v14951_v52 = vld [vmem:[%s20084_s5 + $0x220] sm:$0xff] }
 0x43a   :  { %v17334_v62 = vadd.f32 %v3268_v3, %v16888_v20  ;;  %v4299_v20 = vadd.f32 %v4291_v57, %v16544_v27  ;;  %v4308_v55 = vmax.f32 %v4300_v54, 0.0  ;;  %v13123_v54 = vld [vmem:[#allocation2 + $0x24] sm:$0xf] }
 0x43b   :  { %v4287_v0 = vadd.f32 %v17291_v41, %v4184_v43  ;;  %v15082_v43 = vld [vmem:[#allocation2 + $0xfc] sm:$0xf0] }
 0x43c   :  { %v4307_v45 = vmax.f32 %v4299_v20, 0.0  ;;  %v13192_v19 = vor.u32 %v15082_v43, %v13191_v53  ;;  %v15081_v20 = vld [vmem:[#allocation2 + $0x6c] sm:$0xf0]  ;;  %v20150_v53 = vld [vmem:[#allocation16_spill] sm:$0xff] }
 0x43d   :  { %v4283_v10 = vpop.f32.mrf.mxu2 }
 0x43e   :  { %v4293_v35 = vadd.f32 %v4283_v10, %v4199_v25  ;;  %v4312_v29 = vpack.c.bf16 %v4307_v45, %v4306_v47  ;;  %v15076_v25 = vld [vmem:[#allocation2 + $0xf8] sm:$0xf0]  ;;  %v15075_v10 = vld [vmem:[#allocation2 + $0x68] sm:$0xf0]  ;;  %v14953_v45 = vld [vmem:[%s20084_s5 + $0x230] sm:$0xff] }
 0x43f   :  { %v13128_v28 = vor.u32 %v15076_v25, %v13127_v49  ;;  %v15011_v25 = vld [vmem:[%s20082_s3 + $0x50] sm:$0xff] }
 0x440   :  { %v4301_v63 = vadd.f32 %v4293_v35, %v16523_v1  ;;  %12448 = vmatmul.msk.bf16.gmra.mxu1 %vm1313_vm1, %v14950_v22  ;;  %v13124_v35 = vor.u32 %v15075_v10, %v13123_v54 }
 0x441   :  { %v3270_v14 = vpop.f32.mrf.mxu3 }
 0x442   :  { %v4309_v5 = vmax.f32 %v4301_v63, 0.0  ;;  %v17352_v48 = vadd.f32 %v3270_v14, %v16898_v58  ;;  %v4295_v58 = vadd.f32 %v4287_v0, %v16561_v38 }
 0x444   :  { %v4313_v4 = vpack.c.bf16 %v4309_v5, %v4308_v55  ;;  %v4303_v32 = vmax.f32 %v4295_v58, 0.0  ;;  %v14982_v55 = vld [vmem:[%s20084_s5 + $0x288] sm:$0xff]  ;;  %v15006_v5 = vld [vmem:[%s20082_s3 + $0x38] sm:$0xff] }
 0x446   :  { %4511 = vmatpush.bf16.msrb.mxu0 %v4313_v4  ;;  %12244 = vmatmul.msk.bf16.gmra.mxu3 %vm1313_vm1, %v14924_v33  ;;  %v4310_v3 = vpack.c.bf16 %v4303_v32, %v4302_v36  ;;  %v15009_v4 = vld [vmem:[%s20082_s3 + $0x40] sm:$0xff] }
 0x447   :  { %v14955_v36 = vld [vmem:[%s20084_s5 + $0x240] sm:$0xff] }
 0x449   :  { %v3273_v18 = vpop.f32.mrf.mxu3 }
 0x44a   :  { %4512 = vmatpush.bf16.msrb.mxu0 %v4312_v29  ;;  %v17366_v41 = vadd.f32 %v3273_v18, %v16919_v40  ;;  %v15005_v40 = vld [vmem:[%s20082_s3 + $0x30] sm:$0xff]  ;;  %v14954_v29 = vld [vmem:[%s20084_s5 + $0x238] sm:$0xff] }
 0x44b   :  { %12707 = vmatmul.msk.bf16.gmra.mxu2 %vm900_vm0, %v15005_v40 }
 0x44e   :  { %4513 = vmatpush.bf16.msrb.mxu0 %v4311_v50  ;;  %v20148_v50 = vld [vmem:[#allocation13_spill] sm:$0xff] }
 0x450   :  { %12449 = vmatmul.msk.bf16.gmra.mxu1 %vm1313_vm1, %v14951_v52 }
 0x451   :  { %v3275_v57 = vpop.f32.mrf.mxu3 }
 0x452   :  { %4514 = vmatpush.bf16.msrb.mxu0 %v4310_v3  ;;  %v17379_v22 = vadd.f32 %v3275_v57, %v16929_v23  ;;  %v13187_v23 = vld [vmem:[#allocation2 + $0x28] sm:$0xf]  ;;  %v14985_v3 = vld [vmem:[%s20084_s5 + $0x2a0] sm:$0xff] }
 0x453   :  { %v13188_v61 = vor.u32 %v15081_v20, %v13187_v23  ;;  %v14997_v57 = vld [vmem:[%s20082_s3] sm:$0xff]  ;;  %v15012_v20 = vld [vmem:[%s20082_s3 + $0x58] sm:$0xff] }
 0x455   :  { %12657 = vmatmul.msk.bf16.vlgmr.msrb.gmra.mxu0 %vm1313_vm1, %v14981_v37  ;;  %v20149_v37 = vld [vmem:[#allocation10_spill] sm:$0xff] }
 0x456   :  { %5992 = vmatpush.bf16.msra.mxu0 %v13128_v28  ;;  %12245 = vmatmul.msk.bf16.gmra.mxu3 %vm1313_vm1, %v14925_v42 }
 0x459   :  { %v3278_v63 = vpop.f32.mrf.mxu3 }
 0x45a   :  { %5993 = vmatpush.bf16.msra.mxu0 %v13124_v35  ;;  %v17388_v21 = vadd.f32 %v3278_v63, %v16945_v60  ;;  %v14926_v60 = vld [vmem:[%s20084_s5 + $0x1e8] sm:$0xff] }
 0x45b   :  { %12708 = vmatmul.msk.bf16.gmra.mxu2 %vm900_vm0, %v15006_v5  ;;  %v14956_v35 = vld [vmem:[%s20084_s5 + $0x248] sm:$0xff] }
 0x45c   :  { %v14998_v63 = vld [vmem:[%s20082_s3 + $0x8] sm:$0xff] }
 0x45e   :  { %6150 = vmatpush.bf16.msrb.mxu0 %v13192_v19 }
 0x460   :  { %12450 = vmatmul.msk.bf16.gmra.mxu1 %vm1313_vm1, %v14952_v15 }
 0x461   :  { %v3280_v14 = vpop.f32.mrf.mxu3 }
 0x462   :  { %6151 = vmatpush.bf16.msrb.mxu0 %v13188_v61  ;;  %v17401_v33 = vadd.f32 %v3280_v14, %v16954_v24  ;;  %v14983_v24 = vld [vmem:[%s20084_s5 + $0x290] sm:$0xff] }
 0x463   :  { %v14957_v14 = vld [vmem:[%s20084_s5 + $0x250] sm:$0xff] }
 0x465   :  { %12658 = vmatmul.msk.bf16.gmra.mxu0 %vm1313_vm1, %v14982_v55  ;;  %v20151_v55 = vld [vmem:[#allocation11_spill] sm:$0xff] }
 0x466   :  { %12246 = vmatmul.msk.bf16.gmra.mxu3 %vm1313_vm1, %v14926_v60 }
 0x469   :  { %v3283_v0 = vpop.f32.mrf.mxu3 }
 0x46a   :  { %v17410_v30 = vadd.f32 %v3283_v0, %v16972_v34  ;;  %v14927_v34 = vld [vmem:[%s20084_s5 + $0x1f0] sm:$0xff] }
 0x46b   :  { %12769 = vmatmul.msk.bf16.vlgmr.msrb.gmra.mxu2 %vm900_vm0, %v15009_v4 }
 0x470   :  { %12451 = vmatmul.msk.bf16.gmra.mxu1 %vm1313_vm1, %v14953_v45 }
 0x471   :  { %v3285_v8 = vpop.f32.mrf.mxu3 }
 0x472   :  { %v17423_v47 = vadd.f32 %v3285_v8, %v16981_v13  ;;  %v14984_v13 = vld [vmem:[%s20084_s5 + $0x298] sm:$0xff] }
 0x475   :  { %12659 = vmatmul.msk.bf16.gmra.mxu0 %vm1313_vm1, %v14983_v24  ;;  %v14999_v24 = vld [vmem:[%s20082_s3 + $0x10] sm:$0xff] }
 0x476   :  { %12247 = vmatmul.msk.bf16.gmra.mxu3 %vm1313_vm1, %v14927_v34  ;;  %v20152_v34 = vld [vmem:[#allocation7_spill] sm:$0xff] }
 0x479   :  { %v3288_v58 = vpop.f32.mrf.mxu3 }
 0x47a   :  { %v17432_v51 = vadd.f32 %v3288_v58, %v17003_v31  ;;  %v14928_v31 = vld [vmem:[%s20084_s5 + $0x1f8] sm:$0xff] }
 0x47b   :  { %12770 = vmatmul.msk.bf16.gmra.mxu2 %vm900_vm0, %v15010_v16 }
 0x480   :  { %12452 = vmatmul.msk.bf16.gmra.mxu1 %vm1313_vm1, %v14954_v29  ;;  %v14958_v29 = vld [vmem:[%s20084_s5 + $0x258] sm:$0xff] }
 0x481   :  { %v3290_v11 = vpop.f32.mrf.mxu3 }
 0x482   :  { %v17445_v18 = vadd.f32 %v3290_v11, %v17010_v2 }
 0x485   :  { %12660 = vmatmul.msk.bf16.gmra.mxu0 %vm1313_vm1, %v14984_v13  ;;  %v17535_v13 = vpop.f32.mrf.mxu2 }
 0x486   :  { %12248 = vmatmul.msk.bf16.gmra.mxu3 %vm1313_vm1, %v14928_v31 }
 0x489   :  { %v3293_v32 = vpop.f32.mrf.mxu3 }
 0x48a   :  { %v17454_v52 = vadd.f32 %v3293_v32, %v20148_v50  ;;  %v15000_v32 = vld [vmem:[%s20082_s3 + $0x18] sm:$0xff] }
 0x48b   :  { %12771 = vmatmul.msk.bf16.gmra.mxu2 %vm900_vm0, %v15011_v25  ;;  %v14959_v25 = vld [vmem:[%s20084_s5 + $0x260] sm:$0xff] }
 0x48d   :  { %v3887_v2 = vpop.f32.mrf.mxu1 }
 0x48e   :  { %v17460_v49 = vadd.f32 %v3887_v2, %v17302_v26 }
 0x490   :  { %12453 = vmatmul.msk.bf16.gmra.mxu1 %vm1313_vm1, %v14955_v36 }
 0x491   :  { %v3295_v28 = vpop.f32.mrf.mxu3 }
 0x492   :  { %v17470_v40 = vadd.f32 %v3295_v28, %v20149_v37 }
 0x495   :  { %12661 = vmatmul.msk.bf16.gmra.mxu0 %vm1313_vm1, %v14985_v3  ;;  %v3889_v26 = vpop.f32.mrf.mxu1 }
 0x496   :  { %v3968_v10 = vadd.f32 %v3889_v26, %v17309_v46  ;;  %12733 = vmatmul.msk.bf16.vlgmr.msrb.gmra.mxu3 %vm900_vm0, %v14997_v57  ;;  %v14986_v46 = vld [vmem:[%s20084_s5 + $0x2a8] sm:$0xff] }
 0x499   :  { %v3298_v42 = vpop.f32.mrf.mxu3 }
 0x49a   :  { %v17480_v54 = vadd.f32 %v3298_v42, %v20150_v53 }
 0x49b   :  { %12772 = vmatmul.msk.bf16.gmra.mxu2 %vm900_vm0, %v15012_v20 }
 0x49d   :  { %v3892_v43 = vpop.f32.mrf.mxu1 }
 0x49e   :  { %v17486_v19 = vadd.f32 %v3892_v43, %v17316_v9 }
 0x4a0   :  { %12454 = vmatmul.msk.bf16.gmra.mxu1 %vm1313_vm1, %v14956_v35 }
 0x4a1   :  { %v17495_v23 = vpop.f32.mrf.mxu3 }
 0x4a5   :  { %12662 = vmatmul.msk.bf16.gmra.mxu0 %vm1313_vm1, %v14986_v46  ;;  %v3894_v9 = vpop.f32.mrf.mxu1 }
 0x4a6   :  { %v17503_v61 = vadd.f32 %v3894_v9, %v17323_v7  ;;  %12734 = vmatmul.msk.bf16.gmra.mxu3 %vm900_vm0, %v14998_v63  ;;  %v14987_v7 = vld [vmem:[%s20084_s5 + $0x2b0] sm:$0xff] }
 0x4a9   :  { %v3303_v15 = vpop.f32.mrf.mxu3 }
 0x4aa   :  { %v17507_v5 = vadd.f32 %v3303_v15, %v20151_v55 }
 0x4ad   :  { %v3897_v60 = vpop.f32.mrf.mxu1 }
 0x4ae   :  { %v17513_v0 = vadd.f32 %v3897_v60, %v17334_v62 }
 0x4b0   :  { %12455 = vmatmul.msk.bf16.gmra.mxu1 %vm1313_vm1, %v14957_v14 }
 0x4b1   :  { %v17519_v45 = vpop.f32.mrf.mxu3 }
 0x4b5   :  { %12663 = vmatmul.msk.bf16.gmra.mxu0 %vm1313_vm1, %v14987_v7  ;;  %v3899_v4 = vpop.f32.mrf.mxu1 }
 0x4b6   :  { %v17526_v8 = vadd.f32 %v3899_v4, %v17352_v48  ;;  %12735 = vmatmul.msk.bf16.gmra.mxu3 %vm900_vm0, %v14999_v24  ;;  %v14988_v48 = vld [vmem:[%s20084_s5 + $0x2b8] sm:$0xff] }
 0x4b7   :  { %v20153_v4 = vld [vmem:[#allocation23_spill] sm:$0xff] }
 0x4b9   :  { %v3308_v62 = vpop.f32.mrf.mxu3 }
 0x4ba   :  { %v17530_v58 = vadd.f32 %v3308_v62, %v20152_v34 }
 0x4bd   :  { %v3902_v16 = vpop.f32.mrf.mxu1 }
 0x4be   :  { %v17538_v11 = vadd.f32 %v3902_v16, %v17366_v41  ;;  %v17554_v41 = vpop.f32.mrf.mxu2 }
 0x4c0   :  { %12456 = vmatmul.msk.bf16.gmra.mxu1 %vm1313_vm1, %v14958_v29 }
 0x4c1   :  { %v17544_v31 = vpop.f32.mrf.mxu3 }
 0x4c5   :  { %12664 = vmatmul.msk.bf16.gmra.mxu0 %vm1313_vm1, %v14988_v48  ;;  %v3904_v50 = vpop.f32.mrf.mxu1 }
 0x4c6   :  { %v17551_v36 = vadd.f32 %v3904_v50, %v17379_v22  ;;  %12736 = vmatmul.msk.bf16.gmra.mxu3 %vm900_vm0, %v15000_v32  ;;  %v14989_v22 = vld [vmem:[%s20084_s5 + $0x2c0] sm:$0xff]  ;;  %v17569_v57 = vpop.f32.mrf.mxu2 }
 0x4c9   :  { %v3313_v2 = vpop.f32.mrf.mxu3 }
 0x4ca   :  { %v17557_v3 = vadd.f32 %v3313_v2, %v17130_v17 }
 0x4cd   :  { %v3907_v28 = vpop.f32.mrf.mxu1 }
 0x4ce   :  { %v17563_v37 = vadd.f32 %v3907_v28, %v17388_v21  ;;  %v17585_v63 = vpop.f32.mrf.mxu2 }
 0x4d0   :  { %12457 = vmatmul.msk.bf16.gmra.mxu1 %vm1313_vm1, %v14959_v25 }
 0x4d1   :  { %v17571_v26 = vpop.f32.mrf.mxu3 }
 0x4d2   :  { %v4516_v17 = vpop.f32.mrf.mxu0 }
 0x4d3   :  { %v17574_v42 = vadd.f32 %v4516_v17, %v17460_v49  ;;  %v14960_v49 = vld [vmem:[%s20084_s5 + $0x268] sm:$0xff] }
 0x4d4   :  { %v20154_v17 = vld [vmem:[#allocation25_spill] sm:$0xff] }
 0x4d5   :  { %12665 = vmatmul.msk.bf16.gmra.mxu0 %vm1313_vm1, %v14989_v22  ;;  %v3909_v53 = vpop.f32.mrf.mxu1 }
 0x4d6   :  { %v17578_v21 = vadd.f32 %v3909_v53, %v17401_v33  ;;  %v14990_v33 = vld [vmem:[%s20084_s5 + $0x2c8] sm:$0xff]  ;;  %v17603_v14 = vpop.f32.mrf.mxu2 }
 0x4d9   :  { %v3318_v35 = vpop.f32.mrf.mxu3 }
 0x4da   :  { %v4518_v43 = vpop.f32.mrf.mxu0  ;;  %v17581_v46 = vadd.f32 %v3318_v35, %v17164_v56 }
 0x4db   :  { %v17583_v20 = vadd.f32 %v4518_v43, %v3968_v10 }
 0x4dd   :  { %v3912_v9 = vpop.f32.mrf.mxu1 }
 0x4de   :  { %v17591_v15 = vadd.f32 %v3912_v9, %v17410_v30  ;;  %v17620_v48 = vpop.f32.mrf.mxu2 }
 0x4e0   :  { %12458 = vmatmul.msk.bf16.gmra.mxu1 %vm1313_vm1, %v14960_v49 }
 0x4e1   :  { %v17597_v56 = vpop.f32.mrf.mxu3 }
 0x4e2   :  { %v4521_v10 = vpop.f32.mrf.mxu0 }
 0x4e3   :  { %v17600_v55 = vadd.f32 %v4521_v10, %v17486_v19  ;;  %v14961_v19 = vld [vmem:[%s20084_s5 + $0x270] sm:$0xff] }
 0x4e5   :  { %12666 = vmatmul.msk.bf16.gmra.mxu0 %vm1313_vm1, %v14990_v33  ;;  %v3914_v60 = vpop.f32.mrf.mxu1 }
 0x4e6   :  { %v17606_v30 = vadd.f32 %v3914_v60, %v17423_v47  ;;  %v14991_v47 = vld [vmem:[%s20084_s5 + $0x2d0] sm:$0xff]  ;;  %v17635_v25 = vpop.f32.mrf.mxu2 }
 0x4e9   :  { %v3323_v7 = vpop.f32.mrf.mxu3 }
 0x4ea   :  { %v4523_v24 = vpop.f32.mrf.mxu0  ;;  %v17609_v62 = vadd.f32 %v3323_v7, %v20153_v4  ;;  %v20155_v4 = vld [vmem:[#allocation27_spill] sm:$0xff] }
 0x4eb   :  { %v17612_v34 = vadd.f32 %v4523_v24, %v17503_v61 }
 0x4ed   :  { %v3917_v29 = vpop.f32.mrf.mxu1 }
 0x4ee   :  { %v17618_v16 = vadd.f32 %v3917_v29, %v17432_v51  ;;  %v17658_v10 = vpop.f32.mrf.mxu2 }
 0x4f0   :  { %12459 = vmatmul.msk.bf16.gmra.mxu1 %vm1313_vm1, %v14961_v19 }
 0x4f1   :  { %v17626_v32 = vpop.f32.mrf.mxu3 }
 0x4f2   :  { %v4526_v61 = vpop.f32.mrf.mxu0 }
 0x4f3   :  { %v17629_v50 = vadd.f32 %v4526_v61, %v17513_v0  ;;  %v14962_v0 = vld [vmem:[%s20084_s5 + $0x278] sm:$0xff] }
 0x4f5   :  { %12667 = vmatmul.msk.bf16.gmra.mxu0 %vm1313_vm1, %v14991_v47  ;;  %v3919_v2 = vpop.f32.mrf.mxu1  ;;  %v13155_v47 = vld [vmem:[#allocation2 + $0xb0] sm:$0xf] }
 0x4f6   :  { %v17633_v51 = vadd.f32 %v3919_v2, %v17445_v18  ;;  %v14992_v18 = vld [vmem:[%s20084_s5 + $0x2d8] sm:$0xff]  ;;  %v4895_v61 = vpop.f32.mrf.mxu2 }
 0x4f9   :  { %v3328_v28 = vpop.f32.mrf.mxu3 }
 0x4fa   :  { %v4528_v22 = vpop.f32.mrf.mxu0  ;;  %v17638_v53 = vadd.f32 %v3328_v28, %v20154_v17  ;;  %v14993_v17 = vld [vmem:[%s20084_s5 + $0x2e0] sm:$0xff] }
 0x4fb   :  { %v17641_v35 = vadd.f32 %v4528_v22, %v17526_v8 }
 0x4fd   :  { %v3922_v43 = vpop.f32.mrf.mxu1 }
 0x4fe   :  { %v17647_v49 = vadd.f32 %v3922_v43, %v17454_v52 }
 0x500   :  { %12460 = vmatmul.msk.bf16.gmra.mxu1 %vm1313_vm1, %v14962_v0 }
 0x501   :  { %v17653_v9 = vpop.f32.mrf.mxu3 }
 0x502   :  { %v4531_v33 = vpop.f32.mrf.mxu0 }
 0x503   :  { %v17656_v8 = vadd.f32 %v4531_v33, %v17538_v11  ;;  %v15037_v11 = vld [vmem:[%s20082_s3 + $0x20] sm:$0xff] }
 0x504   :  { %v13151_v33 = vld [vmem:[#allocation2 + $0x20] sm:$0xf] }
 0x505   :  { %12668 = vmatmul.msk.bf16.gmra.mxu0 %vm1313_vm1, %v14992_v18  ;;  %v3924_v60 = vpop.f32.mrf.mxu1 }
 0x506   :  { %v17662_v52 = vadd.f32 %v3924_v60, %v17470_v40  ;;  %v15070_v40 = vld [vmem:[#allocation2 + $0xf4] sm:$0xf0] }
 0x507   :  { %v13156_v22 = vor.u32 %v15070_v40, %v13155_v47 }
 0x509   :  { %v3333_v7 = vpop.f32.mrf.mxu3 }
 0x50a   :  { %v4533_v24 = vpop.f32.mrf.mxu0  ;;  %v17665_v19 = vadd.f32 %v3333_v7, %v20155_v4 }
 0x50b   :  { %v17668_v29 = vadd.f32 %v4533_v24, %v17551_v36  ;;  %v15069_v36 = vld [vmem:[#allocation2 + $0x64] sm:$0xf0] }
 0x50c   :  { %v13152_v60 = vor.u32 %v15069_v36, %v13151_v33 }
 0x50d   :  { %20156 = vst [vmem:[#allocation13_spill] sm:$0xff] %v17668_v29  ;;  %v3927_v2 = vpop.f32.mrf.mxu1 }
 0x50e   :  { %v17674_v28 = vadd.f32 %v3927_v2, %v17480_v54  ;;  %v20158_v54 = vld [vmem:[#allocation17_spill] sm:$0xff] }
 0x50f   :  { %v3355_v7 = vadd.f32 %v17495_v23, %v20158_v54  ;;  %v15038_v23 = vld [vmem:[%s20082_s3 + $0x28] sm:$0xff] }
 0x510   :  { %12917 = vmatmul.msk.bf16.vlgmr.msrb.gmra.mxu1 %vm900_vm0, %v15037_v11  ;;  %v17690_v11 = vpop.f32.mrf.mxu2 }
 0x511   :  { %6065 = vmatpush.bf16.msrb.mxu1 %v13156_v22  ;;  %v17680_v0 = vpop.f32.mrf.mxu3 }
 0x512   :  { %v4536_v43 = vpop.f32.mrf.mxu0 }
 0x513   :  { %v17683_v18 = vadd.f32 %v4536_v43, %v17563_v37 }
 0x515   :  { %20157 = vst [vmem:[#allocation10_spill] sm:$0xff] %v17683_v18  ;;  %12669 = vmatmul.msk.bf16.gmra.mxu0 %vm1313_vm1, %v14993_v17  ;;  %6066 = vmatpush.bf16.msrb.mxu1 %v13152_v60  ;;  %v3929_v24 = vpop.f32.mrf.mxu1  ;;  %v20161_v60 = vld [vmem:[#allocation12_spill] sm:$0xff] }
 0x516   :  { %v17688_v4 = vadd.f32 %v3929_v24, %v3355_v7  ;;  %v3357_v54 = vadd.f32 %v17519_v45, %v20161_v60  ;;  %v15031_v24 = vld [vmem:[%s20082_s3] sm:$0xff]  ;;  %v15039_v45 = vld [vmem:[%s20082_s3 + $0x30] sm:$0xff] }
 0x517   :  { %12945 = vmatmul.msk.bf16.vlgmr.msra.gmra.mxu2 %vm900_vm0, %v15031_v24 }
 0x518   :  { %v17705_v43 = vpop.f32.mrf.mxu2 }
 0x519   :  { %v4810_v2 = vpop.f32.mrf.mxu3 }
 0x51a   :  { %v4538_v47 = vpop.f32.mrf.mxu0  ;;  %v4811_v37 = vadd.f32 %v4810_v2, %v17535_v13 }
 0x51b   :  { %v17693_v40 = vadd.f32 %v4538_v47, %v17578_v21  ;;  %v14994_v21 = vld [vmem:[%s20084_s5 + $0x2e8] sm:$0xff] }
 0x51c   :  { %v17696_v22 = vadd.f32 %v4895_v61, %v4811_v37 }
 0x51d   :  { %20159 = vst [vmem:[#allocation16_spill] sm:$0xff] %v17693_v40  ;;  %v3932_v17 = vpop.f32.mrf.mxu1 }
 0x51e   :  { %v17702_v36 = vadd.f32 %v3932_v17, %v17507_v5 }
 0x520   :  { %12918 = vmatmul.msk.bf16.gmra.mxu1 %vm900_vm0, %v15038_v23 }
 0x521   :  { %v17710_v13 = vpop.f32.mrf.mxu3 }
 0x522   :  { %v4541_v33 = vpop.f32.mrf.mxu0 }
 0x523   :  { %v17713_v61 = vadd.f32 %v4541_v33, %v17591_v15  ;;  %v17727_v15 = vpop.f32.mrf.mxu2 }
 0x525   :  { %20160 = vst [vmem:[#allocation11_spill] sm:$0xff] %v17713_v61  ;;  %12670 = vmatmul.msk.bf16.gmra.mxu0 %vm1313_vm1, %v14994_v21  ;;  %v3934_v5 = vpop.f32.mrf.mxu1  ;;  %v14995_v21 = vld [vmem:[%s20084_s5 + $0x2f0] sm:$0xff] }
 0x526   :  { %v17718_v7 = vadd.f32 %v3934_v5, %v3357_v54  ;;  %v20164_v54 = vld [vmem:[#allocation19_spill] sm:$0xff] }
 0x527   :  { %v3359_v5 = vadd.f32 %v17544_v31, %v20164_v54  ;;  %v15040_v31 = vld [vmem:[%s20082_s3 + $0x38] sm:$0xff] }
 0x528   :  { %v14996_v54 = vld [vmem:[%s20084_s5 + $0x2f8] sm:$0xff] }
 0x529   :  { %v4815_v2 = vpop.f32.mrf.mxu3 }
 0x52a   :  { %v4543_v47 = vpop.f32.mrf.mxu0 }
 0x52b   :  { %v17725_v37 = vadd.f32 %v4543_v47, %v17606_v30  ;;  %v4905_v24 = vpop.f32.mrf.mxu2 }
 0x52d   :  { %20162 = vst [vmem:[#allocation7_spill] sm:$0xff] %v17725_v37  ;;  %v3937_v23 = vpop.f32.mrf.mxu1 }
 0x52e   :  { %v17733_v17 = vadd.f32 %v3937_v23, %v17530_v58 }
 0x530   :  { %12919 = vmatmul.msk.bf16.gmra.mxu1 %vm900_vm0, %v15039_v45  ;;  %v15032_v45 = vld [vmem:[%s20082_s3 + $0x8] sm:$0xff] }
 0x531   :  { %v4817_v60 = vpop.f32.mrf.mxu3  ;;  %12946 = vmatmul.msk.bf16.gmra.mxu2 %vm900_vm0, %v15032_v45  ;;  %v20167_v45 = vld [vmem:[#allocation21_spill] sm:$0xff] }
 0x532   :  { %v4546_v33 = vpop.f32.mrf.mxu0 }
 0x533   :  { %v17740_v30 = vadd.f32 %v4546_v33, %v17618_v16 }
 0x535   :  { %20163 = vst [vmem:[#allocation23_spill] sm:$0xff] %v17740_v30  ;;  %12671 = vmatmul.msk.bf16.gmra.mxu0 %vm1313_vm1, %v14995_v21  ;;  %v3939_v47 = vpop.f32.mrf.mxu1  ;;  %v4907_v21 = vpop.f32.mrf.mxu2 }
 0x536   :  { %v17745_v58 = vadd.f32 %v3939_v47, %v3359_v5 }
 0x539   :  { %v4820_v37 = vpop.f32.mrf.mxu3 }
 0x53a   :  { %v4548_v23 = vpop.f32.mrf.mxu0 }
 0x53b   :  { %v17751_v61 = vadd.f32 %v4548_v23, %v17633_v51  ;;  %v3361_v23 = vadd.f32 %v17571_v26, %v20167_v45  ;;  %v15043_v26 = vld [vmem:[%s20082_s3 + $0x40] sm:$0xff]  ;;  %v4821_v45 = vadd.f32 %v4820_v37, %v17603_v14  ;;  %v20169_v14 = vld [vmem:[#allocation22_spill] sm:$0xff] }
 0x53c   :  { %v3363_v37 = vadd.f32 %v17597_v56, %v20169_v14  ;;  %v20171_v14 = vld [vmem:[#allocation14_spill] sm:$0xff] }
 0x53d   :  { %20165 = vst [vmem:[#allocation25_spill] sm:$0xff] %v17751_v61  ;;  %v3942_v16 = vpop.f32.mrf.mxu1 }
 0x53e   :  { %v17758_v33 = vadd.f32 %v3942_v16, %v17557_v3  ;;  %v4910_v3 = vpop.f32.mrf.mxu2 }
 0x540   :  { %12920 = vmatmul.msk.bf16.gmra.mxu1 %vm900_vm0, %v15040_v31  ;;  %v15033_v31 = vld [vmem:[%s20082_s3 + $0x10] sm:$0xff] }
 0x541   :  { %v4822_v51 = vpop.f32.mrf.mxu3  ;;  %12947 = vmatmul.msk.bf16.gmra.mxu2 %vm900_vm0, %v15033_v31 }
 0x542   :  { %v4551_v5 = vpop.f32.mrf.mxu0 }
 0x543   :  { %v17765_v47 = vadd.f32 %v4551_v5, %v17647_v49 }
 0x545   :  { %20166 = vst [vmem:[#allocation27_spill] sm:$0xff] %v17765_v47  ;;  %12672 = vmatmul.msk.bf16.gmra.mxu0 %vm1313_vm1, %v14996_v54  ;;  %v3944_v61 = vpop.f32.mrf.mxu1  ;;  %v4823_v54 = vadd.f32 %v4822_v51, %v17620_v48  ;;  %v15104_v51 = vld [vmem:[#allocation2 + $0xf8] sm:$0xf0] }
 0x546   :  { %v17770_v30 = vadd.f32 %v3944_v61, %v3361_v23 }
 0x549   :  { %v4825_v40 = vpop.f32.mrf.mxu3 }
 0x54a   :  { %v4553_v16 = vpop.f32.mrf.mxu0  ;;  %v4826_v49 = vadd.f32 %v4825_v40, %v17635_v25  ;;  %v13367_v25 = vld [vmem:[#allocation2 + $0xb4] sm:$0xf] }
 0x54b   :  { %v17776_v18 = vadd.f32 %v4553_v16, %v17662_v52  ;;  %v15071_v52 = vld [vmem:[%s20082_s3 + $0x20] sm:$0xff]  ;;  %v4818_v16 = vadd.f32 %v4817_v60, %v17585_v63  ;;  %v15103_v63 = vld [vmem:[#allocation2 + $0x68] sm:$0xf0] }
 0x54c   :  { %v4921_v23 = vadd.f32 %v4910_v3, %v4826_v49  ;;  %v4912_v3 = vpop.f32.mrf.mxu2  ;;  %v13368_v49 = vor.u32 %v15104_v51, %v13367_v25 }
 0x54d   :  { %20168 = vst [vmem:[#allocation17_spill] sm:$0xff] %v17776_v18  ;;  %v3947_v61 = vpop.f32.mrf.mxu1  ;;  %v4920_v18 = vadd.f32 %v4907_v21, %v4823_v54  ;;  %v4918_v60 = vadd.f32 %v17727_v15, %v4818_v16 }
 0x54e   :  { %v17785_v5 = vadd.f32 %v3947_v61, %v17581_v46  ;;  %v4919_v61 = vadd.f32 %v4905_v24, %v4821_v45  ;;  %v4929_v47 = vadd.f32 %v4921_v23, %v16521_v44 }
 0x54f   :  { %v4928_v56 = vadd.f32 %v4920_v18, %v16544_v27 }
 0x550   :  { %12981 = vmatmul.msk.bf16.vlgmr.msra.gmra.mxu1 %vm900_vm0, %v15043_v26  ;;  %v4816_v26 = vadd.f32 %v4815_v2, %v17569_v57  ;;  %v13363_v57 = vld [vmem:[#allocation2 + $0x24] sm:$0xf]  ;;  %v15034_v2 = vld [vmem:[%s20082_s3 + $0x18] sm:$0xff] }
 0x551   :  { %v4827_v31 = vpop.f32.mrf.mxu3  ;;  %v13364_v24 = vor.u32 %v15103_v63, %v13363_v57  ;;  %12948 = vmatmul.msk.bf16.gmra.mxu2 %vm900_vm0, %v15034_v2 }
 0x552   :  { %v4556_v40 = vpop.f32.mrf.mxu0  ;;  %v4828_v46 = vadd.f32 %v4827_v31, %v17658_v10  ;;  %v4917_v45 = vadd.f32 %v17705_v43, %v4816_v26 }
 0x553   :  { %v17794_v48 = vadd.f32 %v4556_v40, %v17674_v28  ;;  %v4813_v28 = vadd.f32 %v17710_v13, %v17554_v41  ;;  %v4927_v41 = vadd.f32 %v4919_v61, %v16532_v59  ;;  %v4937_v13 = vmax.f32 %v4929_v47, 0.0  ;;  %v15044_v47 = vld [vmem:[%s20082_s3 + $0x48] sm:$0xff] }
 0x554   :  { %v4922_v29 = vadd.f32 %v4912_v3, %v4828_v46  ;;  %v4936_v40 = vmax.f32 %v4928_v56, 0.0  ;;  %v4925_v31 = vadd.f32 %v4917_v45, %v16535_v12  ;;  %v15072_v61 = vld [vmem:[%s20082_s3 + $0x28] sm:$0xff] }
 0x555   :  { %13129 = vmatmul.msk.bf16.vlgmr.msra.gmra.mxu0 %vm900_vm0, %v15071_v52  ;;  %v3949_v10 = vpop.f32.mrf.mxu1  ;;  %v4916_v15 = vadd.f32 %v17690_v11, %v4813_v28  ;;  %v4935_v43 = vmax.f32 %v4927_v41, 0.0  ;;  %v20173_v28 = vld [vmem:[#allocation24_spill] sm:$0xff] }
 0x556   :  { %6694 = vmatpush.bf16.msra.mxu0 %v13368_v49  ;;  %v4930_v21 = vadd.f32 %v4922_v29, %v16523_v1  ;;  %v17807_v54 = vadd.f32 %v3949_v10, %v3363_v37  ;;  %v4926_v29 = vadd.f32 %v4918_v60, %v16553_v6  ;;  %v20172_v37 = vld [vmem:[#allocation9_spill] sm:$0xff]  ;;  %v4923_v49 = vadd.f32 %v17696_v22, %v16566_v39  ;;  %v13339_v22 = vld [vmem:[#allocation2 + $0xb8] sm:$0xf]  ;;  %v15110_v41 = vld [vmem:[#allocation2 + $0xfc] sm:$0xf0] }
 0x557   :  { %v4924_v16 = vadd.f32 %v4916_v15, %v16561_v38  ;;  %v2107_v3 = vadd.f32 %v20172_v37, %v20171_v14  ;;  %v4933_v26 = vmax.f32 %v4925_v31, 0.0 }
 0x558   :  { %20170 = vst [vmem:[#allocation12_spill] sm:$0xff] %v17807_v54  ;;  %v4938_v23 = vmax.f32 %v4930_v21, 0.0  ;;  %v4934_v51 = vmax.f32 %v4926_v29, 0.0  ;;  %v4931_v57 = vmax.f32 %v4923_v49, 0.0  ;;  %v13335_v29 = vld [vmem:[#allocation2 + $0x28] sm:$0xf] }
 0x559   :  { %v4932_v56 = vmax.f32 %v4924_v16, 0.0 }
 0x55a   :  { %6695 = vmatpush.bf16.msra.mxu0 %v13364_v24  ;;  %v4558_v18 = vpop.f32.mrf.mxu0  ;;  %v4942_v25 = vpack.c.bf16 %v4938_v23, %v4937_v13  ;;  %v4940_v60 = vpack.c.bf16 %v4934_v51, %v4933_v26  ;;  %v13340_v13 = vor.u32 %v15110_v41, %v13339_v22  ;;  %v15109_v23 = vld [vmem:[#allocation2 + $0x6c] sm:$0xf0]  ;;  %v20176_v51 = vld [vmem:[#allocation8_spill] sm:$0xff]  ;;  %v15074_v41 = vld [vmem:[%s20082_s3 + $0x38] sm:$0xff] }
 0x55b   :  { %v17817_v52 = vadd.f32 %v4558_v18, %v17688_v4  ;;  %v4941_v4 = vpack.c.bf16 %v4936_v40, %v4935_v43  ;;  %v4939_v45 = vpack.c.bf16 %v4932_v56, %v4931_v57  ;;  %v15116_v40 = vld [vmem:[#allocation2 + $0x100] sm:$0xf0]  ;;  %v15045_v43 = vld [vmem:[%s20082_s3 + $0x50] sm:$0xff] }
 0x55c   :  { %5140 = vmatpush.bf16.msra.mxu3 %v4942_v25  ;;  %v13336_v25 = vor.u32 %v15109_v23, %v13335_v29  ;;  %v20177_v26 = vld [vmem:[#allocation26_spill] sm:$0xff] }
 0x55d   :  { %v3952_v11 = vpop.f32.mrf.mxu1  ;;  %v20179_v22 = vld [vmem:[#allocation18_spill] sm:$0xff] }
 0x55e   :  { %v17826_v46 = vadd.f32 %v3952_v11, %v17609_v62  ;;  %v2736_v62 = vadd.f32 %v20173_v28, %v2107_v3  ;;  %v15115_v11 = vld [vmem:[#allocation2 + $0x70] sm:$0xf0] }
 0x55f   :  { %v15073_v3 = vld [vmem:[%s20082_s3 + $0x30] sm:$0xff] }
 0x560   :  { %5141 = vmatpush.bf16.msra.mxu3 %v4941_v4  ;;  %12982 = vmatmul.msk.bf16.gmra.mxu1 %vm900_vm0, %v15044_v47  ;;  %v3365_v21 = vadd.f32 %v17626_v32, %v2736_v62  ;;  %v13403_v32 = vld [vmem:[#allocation2 + $0xbc] sm:$0xf]  ;;  %v13399_v4 = vld [vmem:[#allocation2 + $0x2c] sm:$0xf]  ;;  %v15017_v29 = vld [vmem:[%s20084_s5 + $0x310] sm:$0xff] }
 0x561   :  { %v13404_v31 = vor.u32 %v15116_v40, %v13403_v32  ;;  %v13400_v37 = vor.u32 %v15115_v11, %v13399_v4  ;;  %v15018_v11 = vld [vmem:[%s20084_s5 + $0x318] sm:$0xff] }
 0x562   :  { %v4561_v63 = vpop.f32.mrf.mxu0 }
 0x563   :  { %v17838_v10 = vadd.f32 %v4561_v63, %v17702_v36  ;;  %v15015_v36 = vld [vmem:[%s20084_s5 + $0x300] sm:$0xff] }
 0x564   :  { %5142 = vmatpush.bf16.msra.mxu3 %v4940_v60  ;;  %v15016_v60 = vld [vmem:[%s20084_s5 + $0x308] sm:$0xff] }
 0x565   :  { %13130 = vmatmul.msk.bf16.gmra.mxu0 %vm900_vm0, %v15072_v61  ;;  %v3954_v2 = vpop.f32.mrf.mxu1 }
 0x566   :  { %v17842_v24 = vadd.f32 %v3954_v2, %v3365_v21  ;;  %v20180_v2 = vld [vmem:[#allocation20_spill] sm:$0xff] }
 0x568   :  { %20174 = vst [vmem:[#allocation19_spill] sm:$0xff] %v17842_v24  ;;  %5143 = vmatpush.bf16.msra.mxu3 %v4939_v45  ;;  %v2111_v45 = vadd.f32 %v20180_v2, %v20179_v22  ;;  %v15020_v22 = vld [vmem:[%s20084_s5 + $0x328] sm:$0xff] }
 0x56a   :  { %v4563_v15 = vpop.f32.mrf.mxu0 }
 0x56b   :  { %v17848_v18 = vadd.f32 %v4563_v15, %v17718_v7  ;;  %12869 = vmatmul.msk.bf16.vlgmr.msra.gmra.mxu3 %vm1313_vm1, %v15015_v36  ;;  %v20175_v7 = vld [vmem:[#allocation15_spill] sm:$0xff] }
 0x56c   :  { %6621 = vmatpush.bf16.msrb.mxu3 %v13340_v13  ;;  %v2109_v14 = vadd.f32 %v20176_v51, %v20175_v7  ;;  %v20181_v13 = vld [vmem:[#allocation28_spill] sm:$0xff]  ;;  %v15066_v7 = vld [vmem:[%s20082_s3 + $0x8] sm:$0xff] }
 0x56d   :  { %v3957_v47 = vpop.f32.mrf.mxu1  ;;  %v2740_v36 = vadd.f32 %v20181_v13, %v2111_v45  ;;  %v15068_v45 = vld [vmem:[%s20082_s3 + $0x18] sm:$0xff] }
 0x56e   :  { %v17855_v16 = vadd.f32 %v3957_v47, %v17638_v53  ;;  %v2738_v61 = vadd.f32 %v20177_v26, %v2109_v14 }
 0x56f   :  { %v3369_v15 = vadd.f32 %v17680_v0, %v2740_v36 }
 0x570   :  { %6622 = vmatpush.bf16.msrb.mxu3 %v13336_v25  ;;  %12983 = vmatmul.msk.bf16.gmra.mxu1 %vm900_vm0, %v15045_v43  ;;  %v3367_v53 = vadd.f32 %v17653_v9, %v2738_v61 }
 0x572   :  { %v4566_v49 = vpop.f32.mrf.mxu0 }
 0x573   :  { %v17865_v63 = vadd.f32 %v4566_v49, %v17733_v17  ;;  %v15046_v17 = vld [vmem:[%s20082_s3 + $0x58] sm:$0xff]  ;;  %v15019_v49 = vld [vmem:[%s20084_s5 + $0x320] sm:$0xff] }
 0x574   :  { %6779 = vmatpush.bf16.msra.mxu3 %v13404_v31  ;;  %v15077_v31 = vld [vmem:[%s20082_s3 + $0x40] sm:$0xff] }
 0x575   :  { %13131 = vmatmul.msk.bf16.gmra.mxu0 %vm900_vm0, %v15073_v3  ;;  %v3959_v28 = vpop.f32.mrf.mxu1 }
 0x576   :  { %v17869_v62 = vadd.f32 %v3959_v28, %v3367_v53  ;;  %v15067_v53 = vld [vmem:[%s20082_s3 + $0x10] sm:$0xff] }
 0x578   :  { %6780 = vmatpush.bf16.msra.mxu3 %v13400_v37  ;;  %20178 = vst [vmem:[#allocation21_spill] sm:$0xff] %v17869_v62 }
 0x57a   :  { %v4568_v56 = vpop.f32.mrf.mxu0 }
 0x57b   :  { %v17875_v21 = vadd.f32 %v4568_v56, %v17745_v58  ;;  %12870 = vmatmul.msk.bf16.gmra.mxu3 %vm1313_vm1, %v15016_v60  ;;  %v15079_v60 = vld [vmem:[%s20082_s3 + $0x50] sm:$0xff] }
 0x57d   :  { %v3962_v9 = vpop.f32.mrf.mxu1 }
 0x57e   :  { %v3997_v57 = vadd.f32 %v3962_v9, %v17665_v19 }
 0x580   :  { %12984 = vmatmul.msk.bf16.gmra.mxu1 %vm900_vm0, %v15046_v17 }
 0x582   :  { %v4571_v58 = vpop.f32.mrf.mxu0 }
 0x583   :  { %v17890_v23 = vadd.f32 %v4571_v58, %v17758_v33  ;;  %v15065_v33 = vld [vmem:[%s20082_s3] sm:$0xff] }
 0x585   :  { %13132 = vmatmul.msk.bf16.gmra.mxu0 %vm900_vm0, %v15074_v41  ;;  %v3964_v19 = vpop.f32.mrf.mxu1 }
 0x586   :  { %v17894_v32 = vadd.f32 %v3964_v19, %v3369_v15  ;;  %v15021_v19 = vld [vmem:[%s20084_s5 + $0x330] sm:$0xff] }
 0x588   :  { %20182 = vst [vmem:[#allocation22_spill] sm:$0xff] %v17894_v32 }
 0x58a   :  { %v4573_v25 = vpop.f32.mrf.mxu0 }
 0x58b   :  { %v17900_v40 = vadd.f32 %v4573_v25, %v17770_v30  ;;  %12871 = vmatmul.msk.bf16.gmra.mxu3 %vm1313_vm1, %v15017_v29 }
 0x58d   :  { %v5366_v0 = vpop.f32.mrf.mxu1 }
 0x590   :  { %13157 = vmatmul.msk.bf16.vlgmr.msrb.gmra.mxu1 %vm900_vm0, %v15065_v33 }
 0x592   :  { %v4576_v43 = vpop.f32.mrf.mxu0 }
 0x593   :  { %v17911_v47 = vadd.f32 %v4576_v43, %v17785_v5  ;;  %v15078_v5 = vld [vmem:[%s20082_s3 + $0x48] sm:$0xff]  ;;  %v15022_v43 = vld [vmem:[%s20084_s5 + $0x338] sm:$0xff] }
 0x595   :  { %20183 = vst [vmem:[#allocation14_spill] sm:$0xff] %v17911_v47  ;;  %13193 = vmatmul.msk.bf16.vlgmr.msrb.gmra.mxu0 %vm900_vm0, %v15077_v31  ;;  %v17914_v30 = vpop.f32.mrf.mxu1 }
 0x59a   :  { %v17919_v4 = vpop.f32.mrf.mxu0  ;;  %v5439_v61 = vpop.f32.mrf.mxu2 }
 0x59b   :  { %20184 = vst [vmem:[#allocation9_spill] sm:$0xff] %v17919_v4  ;;  %12872 = vmatmul.msk.bf16.gmra.mxu3 %vm1313_vm1, %v15018_v11  ;;  %v5440_v28 = vadd.f32 %v5439_v61, %v5366_v0 }
 0x59d   :  { %v17925_v51 = vpop.f32.mrf.mxu1 }
 0x5a0   :  { %13158 = vmatmul.msk.bf16.gmra.mxu1 %vm900_vm0, %v15066_v7 }
 0x5a2   :  { %v4581_v14 = vpop.f32.mrf.mxu0  ;;  %v5441_v36 = vpop.f32.mrf.mxu2 }
 0x5a3   :  { %v17932_v37 = vadd.f32 %v4581_v14, %v17826_v46 }
 0x5a5   :  { %20185 = vst [vmem:[#allocation24_spill] sm:$0xff] %v17932_v37  ;;  %13194 = vmatmul.msk.bf16.gmra.mxu0 %vm900_vm0, %v15078_v5  ;;  %v17935_v3 = vpop.f32.mrf.mxu1 }
 0x5aa   :  { %v17940_v26 = vpop.f32.mrf.mxu0 }
 0x5ab   :  { %20186 = vst [vmem:[#allocation15_spill] sm:$0xff] %v17940_v26  ;;  %12873 = vmatmul.msk.bf16.gmra.mxu3 %vm1313_vm1, %v15019_v49 }
 0x5ad   :  { %v5376_v46 = vpop.f32.mrf.mxu1 }
 0x5b0   :  { %13159 = vmatmul.msk.bf16.gmra.mxu1 %vm900_vm0, %v15067_v53  ;;  %v15023_v53 = vld [vmem:[%s20084_s5 + $0x340] sm:$0xff] }
 0x5b2   :  { %v4586_v56 = vpop.f32.mrf.mxu0 }
 0x5b3   :  { %v17951_v17 = vadd.f32 %v4586_v56, %v17855_v16  ;;  %v15080_v16 = vld [vmem:[%s20082_s3 + $0x58] sm:$0xff] }
 0x5b4   :  { %v5444_v33 = vpop.f32.mrf.mxu2 }
 0x5b5   :  { %20187 = vst [vmem:[#allocation8_spill] sm:$0xff] %v17951_v17  ;;  %13195 = vmatmul.msk.bf16.gmra.mxu0 %vm900_vm0, %v15079_v60  ;;  %v5378_v9 = vpop.f32.mrf.mxu1  ;;  %v5445_v37 = vadd.f32 %v5444_v33, %v17925_v51 }
 0x5ba   :  { %v17957_v2 = vpop.f32.mrf.mxu0 }
 0x5bb   :  { %20188 = vst [vmem:[#allocation26_spill] sm:$0xff] %v17957_v2  ;;  %12874 = vmatmul.msk.bf16.gmra.mxu3 %vm1313_vm1, %v15020_v22 }
 0x5bc   :  { %v5446_v11 = vpop.f32.mrf.mxu2 }
 0x5bd   :  { %v5381_v41 = vpop.f32.mrf.mxu1  ;;  %v5447_v54 = vadd.f32 %v5446_v11, %v17935_v3 }
 0x5c0   :  { %13160 = vmatmul.msk.bf16.gmra.mxu1 %vm900_vm0, %v15068_v45 }
 0x5c2   :  { %v4591_v58 = vpop.f32.mrf.mxu0 }
 0x5c3   :  { %v17967_v13 = vadd.f32 %v4591_v58, %v3997_v57 }
 0x5c4   :  { %v5449_v49 = vpop.f32.mrf.mxu2 }
 0x5c5   :  { %20189 = vst [vmem:[#allocation18_spill] sm:$0xff] %v17967_v13  ;;  %13196 = vmatmul.msk.bf16.gmra.mxu0 %vm900_vm0, %v15080_v16  ;;  %v5383_v15 = vpop.f32.mrf.mxu1 }
 0x5ca   :  { %v17973_v29 = vpop.f32.mrf.mxu0 }
 0x5cb   :  { %20190 = vst [vmem:[#allocation20_spill] sm:$0xff] %v17973_v29  ;;  %12875 = vmatmul.msk.bf16.gmra.mxu3 %vm1313_vm1, %v15021_v19  ;;  %v15024_v29 = vld [vmem:[%s20084_s5 + $0x348] sm:$0xff] }
 0x5cc   :  { %v5451_v60 = vpop.f32.mrf.mxu2 }
 0x5cd   :  { %v5524_v25 = vpop.f32.mrf.mxu1  ;;  %v5452_v26 = vadd.f32 %v5451_v60, %v5378_v9 }
 0x5ce   :  { %v17976_v0 = vadd.f32 %v5524_v25, %v5440_v28 }
 0x5d2   :  { %v17978_v31 = vpop.f32.mrf.mxu0 }
 0x5d4   :  { %v5454_v19 = vpop.f32.mrf.mxu2 }
 0x5d5   :  { %v5526_v57 = vpop.f32.mrf.mxu1  ;;  %v5455_v2 = vadd.f32 %v5454_v19, %v5381_v41 }
 0x5da   :  { %v17983_v7 = vpop.f32.mrf.mxu0 }
 0x5db   :  { %12876 = vmatmul.msk.bf16.gmra.mxu3 %vm1313_vm1, %v15022_v43 }
 0x5dc   :  { %v5456_v62 = vpop.f32.mrf.mxu2 }
 0x5dd   :  { %v5529_v5 = vpop.f32.mrf.mxu1  ;;  %v5457_v4 = vadd.f32 %v5456_v62, %v5383_v15  ;;  %v5442_v62 = vadd.f32 %v5441_v36, %v17914_v30 }
 0x5e2   :  { %v17986_v14 = vpop.f32.mrf.mxu0 }
 0x5e5   :  { %v5531_v61 = vpop.f32.mrf.mxu1 }
 0x5e6   :  { %v5547_v9 = vadd.f32 %v5531_v61, %v5447_v54 }
 0x5ea   :  { %v17991_v28 = vpop.f32.mrf.mxu0 }
 0x5eb   :  { %12877 = vmatmul.msk.bf16.gmra.mxu3 %vm1313_vm1, %v15023_v53 }
 0x5ed   :  { %v5534_v56 = vpop.f32.mrf.mxu1 }
 0x5ee   :  { %v5145_v22 = vpop.f32.mrf.mxu3 }
 0x5ef   :  { %v17995_v45 = vadd.f32 %v5145_v22, %v17574_v42 }
 0x5f2   :  { %v17997_v16 = vpop.f32.mrf.mxu0 }
 0x5f5   :  { %v5536_v58 = vpop.f32.mrf.mxu1 }
 0x5f6   :  { %v5147_v25 = vpop.f32.mrf.mxu3  ;;  %v5549_v13 = vadd.f32 %v5536_v58, %v5452_v26 }
 0x5f7   :  { %v18000_v43 = vadd.f32 %v5147_v25, %v17583_v20  ;;  %v5450_v20 = vadd.f32 %v5449_v49, %v5376_v46  ;;  %v15025_v46 = vld [vmem:[%s20084_s5 + $0x350] sm:$0xff] }
 0x5f8   :  { %v5557_v3 = vadd.f32 %v5549_v13, %v16544_v27 }
 0x5fa   :  { %v18005_v32 = vpop.f32.mrf.mxu0  ;;  %v5565_v33 = vmax.f32 %v5557_v3, 0.0  ;;  %v15049_v3 = vld [vmem:[%s20084_s5 + $0x380] sm:$0xff] }
 0x5fb   :  { %12878 = vmatmul.msk.bf16.gmra.mxu3 %vm1313_vm1, %v15024_v29  ;;  %v5548_v29 = vadd.f32 %v5534_v56, %v5450_v20  ;;  %v5552_v56 = vadd.f32 %v17976_v0, %v16566_v39 }
 0x5fd   :  { %v5539_v53 = vpop.f32.mrf.mxu1 }
 0x5fe   :  { %v5150_v42 = vpop.f32.mrf.mxu3  ;;  %v5550_v25 = vadd.f32 %v5539_v53, %v5455_v2  ;;  %v5546_v2 = vadd.f32 %v5529_v5, %v5445_v37 }
 0x5ff   :  { %v18009_v22 = vadd.f32 %v5150_v42, %v17600_v55 }
 0x600   :  { %v5558_v41 = vadd.f32 %v5550_v25, %v16521_v44  ;;  %v5554_v54 = vadd.f32 %v5546_v2, %v16535_v12  ;;  %v13547_v2 = vld [vmem:[#allocation2 + $0x2c] sm:$0xf] }
 0x602   :  { %v18011_v24 = vpop.f32.mrf.mxu0  ;;  %v5562_v58 = vmax.f32 %v5554_v54, 0.0  ;;  %v13611_v54 = vld [vmem:[#allocation2 + $0x30] sm:$0xf] }
 0x605   :  { %v5541_v17 = vpop.f32.mrf.mxu1 }
 0x606   :  { %v5551_v19 = vadd.f32 %v5541_v17, %v5457_v4  ;;  %v5152_v47 = vpop.f32.mrf.mxu3  ;;  %v5556_v4 = vadd.f32 %v5548_v29, %v16532_v59  ;;  %v5566_v17 = vmax.f32 %v5558_v41, 0.0 }
 0x607   :  { %v18017_v55 = vadd.f32 %v5152_v47, %v17612_v34  ;;  %v5545_v34 = vadd.f32 %v5526_v57, %v5442_v62  ;;  %v5555_v47 = vadd.f32 %v5547_v9, %v16553_v6 }
 0x608   :  { %v5559_v26 = vadd.f32 %v5551_v19, %v16523_v1  ;;  %v5564_v13 = vmax.f32 %v5556_v4, 0.0  ;;  %v15026_v19 = vld [vmem:[%s20084_s5 + $0x358] sm:$0xff] }
 0x609   :  { %v5553_v5 = vadd.f32 %v5545_v34, %v16561_v38  ;;  %v5563_v61 = vmax.f32 %v5555_v47, 0.0 }
 0x60a   :  { %v18025_v51 = vpop.f32.mrf.mxu0  ;;  %v5567_v15 = vmax.f32 %v5559_v26, 0.0  ;;  %v5570_v60 = vpack.c.bf16 %v5565_v33, %v5564_v13  ;;  %v15143_v26 = vld [vmem:[#allocation2 + $0x70] sm:$0xf0] }
 0x60b   :  { %12879 = vmatmul.msk.bf16.gmra.mxu3 %vm1313_vm1, %v15025_v46  ;;  %v5561_v42 = vmax.f32 %v5553_v5, 0.0  ;;  %v5569_v20 = vpack.c.bf16 %v5563_v61, %v5562_v58  ;;  %v15144_v46 = vld [vmem:[#allocation2 + $0x100] sm:$0xf0]  ;;  %v20191_v5 = vld [vmem:[#allocation13_spill] sm:$0xff] }
 0x60c   :  { %v5571_v11 = vpack.c.bf16 %v5567_v15, %v5566_v17  ;;  %v13548_v17 = vor.u32 %v15143_v26, %v13547_v2  ;;  %v15150_v15 = vld [vmem:[#allocation2 + $0x104] sm:$0xf0]  ;;  %v20194_v2 = vld [vmem:[#allocation11_spill] sm:$0xff] }
 0x60d   :  { %v6068_v30 = vpop.f32.mrf.mxu1 }
 0x60e   :  { %v5155_v36 = vpop.f32.mrf.mxu3  ;;  %5769 = vmatpush.bf16.msrb.mxu2 %v5571_v11  ;;  %v6069_v49 = vadd.f32 %v6068_v30, %v17978_v31  ;;  %v5560_v31 = vmax.f32 %v5552_v56, 0.0  ;;  %v15149_v11 = vld [vmem:[#allocation2 + $0x74] sm:$0xf0] }
 0x60f   :  { %v18033_v37 = vadd.f32 %v5155_v36, %v17629_v50  ;;  %v13551_v50 = vld [vmem:[#allocation2 + $0xbc] sm:$0xf]  ;;  %v13612_v13 = vor.u32 %v15149_v11, %v13611_v54 }
 0x610   :  { %v5568_v0 = vpack.c.bf16 %v5561_v42, %v5560_v31  ;;  %v13552_v9 = vor.u32 %v15144_v46, %v13551_v50  ;;  %v20192_v42 = vld [vmem:[#allocation10_spill] sm:$0xff]  ;;  %v15028_v46 = vld [vmem:[%s20084_s5 + $0x368] sm:$0xff] }
 0x612   :  { %v6153_v57 = vpop.f32.mrf.mxu0  ;;  %5770 = vmatpush.bf16.msrb.mxu2 %v5570_v60  ;;  %v15027_v60 = vld [vmem:[%s20084_s5 + $0x360] sm:$0xff] }
 0x613   :  { %v18038_v53 = vadd.f32 %v6153_v57, %v6069_v49 }
 0x615   :  { %v18040_v25 = vpop.f32.mrf.mxu1 }
 0x616   :  { %v5157_v29 = vpop.f32.mrf.mxu3  ;;  %5771 = vmatpush.bf16.msrb.mxu2 %v5569_v20 }
 0x617   :  { %v18043_v41 = vadd.f32 %v5157_v29, %v17641_v35  ;;  %v13615_v35 = vld [vmem:[#allocation2 + $0xc0] sm:$0xf] }
 0x618   :  { %v13616_v47 = vor.u32 %v15150_v15, %v13615_v35 }
 0x61a   :  { %v18048_v62 = vpop.f32.mrf.mxu0  ;;  %5772 = vmatpush.bf16.msrb.mxu2 %v5568_v0 }
 0x61b   :  { %12880 = vmatmul.msk.bf16.gmra.mxu3 %vm1313_vm1, %v15026_v19  ;;  %v20193_v19 = vld [vmem:[#allocation16_spill] sm:$0xff] }
 0x61d   :  { %13081 = vmatmul.msk.bf16.vlgmr.msrb.gmra.mxu2 %vm1313_vm1, %v15049_v3  ;;  %v6073_v4 = vpop.f32.mrf.mxu1  ;;  %v15051_v3 = vld [vmem:[%s20084_s5 + $0x390] sm:$0xff] }
 0x61e   :  { %7250 = vmatpush.bf16.msra.mxu2 %v13552_v9  ;;  %v5160_v34 = vpop.f32.mrf.mxu3 }
 0x61f   :  { %v18056_v33 = vadd.f32 %v5160_v34, %v17656_v8  ;;  %v15050_v8 = vld [vmem:[%s20084_s5 + $0x388] sm:$0xff] }
 0x622   :  { %7251 = vmatpush.bf16.msra.mxu2 %v13548_v17  ;;  %v6158_v30 = vpop.f32.mrf.mxu0 }
 0x625   :  { %v6075_v36 = vpop.f32.mrf.mxu1 }
 0x626   :  { %7408 = vmatpush.bf16.msrb.mxu2 %v13616_v47  ;;  %v5162_v49 = vpop.f32.mrf.mxu3 }
 0x627   :  { %v18059_v61 = vadd.f32 %v5162_v49, %v20191_v5 }
 0x62a   :  { %7409 = vmatpush.bf16.msrb.mxu2 %v13612_v13  ;;  %v6160_v57 = vpop.f32.mrf.mxu0 }
 0x62b   :  { %12881 = vmatmul.msk.bf16.gmra.mxu3 %vm1313_vm1, %v15027_v60  ;;  %v20195_v60 = vld [vmem:[#allocation7_spill] sm:$0xff] }
 0x62d   :  { %13082 = vmatmul.msk.bf16.gmra.mxu2 %vm1313_vm1, %v15050_v8  ;;  %v6078_v56 = vpop.f32.mrf.mxu1 }
 0x62e   :  { %v5165_v58 = vpop.f32.mrf.mxu3  ;;  %v6079_v54 = vadd.f32 %v6078_v56, %v17997_v16  ;;  %v6074_v16 = vadd.f32 %v6073_v4, %v17986_v14 }
 0x62f   :  { %v18070_v20 = vadd.f32 %v5165_v58, %v20192_v42  ;;  %v15029_v58 = vld [vmem:[%s20084_s5 + $0x370] sm:$0xff]  ;;  %v6076_v42 = vadd.f32 %v6075_v36, %v17991_v28 }
 0x632   :  { %v6163_v31 = vpop.f32.mrf.mxu0 }
 0x633   :  { %v6177_v56 = vadd.f32 %v6163_v31, %v6079_v54 }
 0x635   :  { %v6080_v29 = vpop.f32.mrf.mxu1 }
 0x636   :  { %v5167_v50 = vpop.f32.mrf.mxu3  ;;  %v6081_v47 = vadd.f32 %v6080_v29, %v18005_v32  ;;  %v15052_v32 = vld [vmem:[%s20084_s5 + $0x398] sm:$0xff] }
 0x637   :  { %v18073_v0 = vadd.f32 %v5167_v50, %v20193_v19  ;;  %v6071_v19 = vadd.f32 %v18040_v25, %v17983_v7 }
 0x63a   :  { %v6165_v9 = vpop.f32.mrf.mxu0 }
 0x63b   :  { %12882 = vmatmul.msk.bf16.gmra.mxu3 %vm1313_vm1, %v15028_v46  ;;  %v6178_v50 = vadd.f32 %v6165_v9, %v6081_v47  ;;  %v6176_v46 = vadd.f32 %v6160_v57, %v6076_v42  ;;  %v6175_v9 = vadd.f32 %v6158_v30, %v6074_v16  ;;  %v13763_v16 = vld [vmem:[#allocation2 + $0xc0] sm:$0xf] }
 0x63d   :  { %13083 = vmatmul.msk.bf16.gmra.mxu2 %vm1313_vm1, %v15051_v3  ;;  %v6083_v26 = vpop.f32.mrf.mxu1  ;;  %v6186_v28 = vadd.f32 %v6178_v50, %v16544_v27  ;;  %v6185_v3 = vadd.f32 %v6177_v56, %v16532_v59  ;;  %v6184_v7 = vadd.f32 %v6176_v46, %v16553_v6  ;;  %v6183_v30 = vadd.f32 %v6175_v9, %v16535_v12  ;;  %v15178_v56 = vld [vmem:[#allocation2 + $0x104] sm:$0xf0]  ;;  %v15177_v46 = vld [vmem:[#allocation2 + $0x74] sm:$0xf0]  ;;  %v13827_v9 = vld [vmem:[#allocation2 + $0xc4] sm:$0xf] }
 0x63e   :  { %v5170_v35 = vpop.f32.mrf.mxu3  ;;  %v6084_v34 = vadd.f32 %v6083_v26, %v18011_v24  ;;  %v20196_v26 = vld [vmem:[#allocation23_spill] sm:$0xff] }
 0x63f   :  { %v18084_v17 = vadd.f32 %v5170_v35, %v20194_v2  ;;  %v6174_v2 = vadd.f32 %v18048_v62, %v6071_v19  ;;  %v6194_v25 = vmax.f32 %v6186_v28, 0.0  ;;  %v6181_v62 = vadd.f32 %v18038_v53, %v16566_v39  ;;  %v20198_v28 = vld [vmem:[#allocation27_spill] sm:$0xff] }
 0x641   :  { %v6182_v47 = vadd.f32 %v6174_v2, %v16561_v38  ;;  %v15183_v2 = vld [vmem:[#allocation2 + $0x78] sm:$0xf0] }
 0x642   :  { %v6168_v15 = vpop.f32.mrf.mxu0 }
 0x643   :  { %v6179_v13 = vadd.f32 %v6168_v15, %v6084_v34  ;;  %v15099_v15 = vld [vmem:[%s20082_s3] sm:$0xff]  ;;  %v6193_v34 = vmax.f32 %v6185_v3, 0.0  ;;  %v6190_v42 = vmax.f32 %v6182_v47, 0.0  ;;  %v13759_v3 = vld [vmem:[#allocation2 + $0x30] sm:$0xf] }
 0x644   :  { %13369 = vmatmul.msk.bf16.vlgmr.msra.gmra.mxu0 %vm900_vm0, %v15099_v15  ;;  %v20199_v15 = vld [vmem:[#allocation17_spill] sm:$0xff]  ;;  %v13579_v47 = vld [vmem:[#allocation2 + $0xb8] sm:$0xf] }
 0x645   :  { %v6085_v11 = vpop.f32.mrf.mxu1  ;;  %v6199_v54 = vpack.c.bf16 %v6194_v25, %v6193_v34  ;;  %v15105_v34 = vld [vmem:[%s20082_s3 + $0x20] sm:$0xff] }
 0x646   :  { %v5172_v49 = vpop.f32.mrf.mxu3  ;;  %v6086_v5 = vadd.f32 %v6085_v11, %v18025_v51  ;;  %v6187_v51 = vadd.f32 %v6179_v13, %v16521_v44  ;;  %v6192_v11 = vmax.f32 %v6184_v7, 0.0  ;;  %v6191_v13 = vmax.f32 %v6183_v30, 0.0  ;;  %v13823_v7 = vld [vmem:[#allocation2 + $0x34] sm:$0xf] }
 0x647   :  { %v18091_v8 = vadd.f32 %v5172_v49, %v20195_v60 }
 0x648   :  { %v6195_v14 = vmax.f32 %v6187_v51, 0.0  ;;  %v6198_v50 = vpack.c.bf16 %v6192_v11, %v6191_v13  ;;  %v13764_v51 = vor.u32 %v15178_v56, %v13763_v16  ;;  %v15138_v11 = vld [vmem:[#allocation2 + $0xfc] sm:$0xf0]  ;;  %v15137_v13 = vld [vmem:[#allocation2 + $0x6c] sm:$0xf0] }
 0x649   :  { %v15085_v56 = vld [vmem:[%s20084_s5 + $0x410] sm:$0xff] }
 0x64a   :  { %v6170_v24 = vpop.f32.mrf.mxu0 }
 0x64b   :  { %v6180_v29 = vadd.f32 %v6170_v24, %v6086_v5  ;;  %12883 = vmatmul.msk.bf16.gmra.mxu3 %vm1313_vm1, %v15029_v58  ;;  %v20197_v5 = vld [vmem:[#allocation25_spill] sm:$0xff]  ;;  %v15030_v58 = vld [vmem:[%s20084_s5 + $0x378] sm:$0xff]  ;;  %v15053_v24 = vld [vmem:[%s20084_s5 + $0x3a0] sm:$0xff] }
 0x64d   :  { %v6188_v36 = vadd.f32 %v6180_v29, %v16523_v1  ;;  %13084 = vmatmul.msk.bf16.gmra.mxu2 %vm1313_vm1, %v15052_v32  ;;  %v6189_v32 = vmax.f32 %v6181_v62, 0.0  ;;  %v15083_v29 = vld [vmem:[%s20084_s5 + $0x400] sm:$0xff]  ;;  %v13580_v62 = vor.u32 %v15138_v11, %v13579_v47 }
 0x64e   :  { %v5175_v31 = vpop.f32.mrf.mxu3 }
 0x64f   :  { %v6196_v4 = vmax.f32 %v6188_v36, 0.0  ;;  %v18110_v35 = vadd.f32 %v5175_v31, %v20196_v26  ;;  %v6197_v53 = vpack.c.bf16 %v6190_v42, %v6189_v32  ;;  %v15100_v31 = vld [vmem:[%s20082_s3 + $0x8] sm:$0xff] }
 0x651   :  { %v6200_v57 = vpack.c.bf16 %v6196_v4, %v6195_v14  ;;  %v13760_v14 = vor.u32 %v15177_v46, %v13759_v3  ;;  %v15184_v4 = vld [vmem:[#allocation2 + $0x108] sm:$0xf0] }
 0x652   :  { %v13828_v26 = vor.u32 %v15184_v4, %v13827_v9  ;;  %v15086_v9 = vld [vmem:[%s20084_s5 + $0x418] sm:$0xff] }
 0x653   :  { %6398 = vmatpush.bf16.msra.mxu1 %v6200_v57  ;;  %v13824_v57 = vor.u32 %v15183_v2, %v13823_v7 }
 0x654   :  { %13370 = vmatmul.msk.bf16.gmra.mxu0 %vm900_vm0, %v15100_v31  ;;  %v15108_v31 = vld [vmem:[%s20082_s3 + $0x38] sm:$0xff] }
 0x656   :  { %v5177_v49 = vpop.f32.mrf.mxu3 }
 0x657   :  { %6399 = vmatpush.bf16.msra.mxu1 %v6199_v54  ;;  %v18123_v60 = vadd.f32 %v5177_v49, %v20197_v5  ;;  %v15054_v54 = vld [vmem:[%s20084_s5 + $0x3a8] sm:$0xff] }
 0x658   :  { %v13575_v49 = vld [vmem:[#allocation2 + $0x28] sm:$0xf] }
 0x659   :  { %v15084_v5 = vld [vmem:[%s20084_s5 + $0x408] sm:$0xff]  ;;  %v13576_v42 = vor.u32 %v15137_v13, %v13575_v49 }
 0x65b   :  { %6400 = vmatpush.bf16.msra.mxu1 %v6198_v50  ;;  %12884 = vmatmul.msk.bf16.gmra.mxu3 %vm1313_vm1, %v15030_v58 }
 0x65d   :  { %13085 = vmatmul.msk.bf16.gmra.mxu2 %vm1313_vm1, %v15053_v24  ;;  %v15101_v24 = vld [vmem:[%s20082_s3 + $0x10] sm:$0xff] }
 0x65e   :  { %v5180_v19 = vpop.f32.mrf.mxu3 }
 0x65f   :  { %6401 = vmatpush.bf16.msra.mxu1 %v6197_v53  ;;  %v18137_v36 = vadd.f32 %v5180_v19, %v20198_v28  ;;  %v15106_v53 = vld [vmem:[%s20082_s3 + $0x28] sm:$0xff]  ;;  %v15107_v28 = vld [vmem:[%s20082_s3 + $0x30] sm:$0xff] }
 0x662   :  { %13293 = vmatmul.msk.bf16.vlgmr.msra.gmra.mxu1 %vm1313_vm1, %v15083_v29  ;;  %v15102_v29 = vld [vmem:[%s20082_s3 + $0x18] sm:$0xff] }
 0x663   :  { %7879 = vmatpush.bf16.msrb.mxu1 %v13764_v51 }
 0x664   :  { %13371 = vmatmul.msk.bf16.gmra.mxu0 %vm900_vm0, %v15101_v24  ;;  %v15059_v24 = vld [vmem:[%s20084_s5 + $0x3d0] sm:$0xff] }
 0x666   :  { %v5182_v25 = vpop.f32.mrf.mxu3 }
 0x667   :  { %7880 = vmatpush.bf16.msrb.mxu1 %v13760_v14  ;;  %v18145_v30 = vadd.f32 %v5182_v25, %v20199_v15 }
 0x66b   :  { %8037 = vmatpush.bf16.msra.mxu1 %v13828_v26  ;;  %13341 = vmatmul.msk.bf16.vlgmr.msrb.gmra.mxu3 %vm900_vm0, %v15105_v34  ;;  %v15057_v26 = vld [vmem:[%s20084_s5 + $0x3c0] sm:$0xff] }
 0x66c   :  { %7323 = vmatpush.bf16.msrb.mxu3 %v13580_v62  ;;  %v15111_v34 = vld [vmem:[%s20082_s3 + $0x40] sm:$0xff] }
 0x66d   :  { %13086 = vmatmul.msk.bf16.gmra.mxu2 %vm1313_vm1, %v15054_v54  ;;  %v20200_v54 = vld [vmem:[#allocation14_spill] sm:$0xff] }
 0x66e   :  { %v5185_v58 = vpop.f32.mrf.mxu3 }
 0x66f   :  { %8038 = vmatpush.bf16.msra.mxu1 %v13824_v57  ;;  %v18159_v50 = vadd.f32 %v5185_v58, %v17794_v48  ;;  %v15055_v48 = vld [vmem:[%s20084_s5 + $0x3b0] sm:$0xff] }
 0x670   :  { %7324 = vmatpush.bf16.msrb.mxu3 %v13576_v42 }
 0x672   :  { %13294 = vmatmul.msk.bf16.gmra.mxu1 %vm1313_vm1, %v15084_v5  ;;  %v15112_v5 = vld [vmem:[%s20082_s3 + $0x48] sm:$0xff] }
 0x674   :  { %13372 = vmatmul.msk.bf16.gmra.mxu0 %vm900_vm0, %v15102_v29  ;;  %v15113_v29 = vld [vmem:[%s20082_s3 + $0x50] sm:$0xff] }
 0x676   :  { %v5187_v32 = vpop.f32.mrf.mxu3 }
 0x677   :  { %v18167_v16 = vadd.f32 %v5187_v32, %v17817_v52 }
 0x67b   :  { %13342 = vmatmul.msk.bf16.gmra.mxu3 %vm900_vm0, %v15106_v53  ;;  %v20201_v53 = vld [vmem:[#allocation24_spill] sm:$0xff] }
 0x67d   :  { %13087 = vmatmul.msk.bf16.gmra.mxu2 %vm1313_vm1, %v15055_v48 }
 0x67e   :  { %v5190_v51 = vpop.f32.mrf.mxu3 }
 0x67f   :  { %v18181_v52 = vadd.f32 %v5190_v51, %v17838_v10  ;;  %v15056_v10 = vld [vmem:[%s20084_s5 + $0x3b8] sm:$0xff] }
 0x682   :  { %13295 = vmatmul.msk.bf16.gmra.mxu1 %vm1313_vm1, %v15085_v56 }
 0x686   :  { %v5192_v19 = vpop.f32.mrf.mxu3 }
 0x687   :  { %v18189_v46 = vadd.f32 %v5192_v19, %v17848_v18 }
 0x68b   :  { %13343 = vmatmul.msk.bf16.gmra.mxu3 %vm900_vm0, %v15107_v28 }
 0x68d   :  { %13088 = vmatmul.msk.bf16.gmra.mxu2 %vm1313_vm1, %v15056_v10  ;;  %v15060_v10 = vld [vmem:[%s20084_s5 + $0x3d8] sm:$0xff] }
 0x68e   :  { %v5195_v3 = vpop.f32.mrf.mxu3 }
 0x68f   :  { %v18203_v18 = vadd.f32 %v5195_v3, %v17865_v63  ;;  %v15087_v63 = vld [vmem:[%s20084_s5 + $0x420] sm:$0xff] }
 0x690   :  { %v20202_v3 = vld [vmem:[#allocation8_spill] sm:$0xff] }
 0x692   :  { %13296 = vmatmul.msk.bf16.gmra.mxu1 %vm1313_vm1, %v15086_v9 }
 0x696   :  { %v5197_v14 = vpop.f32.mrf.mxu3 }
 0x697   :  { %v18207_v4 = vadd.f32 %v5197_v14, %v17875_v21 }
 0x69b   :  { %13344 = vmatmul.msk.bf16.gmra.mxu3 %vm900_vm0, %v15108_v31 }
 0x69d   :  { %13089 = vmatmul.msk.bf16.gmra.mxu2 %vm1313_vm1, %v15057_v26 }
 0x69e   :  { %v5200_v2 = vpop.f32.mrf.mxu3 }
 0x69f   :  { %v18221_v21 = vadd.f32 %v5200_v2, %v17890_v23  ;;  %v15058_v23 = vld [vmem:[%s20084_s5 + $0x3c8] sm:$0xff] }
 0x6a0   :  { %v5774_v7 = vpop.f32.mrf.mxu2 }
 0x6a1   :  { %v5854_v25 = vadd.f32 %v5774_v7, %v17995_v45 }
 0x6a2   :  { %13297 = vmatmul.msk.bf16.gmra.mxu1 %vm1313_vm1, %v15087_v63  ;;  %v15114_v63 = vld [vmem:[%s20082_s3 + $0x58] sm:$0xff] }
 0x6a6   :  { %v5202_v57 = vpop.f32.mrf.mxu3 }
 0x6a7   :  { %v18226_v15 = vadd.f32 %v5202_v57, %v17900_v40  ;;  %v15088_v40 = vld [vmem:[%s20084_s5 + $0x428] sm:$0xff]  ;;  %v15061_v57 = vld [vmem:[%s20084_s5 + $0x3e0] sm:$0xff] }
 0x6a8   :  { %v5776_v47 = vpop.f32.mrf.mxu2 }
 0x6a9   :  { %v5855_v11 = vadd.f32 %v5776_v47, %v18000_v43 }
 0x6ab   :  { %13405 = vmatmul.msk.bf16.vlgmr.msra.gmra.mxu3 %vm900_vm0, %v15111_v34 }
 0x6ad   :  { %13090 = vmatmul.msk.bf16.gmra.mxu2 %vm1313_vm1, %v15058_v23  ;;  %v20203_v23 = vld [vmem:[#allocation18_spill] sm:$0xff] }
 0x6ae   :  { %v5205_v45 = vpop.f32.mrf.mxu3 }
 0x6af   :  { %v18241_v62 = vadd.f32 %v5205_v45, %v20200_v54 }
 0x6b0   :  { %v5779_v13 = vpop.f32.mrf.mxu2 }
 0x6b1   :  { %v5856_v49 = vadd.f32 %v5779_v13, %v18009_v22  ;;  %v15089_v22 = vld [vmem:[%s20084_s5 + $0x430] sm:$0xff] }
 0x6b2   :  { %13298 = vmatmul.msk.bf16.gmra.mxu1 %vm1313_vm1, %v15088_v40 }
 0x6b6   :  { %v18245_v43 = vpop.f32.mrf.mxu3 }
 0x6b8   :  { %v5781_v58 = vpop.f32.mrf.mxu2 }
 0x6b9   :  { %v5857_v42 = vadd.f32 %v5781_v58, %v18017_v55 }
 0x6bb   :  { %13406 = vmatmul.msk.bf16.gmra.mxu3 %vm900_vm0, %v15112_v5 }
 0x6bd   :  { %13091 = vmatmul.msk.bf16.gmra.mxu2 %vm1313_vm1, %v15059_v24 }
 0x6be   :  { %v5210_v32 = vpop.f32.mrf.mxu3 }
 0x6bf   :  { %v18260_v48 = vadd.f32 %v5210_v32, %v20201_v53  ;;  %v15062_v32 = vld [vmem:[%s20084_s5 + $0x3e8] sm:$0xff] }
 0x6c0   :  { %v5784_v56 = vpop.f32.mrf.mxu2 }
 0x6c1   :  { %v5858_v51 = vadd.f32 %v5784_v56, %v18033_v37  ;;  %v15090_v37 = vld [vmem:[%s20084_s5 + $0x438] sm:$0xff] }
 0x6c2   :  { %13299 = vmatmul.msk.bf16.gmra.mxu1 %vm1313_vm1, %v15089_v22 }
 0x6c6   :  { %v18264_v55 = vpop.f32.mrf.mxu3 }
 0x6c8   :  { %v5786_v19 = vpop.f32.mrf.mxu2 }
 0x6c9   :  { %v5859_v28 = vadd.f32 %v5786_v19, %v18043_v41 }
 0x6cb   :  { %13407 = vmatmul.msk.bf16.gmra.mxu3 %vm900_vm0, %v15113_v29 }
 0x6cd   :  { %13092 = vmatmul.msk.bf16.gmra.mxu2 %vm1313_vm1, %v15060_v10 }
 0x6ce   :  { %v5215_v9 = vpop.f32.mrf.mxu3 }
 0x6cf   :  { %v18279_v14 = vadd.f32 %v5215_v9, %v20202_v3 }
 0x6d0   :  { %v5789_v31 = vpop.f32.mrf.mxu2 }
 0x6d1   :  { %v5860_v26 = vadd.f32 %v5789_v31, %v18056_v33  ;;  %v15091_v33 = vld [vmem:[%s20084_s5 + $0x440] sm:$0xff] }
 0x6d2   :  { %13300 = vmatmul.msk.bf16.gmra.mxu1 %vm1313_vm1, %v15090_v37 }
 0x6d6   :  { %v18283_v41 = vpop.f32.mrf.mxu3 }
 0x6d8   :  { %v5791_v2 = vpop.f32.mrf.mxu2 }
 0x6d9   :  { %v5861_v7 = vadd.f32 %v5791_v2, %v18059_v61 }
 0x6db   :  { %13408 = vmatmul.msk.bf16.gmra.mxu3 %vm900_vm0, %v15114_v63 }
 0x6dd   :  { %13093 = vmatmul.msk.bf16.gmra.mxu2 %vm1313_vm1, %v15061_v57 }
 0x6de   :  { %v5220_v34 = vpop.f32.mrf.mxu3 }
 0x6df   :  { %v6403_v47 = vpop.f32.mrf.mxu1  ;;  %v18298_v40 = vadd.f32 %v5220_v34, %v20203_v23 }
 0x6e0   :  { %v18300_v45 = vadd.f32 %v6403_v47, %v5854_v25  ;;  %v5794_v61 = vpop.f32.mrf.mxu2  ;;  %v6697_v25 = vpop.f32.mrf.mxu0 }
 0x6e1   :  { %v5862_v54 = vadd.f32 %v5794_v61, %v18070_v20  ;;  %v15092_v20 = vld [vmem:[%s20084_s5 + $0x448] sm:$0xff] }
 0x6e2   :  { %13301 = vmatmul.msk.bf16.gmra.mxu1 %vm1313_vm1, %v15091_v33 }
 0x6e6   :  { %v18304_v13 = vpop.f32.mrf.mxu3 }
 0x6e7   :  { %v6405_v5 = vpop.f32.mrf.mxu1 }
 0x6e8   :  { %v18306_v58 = vadd.f32 %v6405_v5, %v5855_v11  ;;  %v5796_v24 = vpop.f32.mrf.mxu2 }
 0x6e9   :  { %v18309_v22 = vadd.f32 %v5796_v24, %v18073_v0 }
 0x6ed   :  { %13094 = vmatmul.msk.bf16.gmra.mxu2 %vm1313_vm1, %v15062_v32 }
 0x6ee   :  { %v6624_v56 = vpop.f32.mrf.mxu3 }
 0x6ef   :  { %v6408_v53 = vpop.f32.mrf.mxu1  ;;  %v18320_v11 = vadd.f32 %v6697_v25, %v6624_v56 }
 0x6f0   :  { %v18318_v29 = vadd.f32 %v6408_v53, %v5856_v49  ;;  %v5799_v19 = vpop.f32.mrf.mxu2  ;;  %v15063_v49 = vld [vmem:[%s20084_s5 + $0x3f0] sm:$0xff] }
 0x6f1   :  { %v18323_v0 = vadd.f32 %v5799_v19, %v18084_v17  ;;  %v15093_v17 = vld [vmem:[%s20084_s5 + $0x450] sm:$0xff] }
 0x6f2   :  { %13302 = vmatmul.msk.bf16.gmra.mxu1 %vm1313_vm1, %v15092_v20 }
 0x6f6   :  { %v18326_v37 = vpop.f32.mrf.mxu3 }
 0x6f7   :  { %v6410_v10 = vpop.f32.mrf.mxu1 }
 0x6f8   :  { %v18328_v9 = vadd.f32 %v6410_v10, %v5857_v42  ;;  %v5801_v3 = vpop.f32.mrf.mxu2  ;;  %v13791_v10 = vld [vmem:[#allocation2 + $0xbc] sm:$0xf] }
 0x6f9   :  { %v18331_v31 = vadd.f32 %v5801_v3, %v18091_v8  ;;  %v15172_v3 = vld [vmem:[#allocation2 + $0x100] sm:$0xf0] }
 0x6fd   :  { %13095 = vmatmul.msk.bf16.gmra.mxu2 %vm1313_vm1, %v15063_v49  ;;  %v13792_v49 = vor.u32 %v15172_v3, %v13791_v10 }
 0x6fe   :  { %v18340_v2 = vpop.f32.mrf.mxu3 }
 0x6ff   :  { %v6413_v63 = vpop.f32.mrf.mxu1 }
 0x700   :  { %v18342_v57 = vadd.f32 %v6413_v63, %v5858_v51  ;;  %v5804_v42 = vpop.f32.mrf.mxu2  ;;  %v15064_v51 = vld [vmem:[%s20084_s5 + $0x3f8] sm:$0xff] }
 0x701   :  { %v18345_v33 = vadd.f32 %v5804_v42, %v18110_v35  ;;  %v15094_v35 = vld [vmem:[%s20084_s5 + $0x458] sm:$0xff]  ;;  %v13787_v42 = vld [vmem:[#allocation2 + $0x2c] sm:$0xf] }
 0x702   :  { %13303 = vmatmul.msk.bf16.gmra.mxu1 %vm1313_vm1, %v15093_v17  ;;  %v15171_v17 = vld [vmem:[#allocation2 + $0x70] sm:$0xf0] }
 0x706   :  { %v18348_v34 = vpop.f32.mrf.mxu3 }
 0x707   :  { %v6415_v8 = vpop.f32.mrf.mxu1 }
 0x708   :  { %v18350_v47 = vadd.f32 %v6415_v8, %v5859_v28  ;;  %v5806_v23 = vpop.f32.mrf.mxu2 }
 0x709   :  { %v18353_v61 = vadd.f32 %v5806_v23, %v18123_v60  ;;  %v13788_v23 = vor.u32 %v15171_v17, %v13787_v42 }
 0x70a   :  { %20204 = vst [vmem:[#allocation28_spill] sm:$0xff] %v18350_v47 }
 0x70d   :  { %13096 = vmatmul.msk.bf16.gmra.mxu2 %vm1313_vm1, %v15064_v51 }
 0x70e   :  { %v18362_v24 = vpop.f32.mrf.mxu3 }
 0x70f   :  { %v6418_v5 = vpop.f32.mrf.mxu1 }
 0x710   :  { %v18364_v32 = vadd.f32 %v6418_v5, %v5860_v26  ;;  %v5809_v28 = vpop.f32.mrf.mxu2  ;;  %v15139_v26 = vld [vmem:[%s20082_s3 + $0x20] sm:$0xff] }
 0x711   :  { %v18367_v25 = vadd.f32 %v5809_v28, %v18137_v36  ;;  %v15095_v36 = vld [vmem:[%s20084_s5 + $0x460] sm:$0xff] }
 0x712   :  { %20205 = vst [vmem:[#allocation13_spill] sm:$0xff] %v18364_v32  ;;  %13304 = vmatmul.msk.bf16.gmra.mxu1 %vm1313_vm1, %v15094_v35  ;;  %v18392_v35 = vpop.f32.mrf.mxu0 }
 0x716   :  { %v18370_v20 = vpop.f32.mrf.mxu3 }
 0x717   :  { %v6420_v60 = vpop.f32.mrf.mxu1 }
 0x718   :  { %v18372_v53 = vadd.f32 %v6420_v60, %v5861_v7  ;;  %v5811_v56 = vpop.f32.mrf.mxu2 }
 0x719   :  { %v18375_v19 = vadd.f32 %v5811_v56, %v18145_v30 }
 0x71a   :  { %20206 = vst [vmem:[#allocation10_spill] sm:$0xff] %v18372_v53 }
 0x71d   :  { %13553 = vmatmul.msk.bf16.vlgmr.msra.gmra.mxu2 %vm900_vm0, %v15139_v26  ;;  %v15096_v26 = vld [vmem:[%s20084_s5 + $0x468] sm:$0xff] }
 0x71e   :  { %7952 = vmatpush.bf16.msra.mxu2 %v13792_v49  ;;  %v18384_v63 = vpop.f32.mrf.mxu3  ;;  %v18409_v49 = vpop.f32.mrf.mxu0 }
 0x71f   :  { %v6423_v7 = vpop.f32.mrf.mxu1 }
 0x720   :  { %v18386_v30 = vadd.f32 %v6423_v7, %v5862_v54  ;;  %v5814_v8 = vpop.f32.mrf.mxu2 }
 0x721   :  { %v18389_v51 = vadd.f32 %v5814_v8, %v18159_v50  ;;  %v15140_v50 = vld [vmem:[%s20082_s3 + $0x28] sm:$0xff] }
 0x722   :  { %20207 = vst [vmem:[#allocation16_spill] sm:$0xff] %v18386_v30  ;;  %13305 = vmatmul.msk.bf16.gmra.mxu1 %vm1313_vm1, %v15095_v36  ;;  %7953 = vmatpush.bf16.msra.mxu2 %v13788_v23 }
 0x726   :  { %v18394_v28 = vpop.f32.mrf.mxu3 }
 0x727   :  { %v6425_v5 = vpop.f32.mrf.mxu1 }
 0x728   :  { %v18397_v60 = vadd.f32 %v6425_v5, %v18309_v22  ;;  %v5816_v56 = vpop.f32.mrf.mxu2  ;;  %v18426_v5 = vpop.f32.mrf.mxu0 }
 0x729   :  { %v18400_v54 = vadd.f32 %v5816_v56, %v18167_v16 }
 0x72a   :  { %20208 = vst [vmem:[#allocation11_spill] sm:$0xff] %v18397_v60 }
 0x72d   :  { %13554 = vmatmul.msk.bf16.gmra.mxu2 %vm900_vm0, %v15140_v50 }
 0x72e   :  { %v6782_v3 = vpop.f32.mrf.mxu3 }
 0x72f   :  { %v6428_v10 = vpop.f32.mrf.mxu1  ;;  %v18415_v16 = vadd.f32 %v6782_v3, %v18320_v11  ;;  %v15141_v11 = vld [vmem:[%s20082_s3 + $0x30] sm:$0xff] }
 0x730   :  { %v18412_v22 = vadd.f32 %v6428_v10, %v18323_v0  ;;  %v5819_v36 = vpop.f32.mrf.mxu2  ;;  %v6707_v3 = vpop.f32.mrf.mxu0 }
 0x731   :  { %v18418_v17 = vadd.f32 %v5819_v36, %v18181_v52  ;;  %v15133_v52 = vld [vmem:[%s20082_s3] sm:$0xff] }
 0x732   :  { %20209 = vst [vmem:[#allocation7_spill] sm:$0xff] %v18412_v22  ;;  %13306 = vmatmul.msk.bf16.gmra.mxu1 %vm1313_vm1, %v15096_v26  ;;  %13581 = vmatmul.msk.bf16.vlgmr.msrb.gmra.mxu3 %vm900_vm0, %v15133_v52 }
 0x736   :  { %v18421_v42 = vpop.f32.mrf.mxu3 }
 0x737   :  { %v6430_v7 = vpop.f32.mrf.mxu1 }
 0x738   :  { %v18424_v8 = vadd.f32 %v6430_v7, %v18331_v31  ;;  %v5821_v23 = vpop.f32.mrf.mxu2  ;;  %v15097_v31 = vld [vmem:[%s20084_s5 + $0x470] sm:$0xff] }
 0x739   :  { %v18429_v0 = vadd.f32 %v5821_v23, %v18189_v46 }
 0x73a   :  { %20210 = vst [vmem:[#allocation23_spill] sm:$0xff] %v18424_v8 }
 0x73d   :  { %13555 = vmatmul.msk.bf16.gmra.mxu2 %vm900_vm0, %v15141_v11 }
 0x73e   :  { %v18442_v50 = vpop.f32.mrf.mxu3 }
 0x73f   :  { %v6433_v56 = vpop.f32.mrf.mxu1 }
 0x740   :  { %v18445_v46 = vadd.f32 %v6433_v56, %v18345_v33  ;;  %v5824_v26 = vpop.f32.mrf.mxu2  ;;  %v15142_v33 = vld [vmem:[%s20082_s3 + $0x38] sm:$0xff]  ;;  %v6709_v56 = vpop.f32.mrf.mxu0 }
 0x741   :  { %v18448_v10 = vadd.f32 %v5824_v26, %v18203_v18  ;;  %v15098_v18 = vld [vmem:[%s20084_s5 + $0x478] sm:$0xff]  ;;  %v6710_v53 = vadd.f32 %v6709_v56, %v18370_v20 }
 0x742   :  { %20211 = vst [vmem:[#allocation25_spill] sm:$0xff] %v18445_v46  ;;  %13307 = vmatmul.msk.bf16.gmra.mxu1 %vm1313_vm1, %v15097_v31 }
 0x746   :  { %v6789_v7 = vpop.f32.mrf.mxu3 }
 0x747   :  { %v6435_v36 = vpop.f32.mrf.mxu1 }
 0x748   :  { %v18452_v23 = vadd.f32 %v6435_v36, %v18353_v61  ;;  %v5826_v11 = vpop.f32.mrf.mxu2  ;;  %v15134_v61 = vld [vmem:[%s20082_s3 + $0x8] sm:$0xff]  ;;  %v6712_v8 = vpop.f32.mrf.mxu0 }
 0x749   :  { %v18455_v52 = vadd.f32 %v5826_v11, %v18207_v4  ;;  %13582 = vmatmul.msk.bf16.gmra.mxu3 %vm900_vm0, %v15134_v61 }
 0x74a   :  { %20212 = vst [vmem:[#allocation27_spill] sm:$0xff] %v18452_v23 }
 0x74d   :  { %13556 = vmatmul.msk.bf16.gmra.mxu2 %vm900_vm0, %v15142_v33 }
 0x74e   :  { %v6792_v26 = vpop.f32.mrf.mxu3 }
 0x74f   :  { %v6438_v31 = vpop.f32.mrf.mxu1 }
 0x750   :  { %v18468_v4 = vadd.f32 %v6438_v31, %v18367_v25  ;;  %v5829_v36 = vpop.f32.mrf.mxu2  ;;  %v15145_v25 = vld [vmem:[%s20082_s3 + $0x40] sm:$0xff]  ;;  %v6714_v30 = vpop.f32.mrf.mxu0 }
 0x751   :  { %v18472_v11 = vadd.f32 %v5829_v36, %v18221_v21  ;;  %v15135_v21 = vld [vmem:[%s20082_s3 + $0x10] sm:$0xff] }
 0x752   :  { %20213 = vst [vmem:[#allocation17_spill] sm:$0xff] %v18468_v4  ;;  %13308 = vmatmul.msk.bf16.gmra.mxu1 %vm1313_vm1, %v15098_v18  ;;  %v14003_v18 = vld [vmem:[#allocation2 + $0xc0] sm:$0xf] }
 0x756   :  { %v6794_v23 = vpop.f32.mrf.mxu3 }
 0x757   :  { %v6440_v33 = vpop.f32.mrf.mxu1 }
 0x758   :  { %v18476_v46 = vadd.f32 %v6440_v33, %v18375_v19  ;;  %v5831_v22 = vpop.f32.mrf.mxu2  ;;  %v15173_v19 = vld [vmem:[%s20082_s3 + $0x20] sm:$0xff] }
 0x759   :  { %v18479_v60 = vadd.f32 %v5831_v22, %v18226_v15  ;;  %v15206_v22 = vld [vmem:[#allocation2 + $0x104] sm:$0xf0]  ;;  %13583 = vmatmul.msk.bf16.gmra.mxu3 %vm900_vm0, %v15135_v21 }
 0x75a   :  { %20214 = vst [vmem:[#allocation14_spill] sm:$0xff] %v18476_v46  ;;  %v14004_v33 = vor.u32 %v15206_v22, %v14003_v18  ;;  %v6713_v46 = vadd.f32 %v6712_v8, %v18384_v63  ;;  %v6708_v18 = vadd.f32 %v6707_v3, %v18362_v24  ;;  %v6715_v63 = vadd.f32 %v6714_v30, %v18394_v28  ;;  %v15146_v28 = vld [vmem:[%s20082_s3 + $0x48] sm:$0xff]  ;;  %v15136_v3 = vld [vmem:[%s20082_s3 + $0x18] sm:$0xff] }
 0x75b   :  { %v6807_v8 = vadd.f32 %v6794_v23, %v6710_v53  ;;  %v6703_v24 = vadd.f32 %v18409_v49, %v18340_v2 }
 0x75c   :  { %v6806_v20 = vadd.f32 %v6792_v26, %v6708_v18 }
 0x75d   :  { %13617 = vmatmul.msk.bf16.vlgmr.msrb.gmra.mxu2 %vm900_vm0, %v15145_v25  ;;  %v15205_v25 = vld [vmem:[#allocation2 + $0x74] sm:$0xf0] }
 0x75e   :  { %v6797_v31 = vpop.f32.mrf.mxu3 }
 0x75f   :  { %v6443_v61 = vpop.f32.mrf.mxu1  ;;  %v6808_v32 = vadd.f32 %v6797_v31, %v6713_v46 }
 0x760   :  { %v18492_v15 = vadd.f32 %v6443_v61, %v18389_v51  ;;  %v5834_v36 = vpop.f32.mrf.mxu2  ;;  %v13999_v51 = vld [vmem:[#allocation2 + $0x30] sm:$0xf]  ;;  %v20216_v61 = vld [vmem:[#allocation12_spill] sm:$0xff] }
 0x761   :  { %v18497_v4 = vadd.f32 %v5834_v36, %v18241_v62  ;;  %v14000_v21 = vor.u32 %v15205_v25, %v13999_v51  ;;  %v6816_v46 = vadd.f32 %v6808_v32, %v16521_v44  ;;  %v6700_v32 = vadd.f32 %v18392_v35, %v18326_v37  ;;  %v15174_v37 = vld [vmem:[%s20082_s3 + $0x28] sm:$0xff] }
 0x762   :  { %20215 = vst [vmem:[#allocation24_spill] sm:$0xff] %v18492_v15  ;;  %13765 = vmatmul.msk.bf16.vlgmr.msrb.gmra.mxu1 %vm900_vm0, %v15173_v19  ;;  %v20217_v15 = vld [vmem:[#allocation9_spill] sm:$0xff]  ;;  %v6705_v19 = vadd.f32 %v18426_v5, %v18348_v34  ;;  %v6814_v5 = vadd.f32 %v6806_v20, %v16532_v59 }
 0x763   :  { %8581 = vmatpush.bf16.msrb.mxu1 %v14004_v33  ;;  %v4621_v47 = vadd.f32 %v20217_v15, %v20216_v61  ;;  %v6824_v2 = vmax.f32 %v6816_v46, 0.0 }
 0x764   :  { %v6805_v53 = vadd.f32 %v6789_v7, %v6705_v19  ;;  %v6803_v7 = vadd.f32 %v18421_v42, %v6700_v32  ;;  %v6822_v33 = vmax.f32 %v6814_v5, 0.0  ;;  %v15211_v32 = vld [vmem:[#allocation2 + $0x78] sm:$0xf0]  ;;  %v15175_v5 = vld [vmem:[%s20082_s3 + $0x30] sm:$0xff] }
 0x765   :  { %v5250_v62 = vadd.f32 %v18245_v43, %v4621_v47  ;;  %v6815_v43 = vadd.f32 %v6807_v8, %v16544_v27 }
 0x766   :  { %v6799_v36 = vpop.f32.mrf.mxu3  ;;  %v6813_v23 = vadd.f32 %v6805_v53, %v16553_v6  ;;  %v6811_v51 = vadd.f32 %v6803_v7, %v16561_v38 }
 0x767   :  { %8582 = vmatpush.bf16.msrb.mxu1 %v14000_v21  ;;  %v6445_v22 = vpop.f32.mrf.mxu1  ;;  %v6809_v31 = vadd.f32 %v6799_v36, %v6715_v63  ;;  %v6823_v26 = vmax.f32 %v6815_v43, 0.0  ;;  %v6810_v63 = vadd.f32 %v18415_v16, %v16566_v39  ;;  %v15212_v43 = vld [vmem:[#allocation2 + $0x108] sm:$0xf0] }
 0x768   :  { %v18510_v56 = vadd.f32 %v6445_v22, %v18400_v54  ;;  %v5836_v30 = vpop.f32.mrf.mxu2  ;;  %v6804_v54 = vadd.f32 %v18442_v50, %v6703_v24  ;;  %v6821_v61 = vmax.f32 %v6813_v23, 0.0  ;;  %v6819_v22 = vmax.f32 %v6811_v51, 0.0  ;;  %v13975_v24 = vld [vmem:[#allocation2 + $0xc4] sm:$0xf] }
 0x769   :  { %v6817_v47 = vadd.f32 %v6809_v31, %v16523_v1  ;;  %v18516_v34 = vadd.f32 %v5836_v30, %v5250_v62  ;;  %13584 = vmatmul.msk.bf16.gmra.mxu3 %vm900_vm0, %v15136_v3  ;;  %v6828_v18 = vpack.c.bf16 %v6823_v26, %v6822_v33  ;;  %v20220_v62 = vld [vmem:[#allocation15_spill] sm:$0xff]  ;;  %v6818_v31 = vmax.f32 %v6810_v63, 0.0  ;;  %v15218_v3 = vld [vmem:[#allocation2 + $0x10c] sm:$0xf0]  ;;  %v20222_v33 = vld [vmem:[#allocation21_spill] sm:$0xff] }
 0x76a   :  { %v6812_v50 = vadd.f32 %v6804_v54, %v16535_v12  ;;  %v13971_v54 = vld [vmem:[#allocation2 + $0x34] sm:$0xf] }
 0x76b   :  { %20218 = vst [vmem:[#allocation8_spill] sm:$0xff] %v18516_v34  ;;  %v6825_v49 = vmax.f32 %v6817_v47, 0.0  ;;  %v6826_v16 = vpack.c.bf16 %v6819_v22, %v6818_v31  ;;  %v15147_v47 = vld [vmem:[%s20082_s3 + $0x50] sm:$0xff] }
 0x76c   :  { %v6820_v8 = vmax.f32 %v6812_v50, 0.0 }
 0x76d   :  { %v6829_v15 = vpack.c.bf16 %v6825_v49, %v6824_v2  ;;  %13618 = vmatmul.msk.bf16.gmra.mxu2 %vm900_vm0, %v15146_v28  ;;  %v13976_v28 = vor.u32 %v15212_v43, %v13975_v24  ;;  %v13972_v49 = vor.u32 %v15211_v32, %v13971_v54  ;;  %v15120_v54 = vld [vmem:[%s20084_s5 + $0x498] sm:$0xff] }
 0x76e   :  { %v6827_v36 = vpack.c.bf16 %v6821_v61, %v6820_v8 }
 0x76f   :  { %v6448_v35 = vpop.f32.mrf.mxu1  ;;  %7027 = vmatpush.bf16.msrb.mxu0 %v6829_v15  ;;  %v15217_v15 = vld [vmem:[#allocation2 + $0x7c] sm:$0xf0] }
 0x770   :  { %v18536_v25 = vadd.f32 %v6448_v35, %v18418_v17  ;;  %v5839_v42 = vpop.f32.mrf.mxu2  ;;  %v20219_v17 = vld [vmem:[#allocation19_spill] sm:$0xff] }
 0x771   :  { %v18541_v21 = vadd.f32 %v5839_v42, %v18260_v48  ;;  %v4623_v19 = vadd.f32 %v20220_v62, %v20219_v17  ;;  %v14035_v35 = vld [vmem:[#allocation2 + $0x38] sm:$0xf]  ;;  %v20223_v42 = vld [vmem:[#allocation26_spill] sm:$0xff]  ;;  %v15118_v17 = vld [vmem:[%s20084_s5 + $0x488] sm:$0xff] }
 0x772   :  { %13766 = vmatmul.msk.bf16.gmra.mxu1 %vm900_vm0, %v15174_v37  ;;  %v14036_v50 = vor.u32 %v15217_v15, %v14035_v35  ;;  %v4625_v51 = vadd.f32 %v20223_v42, %v20222_v33  ;;  %v15121_v15 = vld [vmem:[%s20084_s5 + $0x4a0] sm:$0xff] }
 0x773   :  { %7028 = vmatpush.bf16.msrb.mxu0 %v6828_v18  ;;  %v5252_v46 = vadd.f32 %v18264_v55, %v4623_v19  ;;  %v15117_v55 = vld [vmem:[%s20084_s5 + $0x480] sm:$0xff] }
 0x774   :  { %v5254_v18 = vadd.f32 %v18283_v41, %v4625_v51  ;;  %v15176_v41 = vld [vmem:[%s20082_s3 + $0x38] sm:$0xff] }
 0x777   :  { %v6450_v20 = vpop.f32.mrf.mxu1  ;;  %7029 = vmatpush.bf16.msrb.mxu0 %v6827_v36  ;;  %v20225_v36 = vld [vmem:[#allocation22_spill] sm:$0xff] }
 0x778   :  { %v18550_v48 = vadd.f32 %v6450_v20, %v18429_v0  ;;  %v5841_v30 = vpop.f32.mrf.mxu2  ;;  %v14039_v0 = vld [vmem:[#allocation2 + $0xc8] sm:$0xf]  ;;  %v20226_v20 = vld [vmem:[#allocation20_spill] sm:$0xff] }
 0x779   :  { %v18552_v53 = vadd.f32 %v5841_v30, %v5252_v46  ;;  %v14040_v23 = vor.u32 %v15218_v3, %v14039_v0  ;;  %v4627_v46 = vadd.f32 %v20226_v20, %v20225_v36  ;;  %v15168_v0 = vld [vmem:[%s20082_s3 + $0x8] sm:$0xff] }
 0x77b   :  { %20221 = vst [vmem:[#allocation18_spill] sm:$0xff] %v18552_v53  ;;  %7030 = vmatpush.bf16.msrb.mxu0 %v6826_v16  ;;  %v5256_v24 = vadd.f32 %v18304_v13, %v4627_v46  ;;  %v15179_v13 = vld [vmem:[%s20082_s3 + $0x40] sm:$0xff]  ;;  %v15123_v46 = vld [vmem:[%s20084_s5 + $0x4b0] sm:$0xff] }
 0x77d   :  { %13619 = vmatmul.msk.bf16.gmra.mxu2 %vm900_vm0, %v15147_v47 }
 0x77e   :  { %13505 = vmatmul.msk.bf16.vlgmr.msrb.gmra.mxu0 %vm1313_vm1, %v15117_v55 }
 0x77f   :  { %8508 = vmatpush.bf16.msra.mxu0 %v13976_v28  ;;  %v6453_v2 = vpop.f32.mrf.mxu1 }
 0x780   :  { %v18566_v7 = vadd.f32 %v6453_v2, %v18448_v10  ;;  %v5844_v26 = vpop.f32.mrf.mxu2 }
 0x781   :  { %v5882_v37 = vadd.f32 %v5844_v26, %v18279_v14  ;;  %v15148_v14 = vld [vmem:[%s20082_s3 + $0x58] sm:$0xff]  ;;  %v15169_v26 = vld [vmem:[%s20082_s3 + $0x10] sm:$0xff] }
 0x782   :  { %13767 = vmatmul.msk.bf16.gmra.mxu1 %vm900_vm0, %v15175_v5 }
 0x783   :  { %8509 = vmatpush.bf16.msra.mxu0 %v13972_v49 }
 0x787   :  { %8666 = vmatpush.bf16.msrb.mxu0 %v14040_v23  ;;  %v6455_v61 = vpop.f32.mrf.mxu1 }
 0x788   :  { %v18574_v10 = vadd.f32 %v6455_v61, %v18455_v52  ;;  %v5846_v63 = vpop.f32.mrf.mxu2 }
 0x789   :  { %v18576_v8 = vadd.f32 %v5846_v63, %v5254_v18  ;;  %v15170_v63 = vld [vmem:[%s20082_s3 + $0x18] sm:$0xff] }
 0x78b   :  { %8667 = vmatpush.bf16.msrb.mxu0 %v14036_v50  ;;  %20224 = vst [vmem:[#allocation12_spill] sm:$0xff] %v18576_v8 }
 0x78d   :  { %13620 = vmatmul.msk.bf16.gmra.mxu2 %vm900_vm0, %v15148_v14  ;;  %v15122_v14 = vld [vmem:[%s20084_s5 + $0x4a8] sm:$0xff] }
 0x78e   :  { %13506 = vmatmul.msk.bf16.gmra.mxu0 %vm1313_vm1, %v15118_v17 }
 0x78f   :  { %v6458_v62 = vpop.f32.mrf.mxu1 }
 0x790   :  { %v18590_v52 = vadd.f32 %v6458_v62, %v18472_v11  ;;  %v5849_v19 = vpop.f32.mrf.mxu2  ;;  %v15167_v11 = vld [vmem:[%s20082_s3] sm:$0xff] }
 0x791   :  { %v5884_v22 = vadd.f32 %v5849_v19, %v18298_v40  ;;  %v15119_v40 = vld [vmem:[%s20084_s5 + $0x490] sm:$0xff] }
 0x792   :  { %13768 = vmatmul.msk.bf16.gmra.mxu1 %vm900_vm0, %v15176_v41 }
 0x797   :  { %v6460_v31 = vpop.f32.mrf.mxu1 }
 0x798   :  { %v18598_v30 = vadd.f32 %v6460_v31, %v18479_v60  ;;  %v5851_v16 = vpop.f32.mrf.mxu2 }
 0x799   :  { %v18600_v43 = vadd.f32 %v5851_v16, %v5256_v24 }
 0x79b   :  { %20227 = vst [vmem:[#allocation9_spill] sm:$0xff] %v18600_v43 }
 0x79d   :  { %13793 = vmatmul.msk.bf16.vlgmr.msra.gmra.mxu2 %vm900_vm0, %v15167_v11 }
 0x79e   :  { %13507 = vmatmul.msk.bf16.gmra.mxu0 %vm1313_vm1, %v15119_v40 }
 0x79f   :  { %v6463_v47 = vpop.f32.mrf.mxu1 }
 0x7a0   :  { %v18614_v60 = vadd.f32 %v6463_v47, %v18497_v4  ;;  %v7253_v28 = vpop.f32.mrf.mxu2  ;;  %v15180_v4 = vld [vmem:[%s20082_s3 + $0x48] sm:$0xff] }
 0x7a2   :  { %13829 = vmatmul.msk.bf16.vlgmr.msra.gmra.mxu1 %vm900_vm0, %v15179_v13  ;;  %v15124_v13 = vld [vmem:[%s20084_s5 + $0x4b8] sm:$0xff] }
 0x7a7   :  { %v18617_v55 = vpop.f32.mrf.mxu1 }
 0x7a8   :  { %20228 = vst [vmem:[#allocation19_spill] sm:$0xff] %v18617_v55  ;;  %v18619_v32 = vpop.f32.mrf.mxu2 }
 0x7ad   :  { %13794 = vmatmul.msk.bf16.gmra.mxu2 %vm900_vm0, %v15168_v0 }
 0x7ae   :  { %13508 = vmatmul.msk.bf16.gmra.mxu0 %vm1313_vm1, %v15120_v54 }
 0x7af   :  { %v6468_v5 = vpop.f32.mrf.mxu1 }
 0x7b0   :  { %v18633_v2 = vadd.f32 %v6468_v5, %v18541_v21  ;;  %v18635_v49 = vpop.f32.mrf.mxu2  ;;  %v15181_v21 = vld [vmem:[%s20082_s3 + $0x50] sm:$0xff] }
 0x7b2   :  { %13830 = vmatmul.msk.bf16.gmra.mxu1 %vm900_vm0, %v15180_v4 }
 0x7b5   :  { %v7326_v42 = vpop.f32.mrf.mxu3 }
 0x7b6   :  { %v7327_v51 = vadd.f32 %v7326_v42, %v7253_v28 }
 0x7b7   :  { %v18638_v3 = vpop.f32.mrf.mxu1 }
 0x7b8   :  { %20229 = vst [vmem:[#allocation15_spill] sm:$0xff] %v18638_v3  ;;  %v18640_v23 = vpop.f32.mrf.mxu2 }
 0x7bd   :  { %13795 = vmatmul.msk.bf16.gmra.mxu2 %vm900_vm0, %v15169_v26  ;;  %v7328_v36 = vpop.f32.mrf.mxu3  ;;  %v15125_v26 = vld [vmem:[%s20084_s5 + $0x4c0] sm:$0xff] }
 0x7be   :  { %13509 = vmatmul.msk.bf16.gmra.mxu0 %vm1313_vm1, %v15121_v15 }
 0x7bf   :  { %v6473_v35 = vpop.f32.mrf.mxu1 }
 0x7c0   :  { %v18653_v50 = vadd.f32 %v6473_v35, %v5882_v37  ;;  %v7263_v33 = vpop.f32.mrf.mxu2  ;;  %v15182_v37 = vld [vmem:[%s20082_s3 + $0x58] sm:$0xff] }
 0x7c2   :  { %13831 = vmatmul.msk.bf16.gmra.mxu1 %vm900_vm0, %v15181_v21 }
 0x7c7   :  { %v18656_v61 = vpop.f32.mrf.mxu1 }
 0x7c8   :  { %20230 = vst [vmem:[#allocation21_spill] sm:$0xff] %v18656_v61  ;;  %v7265_v18 = vpop.f32.mrf.mxu2 }
 0x7cc   :  { %v7331_v16 = vpop.f32.mrf.mxu3 }
 0x7cd   :  { %13796 = vmatmul.msk.bf16.gmra.mxu2 %vm900_vm0, %v15170_v63 }
 0x7ce   :  { %13510 = vmatmul.msk.bf16.gmra.mxu0 %vm1313_vm1, %v15122_v14 }
 0x7cf   :  { %v6478_v17 = vpop.f32.mrf.mxu1 }
 0x7d0   :  { %v18669_v41 = vadd.f32 %v6478_v17, %v5884_v22  ;;  %v7268_v62 = vpop.f32.mrf.mxu2 }
 0x7d2   :  { %20231 = vst [vmem:[#allocation26_spill] sm:$0xff] %v18669_v41  ;;  %13832 = vmatmul.msk.bf16.gmra.mxu1 %vm900_vm0, %v15182_v37 }
 0x7d4   :  { %v7333_v47 = vpop.f32.mrf.mxu3 }
 0x7d7   :  { %v18672_v19 = vpop.f32.mrf.mxu1 }
 0x7d8   :  { %20232 = vst [vmem:[#allocation22_spill] sm:$0xff] %v18672_v19  ;;  %v7270_v20 = vpop.f32.mrf.mxu2 }
 0x7dc   :  { %v7336_v54 = vpop.f32.mrf.mxu3 }
 0x7dd   :  { %v7337_v8 = vadd.f32 %v7336_v54, %v7263_v33 }
 0x7de   :  { %13511 = vmatmul.msk.bf16.gmra.mxu0 %vm1313_vm1, %v15123_v46 }
 0x7df   :  { %v18678_v31 = vpop.f32.mrf.mxu1 }
 0x7e0   :  { %v7411_v24 = vpop.f32.mrf.mxu2 }
 0x7e1   :  { %v18680_v11 = vadd.f32 %v7411_v24, %v7327_v51  ;;  %v15126_v24 = vld [vmem:[%s20084_s5 + $0x4c8] sm:$0xff] }
 0x7e4   :  { %v7338_v42 = vpop.f32.mrf.mxu3 }
 0x7e7   :  { %v18682_v22 = vpop.f32.mrf.mxu1 }
 0x7e8   :  { %v7413_v40 = vpop.f32.mrf.mxu2 }
 0x7ec   :  { %v7341_v46 = vpop.f32.mrf.mxu3 }
 0x7ed   :  { %v7342_v19 = vadd.f32 %v7341_v46, %v7268_v62 }
 0x7ee   :  { %13512 = vmatmul.msk.bf16.gmra.mxu0 %vm1313_vm1, %v15124_v13 }
 0x7ef   :  { %v18688_v28 = vpop.f32.mrf.mxu1 }
 0x7f0   :  { %v7416_v0 = vpop.f32.mrf.mxu2 }
 0x7f7   :  { %v18690_v4 = vpop.f32.mrf.mxu1 }
 0x7f8   :  { %v7418_v5 = vpop.f32.mrf.mxu2 }
 0x7fb   :  { %v7032_v15 = vpop.f32.mrf.mxu0 }
 0x7fc   :  { %v18696_v21 = vadd.f32 %v7032_v15, %v18300_v45 }
 0x7fe   :  { %13513 = vmatmul.msk.bf16.gmra.mxu0 %vm1313_vm1, %v15125_v26 }
 0x7ff   :  { %v18699_v35 = vpop.f32.mrf.mxu1 }
 0x800   :  { %v7421_v51 = vpop.f32.mrf.mxu2 }
 0x801   :  { %v7435_v41 = vadd.f32 %v7421_v51, %v7337_v8 }
 0x803   :  { %v7034_v63 = vpop.f32.mrf.mxu0  ;;  %v7443_v8 = vadd.f32 %v7435_v41, %v16532_v59 }
 0x804   :  { %v18702_v14 = vadd.f32 %v7034_v63, %v18306_v58  ;;  %v7343_v58 = vpop.f32.mrf.mxu3  ;;  %v7339_v63 = vadd.f32 %v7338_v42, %v7265_v18 }
 0x805   :  { %v7344_v53 = vadd.f32 %v7343_v58, %v7270_v20  ;;  %v7451_v42 = vmax.f32 %v7443_v8, 0.0  ;;  %v20233_v58 = vld [vmem:[#allocation28_spill] sm:$0xff] }
 0x806   :  { %v15151_v8 = vld [vmem:[%s20084_s5 + $0x500] sm:$0xff] }
 0x807   :  { %v18704_v37 = vpop.f32.mrf.mxu1 }
 0x808   :  { %v7423_v17 = vpop.f32.mrf.mxu2 }
 0x80b   :  { %v7037_v45 = vpop.f32.mrf.mxu0 }
 0x80c   :  { %v18710_v13 = vadd.f32 %v7037_v45, %v18318_v29  ;;  %v7334_v29 = vadd.f32 %v7333_v47, %v18640_v23  ;;  %v7436_v45 = vadd.f32 %v7423_v17, %v7339_v63  ;;  %v7439_v63 = vadd.f32 %v18680_v11, %v16566_v39 }
 0x80e   :  { %13514 = vmatmul.msk.bf16.gmra.mxu0 %vm1313_vm1, %v15126_v24  ;;  %v7332_v24 = vadd.f32 %v7331_v16, %v18635_v49  ;;  %v7434_v33 = vadd.f32 %v7418_v5, %v7334_v29  ;;  %v7444_v18 = vadd.f32 %v7436_v45, %v16544_v27 }
 0x80f   :  { %v18713_v26 = vpop.f32.mrf.mxu1 }
 0x810   :  { %v7426_v15 = vpop.f32.mrf.mxu2  ;;  %v7433_v49 = vadd.f32 %v7416_v0, %v7332_v24 }
 0x811   :  { %v7437_v3 = vadd.f32 %v7426_v15, %v7342_v19 }
 0x812   :  { %v7441_v5 = vadd.f32 %v7433_v49, %v16535_v12 }
 0x813   :  { %v7039_v43 = vpop.f32.mrf.mxu0  ;;  %v7445_v62 = vadd.f32 %v7437_v3, %v16521_v44 }
 0x814   :  { %v18716_v61 = vadd.f32 %v7039_v43, %v18328_v9  ;;  %v15127_v9 = vld [vmem:[%s20084_s5 + $0x4d0] sm:$0xff]  ;;  %v7329_v43 = vadd.f32 %v7328_v36, %v18619_v32  ;;  %v7442_v32 = vadd.f32 %v7434_v33, %v16553_v6  ;;  %v7452_v36 = vmax.f32 %v7444_v18, 0.0 }
 0x815   :  { %v7453_v3 = vmax.f32 %v7445_v62, 0.0  ;;  %v7449_v29 = vmax.f32 %v7441_v5, 0.0  ;;  %v15251_v5 = vld [vmem:[#allocation2 + $0x80] sm:$0xf0] }
 0x816   :  { %v7432_v16 = vadd.f32 %v7413_v40, %v7329_v43  ;;  %v7450_v41 = vmax.f32 %v7442_v32, 0.0  ;;  %v7457_v15 = vpack.c.bf16 %v7452_v36, %v7451_v42  ;;  %v15128_v43 = vld [vmem:[%s20084_s5 + $0x4d8] sm:$0xff] }
 0x817   :  { %v18718_v55 = vpop.f32.mrf.mxu1 }
 0x818   :  { %v7428_v34 = vpop.f32.mrf.mxu2  ;;  %v7440_v0 = vadd.f32 %v7432_v16, %v16561_v38  ;;  %v14183_v16 = vld [vmem:[#allocation2 + $0x38] sm:$0xf] }
 0x819   :  { %v7438_v46 = vadd.f32 %v7428_v34, %v7344_v53 }
 0x81a   :  { %v7448_v24 = vmax.f32 %v7440_v0, 0.0 }
 0x81b   :  { %v7446_v19 = vadd.f32 %v7438_v46, %v16523_v1  ;;  %v7042_v23 = vpop.f32.mrf.mxu0  ;;  %v7447_v46 = vmax.f32 %v7439_v63, 0.0  ;;  %v15129_v63 = vld [vmem:[%s20084_s5 + $0x4e0] sm:$0xff] }
 0x81c   :  { %v18730_v20 = vadd.f32 %v7042_v23, %v18342_v57  ;;  %v20234_v23 = vld [vmem:[#allocation13_spill] sm:$0xff] }
 0x81d   :  { %v7454_v34 = vmax.f32 %v7446_v19, 0.0  ;;  %v7455_v18 = vpack.c.bf16 %v7448_v24, %v7447_v46  ;;  %v15246_v19 = vld [vmem:[#allocation2 + $0x10c] sm:$0xf0]  ;;  %v20236_v24 = vld [vmem:[#allocation16_spill] sm:$0xff]  ;;  %v15152_v46 = vld [vmem:[%s20084_s5 + $0x508] sm:$0xff] }
 0x81e   :  { %13515 = vmatmul.msk.bf16.gmra.mxu0 %vm1313_vm1, %v15127_v9  ;;  %v14187_v9 = vld [vmem:[#allocation2 + $0xc8] sm:$0xf] }
 0x81f   :  { %v8040_v53 = vpop.f32.mrf.mxu1  ;;  %v7458_v47 = vpack.c.bf16 %v7454_v34, %v7453_v3  ;;  %v14188_v49 = vor.u32 %v15246_v19, %v14187_v9  ;;  %v15245_v3 = vld [vmem:[#allocation2 + $0x7c] sm:$0xf0] }
 0x820   :  { %v7955_v54 = vpop.f32.mrf.mxu2  ;;  %v14184_v36 = vor.u32 %v15245_v3, %v14183_v16 }
 0x821   :  { %v7956_v57 = vadd.f32 %v7955_v54, %v18678_v31  ;;  %7656 = vmatpush.bf16.msra.mxu3 %v7458_v47  ;;  %v7456_v31 = vpack.c.bf16 %v7450_v41, %v7449_v29  ;;  %v15252_v47 = vld [vmem:[#allocation2 + $0x110] sm:$0xf0]  ;;  %v14247_v41 = vld [vmem:[#allocation2 + $0x3c] sm:$0xf] }
 0x823   :  { %v18738_v51 = vadd.f32 %v8040_v53, %v7956_v57  ;;  %v7044_v17 = vpop.f32.mrf.mxu0  ;;  %v14251_v53 = vld [vmem:[#allocation2 + $0xcc] sm:$0xf]  ;;  %v20235_v57 = vld [vmem:[#allocation10_spill] sm:$0xff] }
 0x824   :  { %v18741_v40 = vadd.f32 %v7044_v17, %v20233_v58  ;;  %v14252_v54 = vor.u32 %v15252_v47, %v14251_v53  ;;  %v14248_v17 = vor.u32 %v15251_v5, %v14247_v41  ;;  %v20238_v53 = vld [vmem:[#allocation7_spill] sm:$0xff] }
 0x825   :  { %7657 = vmatpush.bf16.msra.mxu3 %v7457_v15 }
 0x827   :  { %v18745_v45 = vpop.f32.mrf.mxu1 }
 0x828   :  { %v18747_v62 = vpop.f32.mrf.mxu2 }
 0x829   :  { %7658 = vmatpush.bf16.msra.mxu3 %v7456_v31 }
 0x82b   :  { %v7047_v33 = vpop.f32.mrf.mxu0 }
 0x82c   :  { %v18753_v11 = vadd.f32 %v7047_v33, %v20234_v23 }
 0x82d   :  { %7659 = vmatpush.bf16.msra.mxu3 %v7455_v18  ;;  %v20237_v18 = vld [vmem:[#allocation11_spill] sm:$0xff] }
 0x82e   :  { %13516 = vmatmul.msk.bf16.gmra.mxu0 %vm1313_vm1, %v15128_v43 }
 0x82f   :  { %v18759_v34 = vpop.f32.mrf.mxu1 }
 0x830   :  { %13717 = vmatmul.msk.bf16.vlgmr.msra.gmra.mxu3 %vm1313_vm1, %v15151_v8  ;;  %v7960_v32 = vpop.f32.mrf.mxu2  ;;  %v15130_v8 = vld [vmem:[%s20084_s5 + $0x4e8] sm:$0xff] }
 0x831   :  { %9137 = vmatpush.bf16.msrb.mxu3 %v14188_v49 }
 0x833   :  { %v7049_v42 = vpop.f32.mrf.mxu0 }
 0x834   :  { %v18763_v0 = vadd.f32 %v7049_v42, %v20235_v57  ;;  %v20239_v57 = vld [vmem:[#allocation23_spill] sm:$0xff] }
 0x835   :  { %9138 = vmatpush.bf16.msrb.mxu3 %v14184_v36  ;;  %v15153_v36 = vld [vmem:[%s20084_s5 + $0x510] sm:$0xff] }
 0x837   :  { %v8047_v15 = vpop.f32.mrf.mxu1 }
 0x838   :  { %v7962_v58 = vpop.f32.mrf.mxu2 }
 0x839   :  { %9295 = vmatpush.bf16.msra.mxu3 %v14252_v54 }
 0x83b   :  { %v7052_v29 = vpop.f32.mrf.mxu0 }
 0x83c   :  { %v18769_v31 = vadd.f32 %v7052_v29, %v20236_v24 }
 0x83d   :  { %9296 = vmatpush.bf16.msra.mxu3 %v14248_v17 }
 0x83e   :  { %13517 = vmatmul.msk.bf16.gmra.mxu0 %vm1313_vm1, %v15129_v63 }
 0x83f   :  { %v8050_v9 = vpop.f32.mrf.mxu1 }
 0x840   :  { %13718 = vmatmul.msk.bf16.gmra.mxu3 %vm1313_vm1, %v15152_v46  ;;  %v7965_v43 = vpop.f32.mrf.mxu2 }
 0x841   :  { %v7966_v63 = vadd.f32 %v7965_v43, %v18699_v35  ;;  %v20240_v35 = vld [vmem:[#allocation25_spill] sm:$0xff] }
 0x843   :  { %v7054_v33 = vpop.f32.mrf.mxu0 }
 0x844   :  { %v18777_v19 = vadd.f32 %v7054_v33, %v20237_v18  ;;  %v7963_v33 = vadd.f32 %v7962_v58, %v18690_v4  ;;  %v15154_v4 = vld [vmem:[%s20084_s5 + $0x518] sm:$0xff] }
 0x846   :  { %v8063_v58 = vadd.f32 %v8047_v15, %v7963_v33 }
 0x847   :  { %v8052_v23 = vpop.f32.mrf.mxu1 }
 0x848   :  { %v7967_v49 = vpop.f32.mrf.mxu2 }
 0x849   :  { %v7968_v17 = vadd.f32 %v7967_v49, %v18704_v37 }
 0x84b   :  { %v7057_v3 = vpop.f32.mrf.mxu0  ;;  %v8065_v18 = vadd.f32 %v8052_v23, %v7968_v17 }
 0x84c   :  { %v18783_v16 = vadd.f32 %v7057_v3, %v20238_v53  ;;  %v7961_v3 = vadd.f32 %v7960_v32, %v18688_v28  ;;  %v8064_v53 = vadd.f32 %v8050_v9, %v7966_v63  ;;  %v15201_v32 = vld [vmem:[%s20082_s3] sm:$0xff] }
 0x84d   :  { %v8073_v23 = vadd.f32 %v8065_v18, %v16544_v27  ;;  %14005 = vmatmul.msk.bf16.vlgmr.msrb.gmra.mxu1 %vm900_vm0, %v15201_v32  ;;  %v8068_v18 = vadd.f32 %v18738_v51, %v16566_v39  ;;  %v15279_v32 = vld [vmem:[#allocation2 + $0x80] sm:$0xf0] }
 0x84e   :  { %13518 = vmatmul.msk.bf16.gmra.mxu0 %vm1313_vm1, %v15130_v8  ;;  %v8062_v9 = vadd.f32 %v18759_v34, %v7961_v3  ;;  %v20241_v34 = vld [vmem:[#allocation27_spill] sm:$0xff] }
 0x84f   :  { %v8055_v47 = vpop.f32.mrf.mxu1  ;;  %v8081_v15 = vmax.f32 %v8073_v23, 0.0  ;;  %v15132_v3 = vld [vmem:[%s20084_s5 + $0x4f8] sm:$0xff]  ;;  %v15185_v23 = vld [vmem:[%s20084_s5 + $0x580] sm:$0xff] }
 0x850   :  { %13719 = vmatmul.msk.bf16.gmra.mxu3 %vm1313_vm1, %v15153_v36  ;;  %v7970_v54 = vpop.f32.mrf.mxu2 }
 0x851   :  { %v7971_v5 = vadd.f32 %v7970_v54, %v18713_v26  ;;  %v15131_v26 = vld [vmem:[%s20084_s5 + $0x4f0] sm:$0xff] }
 0x853   :  { %v7059_v42 = vpop.f32.mrf.mxu0  ;;  %v8066_v29 = vadd.f32 %v8055_v47, %v7971_v5  ;;  %v8072_v47 = vadd.f32 %v8064_v53, %v16532_v59  ;;  %v8076_v53 = vmax.f32 %v8068_v18, 0.0 }
 0x854   :  { %v18792_v41 = vadd.f32 %v7059_v42, %v20239_v57  ;;  %v8070_v57 = vadd.f32 %v8062_v9, %v16535_v12  ;;  %v14463_v9 = vld [vmem:[#allocation2 + $0xd0] sm:$0xf] }
 0x855   :  { %v8074_v36 = vadd.f32 %v8066_v29, %v16521_v44  ;;  %v8080_v17 = vmax.f32 %v8072_v47, 0.0  ;;  %v14395_v47 = vld [vmem:[#allocation2 + $0x3c] sm:$0xf] }
 0x857   :  { %v8057_v46 = vpop.f32.mrf.mxu1  ;;  %v8082_v54 = vmax.f32 %v8074_v36, 0.0  ;;  %v8086_v33 = vpack.c.bf16 %v8081_v15, %v8080_v17  ;;  %v20243_v15 = vld [vmem:[#allocation14_spill] sm:$0xff]  ;;  %v14459_v17 = vld [vmem:[#allocation2 + $0x40] sm:$0xf] }
 0x858   :  { %v7972_v24 = vpop.f32.mrf.mxu2 }
 0x859   :  { %v7973_v8 = vadd.f32 %v7972_v24, %v18718_v55  ;;  %v7958_v55 = vadd.f32 %v18747_v62, %v18682_v22  ;;  %v8071_v62 = vadd.f32 %v8063_v58, %v16553_v6 }
 0x85b   :  { %v8067_v37 = vadd.f32 %v8057_v46, %v7973_v8  ;;  %v7062_v49 = vpop.f32.mrf.mxu0  ;;  %v8061_v22 = vadd.f32 %v18745_v45, %v7958_v55  ;;  %v8079_v46 = vmax.f32 %v8071_v62, 0.0  ;;  %v8078_v45 = vmax.f32 %v8070_v57, 0.0  ;;  %v15280_v55 = vld [vmem:[#allocation2 + $0x110] sm:$0xf0]  ;;  %v15285_v57 = vld [vmem:[#allocation2 + $0x84] sm:$0xf0] }
 0x85c   :  { %v18804_v43 = vadd.f32 %v7062_v49, %v20240_v35  ;;  %v20242_v49 = vld [vmem:[#allocation17_spill] sm:$0xff] }
 0x85d   :  { %v8075_v28 = vadd.f32 %v8067_v37, %v16523_v1  ;;  %v8069_v24 = vadd.f32 %v8061_v22, %v16561_v38  ;;  %v14399_v37 = vld [vmem:[#allocation2 + $0xcc] sm:$0xf] }
 0x85e   :  { %13519 = vmatmul.msk.bf16.gmra.mxu0 %vm1313_vm1, %v15131_v26  ;;  %v8085_v26 = vpack.c.bf16 %v8079_v46, %v8078_v45  ;;  %v14400_v58 = vor.u32 %v15280_v55, %v14399_v37  ;;  %v15240_v45 = vld [vmem:[#allocation2 + $0x108] sm:$0xf0]  ;;  %v14211_v37 = vld [vmem:[#allocation2 + $0x34] sm:$0xf] }
 0x85f   :  { %v8083_v5 = vmax.f32 %v8075_v28, 0.0  ;;  %v8077_v8 = vmax.f32 %v8069_v24, 0.0  ;;  %v15202_v28 = vld [vmem:[%s20082_s3 + $0x8] sm:$0xff]  ;;  %v14215_v24 = vld [vmem:[#allocation2 + $0xc4] sm:$0xf] }
 0x860   :  { %13720 = vmatmul.msk.bf16.gmra.mxu3 %vm1313_vm1, %v15154_v4  ;;  %v15155_v4 = vld [vmem:[%s20084_s5 + $0x520] sm:$0xff]  ;;  %14006 = vmatmul.msk.bf16.gmra.mxu1 %vm900_vm0, %v15202_v28  ;;  %v15208_v55 = vld [vmem:[%s20082_s3 + $0x28] sm:$0xff]  ;;  %v15157_v28 = vld [vmem:[%s20084_s5 + $0x530] sm:$0xff] }
 0x861   :  { %v8087_v42 = vpack.c.bf16 %v8083_v5, %v8082_v54  ;;  %v8084_v51 = vpack.c.bf16 %v8077_v8, %v8076_v53  ;;  %v14396_v54 = vor.u32 %v15279_v32, %v14395_v47  ;;  %v15286_v5 = vld [vmem:[#allocation2 + $0x114] sm:$0xf0]  ;;  %v15156_v8 = vld [vmem:[%s20084_s5 + $0x528] sm:$0xff]  ;;  %v15239_v53 = vld [vmem:[#allocation2 + $0x78] sm:$0xf0] }
 0x862   :  { %v14464_v62 = vor.u32 %v15286_v5, %v14463_v9  ;;  %v15187_v32 = vld [vmem:[%s20084_s5 + $0x590] sm:$0xff] }
 0x863   :  { %v7064_v63 = vpop.f32.mrf.mxu0  ;;  %8285 = vmatpush.bf16.msrb.mxu2 %v8087_v42  ;;  %v15209_v47 = vld [vmem:[%s20082_s3 + $0x30] sm:$0xff] }
 0x864   :  { %v18825_v29 = vadd.f32 %v7064_v63, %v20241_v34  ;;  %v14460_v63 = vor.u32 %v15285_v57, %v14459_v17  ;;  %v15207_v34 = vld [vmem:[%s20082_s3 + $0x20] sm:$0xff] }
 0x867   :  { %8286 = vmatpush.bf16.msrb.mxu2 %v8086_v33  ;;  %v20244_v33 = vld [vmem:[#allocation24_spill] sm:$0xff] }
 0x86b   :  { %v7067_v36 = vpop.f32.mrf.mxu0  ;;  %8287 = vmatpush.bf16.msrb.mxu2 %v8085_v26  ;;  %v14216_v26 = vor.u32 %v15240_v45, %v14215_v24 }
 0x86c   :  { %v18834_v35 = vadd.f32 %v7067_v36, %v20242_v49  ;;  %v15203_v36 = vld [vmem:[%s20082_s3 + $0x10] sm:$0xff]  ;;  %v14212_v49 = vor.u32 %v15239_v53, %v14211_v37  ;;  %v15160_v53 = vld [vmem:[%s20084_s5 + $0x548] sm:$0xff] }
 0x86e   :  { %13520 = vmatmul.msk.bf16.gmra.mxu0 %vm1313_vm1, %v15132_v3  ;;  %v15186_v3 = vld [vmem:[%s20084_s5 + $0x588] sm:$0xff] }
 0x86f   :  { %8288 = vmatpush.bf16.msrb.mxu2 %v8084_v51 }
 0x870   :  { %13721 = vmatmul.msk.bf16.gmra.mxu3 %vm1313_vm1, %v15155_v4  ;;  %14007 = vmatmul.msk.bf16.gmra.mxu1 %vm900_vm0, %v15203_v36 }
 0x872   :  { %13929 = vmatmul.msk.bf16.vlgmr.msrb.gmra.mxu2 %vm1313_vm1, %v15185_v23 }
 0x873   :  { %9766 = vmatpush.bf16.msra.mxu2 %v14400_v58  ;;  %v7069_v22 = vpop.f32.mrf.mxu0 }
 0x874   :  { %v18850_v42 = vadd.f32 %v7069_v22, %v20243_v15  ;;  %v15158_v22 = vld [vmem:[%s20084_s5 + $0x538] sm:$0xff] }
 0x877   :  { %9767 = vmatpush.bf16.msra.mxu2 %v14396_v54 }
 0x87b   :  { %9924 = vmatpush.bf16.msrb.mxu2 %v14464_v62  ;;  %v7072_v46 = vpop.f32.mrf.mxu0  ;;  %v15188_v62 = vld [vmem:[%s20084_s5 + $0x598] sm:$0xff] }
 0x87c   :  { %v18856_v18 = vadd.f32 %v7072_v46, %v20244_v33  ;;  %v15213_v33 = vld [vmem:[%s20082_s3 + $0x40] sm:$0xff] }
 0x87e   :  { %13977 = vmatmul.msk.bf16.vlgmr.msra.gmra.mxu0 %vm900_vm0, %v15207_v34  ;;  %v15189_v34 = vld [vmem:[%s20084_s5 + $0x5a0] sm:$0xff] }
 0x87f   :  { %9925 = vmatpush.bf16.msrb.mxu2 %v14460_v63  ;;  %9210 = vmatpush.bf16.msra.mxu0 %v14216_v26  ;;  %v15159_v63 = vld [vmem:[%s20084_s5 + $0x540] sm:$0xff] }
 0x880   :  { %13722 = vmatmul.msk.bf16.gmra.mxu3 %vm1313_vm1, %v15156_v8 }
 0x882   :  { %13930 = vmatmul.msk.bf16.gmra.mxu2 %vm1313_vm1, %v15186_v3 }
 0x883   :  { %9211 = vmatpush.bf16.msra.mxu0 %v14212_v49  ;;  %v7074_v4 = vpop.f32.mrf.mxu0 }
 0x884   :  { %v18872_v51 = vadd.f32 %v7074_v4, %v18510_v56  ;;  %v15204_v56 = vld [vmem:[%s20082_s3 + $0x18] sm:$0xff] }
 0x885   :  { %14008 = vmatmul.msk.bf16.gmra.mxu1 %vm900_vm0, %v15204_v56 }
 0x88b   :  { %v7077_v58 = vpop.f32.mrf.mxu0 }
 0x88c   :  { %v18878_v23 = vadd.f32 %v7077_v58, %v18536_v25  ;;  %v15161_v58 = vld [vmem:[%s20084_s5 + $0x550] sm:$0xff] }
 0x88e   :  { %13978 = vmatmul.msk.bf16.gmra.mxu0 %vm900_vm0, %v15208_v55 }
 0x890   :  { %13723 = vmatmul.msk.bf16.gmra.mxu3 %vm1313_vm1, %v15157_v28 }
 0x892   :  { %13931 = vmatmul.msk.bf16.gmra.mxu2 %vm1313_vm1, %v15187_v32 }
 0x893   :  { %v7079_v25 = vpop.f32.mrf.mxu0 }
 0x894   :  { %v18894_v9 = vadd.f32 %v7079_v25, %v18550_v48 }
 0x89b   :  { %v7082_v54 = vpop.f32.mrf.mxu0 }
 0x89c   :  { %v18900_v5 = vadd.f32 %v7082_v54, %v18566_v7  ;;  %v15210_v7 = vld [vmem:[%s20082_s3 + $0x38] sm:$0xff] }
 0x89e   :  { %13979 = vmatmul.msk.bf16.gmra.mxu0 %vm900_vm0, %v15209_v47 }
 0x8a0   :  { %13724 = vmatmul.msk.bf16.gmra.mxu3 %vm1313_vm1, %v15158_v22  ;;  %v15162_v22 = vld [vmem:[%s20084_s5 + $0x558] sm:$0xff] }
 0x8a2   :  { %13932 = vmatmul.msk.bf16.gmra.mxu2 %vm1313_vm1, %v15188_v62 }
 0x8a3   :  { %v7084_v48 = vpop.f32.mrf.mxu0 }
 0x8a4   :  { %v18912_v15 = vadd.f32 %v7084_v48, %v18574_v10 }
 0x8ab   :  { %v7087_v57 = vpop.f32.mrf.mxu0 }
 0x8ac   :  { %v18918_v17 = vadd.f32 %v7087_v57, %v18590_v52 }
 0x8ae   :  { %13980 = vmatmul.msk.bf16.gmra.mxu0 %vm900_vm0, %v15210_v7 }
 0x8b0   :  { %13725 = vmatmul.msk.bf16.gmra.mxu3 %vm1313_vm1, %v15159_v63  ;;  %v20245_v63 = vld [vmem:[#allocation26_spill] sm:$0xff] }
 0x8b2   :  { %13933 = vmatmul.msk.bf16.gmra.mxu2 %vm1313_vm1, %v15189_v34 }
 0x8b3   :  { %v7089_v10 = vpop.f32.mrf.mxu0  ;;  %v7661_v24 = vpop.f32.mrf.mxu3 }
 0x8b4   :  { %v18930_v46 = vadd.f32 %v7089_v10, %v18598_v30  ;;  %v7741_v52 = vadd.f32 %v7661_v24, %v18696_v21  ;;  %v15190_v30 = vld [vmem:[%s20084_s5 + $0x5a8] sm:$0xff]  ;;  %v15163_v24 = vld [vmem:[%s20084_s5 + $0x560] sm:$0xff] }
 0x8bb   :  { %v7092_v45 = vpop.f32.mrf.mxu0  ;;  %v7663_v8 = vpop.f32.mrf.mxu3 }
 0x8bc   :  { %v18937_v26 = vadd.f32 %v7092_v45, %v18614_v60  ;;  %v7742_v3 = vadd.f32 %v7663_v8, %v18702_v14  ;;  %v15214_v14 = vld [vmem:[%s20082_s3 + $0x48] sm:$0xff] }
 0x8be   :  { %14041 = vmatmul.msk.bf16.vlgmr.msrb.gmra.mxu0 %vm900_vm0, %v15213_v33 }
 0x8c0   :  { %13726 = vmatmul.msk.bf16.gmra.mxu3 %vm1313_vm1, %v15160_v53 }
 0x8c2   :  { %13934 = vmatmul.msk.bf16.gmra.mxu2 %vm1313_vm1, %v15190_v30 }
 0x8c3   :  { %v18949_v21 = vpop.f32.mrf.mxu0  ;;  %v7666_v60 = vpop.f32.mrf.mxu3 }
 0x8c4   :  { %v7743_v36 = vadd.f32 %v7666_v60, %v18710_v13  ;;  %v15191_v13 = vld [vmem:[%s20084_s5 + $0x5b0] sm:$0xff] }
 0x8ca   :  { %v8584_v30 = vpop.f32.mrf.mxu1 }
 0x8cb   :  { %v7097_v37 = vpop.f32.mrf.mxu0  ;;  %v7668_v49 = vpop.f32.mrf.mxu3 }
 0x8cc   :  { %v18956_v4 = vadd.f32 %v7097_v37, %v18633_v2  ;;  %v7744_v55 = vadd.f32 %v7668_v49, %v18716_v61  ;;  %v15215_v61 = vld [vmem:[%s20082_s3 + $0x50] sm:$0xff] }
 0x8ce   :  { %14042 = vmatmul.msk.bf16.gmra.mxu0 %vm900_vm0, %v15214_v14 }
 0x8d0   :  { %13727 = vmatmul.msk.bf16.gmra.mxu3 %vm1313_vm1, %v15161_v58  ;;  %v15164_v58 = vld [vmem:[%s20084_s5 + $0x568] sm:$0xff] }
 0x8d2   :  { %13935 = vmatmul.msk.bf16.gmra.mxu2 %vm1313_vm1, %v15191_v13 }
 0x8d3   :  { %v18968_v28 = vpop.f32.mrf.mxu0  ;;  %v7671_v2 = vpop.f32.mrf.mxu3 }
 0x8d4   :  { %v7745_v32 = vadd.f32 %v7671_v2, %v18730_v20  ;;  %v15192_v20 = vld [vmem:[%s20084_s5 + $0x5b8] sm:$0xff] }
 0x8db   :  { %v7102_v56 = vpop.f32.mrf.mxu0  ;;  %v7673_v25 = vpop.f32.mrf.mxu3 }
 0x8dc   :  { %v18975_v47 = vadd.f32 %v7102_v56, %v18653_v50  ;;  %v7746_v54 = vadd.f32 %v7673_v25, %v18741_v40  ;;  %v15216_v40 = vld [vmem:[%s20082_s3 + $0x58] sm:$0xff] }
 0x8de   :  { %14043 = vmatmul.msk.bf16.gmra.mxu0 %vm900_vm0, %v15215_v61 }
 0x8e0   :  { %13728 = vmatmul.msk.bf16.gmra.mxu3 %vm1313_vm1, %v15162_v22 }
 0x8e2   :  { %13936 = vmatmul.msk.bf16.gmra.mxu2 %vm1313_vm1, %v15192_v20 }
 0x8e3   :  { %v18987_v62 = vpop.f32.mrf.mxu0  ;;  %v7676_v50 = vpop.f32.mrf.mxu3 }
 0x8e4   :  { %v7747_v48 = vadd.f32 %v7676_v50, %v18753_v11  ;;  %v15193_v11 = vld [vmem:[%s20084_s5 + $0x5c0] sm:$0xff]  ;;  %v15165_v50 = vld [vmem:[%s20084_s5 + $0x570] sm:$0xff] }
 0x8eb   :  { %v7107_v7 = vpop.f32.mrf.mxu0  ;;  %v7678_v57 = vpop.f32.mrf.mxu3 }
 0x8ec   :  { %v18994_v34 = vadd.f32 %v7107_v7, %v20245_v63  ;;  %v7748_v10 = vadd.f32 %v7678_v57, %v18763_v0 }
 0x8ee   :  { %14044 = vmatmul.msk.bf16.gmra.mxu0 %vm900_vm0, %v15216_v40 }
 0x8f0   :  { %13729 = vmatmul.msk.bf16.gmra.mxu3 %vm1313_vm1, %v15163_v24 }
 0x8f2   :  { %13937 = vmatmul.msk.bf16.gmra.mxu2 %vm1313_vm1, %v15193_v11 }
 0x8f3   :  { %v19006_v33 = vpop.f32.mrf.mxu0  ;;  %v7681_v45 = vpop.f32.mrf.mxu3 }
 0x8f4   :  { %v19009_v8 = vadd.f32 %v7681_v45, %v18769_v31  ;;  %v15194_v31 = vld [vmem:[%s20084_s5 + $0x5c8] sm:$0xff] }
 0x8f5   :  { %v8290_v0 = vpop.f32.mrf.mxu2 }
 0x8f6   :  { %v19011_v53 = vadd.f32 %v8290_v0, %v7741_v52  ;;  %v15166_v0 = vld [vmem:[%s20084_s5 + $0x578] sm:$0xff] }
 0x8fb   :  { %v7683_v60 = vpop.f32.mrf.mxu3  ;;  %v8511_v14 = vpop.f32.mrf.mxu0 }
 0x8fc   :  { %v19014_v37 = vadd.f32 %v7683_v60, %v18777_v19  ;;  %v19016_v49 = vadd.f32 %v8584_v30, %v8511_v14 }
 0x8fd   :  { %v8292_v13 = vpop.f32.mrf.mxu2 }
 0x8fe   :  { %v19021_v2 = vadd.f32 %v8292_v13, %v7742_v3 }
 0x900   :  { %13730 = vmatmul.msk.bf16.gmra.mxu3 %vm1313_vm1, %v15164_v58 }
 0x902   :  { %13938 = vmatmul.msk.bf16.gmra.mxu2 %vm1313_vm1, %v15194_v31 }
 0x903   :  { %v7686_v52 = vpop.f32.mrf.mxu3  ;;  %v19028_v19 = vpop.f32.mrf.mxu0 }
 0x904   :  { %v19031_v61 = vadd.f32 %v7686_v52, %v18783_v16  ;;  %v15195_v16 = vld [vmem:[%s20084_s5 + $0x5d0] sm:$0xff] }
 0x905   :  { %v8295_v56 = vpop.f32.mrf.mxu2 }
 0x906   :  { %v19033_v25 = vadd.f32 %v8295_v56, %v7743_v36  ;;  %v15241_v56 = vld [vmem:[%s20082_s3 + $0x20] sm:$0xff] }
 0x90b   :  { %v7688_v22 = vpop.f32.mrf.mxu3  ;;  %v19035_v3 = vpop.f32.mrf.mxu0 }
 0x90c   :  { %v19038_v20 = vadd.f32 %v7688_v22, %v18792_v41  ;;  %v14427_v22 = vld [vmem:[#allocation2 + $0xc8] sm:$0xf] }
 0x90d   :  { %v8297_v40 = vpop.f32.mrf.mxu2 }
 0x90e   :  { %v19043_v7 = vadd.f32 %v8297_v40, %v7744_v55 }
 0x910   :  { %13731 = vmatmul.msk.bf16.gmra.mxu3 %vm1313_vm1, %v15165_v50 }
 0x912   :  { %13939 = vmatmul.msk.bf16.gmra.mxu2 %vm1313_vm1, %v15195_v16  ;;  %v15274_v16 = vld [vmem:[#allocation2 + $0x10c] sm:$0xf0] }
 0x913   :  { %v7691_v36 = vpop.f32.mrf.mxu3  ;;  %v19050_v57 = vpop.f32.mrf.mxu0 }
 0x914   :  { %v19053_v41 = vadd.f32 %v7691_v36, %v18804_v43  ;;  %v15196_v43 = vld [vmem:[%s20084_s5 + $0x5d8] sm:$0xff]  ;;  %v15273_v36 = vld [vmem:[#allocation2 + $0x7c] sm:$0xf0] }
 0x915   :  { %v8300_v63 = vpop.f32.mrf.mxu2 }
 0x916   :  { %v19055_v24 = vadd.f32 %v8300_v63, %v7745_v32  ;;  %v14423_v63 = vld [vmem:[#allocation2 + $0x38] sm:$0xf] }
 0x91b   :  { %v7693_v11 = vpop.f32.mrf.mxu3  ;;  %v19057_v55 = vpop.f32.mrf.mxu0 }
 0x91c   :  { %v19060_v45 = vadd.f32 %v7693_v11, %v18825_v29 }
 0x91d   :  { %v8302_v30 = vpop.f32.mrf.mxu2 }
 0x91e   :  { %v19065_v60 = vadd.f32 %v8302_v30, %v7746_v54 }
 0x920   :  { %20246 = vst [vmem:[#allocation20_spill] sm:$0xff] %v19065_v60  ;;  %13732 = vmatmul.msk.bf16.gmra.mxu3 %vm1313_vm1, %v15166_v0 }
 0x922   :  { %13940 = vmatmul.msk.bf16.gmra.mxu2 %vm1313_vm1, %v15196_v43 }
 0x923   :  { %v7696_v32 = vpop.f32.mrf.mxu3  ;;  %v19072_v14 = vpop.f32.mrf.mxu0 }
 0x924   :  { %v19075_v29 = vadd.f32 %v7696_v32, %v18834_v35  ;;  %v15197_v35 = vld [vmem:[%s20084_s5 + $0x5e0] sm:$0xff] }
 0x925   :  { %v8305_v58 = vpop.f32.mrf.mxu2 }
 0x926   :  { %v19077_v13 = vadd.f32 %v8305_v58, %v7747_v48  ;;  %v14428_v48 = vor.u32 %v15274_v16, %v14427_v22 }
 0x928   :  { %20247 = vst [vmem:[#allocation28_spill] sm:$0xff] %v19077_v13 }
 0x92b   :  { %v7698_v31 = vpop.f32.mrf.mxu3  ;;  %v19079_v54 = vpop.f32.mrf.mxu0 }
 0x92c   :  { %v19082_v52 = vadd.f32 %v7698_v31, %v18850_v42  ;;  %v19093_v42 = vpop.f32.mrf.mxu1 }
 0x92d   :  { %v8307_v50 = vpop.f32.mrf.mxu2 }
 0x92e   :  { %v19087_v40 = vadd.f32 %v8307_v50, %v7748_v10  ;;  %v14424_v10 = vor.u32 %v15273_v36, %v14423_v63 }
 0x930   :  { %20248 = vst [vmem:[#allocation13_spill] sm:$0xff] %v19087_v40  ;;  %14189 = vmatmul.msk.bf16.vlgmr.msrb.gmra.mxu3 %vm900_vm0, %v15241_v56 }
 0x931   :  { %9839 = vmatpush.bf16.msrb.mxu3 %v14428_v48 }
 0x932   :  { %13941 = vmatmul.msk.bf16.gmra.mxu2 %vm1313_vm1, %v15197_v35 }
 0x933   :  { %v7701_v11 = vpop.f32.mrf.mxu3  ;;  %v19096_v0 = vpop.f32.mrf.mxu0 }
 0x934   :  { %v19099_v30 = vadd.f32 %v7701_v11, %v18856_v18  ;;  %v19104_v56 = vpop.f32.mrf.mxu1  ;;  %v15242_v18 = vld [vmem:[%s20082_s3 + $0x28] sm:$0xff] }
 0x935   :  { %9840 = vmatpush.bf16.msrb.mxu3 %v14424_v10  ;;  %v8310_v43 = vpop.f32.mrf.mxu2 }
 0x936   :  { %v19102_v32 = vadd.f32 %v8310_v43, %v19009_v8  ;;  %v15198_v8 = vld [vmem:[%s20084_s5 + $0x5e8] sm:$0xff] }
 0x938   :  { %20249 = vst [vmem:[#allocation10_spill] sm:$0xff] %v19102_v32  ;;  %v15308_v32 = vld [vmem:[#allocation2 + $0x110] sm:$0xf0] }
 0x93b   :  { %v7703_v58 = vpop.f32.mrf.mxu3  ;;  %v8669_v31 = vpop.f32.mrf.mxu0 }
 0x93c   :  { %v19107_v22 = vadd.f32 %v7703_v58, %v18872_v51  ;;  %v19110_v50 = vadd.f32 %v8669_v31, %v19016_v49  ;;  %v8591_v63 = vpop.f32.mrf.mxu1  ;;  %v15243_v58 = vld [vmem:[%s20082_s3 + $0x30] sm:$0xff] }
 0x93d   :  { %v8312_v16 = vpop.f32.mrf.mxu2 }
 0x93e   :  { %v19116_v35 = vadd.f32 %v8312_v16, %v19014_v37 }
 0x940   :  { %20250 = vst [vmem:[#allocation16_spill] sm:$0xff] %v19116_v35  ;;  %14190 = vmatmul.msk.bf16.gmra.mxu3 %vm900_vm0, %v15242_v18 }
 0x942   :  { %13942 = vmatmul.msk.bf16.gmra.mxu2 %vm1313_vm1, %v15198_v8 }
 0x943   :  { %v7706_v51 = vpop.f32.mrf.mxu3  ;;  %v19123_v48 = vpop.f32.mrf.mxu0 }
 0x944   :  { %v19126_v49 = vadd.f32 %v7706_v51, %v18878_v23  ;;  %v15199_v23 = vld [vmem:[%s20084_s5 + $0x5f0] sm:$0xff] }
 0x945   :  { %v8315_v36 = vpop.f32.mrf.mxu2 }
 0x946   :  { %v19129_v11 = vadd.f32 %v8315_v36, %v19031_v61  ;;  %v8594_v61 = vpop.f32.mrf.mxu1 }
 0x948   :  { %20251 = vst [vmem:[#allocation11_spill] sm:$0xff] %v19129_v11 }
 0x94b   :  { %v7708_v37 = vpop.f32.mrf.mxu3  ;;  %v19131_v10 = vpop.f32.mrf.mxu0 }
 0x94c   :  { %v19134_v43 = vadd.f32 %v7708_v37, %v18894_v9  ;;  %v15235_v37 = vld [vmem:[%s20082_s3] sm:$0xff] }
 0x94d   :  { %v8317_v31 = vpop.f32.mrf.mxu2  ;;  %14217 = vmatmul.msk.bf16.vlgmr.msra.gmra.mxu0 %vm900_vm0, %v15235_v37 }
 0x94e   :  { %v19140_v18 = vadd.f32 %v8317_v31, %v19038_v20  ;;  %v8596_v20 = vpop.f32.mrf.mxu1 }
 0x950   :  { %20252 = vst [vmem:[#allocation7_spill] sm:$0xff] %v19140_v18  ;;  %14191 = vmatmul.msk.bf16.gmra.mxu3 %vm900_vm0, %v15243_v58 }
 0x952   :  { %13943 = vmatmul.msk.bf16.gmra.mxu2 %vm1313_vm1, %v15199_v23  ;;  %v15244_v23 = vld [vmem:[%s20082_s3 + $0x38] sm:$0xff] }
 0x953   :  { %v7711_v16 = vpop.f32.mrf.mxu3  ;;  %v8676_v9 = vpop.f32.mrf.mxu0 }
 0x954   :  { %v19148_v8 = vadd.f32 %v7711_v16, %v18900_v5  ;;  %v15200_v16 = vld [vmem:[%s20084_s5 + $0x5f8] sm:$0xff] }
 0x955   :  { %v8320_v51 = vpop.f32.mrf.mxu2 }
 0x956   :  { %v19151_v36 = vadd.f32 %v8320_v51, %v19053_v41 }
 0x958   :  { %20253 = vst [vmem:[#allocation23_spill] sm:$0xff] %v19151_v36  ;;  %v8599_v36 = vpop.f32.mrf.mxu1 }
 0x95b   :  { %v7713_v31 = vpop.f32.mrf.mxu3  ;;  %v8679_v18 = vpop.f32.mrf.mxu0 }
 0x95c   :  { %v19157_v58 = vadd.f32 %v7713_v31, %v18912_v15 }
 0x95d   :  { %v8322_v5 = vpop.f32.mrf.mxu2 }
 0x95e   :  { %v19164_v41 = vadd.f32 %v8322_v5, %v19060_v45  ;;  %v15236_v45 = vld [vmem:[%s20082_s3 + $0x8] sm:$0xff] }
 0x95f   :  { %14218 = vmatmul.msk.bf16.gmra.mxu0 %vm900_vm0, %v15236_v45  ;;  %v8595_v45 = vadd.f32 %v8594_v61, %v19057_v55  ;;  %v8590_v55 = vadd.f32 %v19104_v56, %v19035_v3 }
 0x960   :  { %20254 = vst [vmem:[#allocation25_spill] sm:$0xff] %v19164_v41  ;;  %14192 = vmatmul.msk.bf16.gmra.mxu3 %vm900_vm0, %v15244_v23  ;;  %v8601_v35 = vpop.f32.mrf.mxu1 }
 0x961   :  { %v8693_v60 = vadd.f32 %v8679_v18, %v8595_v45  ;;  %v20258_v18 = vld [vmem:[#allocation19_spill] sm:$0xff] }
 0x962   :  { %13944 = vmatmul.msk.bf16.gmra.mxu2 %vm1313_vm1, %v15200_v16  ;;  %v15247_v16 = vld [vmem:[%s20082_s3 + $0x40] sm:$0xff] }
 0x963   :  { %v7716_v15 = vpop.f32.mrf.mxu3  ;;  %v8681_v51 = vpop.f32.mrf.mxu0  ;;  %v8701_v3 = vadd.f32 %v8693_v60, %v16532_v59  ;;  %v15248_v60 = vld [vmem:[%s20082_s3 + $0x48] sm:$0xff] }
 0x964   :  { %v19172_v31 = vadd.f32 %v7716_v15, %v18918_v17  ;;  %v8600_v15 = vadd.f32 %v8599_v36, %v19079_v54  ;;  %v8602_v54 = vadd.f32 %v8601_v35, %v19096_v0 }
 0x965   :  { %v8325_v11 = vpop.f32.mrf.mxu2 }
 0x966   :  { %v19175_v37 = vadd.f32 %v8325_v11, %v19075_v29  ;;  %v15275_v11 = vld [vmem:[%s20082_s3 + $0x20] sm:$0xff] }
 0x968   :  { %20255 = vst [vmem:[#allocation27_spill] sm:$0xff] %v19175_v37  ;;  %v14639_v37 = vld [vmem:[#allocation2 + $0xcc] sm:$0xf] }
 0x969   :  { %v14640_v40 = vor.u32 %v15308_v32, %v14639_v37 }
 0x96b   :  { %v7718_v5 = vpop.f32.mrf.mxu3  ;;  %v8684_v41 = vpop.f32.mrf.mxu0 }
 0x96c   :  { %v19181_v23 = vadd.f32 %v7718_v5, %v18930_v46  ;;  %v8597_v46 = vadd.f32 %v8596_v20, %v19072_v14  ;;  %v8695_v5 = vadd.f32 %v8684_v41, %v8600_v15  ;;  %v14635_v41 = vld [vmem:[#allocation2 + $0x3c] sm:$0xf] }
 0x96d   :  { %v8327_v17 = vpop.f32.mrf.mxu2 }
 0x96e   :  { %v19189_v29 = vadd.f32 %v8327_v17, %v19082_v52  ;;  %v8694_v36 = vadd.f32 %v8681_v51, %v8597_v46  ;;  %v15307_v52 = vld [vmem:[#allocation2 + $0x80] sm:$0xf0]  ;;  %v8592_v17 = vadd.f32 %v8591_v63, %v19050_v57  ;;  %v8703_v14 = vadd.f32 %v8695_v5, %v16521_v44 }
 0x96f   :  { %v14636_v35 = vor.u32 %v15307_v52, %v14635_v41  ;;  %v20257_v63 = vld [vmem:[#allocation8_spill] sm:$0xff]  ;;  %v15276_v52 = vld [vmem:[%s20082_s3 + $0x28] sm:$0xff] }
 0x970   :  { %20256 = vst [vmem:[#allocation17_spill] sm:$0xff] %v19189_v29  ;;  %14253 = vmatmul.msk.bf16.vlgmr.msra.gmra.mxu3 %vm900_vm0, %v15247_v16  ;;  %v8692_v61 = vadd.f32 %v8676_v9, %v8592_v17  ;;  %v8702_v51 = vadd.f32 %v8694_v36, %v16544_v27  ;;  %v6508_v37 = vadd.f32 %v20258_v18, %v20257_v63  ;;  %v8711_v56 = vmax.f32 %v8703_v14, 0.0  ;;  %v15237_v16 = vld [vmem:[%s20082_s3 + $0x10] sm:$0xff]  ;;  %v15219_v18 = vld [vmem:[%s20084_s5 + $0x600] sm:$0xff] }
 0x971   :  { %14219 = vmatmul.msk.bf16.gmra.mxu0 %vm900_vm0, %v15237_v16  ;;  %v8697_v17 = vadd.f32 %v19110_v50, %v16566_v39 }
 0x972   :  { %14401 = vmatmul.msk.bf16.vlgmr.msra.gmra.mxu2 %vm900_vm0, %v15275_v11  ;;  %v8710_v11 = vmax.f32 %v8702_v51, 0.0 }
 0x973   :  { %10468 = vmatpush.bf16.msra.mxu2 %v14640_v40  ;;  %v7721_v29 = vpop.f32.mrf.mxu3  ;;  %v8686_v13 = vpop.f32.mrf.mxu0 }
 0x974   :  { %v19202_v20 = vadd.f32 %v7721_v29, %v18937_v26  ;;  %v8696_v32 = vadd.f32 %v8686_v13, %v8602_v54  ;;  %v8587_v26 = vadd.f32 %v19093_v42, %v19028_v19  ;;  %v8691_v13 = vadd.f32 %v19131_v10, %v8590_v55 }
 0x975   :  { %v8330_v0 = vpop.f32.mrf.mxu2  ;;  %v8700_v29 = vadd.f32 %v8692_v61, %v16553_v6  ;;  %v8709_v10 = vmax.f32 %v8701_v3, 0.0  ;;  %v15313_v3 = vld [vmem:[#allocation2 + $0x84] sm:$0xf0] }
 0x976   :  { %v8704_v57 = vadd.f32 %v8696_v32, %v16523_v1  ;;  %v19209_v40 = vadd.f32 %v8330_v0, %v19099_v30  ;;  %v7137_v30 = vadd.f32 %v18949_v21, %v6508_v37  ;;  %v8690_v15 = vadd.f32 %v19123_v48, %v8587_v26  ;;  %v20260_v37 = vld [vmem:[#allocation18_spill] sm:$0xff]  ;;  %v20261_v26 = vld [vmem:[#allocation15_spill] sm:$0xff] }
 0x977   :  { %10469 = vmatpush.bf16.msra.mxu2 %v14636_v35  ;;  %v8699_v42 = vadd.f32 %v8691_v13, %v16535_v12  ;;  %v8708_v45 = vmax.f32 %v8700_v29, 0.0  ;;  %v8715_v36 = vpack.c.bf16 %v8710_v11, %v8709_v10  ;;  %v8705_v0 = vmax.f32 %v8697_v17, 0.0  ;;  %v14611_v35 = vld [vmem:[#allocation2 + $0xd0] sm:$0xf] }
 0x978   :  { %v8712_v9 = vmax.f32 %v8704_v57, 0.0  ;;  %v8698_v48 = vadd.f32 %v8690_v15, %v16561_v38  ;;  %v15314_v57 = vld [vmem:[#allocation2 + $0x114] sm:$0xf0]  ;;  %v6510_v13 = vadd.f32 %v20261_v26, %v20260_v37  ;;  %v15249_v15 = vld [vmem:[%s20082_s3 + $0x50] sm:$0xff]  ;;  %v15281_v37 = vld [vmem:[%s20082_s3 + $0x40] sm:$0xff] }
 0x979   :  { %v8707_v14 = vmax.f32 %v8699_v42, 0.0  ;;  %v14612_v63 = vor.u32 %v15314_v57, %v14611_v35  ;;  %v20266_v35 = vld [vmem:[#allocation22_spill] sm:$0xff] }
 0x97a   :  { %v8716_v46 = vpack.c.bf16 %v8712_v9, %v8711_v56  ;;  %v8706_v32 = vmax.f32 %v8698_v48, 0.0  ;;  %v14607_v56 = vld [vmem:[#allocation2 + $0x40] sm:$0xf] }
 0x97b   :  { %v7723_v19 = vpop.f32.mrf.mxu3  ;;  %v8714_v41 = vpack.c.bf16 %v8708_v45, %v8707_v14  ;;  %v14608_v16 = vor.u32 %v15313_v3, %v14607_v56  ;;  %v15278_v14 = vld [vmem:[%s20082_s3 + $0x38] sm:$0xff]  ;;  %v15282_v56 = vld [vmem:[%s20082_s3 + $0x48] sm:$0xff] }
 0x97c   :  { %v19224_v5 = vadd.f32 %v7723_v19, %v7137_v30  ;;  %8914 = vmatpush.bf16.msra.mxu1 %v8716_v46  ;;  %v8713_v50 = vpack.c.bf16 %v8706_v32, %v8705_v0  ;;  %v20265_v0 = vld [vmem:[#allocation9_spill] sm:$0xff]  ;;  %v15222_v3 = vld [vmem:[%s20084_s5 + $0x618] sm:$0xff] }
 0x97d   :  { %v8332_v21 = vpop.f32.mrf.mxu2 }
 0x97e   :  { %20259 = vst [vmem:[#allocation14_spill] sm:$0xff] %v19224_v5  ;;  %v19232_v54 = vadd.f32 %v8332_v21, %v19107_v22  ;;  %v20263_v21 = vld [vmem:[#allocation21_spill] sm:$0xff] }
 0x980   :  { %8915 = vmatpush.bf16.msra.mxu1 %v8715_v36  ;;  %14254 = vmatmul.msk.bf16.gmra.mxu3 %vm900_vm0, %v15248_v60  ;;  %v20262_v60 = vld [vmem:[#allocation12_spill] sm:$0xff] }
 0x981   :  { %v6512_v48 = vadd.f32 %v20263_v21, %v20262_v60  ;;  %v15224_v21 = vld [vmem:[%s20084_s5 + $0x628] sm:$0xff] }
 0x982   :  { %14402 = vmatmul.msk.bf16.gmra.mxu2 %vm900_vm0, %v15276_v52 }
 0x983   :  { %v7726_v55 = vpop.f32.mrf.mxu3  ;;  %v7141_v45 = vadd.f32 %v18987_v62, %v6512_v48 }
 0x984   :  { %v19242_v22 = vadd.f32 %v7726_v55, %v18956_v4  ;;  %8916 = vmatpush.bf16.msra.mxu1 %v8714_v41  ;;  %v15238_v4 = vld [vmem:[%s20082_s3 + $0x18] sm:$0xff] }
 0x985   :  { %v8335_v61 = vpop.f32.mrf.mxu2  ;;  %14220 = vmatmul.msk.bf16.gmra.mxu0 %vm900_vm0, %v15238_v4  ;;  %v15270_v4 = vld [vmem:[%s20082_s3 + $0x8] sm:$0xff] }
 0x986   :  { %v19245_v51 = vadd.f32 %v8335_v61, %v19126_v49  ;;  %v7139_v49 = vadd.f32 %v18968_v28, %v6510_v13  ;;  %v15277_v28 = vld [vmem:[%s20082_s3 + $0x30] sm:$0xff]  ;;  %v6514_v61 = vadd.f32 %v20266_v35, %v20265_v0 }
 0x988   :  { %8917 = vmatpush.bf16.msra.mxu1 %v8713_v50  ;;  %v7143_v50 = vadd.f32 %v19006_v33, %v6514_v61 }
 0x98b   :  { %v7728_v9 = vpop.f32.mrf.mxu3  ;;  %14141 = vmatmul.msk.bf16.vlgmr.msra.gmra.mxu1 %vm1313_vm1, %v15219_v18 }
 0x98c   :  { %10395 = vmatpush.bf16.msrb.mxu1 %v14612_v63  ;;  %v19257_v30 = vadd.f32 %v7728_v9, %v7139_v49 }
 0x98d   :  { %v8337_v29 = vpop.f32.mrf.mxu2 }
 0x98e   :  { %v19264_v11 = vadd.f32 %v8337_v29, %v19134_v43  ;;  %v15220_v43 = vld [vmem:[%s20084_s5 + $0x608] sm:$0xff] }
 0x990   :  { %10396 = vmatpush.bf16.msrb.mxu1 %v14608_v16  ;;  %14255 = vmatmul.msk.bf16.gmra.mxu3 %vm900_vm0, %v15249_v15  ;;  %v15223_v15 = vld [vmem:[%s20084_s5 + $0x620] sm:$0xff] }
 0x992   :  { %14403 = vmatmul.msk.bf16.gmra.mxu2 %vm900_vm0, %v15277_v28  ;;  %v15271_v28 = vld [vmem:[%s20082_s3 + $0x10] sm:$0xff] }
 0x993   :  { %v7731_v46 = vpop.f32.mrf.mxu3 }
 0x994   :  { %v7769_v19 = vadd.f32 %v7731_v46, %v18975_v47  ;;  %v15250_v47 = vld [vmem:[%s20082_s3 + $0x58] sm:$0xff] }
 0x995   :  { %v8340_v42 = vpop.f32.mrf.mxu2 }
 0x996   :  { %v19273_v10 = vadd.f32 %v8340_v42, %v19148_v8  ;;  %v15283_v42 = vld [vmem:[%s20082_s3 + $0x50] sm:$0xff] }
 0x99b   :  { %v7733_v36 = vpop.f32.mrf.mxu3  ;;  %14142 = vmatmul.msk.bf16.gmra.mxu1 %vm1313_vm1, %v15220_v43 }
 0x99c   :  { %v19282_v52 = vadd.f32 %v7733_v36, %v7141_v45 }
 0x99d   :  { %v8342_v8 = vpop.f32.mrf.mxu2 }
 0x99e   :  { %20264 = vst [vmem:[#allocation24_spill] sm:$0xff] %v19282_v52  ;;  %v19288_v17 = vadd.f32 %v8342_v8, %v19157_v58  ;;  %v15221_v58 = vld [vmem:[%s20084_s5 + $0x610] sm:$0xff] }
 0x9a0   :  { %14256 = vmatmul.msk.bf16.gmra.mxu3 %vm900_vm0, %v15250_v47  ;;  %v15272_v47 = vld [vmem:[%s20082_s3 + $0x18] sm:$0xff] }
 0x9a2   :  { %14404 = vmatmul.msk.bf16.gmra.mxu2 %vm900_vm0, %v15278_v14 }
 0x9a3   :  { %v7736_v62 = vpop.f32.mrf.mxu3 }
 0x9a4   :  { %v7771_v32 = vadd.f32 %v7736_v62, %v18994_v34  ;;  %v15269_v34 = vld [vmem:[%s20082_s3] sm:$0xff] }
 0x9a5   :  { %v8345_v41 = vpop.f32.mrf.mxu2 }
 0x9a6   :  { %v19297_v55 = vadd.f32 %v8345_v41, %v19172_v31 }
 0x9ab   :  { %v7738_v57 = vpop.f32.mrf.mxu3  ;;  %14143 = vmatmul.msk.bf16.gmra.mxu1 %vm1313_vm1, %v15221_v58  ;;  %v15225_v58 = vld [vmem:[%s20084_s5 + $0x630] sm:$0xff] }
 0x9ac   :  { %v19306_v63 = vadd.f32 %v7738_v57, %v7143_v50 }
 0x9ad   :  { %v8347_v31 = vpop.f32.mrf.mxu2 }
 0x9ae   :  { %20267 = vst [vmem:[#allocation26_spill] sm:$0xff] %v19306_v63  ;;  %v19312_v18 = vadd.f32 %v8347_v31, %v19181_v23 }
 0x9b0   :  { %14429 = vmatmul.msk.bf16.vlgmr.msrb.gmra.mxu3 %vm900_vm0, %v15269_v34 }
 0x9b2   :  { %14465 = vmatmul.msk.bf16.vlgmr.msrb.gmra.mxu2 %vm900_vm0, %v15281_v37 }
 0x9b3   :  { %v9140_v33 = vpop.f32.mrf.mxu3 }
 0x9b5   :  { %v8350_v26 = vpop.f32.mrf.mxu2 }
 0x9b6   :  { %v19320_v13 = vadd.f32 %v8350_v26, %v19202_v20 }
 0x9bb   :  { %14144 = vmatmul.msk.bf16.gmra.mxu1 %vm1313_vm1, %v15222_v3  ;;  %v19326_v23 = vpop.f32.mrf.mxu3 }
 0x9bd   :  { %v19331_v49 = vpop.f32.mrf.mxu2 }
 0x9be   :  { %20268 = vst [vmem:[#allocation8_spill] sm:$0xff] %v19331_v49 }
 0x9c0   :  { %14430 = vmatmul.msk.bf16.gmra.mxu3 %vm900_vm0, %v15270_v4 }
 0x9c2   :  { %14466 = vmatmul.msk.bf16.gmra.mxu2 %vm900_vm0, %v15282_v56  ;;  %v15227_v56 = vld [vmem:[%s20084_s5 + $0x640] sm:$0xff] }
 0x9c3   :  { %v19338_v20 = vpop.f32.mrf.mxu3 }
 0x9c5   :  { %v8355_v9 = vpop.f32.mrf.mxu2 }
 0x9c6   :  { %v19341_v16 = vadd.f32 %v8355_v9, %v19242_v22 }
 0x9ca   :  { %v9213_v48 = vpop.f32.mrf.mxu0 }
 0x9cb   :  { %14145 = vmatmul.msk.bf16.gmra.mxu1 %vm1313_vm1, %v15223_v15  ;;  %v19347_v29 = vpop.f32.mrf.mxu3  ;;  %v9214_v45 = vadd.f32 %v9213_v48, %v9140_v33 }
 0x9cd   :  { %v19352_v46 = vpop.f32.mrf.mxu2 }
 0x9ce   :  { %20269 = vst [vmem:[#allocation19_spill] sm:$0xff] %v19352_v46 }
 0x9d0   :  { %14431 = vmatmul.msk.bf16.gmra.mxu3 %vm900_vm0, %v15271_v28 }
 0x9d2   :  { %14467 = vmatmul.msk.bf16.gmra.mxu2 %vm900_vm0, %v15283_v42  ;;  %v9215_v0 = vpop.f32.mrf.mxu0 }
 0x9d3   :  { %v9150_v22 = vpop.f32.mrf.mxu3 }
 0x9d5   :  { %v8360_v43 = vpop.f32.mrf.mxu2 }
 0x9d6   :  { %v19359_v60 = vadd.f32 %v8360_v43, %v7769_v19  ;;  %v15284_v19 = vld [vmem:[%s20082_s3 + $0x58] sm:$0xff] }
 0x9d8   :  { %20270 = vst [vmem:[#allocation18_spill] sm:$0xff] %v19359_v60 }
 0x9db   :  { %14146 = vmatmul.msk.bf16.gmra.mxu1 %vm1313_vm1, %v15224_v21  ;;  %v9152_v36 = vpop.f32.mrf.mxu3 }
 0x9dc   :  { %v9218_v57 = vpop.f32.mrf.mxu0 }
 0x9dd   :  { %v19368_v8 = vpop.f32.mrf.mxu2 }
 0x9de   :  { %20271 = vst [vmem:[#allocation15_spill] sm:$0xff] %v19368_v8 }
 0x9e0   :  { %14432 = vmatmul.msk.bf16.gmra.mxu3 %vm900_vm0, %v15272_v47 }
 0x9e2   :  { %14468 = vmatmul.msk.bf16.gmra.mxu2 %vm900_vm0, %v15284_v19 }
 0x9e3   :  { %v9155_v14 = vpop.f32.mrf.mxu3 }
 0x9e4   :  { %v9220_v26 = vpop.f32.mrf.mxu0 }
 0x9e5   :  { %v8365_v62 = vpop.f32.mrf.mxu2 }
 0x9e6   :  { %v19375_v41 = vadd.f32 %v8365_v62, %v7771_v32  ;;  %v15226_v32 = vld [vmem:[%s20084_s5 + $0x638] sm:$0xff]  ;;  %v15228_v62 = vld [vmem:[%s20084_s5 + $0x648] sm:$0xff] }
 0x9e8   :  { %20272 = vst [vmem:[#allocation12_spill] sm:$0xff] %v19375_v41 }
 0x9eb   :  { %14147 = vmatmul.msk.bf16.gmra.mxu1 %vm1313_vm1, %v15225_v58  ;;  %v9157_v35 = vpop.f32.mrf.mxu3 }
 0x9ed   :  { %v19381_v61 = vpop.f32.mrf.mxu2 }
 0x9ee   :  { %20273 = vst [vmem:[#allocation21_spill] sm:$0xff] %v19381_v61  ;;  %v9223_v9 = vpop.f32.mrf.mxu0 }
 0x9f3   :  { %v9298_v50 = vpop.f32.mrf.mxu3 }
 0x9f4   :  { %v19383_v34 = vadd.f32 %v9298_v50, %v9214_v45 }
 0x9f5   :  { %v19385_v31 = vpop.f32.mrf.mxu2 }
 0x9f6   :  { %v9225_v45 = vpop.f32.mrf.mxu0 }
 0x9f7   :  { %v9226_v63 = vadd.f32 %v9225_v45, %v9152_v36 }
 0x9fb   :  { %14148 = vmatmul.msk.bf16.gmra.mxu1 %vm1313_vm1, %v15226_v32  ;;  %v9300_v37 = vpop.f32.mrf.mxu3 }
 0x9fd   :  { %v19391_v33 = vpop.f32.mrf.mxu2 }
 0xa02   :  { %v9228_v32 = vpop.f32.mrf.mxu0 }
 0xa03   :  { %v9303_v3 = vpop.f32.mrf.mxu3  ;;  %v9229_v49 = vadd.f32 %v9228_v32, %v9155_v14  ;;  %v9219_v32 = vadd.f32 %v9218_v57, %v19338_v20  ;;  %v20274_v20 = vld [vmem:[#allocation20_spill] sm:$0xff] }
 0xa05   :  { %v19393_v4 = vpop.f32.mrf.mxu2 }
 0xa08   :  { %v8919_v15 = vpop.f32.mrf.mxu1 }
 0xa09   :  { %v19399_v28 = vadd.f32 %v8919_v15, %v19011_v53 }
 0xa0a   :  { %v9230_v61 = vpop.f32.mrf.mxu0 }
 0xa0b   :  { %14149 = vmatmul.msk.bf16.gmra.mxu1 %vm1313_vm1, %v15227_v56  ;;  %v9305_v42 = vpop.f32.mrf.mxu3  ;;  %v9231_v8 = vadd.f32 %v9230_v61, %v9157_v35 }
 0xa0d   :  { %v19402_v43 = vpop.f32.mrf.mxu2 }
 0xa10   :  { %v8921_v21 = vpop.f32.mrf.mxu1 }
 0xa11   :  { %v19405_v48 = vadd.f32 %v8921_v21, %v19021_v2 }
 0xa13   :  { %v9308_v47 = vpop.f32.mrf.mxu3 }
 0xa15   :  { %v19407_v19 = vpop.f32.mrf.mxu2 }
 0xa18   :  { %v8924_v58 = vpop.f32.mrf.mxu1 }
 0xa19   :  { %v19413_v53 = vadd.f32 %v8924_v58, %v19033_v25  ;;  %v15229_v25 = vld [vmem:[%s20084_s5 + $0x650] sm:$0xff]  ;;  %v9224_v58 = vadd.f32 %v9223_v9, %v9150_v22 }
 0xa1b   :  { %14150 = vmatmul.msk.bf16.gmra.mxu1 %vm1313_vm1, %v15228_v62  ;;  %v9310_v50 = vpop.f32.mrf.mxu3  ;;  %v9322_v36 = vadd.f32 %v9308_v47, %v9224_v58 }
 0xa1d   :  { %v19416_v56 = vpop.f32.mrf.mxu2 }
 0xa20   :  { %v8926_v2 = vpop.f32.mrf.mxu1 }
 0xa21   :  { %v19419_v15 = vadd.f32 %v8926_v2, %v19043_v7  ;;  %v9221_v7 = vadd.f32 %v9220_v26, %v19347_v29  ;;  %v9323_v2 = vadd.f32 %v9310_v50, %v9226_v63  ;;  %v9320_v29 = vadd.f32 %v9303_v3, %v9219_v32  ;;  %v20275_v32 = vld [vmem:[#allocation28_spill] sm:$0xff] }
 0xa22   :  { %v9330_v63 = vadd.f32 %v9322_v36, %v16532_v59 }
 0xa23   :  { %v9313_v21 = vpop.f32.mrf.mxu3  ;;  %v9321_v22 = vadd.f32 %v9305_v42, %v9221_v7  ;;  %v9326_v7 = vadd.f32 %v19383_v34, %v16566_v39  ;;  %v15253_v34 = vld [vmem:[%s20084_s5 + $0x680] sm:$0xff] }
 0xa24   :  { %v9324_v62 = vadd.f32 %v9313_v21, %v9229_v49  ;;  %v9216_v49 = vadd.f32 %v9215_v0, %v19326_v23  ;;  %v9328_v0 = vadd.f32 %v9320_v29, %v16535_v12  ;;  %v9338_v42 = vmax.f32 %v9330_v63, 0.0  ;;  %v20276_v63 = vld [vmem:[#allocation13_spill] sm:$0xff] }
 0xa25   :  { %v19421_v5 = vpop.f32.mrf.mxu2 }
 0xa26   :  { %v9332_v45 = vadd.f32 %v9324_v62, %v16521_v44  ;;  %v9319_v9 = vadd.f32 %v9300_v37, %v9216_v49  ;;  %v15230_v37 = vld [vmem:[%s20084_s5 + $0x658] sm:$0xff] }
 0xa28   :  { %v8929_v41 = vpop.f32.mrf.mxu1  ;;  %v9340_v35 = vmax.f32 %v9332_v45, 0.0  ;;  %v9327_v21 = vadd.f32 %v9319_v9, %v16561_v38 }
 0xa29   :  { %v19427_v52 = vadd.f32 %v8929_v41, %v19055_v24  ;;  %v9331_v24 = vadd.f32 %v9323_v2, %v16544_v27  ;;  %v9336_v2 = vmax.f32 %v9328_v0, 0.0  ;;  %v15254_v0 = vld [vmem:[%s20084_s5 + $0x688] sm:$0xff] }
 0xa2a   :  { %v9335_v36 = vmax.f32 %v9327_v21, 0.0 }
 0xa2b   :  { %14151 = vmatmul.msk.bf16.gmra.mxu1 %vm1313_vm1, %v15229_v25  ;;  %v9315_v14 = vpop.f32.mrf.mxu3  ;;  %v9339_v47 = vmax.f32 %v9331_v24, 0.0 }
 0xa2c   :  { %v9325_v60 = vadd.f32 %v9315_v14, %v9231_v8  ;;  %v9329_v8 = vadd.f32 %v9321_v22, %v16553_v6  ;;  %v9334_v22 = vmax.f32 %v9326_v7, 0.0  ;;  %v20279_v7 = vld [vmem:[#allocation11_spill] sm:$0xff] }
 0xa2d   :  { %v19433_v46 = vpop.f32.mrf.mxu2  ;;  %v9344_v62 = vpack.c.bf16 %v9339_v47, %v9338_v42 }
 0xa2e   :  { %v9333_v41 = vadd.f32 %v9325_v60, %v16523_v1  ;;  %v9337_v25 = vmax.f32 %v9329_v8, 0.0  ;;  %v20277_v8 = vld [vmem:[#allocation10_spill] sm:$0xff] }
 0xa30   :  { %v9341_v61 = vmax.f32 %v9333_v41, 0.0  ;;  %v8931_v26 = vpop.f32.mrf.mxu1  ;;  %v9343_v45 = vpack.c.bf16 %v9337_v25, %v9336_v2  ;;  %v9342_v41 = vpack.c.bf16 %v9335_v36, %v9334_v22  ;;  %v15255_v36 = vld [vmem:[%s20084_s5 + $0x690] sm:$0xff]  ;;  %v20280_v22 = vld [vmem:[#allocation7_spill] sm:$0xff] }
 0xa31   :  { %v19440_v57 = vadd.f32 %v8931_v26, %v20274_v20  ;;  %v15231_v20 = vld [vmem:[%s20084_s5 + $0x660] sm:$0xff] }
 0xa32   :  { %v9345_v50 = vpack.c.bf16 %v9341_v61, %v9340_v35 }
 0xa33   :  { %v9842_v23 = vpop.f32.mrf.mxu3 }
 0xa34   :  { %v9843_v60 = vadd.f32 %v9842_v23, %v19385_v31  ;;  %9543 = vmatpush.bf16.msrb.mxu0 %v9345_v50 }
 0xa35   :  { %v9927_v3 = vpop.f32.mrf.mxu2 }
 0xa36   :  { %v19446_v58 = vadd.f32 %v9927_v3, %v9843_v60  ;;  %v20278_v60 = vld [vmem:[#allocation16_spill] sm:$0xff] }
 0xa38   :  { %v8934_v14 = vpop.f32.mrf.mxu1  ;;  %9544 = vmatpush.bf16.msrb.mxu0 %v9344_v62  ;;  %v15232_v62 = vld [vmem:[%s20084_s5 + $0x668] sm:$0xff] }
 0xa39   :  { %v19454_v31 = vadd.f32 %v8934_v14, %v20275_v32 }
 0xa3b   :  { %14152 = vmatmul.msk.bf16.gmra.mxu1 %vm1313_vm1, %v15230_v37  ;;  %v9844_v49 = vpop.f32.mrf.mxu3 }
 0xa3c   :  { %9545 = vmatpush.bf16.msrb.mxu0 %v9343_v45 }
 0xa3d   :  { %v19457_v24 = vpop.f32.mrf.mxu2 }
 0xa40   :  { %v8936_v29 = vpop.f32.mrf.mxu1  ;;  %9546 = vmatpush.bf16.msrb.mxu0 %v9342_v41 }
 0xa41   :  { %v19463_v35 = vadd.f32 %v8936_v29, %v20276_v63  ;;  %v15303_v63 = vld [vmem:[%s20082_s3] sm:$0xff] }
 0xa42   :  { %14641 = vmatmul.msk.bf16.vlgmr.msra.gmra.mxu2 %vm900_vm0, %v15303_v63 }
 0xa43   :  { %14353 = vmatmul.msk.bf16.vlgmr.msrb.gmra.mxu0 %vm1313_vm1, %v15253_v34  ;;  %v9847_v61 = vpop.f32.mrf.mxu3 }
 0xa45   :  { %v9932_v26 = vpop.f32.mrf.mxu2 }
 0xa48   :  { %v8939_v9 = vpop.f32.mrf.mxu1 }
 0xa49   :  { %v19470_v47 = vadd.f32 %v8939_v9, %v20277_v8  ;;  %v15233_v9 = vld [vmem:[%s20084_s5 + $0x670] sm:$0xff] }
 0xa4b   :  { %14153 = vmatmul.msk.bf16.gmra.mxu1 %vm1313_vm1, %v15231_v20  ;;  %v9849_v50 = vpop.f32.mrf.mxu3 }
 0xa4d   :  { %v9934_v23 = vpop.f32.mrf.mxu2 }
 0xa50   :  { %v8941_v42 = vpop.f32.mrf.mxu1 }
 0xa51   :  { %v19477_v3 = vadd.f32 %v8941_v42, %v20278_v60  ;;  %v20281_v42 = vld [vmem:[#allocation23_spill] sm:$0xff] }
 0xa53   :  { %14354 = vmatmul.msk.bf16.gmra.mxu0 %vm1313_vm1, %v15254_v0  ;;  %v9852_v21 = vpop.f32.mrf.mxu3 }
 0xa55   :  { %v9937_v25 = vpop.f32.mrf.mxu2 }
 0xa58   :  { %v8944_v37 = vpop.f32.mrf.mxu1 }
 0xa59   :  { %v19484_v2 = vadd.f32 %v8944_v37, %v20279_v7 }
 0xa5b   :  { %14154 = vmatmul.msk.bf16.gmra.mxu1 %vm1313_vm1, %v15232_v62  ;;  %v9854_v14 = vpop.f32.mrf.mxu3  ;;  %v9853_v62 = vadd.f32 %v9852_v21, %v19407_v19  ;;  %v15256_v19 = vld [vmem:[%s20084_s5 + $0x698] sm:$0xff]  ;;  %v9845_v21 = vadd.f32 %v9844_v49, %v19391_v33 }
 0xa5c   :  { %v9855_v8 = vadd.f32 %v9854_v14, %v19416_v56 }
 0xa5d   :  { %v9939_v32 = vpop.f32.mrf.mxu2  ;;  %v9951_v63 = vadd.f32 %v9937_v25, %v9853_v62 }
 0xa60   :  { %v8946_v45 = vpop.f32.mrf.mxu1 }
 0xa61   :  { %v19491_v41 = vadd.f32 %v8946_v45, %v20280_v22 }
 0xa63   :  { %14355 = vmatmul.msk.bf16.gmra.mxu0 %vm1313_vm1, %v15255_v36  ;;  %v9857_v34 = vpop.f32.mrf.mxu3  ;;  %v9952_v36 = vadd.f32 %v9939_v32, %v9855_v8  ;;  %v9948_v8 = vadd.f32 %v19457_v24, %v9845_v21 }
 0xa64   :  { %v9858_v20 = vadd.f32 %v9857_v34, %v19421_v5  ;;  %v9850_v5 = vadd.f32 %v9849_v50, %v19402_v43  ;;  %v9848_v34 = vadd.f32 %v9847_v61, %v19393_v4  ;;  %v9959_v61 = vadd.f32 %v9951_v63, %v16532_v59 }
 0xa65   :  { %v9942_v29 = vpop.f32.mrf.mxu2  ;;  %v9956_v24 = vadd.f32 %v9948_v8, %v16561_v38 }
 0xa66   :  { %v9953_v37 = vadd.f32 %v9942_v29, %v9858_v20  ;;  %v9950_v29 = vadd.f32 %v9934_v23, %v9850_v5  ;;  %v9960_v20 = vadd.f32 %v9952_v36, %v16544_v27  ;;  %v9949_v4 = vadd.f32 %v9932_v26, %v9848_v34  ;;  %v15234_v26 = vld [vmem:[%s20084_s5 + $0x678] sm:$0xff] }
 0xa67   :  { %v9967_v62 = vmax.f32 %v9959_v61, 0.0  ;;  %v20284_v36 = vld [vmem:[#allocation27_spill] sm:$0xff]  ;;  %v9964_v63 = vmax.f32 %v9956_v24, 0.0  ;;  %v14675_v24 = vld [vmem:[#allocation2 + $0xd4] sm:$0xf] }
 0xa68   :  { %v8949_v0 = vpop.f32.mrf.mxu1  ;;  %v9961_v56 = vadd.f32 %v9953_v37, %v16521_v44  ;;  %v9958_v33 = vadd.f32 %v9950_v29, %v16553_v6  ;;  %v9968_v49 = vmax.f32 %v9960_v20, 0.0  ;;  %v20286_v20 = vld [vmem:[#allocation17_spill] sm:$0xff] }
 0xa69   :  { %v19504_v60 = vadd.f32 %v8949_v0, %v20281_v42  ;;  %v15304_v0 = vld [vmem:[%s20082_s3 + $0x8] sm:$0xff]  ;;  %v9957_v42 = vadd.f32 %v9949_v4, %v16535_v12 }
 0xa6a   :  { %v9969_v25 = vmax.f32 %v9961_v56, 0.0  ;;  %14642 = vmatmul.msk.bf16.gmra.mxu2 %vm900_vm0, %v15304_v0  ;;  %v9966_v37 = vmax.f32 %v9958_v33, 0.0  ;;  %v9973_v5 = vpack.c.bf16 %v9968_v49, %v9967_v62  ;;  %v15288_v33 = vld [vmem:[%s20084_s5 + $0x708] sm:$0xff]  ;;  %v15259_v0 = vld [vmem:[%s20084_s5 + $0x6b0] sm:$0xff] }
 0xa6b   :  { %14155 = vmatmul.msk.bf16.gmra.mxu1 %vm1313_vm1, %v15233_v9  ;;  %v9859_v7 = vpop.f32.mrf.mxu3  ;;  %v9965_v34 = vmax.f32 %v9957_v42, 0.0  ;;  %v15310_v49 = vld [vmem:[%s20082_s3 + $0x28] sm:$0xff] }
 0xa6c   :  { %v9860_v45 = vadd.f32 %v9859_v7, %v19433_v46  ;;  %v20282_v46 = vld [vmem:[#allocation25_spill] sm:$0xff] }
 0xa6d   :  { %v9944_v22 = vpop.f32.mrf.mxu2  ;;  %v9972_v56 = vpack.c.bf16 %v9966_v37, %v9965_v34  ;;  %v15320_v37 = vld [vmem:[#allocation2 + $0x118] sm:$0xf0] }
 0xa6e   :  { %v9954_v14 = vadd.f32 %v9944_v22, %v9860_v45  ;;  %v9955_v22 = vadd.f32 %v19446_v58, %v16566_v39  ;;  %v15287_v58 = vld [vmem:[%s20084_s5 + $0x700] sm:$0xff] }
 0xa70   :  { %v9962_v43 = vadd.f32 %v9954_v14, %v16523_v1  ;;  %v8951_v50 = vpop.f32.mrf.mxu1  ;;  %v9963_v14 = vmax.f32 %v9955_v22, 0.0  ;;  %v15319_v22 = vld [vmem:[#allocation2 + $0x88] sm:$0xf0] }
 0xa71   :  { %v19519_v32 = vadd.f32 %v8951_v50, %v20282_v46  ;;  %v15305_v50 = vld [vmem:[%s20082_s3 + $0x10] sm:$0xff]  ;;  %v15309_v46 = vld [vmem:[%s20082_s3 + $0x20] sm:$0xff] }
 0xa72   :  { %v9970_v9 = vmax.f32 %v9962_v43, 0.0  ;;  %v9971_v29 = vpack.c.bf16 %v9964_v63, %v9963_v14  ;;  %v15260_v63 = vld [vmem:[%s20084_s5 + $0x6b8] sm:$0xff] }
 0xa73   :  { %20283 = vst [vmem:[#allocation9_spill] sm:$0xff] %v19519_v32  ;;  %14356 = vmatmul.msk.bf16.gmra.mxu0 %vm1313_vm1, %v15256_v19  ;;  %v15257_v19 = vld [vmem:[%s20084_s5 + $0x6a0] sm:$0xff] }
 0xa74   :  { %v9974_v23 = vpack.c.bf16 %v9970_v9, %v9969_v25  ;;  %v15258_v25 = vld [vmem:[%s20084_s5 + $0x6a8] sm:$0xff] }
 0xa76   :  { %10172 = vmatpush.bf16.msra.mxu3 %v9974_v23 }
 0xa78   :  { %v8954_v7 = vpop.f32.mrf.mxu1 }
 0xa79   :  { %v19535_v45 = vadd.f32 %v8954_v7, %v20284_v36  ;;  %v15311_v7 = vld [vmem:[%s20082_s3 + $0x30] sm:$0xff]  ;;  %v14671_v36 = vld [vmem:[#allocation2 + $0x44] sm:$0xf] }
 0xa7a   :  { %10173 = vmatpush.bf16.msra.mxu3 %v9973_v5  ;;  %14643 = vmatmul.msk.bf16.gmra.mxu2 %vm900_vm0, %v15305_v50  ;;  %v14672_v34 = vor.u32 %v15319_v22, %v14671_v36 }
 0xa7b   :  { %20285 = vst [vmem:[#allocation22_spill] sm:$0xff] %v19535_v45  ;;  %14156 = vmatmul.msk.bf16.gmra.mxu1 %vm1313_vm1, %v15234_v26  ;;  %v15289_v26 = vld [vmem:[%s20084_s5 + $0x710] sm:$0xff] }
 0xa7e   :  { %10174 = vmatpush.bf16.msra.mxu3 %v9972_v56 }
 0xa80   :  { %v8956_v21 = vpop.f32.mrf.mxu1 }
 0xa81   :  { %v19544_v43 = vadd.f32 %v8956_v21, %v20286_v20 }
 0xa82   :  { %10175 = vmatpush.bf16.msra.mxu3 %v9971_v29 }
 0xa83   :  { %20287 = vst [vmem:[#allocation20_spill] sm:$0xff] %v19544_v43  ;;  %14357 = vmatmul.msk.bf16.gmra.mxu0 %vm1313_vm1, %v15257_v19  ;;  %v15290_v19 = vld [vmem:[%s20084_s5 + $0x718] sm:$0xff] }
 0xa85   :  { %14565 = vmatmul.msk.bf16.vlgmr.msra.gmra.mxu3 %vm1313_vm1, %v15287_v58 }
 0xa88   :  { %v8959_v4 = vpop.f32.mrf.mxu1 }
 0xa89   :  { %v19559_v61 = vadd.f32 %v8959_v4, %v19209_v40  ;;  %v15306_v40 = vld [vmem:[%s20082_s3 + $0x18] sm:$0xff]  ;;  %v15291_v4 = vld [vmem:[%s20084_s5 + $0x720] sm:$0xff] }
 0xa8a   :  { %14644 = vmatmul.msk.bf16.gmra.mxu2 %vm900_vm0, %v15306_v40 }
 0xa8b   :  { %14613 = vmatmul.msk.bf16.vlgmr.msrb.gmra.mxu1 %vm900_vm0, %v15309_v46 }
 0xa90   :  { %v8961_v9 = vpop.f32.mrf.mxu1 }
 0xa91   :  { %v19566_v8 = vadd.f32 %v8961_v9, %v19232_v54 }
 0xa93   :  { %14358 = vmatmul.msk.bf16.gmra.mxu0 %vm1313_vm1, %v15258_v25 }
 0xa95   :  { %14566 = vmatmul.msk.bf16.gmra.mxu3 %vm1313_vm1, %v15288_v33  ;;  %v15262_v33 = vld [vmem:[%s20084_s5 + $0x6c8] sm:$0xff] }
 0xa98   :  { %v8964_v54 = vpop.f32.mrf.mxu1 }
 0xa99   :  { %v19581_v23 = vadd.f32 %v8964_v54, %v19245_v51  ;;  %v14676_v51 = vor.u32 %v15320_v37, %v14675_v24  ;;  %v20290_v24 = vld [vmem:[#allocation19_spill] sm:$0xff] }
 0xa9a   :  { %v8397_v37 = vadd.f32 %v20290_v24, %v19257_v30  ;;  %v15317_v30 = vld [vmem:[%s20082_s3 + $0x50] sm:$0xff]  ;;  %v15265_v24 = vld [vmem:[%s20084_s5 + $0x6e0] sm:$0xff] }
 0xa9b   :  { %14614 = vmatmul.msk.bf16.gmra.mxu1 %vm900_vm0, %v15310_v49 }
 0xa9c   :  { %10553 = vmatpush.bf16.msra.mxu1 %v14676_v51  ;;  %v15263_v51 = vld [vmem:[%s20084_s5 + $0x6d0] sm:$0xff] }
 0xaa0   :  { %v8966_v42 = vpop.f32.mrf.mxu1  ;;  %10554 = vmatpush.bf16.msra.mxu1 %v14672_v34 }
 0xaa1   :  { %v19588_v62 = vadd.f32 %v8966_v42, %v19264_v11 }
 0xaa3   :  { %14359 = vmatmul.msk.bf16.gmra.mxu0 %vm1313_vm1, %v15259_v0 }
 0xaa5   :  { %14567 = vmatmul.msk.bf16.gmra.mxu3 %vm1313_vm1, %v15289_v26 }
 0xaa8   :  { %v8969_v5 = vpop.f32.mrf.mxu1 }
 0xaa9   :  { %v19599_v11 = vadd.f32 %v8969_v5, %v19273_v10  ;;  %v15312_v10 = vld [vmem:[%s20082_s3 + $0x38] sm:$0xff] }
 0xaab   :  { %14615 = vmatmul.msk.bf16.gmra.mxu1 %vm900_vm0, %v15311_v7 }
 0xab0   :  { %v8971_v56 = vpop.f32.mrf.mxu1 }
 0xab1   :  { %v19606_v14 = vadd.f32 %v8971_v56, %v19288_v17  ;;  %v15261_v17 = vld [vmem:[%s20084_s5 + $0x6c0] sm:$0xff] }
 0xab3   :  { %14360 = vmatmul.msk.bf16.gmra.mxu0 %vm1313_vm1, %v15260_v63  ;;  %v20292_v63 = vld [vmem:[#allocation18_spill] sm:$0xff] }
 0xab5   :  { %14568 = vmatmul.msk.bf16.gmra.mxu3 %vm1313_vm1, %v15290_v19 }
 0xab8   :  { %v8974_v21 = vpop.f32.mrf.mxu1 }
 0xab9   :  { %v19617_v29 = vadd.f32 %v8974_v21, %v19297_v55  ;;  %v15315_v55 = vld [vmem:[%s20082_s3 + $0x40] sm:$0xff] }
 0xabb   :  { %14616 = vmatmul.msk.bf16.gmra.mxu1 %vm900_vm0, %v15312_v10  ;;  %v20295_v10 = vld [vmem:[#allocation15_spill] sm:$0xff] }
 0xac0   :  { %v8976_v20 = vpop.f32.mrf.mxu1  ;;  %v9548_v58 = vpop.f32.mrf.mxu0 }
 0xac1   :  { %v19624_v50 = vadd.f32 %v8976_v20, %v19312_v18  ;;  %v19627_v46 = vadd.f32 %v9548_v58, %v19399_v28 }
 0xac3   :  { %14361 = vmatmul.msk.bf16.gmra.mxu0 %vm1313_vm1, %v15261_v17  ;;  %v15264_v17 = vld [vmem:[%s20084_s5 + $0x6d8] sm:$0xff] }
 0xac5   :  { %14569 = vmatmul.msk.bf16.gmra.mxu3 %vm1313_vm1, %v15291_v4 }
 0xac8   :  { %v8979_v25 = vpop.f32.mrf.mxu1  ;;  %v9550_v9 = vpop.f32.mrf.mxu0 }
 0xac9   :  { %v19638_v18 = vadd.f32 %v8979_v25, %v19320_v13  ;;  %v19641_v28 = vadd.f32 %v9550_v9, %v19405_v48  ;;  %v15292_v13 = vld [vmem:[%s20084_s5 + $0x728] sm:$0xff]  ;;  %v15294_v25 = vld [vmem:[%s20084_s5 + $0x738] sm:$0xff] }
 0xaca   :  { %v15316_v48 = vld [vmem:[%s20082_s3 + $0x48] sm:$0xff] }
 0xacb   :  { %14677 = vmatmul.msk.bf16.vlgmr.msra.gmra.mxu1 %vm900_vm0, %v15315_v55 }
 0xad0   :  { %v19647_v40 = vpop.f32.mrf.mxu1  ;;  %v9553_v49 = vpop.f32.mrf.mxu0 }
 0xad1   :  { %20288 = vst [vmem:[#allocation28_spill] sm:$0xff] %v19647_v40  ;;  %v19650_v54 = vadd.f32 %v9553_v49, %v19413_v53  ;;  %v20297_v49 = vld [vmem:[#allocation12_spill] sm:$0xff]  ;;  %v15301_v40 = vld [vmem:[%s20084_s5 + $0x770] sm:$0xff] }
 0xad3   :  { %14362 = vmatmul.msk.bf16.gmra.mxu0 %vm1313_vm1, %v15262_v33 }
 0xad5   :  { %14570 = vmatmul.msk.bf16.gmra.mxu3 %vm1313_vm1, %v15292_v13 }
 0xad8   :  { %v8984_v0 = vpop.f32.mrf.mxu1  ;;  %v9555_v42 = vpop.f32.mrf.mxu0 }
 0xad9   :  { %v19661_v26 = vadd.f32 %v8984_v0, %v19341_v16  ;;  %v9631_v53 = vadd.f32 %v9555_v42, %v19419_v15  ;;  %v15293_v16 = vld [vmem:[%s20084_s5 + $0x730] sm:$0xff]  ;;  %v20300_v0 = vld [vmem:[#allocation21_spill] sm:$0xff] }
 0xadb   :  { %20289 = vst [vmem:[#allocation13_spill] sm:$0xff] %v19661_v26  ;;  %14678 = vmatmul.msk.bf16.gmra.mxu1 %vm900_vm0, %v15316_v48 }
 0xae0   :  { %v8986_v7 = vpop.f32.mrf.mxu1  ;;  %v9558_v5 = vpop.f32.mrf.mxu0 }
 0xae1   :  { %v19670_v36 = vadd.f32 %v8986_v7, %v8397_v37  ;;  %v9632_v22 = vadd.f32 %v9558_v5, %v19427_v52  ;;  %v20294_v52 = vld [vmem:[#allocation24_spill] sm:$0xff] }
 0xae2   :  { %v8399_v21 = vadd.f32 %v20295_v10, %v20294_v52 }
 0xae3   :  { %20291 = vst [vmem:[#allocation10_spill] sm:$0xff] %v19670_v36  ;;  %14363 = vmatmul.msk.bf16.gmra.mxu0 %vm1313_vm1, %v15263_v51 }
 0xae5   :  { %14571 = vmatmul.msk.bf16.gmra.mxu3 %vm1313_vm1, %v15293_v16  ;;  %v15295_v16 = vld [vmem:[%s20084_s5 + $0x740] sm:$0xff] }
 0xae8   :  { %v8989_v15 = vpop.f32.mrf.mxu1  ;;  %v9560_v34 = vpop.f32.mrf.mxu0 }
 0xae9   :  { %v19682_v56 = vadd.f32 %v8989_v15, %v20292_v63  ;;  %v9633_v19 = vadd.f32 %v9560_v34, %v19440_v57  ;;  %v15318_v57 = vld [vmem:[%s20082_s3 + $0x58] sm:$0xff] }
 0xaeb   :  { %20293 = vst [vmem:[#allocation16_spill] sm:$0xff] %v19682_v56  ;;  %14679 = vmatmul.msk.bf16.gmra.mxu1 %vm900_vm0, %v15317_v30 }
 0xaf0   :  { %v8991_v20 = vpop.f32.mrf.mxu1  ;;  %v9563_v58 = vpop.f32.mrf.mxu0 }
 0xaf1   :  { %v19691_v4 = vadd.f32 %v8991_v20, %v8399_v21  ;;  %v9634_v55 = vadd.f32 %v9563_v58, %v19454_v31  ;;  %v20299_v31 = vld [vmem:[#allocation26_spill] sm:$0xff]  ;;  %v15296_v58 = vld [vmem:[%s20084_s5 + $0x748] sm:$0xff] }
 0xaf2   :  { %v8401_v42 = vadd.f32 %v20300_v0, %v20299_v31 }
 0xaf3   :  { %20296 = vst [vmem:[#allocation11_spill] sm:$0xff] %v19691_v4  ;;  %14364 = vmatmul.msk.bf16.gmra.mxu0 %vm1313_vm1, %v15264_v17 }
 0xaf5   :  { %14572 = vmatmul.msk.bf16.gmra.mxu3 %vm1313_vm1, %v15294_v25 }
 0xaf8   :  { %v8994_v9 = vpop.f32.mrf.mxu1  ;;  %v9565_v33 = vpop.f32.mrf.mxu0 }
 0xaf9   :  { %v19703_v13 = vadd.f32 %v8994_v9, %v20297_v49  ;;  %v9635_v48 = vadd.f32 %v9565_v33, %v19463_v35  ;;  %v10471_v35 = vpop.f32.mrf.mxu2 }
 0xafb   :  { %20298 = vst [vmem:[#allocation7_spill] sm:$0xff] %v19703_v13  ;;  %14680 = vmatmul.msk.bf16.gmra.mxu1 %vm900_vm0, %v15318_v57 }
 0xb00   :  { %v8996_v37 = vpop.f32.mrf.mxu1  ;;  %v9568_v51 = vpop.f32.mrf.mxu0 }
 0xb01   :  { %v19712_v7 = vadd.f32 %v8996_v37, %v8401_v42  ;;  %v9636_v5 = vadd.f32 %v9568_v51, %v19470_v47  ;;  %v15266_v47 = vld [vmem:[%s20084_s5 + $0x6e8] sm:$0xff]  ;;  %v15297_v42 = vld [vmem:[%s20084_s5 + $0x750] sm:$0xff] }
 0xb03   :  { %20301 = vst [vmem:[#allocation23_spill] sm:$0xff] %v19712_v7  ;;  %14365 = vmatmul.msk.bf16.gmra.mxu0 %vm1313_vm1, %v15265_v24 }
 0xb05   :  { %14573 = vmatmul.msk.bf16.gmra.mxu3 %vm1313_vm1, %v15295_v16 }
 0xb08   :  { %v19720_v30 = vpop.f32.mrf.mxu0  ;;  %v10177_v15 = vpop.f32.mrf.mxu3 }
 0xb09   :  { %v19723_v34 = vadd.f32 %v10177_v15, %v19627_v46  ;;  %v10398_v63 = vpop.f32.mrf.mxu1 }
 0xb0a   :  { %v10472_v52 = vadd.f32 %v10471_v35, %v10398_v63 }
 0xb10   :  { %v19728_v10 = vpop.f32.mrf.mxu0  ;;  %v10179_v21 = vpop.f32.mrf.mxu3 }
 0xb11   :  { %v19731_v17 = vadd.f32 %v10179_v21, %v19641_v28  ;;  %v19733_v20 = vpop.f32.mrf.mxu1  ;;  %v15267_v28 = vld [vmem:[%s20084_s5 + $0x6f0] sm:$0xff] }
 0xb13   :  { %14366 = vmatmul.msk.bf16.gmra.mxu0 %vm1313_vm1, %v15266_v47  ;;  %v15298_v47 = vld [vmem:[%s20084_s5 + $0x758] sm:$0xff] }
 0xb15   :  { %14574 = vmatmul.msk.bf16.gmra.mxu3 %vm1313_vm1, %v15296_v58 }
 0xb18   :  { %v19740_v46 = vpop.f32.mrf.mxu0  ;;  %v10182_v25 = vpop.f32.mrf.mxu3 }
 0xb19   :  { %v19743_v57 = vadd.f32 %v10182_v25, %v19650_v54  ;;  %v10403_v9 = vpop.f32.mrf.mxu1 }
 0xb20   :  { %v19748_v33 = vpop.f32.mrf.mxu0  ;;  %v10184_v49 = vpop.f32.mrf.mxu3 }
 0xb21   :  { %v19750_v31 = vadd.f32 %v10184_v49, %v9631_v53  ;;  %v10405_v0 = vpop.f32.mrf.mxu1  ;;  %v15268_v53 = vld [vmem:[%s20084_s5 + $0x6f8] sm:$0xff] }
 0xb23   :  { %14367 = vmatmul.msk.bf16.gmra.mxu0 %vm1313_vm1, %v15267_v28 }
 0xb25   :  { %14575 = vmatmul.msk.bf16.gmra.mxu3 %vm1313_vm1, %v15297_v42 }
 0xb28   :  { %v19757_v54 = vpop.f32.mrf.mxu0  ;;  %v10187_v24 = vpop.f32.mrf.mxu3 }
 0xb29   :  { %20302 = vst [vmem:[#allocation25_spill] sm:$0xff] %v19757_v54  ;;  %v19759_v37 = vadd.f32 %v10187_v24, %v9632_v22  ;;  %v10408_v51 = vpop.f32.mrf.mxu1 }
 0xb30   :  { %v19764_v16 = vpop.f32.mrf.mxu0  ;;  %v10189_v35 = vpop.f32.mrf.mxu3 }
 0xb31   :  { %20303 = vst [vmem:[#allocation27_spill] sm:$0xff] %v19764_v16  ;;  %v19766_v15 = vadd.f32 %v10189_v35, %v9633_v19  ;;  %v10410_v63 = vpop.f32.mrf.mxu1  ;;  %v10473_v19 = vpop.f32.mrf.mxu2 }
 0xb33   :  { %14368 = vmatmul.msk.bf16.gmra.mxu0 %vm1313_vm1, %v15268_v53  ;;  %v15299_v53 = vld [vmem:[%s20084_s5 + $0x760] sm:$0xff] }
 0xb35   :  { %14576 = vmatmul.msk.bf16.gmra.mxu3 %vm1313_vm1, %v15298_v47 }
 0xb38   :  { %v19773_v22 = vpop.f32.mrf.mxu0  ;;  %v10192_v21 = vpop.f32.mrf.mxu3 }
 0xb39   :  { %20304 = vst [vmem:[#allocation17_spill] sm:$0xff] %v19773_v22  ;;  %v19775_v58 = vadd.f32 %v10192_v21, %v9634_v55  ;;  %v19777_v25 = vpop.f32.mrf.mxu1  ;;  %v10474_v22 = vadd.f32 %v10473_v19, %v19733_v20 }
 0xb40   :  { %v9588_v28 = vpop.f32.mrf.mxu0  ;;  %v10194_v49 = vpop.f32.mrf.mxu3 }
 0xb41   :  { %v19780_v42 = vadd.f32 %v9588_v28, %v19559_v61  ;;  %v19782_v24 = vadd.f32 %v10194_v49, %v9635_v48  ;;  %v19784_v35 = vpop.f32.mrf.mxu1  ;;  %v10476_v28 = vpop.f32.mrf.mxu2 }
 0xb42   :  { %v10477_v43 = vadd.f32 %v10476_v28, %v10403_v9 }
 0xb45   :  { %14577 = vmatmul.msk.bf16.gmra.mxu3 %vm1313_vm1, %v15299_v53  ;;  %v15300_v53 = vld [vmem:[%s20084_s5 + $0x768] sm:$0xff] }
 0xb48   :  { %v9590_v55 = vpop.f32.mrf.mxu0  ;;  %v10197_v47 = vpop.f32.mrf.mxu3 }
 0xb49   :  { %v19791_v21 = vadd.f32 %v9590_v55, %v19566_v8  ;;  %v19793_v7 = vadd.f32 %v10197_v47, %v9636_v5  ;;  %v10556_v13 = vpop.f32.mrf.mxu1  ;;  %v10478_v36 = vpop.f32.mrf.mxu2 }
 0xb4a   :  { %v10576_v61 = vadd.f32 %v10556_v13, %v10472_v52 }
 0xb50   :  { %v9593_v48 = vpop.f32.mrf.mxu0  ;;  %v19795_v49 = vpop.f32.mrf.mxu3 }
 0xb51   :  { %20305 = vst [vmem:[#allocation19_spill] sm:$0xff] %v19795_v49  ;;  %v19798_v4 = vadd.f32 %v9593_v48, %v19581_v23  ;;  %v10558_v56 = vpop.f32.mrf.mxu1  ;;  %v10481_v55 = vpop.f32.mrf.mxu2 }
 0xb52   :  { %v10482_v9 = vadd.f32 %v10481_v55, %v10408_v51 }
 0xb55   :  { %14578 = vmatmul.msk.bf16.gmra.mxu3 %vm1313_vm1, %v15300_v53  ;;  %v10479_v53 = vadd.f32 %v10478_v36, %v10405_v0  ;;  %v10584_v0 = vadd.f32 %v10576_v61, %v16566_v39 }
 0xb57   :  { %v10592_v28 = vmax.f32 %v10584_v0, 0.0 }
 0xb58   :  { %v9595_v8 = vpop.f32.mrf.mxu0  ;;  %v19804_v5 = vpop.f32.mrf.mxu3 }
 0xb59   :  { %v19807_v13 = vadd.f32 %v9595_v8, %v19588_v62  ;;  %v10561_v52 = vpop.f32.mrf.mxu1  ;;  %v10577_v62 = vadd.f32 %v10558_v56, %v10474_v22  ;;  %v10483_v32 = vpop.f32.mrf.mxu2 }
 0xb5a   :  { %v10578_v8 = vadd.f32 %v10561_v52, %v10477_v43  ;;  %v10484_v19 = vadd.f32 %v10483_v32, %v10410_v63 }
 0xb5b   :  { %v10585_v36 = vadd.f32 %v10577_v62, %v16561_v38  ;;  %v15302_v38 = vld [vmem:[%s20084_s5 + $0x778] sm:$0xff] }
 0xb5c   :  { %v10586_v20 = vadd.f32 %v10578_v8, %v16535_v12 }
 0xb5d   :  { %v10593_v56 = vmax.f32 %v10585_v36, 0.0 }
 0xb5e   :  { %v10594_v22 = vmax.f32 %v10586_v20, 0.0 }
 0xb5f   :  { %v10600_v51 = vpack.c.bf16 %v10593_v56, %v10592_v28 }
 0xb60   :  { %v9598_v47 = vpop.f32.mrf.mxu0  ;;  %v19809_v26 = vpop.f32.mrf.mxu3 }
 0xb61   :  { %v19812_v23 = vadd.f32 %v9598_v47, %v19599_v11  ;;  %v10563_v48 = vpop.f32.mrf.mxu1 }
 0xb62   :  { %v10579_v16 = vadd.f32 %v10563_v48, %v10479_v53 }
 0xb64   :  { %v10587_v11 = vadd.f32 %v10579_v16, %v16553_v6  ;;  %v10486_v16 = vpop.f32.mrf.mxu2 }
 0xb65   :  { %14579 = vmatmul.msk.bf16.gmra.mxu3 %vm1313_vm1, %v15301_v40  ;;  %v10487_v8 = vadd.f32 %v10486_v16, %v19777_v25 }
 0xb66   :  { %v10595_v40 = vmax.f32 %v10587_v11, 0.0 }
 0xb68   :  { %v9600_v45 = vpop.f32.mrf.mxu0  ;;  %v19819_v54 = vpop.f32.mrf.mxu3  ;;  %v10601_v12 = vpack.c.bf16 %v10595_v40, %v10594_v22 }
 0xb69   :  { %v19823_v47 = vadd.f32 %v9600_v45, %v19606_v14  ;;  %v10566_v49 = vpop.f32.mrf.mxu1 }
 0xb6a   :  { %v10580_v43 = vadd.f32 %v10566_v49, %v10482_v9 }
 0xb6c   :  { %v10588_v14 = vadd.f32 %v10580_v43, %v16532_v59  ;;  %v10488_v11 = vpop.f32.mrf.mxu2 }
 0xb6d   :  { %v10489_v36 = vadd.f32 %v10488_v11, %v19784_v35 }
 0xb6e   :  { %v10596_v32 = vmax.f32 %v10588_v14, 0.0 }
 0xb70   :  { %v9603_v52 = vpop.f32.mrf.mxu0  ;;  %v19828_v48 = vpop.f32.mrf.mxu3 }
 0xb71   :  { %v9650_v6 = vadd.f32 %v9603_v52, %v19617_v29  ;;  %v10568_v45 = vpop.f32.mrf.mxu1 }
 0xb72   :  { %v10581_v39 = vadd.f32 %v10568_v45, %v10484_v19 }
 0xb74   :  { %v10589_v61 = vadd.f32 %v10581_v39, %v16544_v27  ;;  %v15323_v39 = vld [vmem:[%s20084_s5 + $0x790] sm:$0xff] }
 0xb75   :  { %14580 = vmatmul.msk.bf16.gmra.mxu3 %vm1313_vm1, %v15302_v38 }
 0xb76   :  { %v10597_v63 = vmax.f32 %v10589_v61, 0.0 }
 0xb78   :  { %v9605_v49 = vpop.f32.mrf.mxu0  ;;  %v19837_v55 = vpop.f32.mrf.mxu3  ;;  %v10602_v29 = vpack.c.bf16 %v10597_v63, %v10596_v32 }
 0xb79   :  { %v9651_v53 = vadd.f32 %v9605_v49, %v19624_v50  ;;  %v10571_v62 = vpop.f32.mrf.mxu1  ;;  %v15327_v49 = vld [vmem:[%s20084_s5 + $0x7b0] sm:$0xff] }
 0xb7a   :  { %v10582_v59 = vadd.f32 %v10571_v62, %v10487_v8 }
 0xb7c   :  { %v10590_v40 = vadd.f32 %v10582_v59, %v16521_v44  ;;  %v15321_v44 = vld [vmem:[%s20084_s5 + $0x780] sm:$0xff]  ;;  %v19910_v59 = vpop.permute.xlu2 %11166 }
 0xb7d   :  { %20306 = vst [vmem:[#allocation18_spill] sm:$0xff] %v19910_v59  ;;  %v9640_v59 = vadd.f32 %v19748_v33, %v19504_v60 }
 0xb7e   :  { %v10598_v22 = vmax.f32 %v10590_v40, 0.0 }
 0xb80   :  { %v9608_v20 = vpop.f32.mrf.mxu0  ;;  %v19842_v9 = vpop.f32.mrf.mxu3 }
 0xb81   :  { %v9652_v27 = vadd.f32 %v9608_v20, %v19638_v18  ;;  %v10573_v0 = vpop.f32.mrf.mxu1 }
 0xb82   :  { %v10583_v56 = vadd.f32 %v10573_v0, %v10489_v36  ;;  %v19912_v36 = vpop.permute.xlu0 %11171 }
 0xb83   :  { %20307 = vst [vmem:[#allocation24_spill] sm:$0xff] %v19912_v36 }
 0xb84   :  { %v10591_v43 = vadd.f32 %v10583_v56, %v16523_v1 }
 0xb86   :  { %v10599_v50 = vmax.f32 %v10591_v43, 0.0  ;;  %v19928_v43 = vpop.permute.xlu1 %11156 }
 0xb87   :  { %20309 = vst [vmem:[#allocation12_spill] sm:$0xff] %v19928_v43 }
 0xb88   :  { %v10603_v19 = vpack.c.bf16 %v10599_v50, %v10598_v22  ;;  %v10217_v28 = vpop.f32.mrf.mxu3  ;;  %v15331_v50 = vld [vmem:[%s20084_s5 + $0x7d0] sm:$0xff] }
 0xb89   :  { %v19848_v25 = vadd.f32 %v10217_v28, %v19780_v42 }
 0xb8a   :  { %10801 = vmatpush.bf16.msrb.mxu2 %v10603_v19  ;;  %v19926_v56 = vpop.permute.xlu0 %11146 }
 0xb8e   :  { %10802 = vmatpush.bf16.msrb.mxu2 %v10602_v29  ;;  %v15328_v29 = vld [vmem:[%s20084_s5 + $0x7b8] sm:$0xff] }
 0xb90   :  { %v10219_v35 = vpop.f32.mrf.mxu3 }
 0xb91   :  { %v19851_v52 = vadd.f32 %v10219_v35, %v19791_v21  ;;  %v15322_v21 = vld [vmem:[%s20084_s5 + $0x788] sm:$0xff] }
 0xb92   :  { %10803 = vmatpush.bf16.msrb.mxu2 %v10601_v12  ;;  %v19938_v28 = vpop.permute.xlu0 %11091 }
 0xb96   :  { %10804 = vmatpush.bf16.msrb.mxu2 %v10600_v51 }
 0xb98   :  { %v10222_v1 = vpop.f32.mrf.mxu3 }
 0xb99   :  { %v19857_v18 = vadd.f32 %v10222_v1, %v19798_v4  ;;  %14777 = vmatmul.msk.bf16.vlgmr.msrb.gmra.mxu2 %vm1313_vm1, %v15321_v44 }
 0xba0   :  { %v10224_v42 = vpop.f32.mrf.mxu3 }
 0xba1   :  { %v19861_v45 = vadd.f32 %v10224_v42, %v19807_v13 }
 0xba8   :  { %v10227_v38 = vpop.f32.mrf.mxu3 }
 0xba9   :  { %v19867_v12 = vadd.f32 %v10227_v38, %v19812_v23  ;;  %14778 = vmatmul.msk.bf16.gmra.mxu2 %vm1313_vm1, %v15322_v21  ;;  %v15324_v23 = vld [vmem:[%s20084_s5 + $0x798] sm:$0xff] }
 0xbb0   :  { %v10229_v14 = vpop.f32.mrf.mxu3 }
 0xbb1   :  { %v19871_v4 = vadd.f32 %v10229_v14, %v19823_v47  ;;  %v15325_v47 = vld [vmem:[%s20084_s5 + $0x7a0] sm:$0xff]  ;;  %v15332_v14 = vld [vmem:[%s20084_s5 + $0x7d8] sm:$0xff] }
 0xbb8   :  { %v10232_v13 = vpop.f32.mrf.mxu3 }
 0xbb9   :  { %v19876_v51 = vadd.f32 %v10232_v13, %v9650_v6  ;;  %14779 = vmatmul.msk.bf16.gmra.mxu2 %vm1313_vm1, %v15323_v39  ;;  %v15326_v6 = vld [vmem:[%s20084_s5 + $0x7a8] sm:$0xff] }
 0xbc0   :  { %v10234_v16 = vpop.f32.mrf.mxu3 }
 0xbc1   :  { %v19879_v61 = vadd.f32 %v10234_v16, %v9651_v53  ;;  %v15329_v53 = vld [vmem:[%s20084_s5 + $0x7c0] sm:$0xff] }
 0xbc8   :  { %v10237_v32 = vpop.f32.mrf.mxu3 }
 0xbc9   :  { %v19884_v63 = vadd.f32 %v10237_v32, %v9652_v27  ;;  %14780 = vmatmul.msk.bf16.gmra.mxu2 %vm1313_vm1, %v15324_v23  ;;  %v15330_v27 = vld [vmem:[%s20084_s5 + $0x7c8] sm:$0xff] }
 0xbd9   :  { %14781 = vmatmul.msk.bf16.gmra.mxu2 %vm1313_vm1, %v15325_v47 }
 0xbe9   :  { %14782 = vmatmul.msk.bf16.gmra.mxu2 %vm1313_vm1, %v15326_v6 }
 0xbf9   :  { %14783 = vmatmul.msk.bf16.gmra.mxu2 %vm1313_vm1, %v15327_v49 }
 0xc09   :  { %14784 = vmatmul.msk.bf16.gmra.mxu2 %vm1313_vm1, %v15328_v29 }
 0xc19   :  { %14785 = vmatmul.msk.bf16.gmra.mxu2 %vm1313_vm1, %v15329_v53 }
 0xc1c   :  { %v10806_v62 = vpop.f32.mrf.mxu2 }
 0xc1d   :  { %v19908_v8 = vadd.f32 %v10806_v62, %v19723_v34  ;;  %v19924_v34 = vpop.permute.xlu2 %11161 }
 0xc1e   :  { %20308 = vst [vmem:[#allocation15_spill] sm:$0xff] %v19924_v34 }
 0xc24   :  { %v10808_v11 = vpop.f32.mrf.mxu2 }
 0xc25   :  { %v19915_v20 = vadd.f32 %v10808_v11, %v19731_v17  ;;  %v19936_v19 = vpop.permute.xlu2 %11086 }
 0xc29   :  { %14786 = vmatmul.msk.bf16.gmra.mxu2 %vm1313_vm1, %v15330_v27 }
 0xc2c   :  { %v10811_v0 = vpop.f32.mrf.mxu2 }
 0xc2d   :  { %v19922_v40 = vadd.f32 %v10811_v0, %v19743_v57  ;;  %v19941_v57 = vpop.permute.xlu1 %11151  ;;  %v19946_v1 = vpop.permute.xlu2 %11141 }
 0xc34   :  { %v10813_v22 = vpop.f32.mrf.mxu2 }
 0xc35   :  { %v19931_v17 = vadd.f32 %v10813_v22, %v19750_v31  ;;  %v11077_v31 = vpop.permute.xlu0 %11076  ;;  %v19948_v21 = vpop.permute.xlu1 %11136 }
 0xc36   :  { %v19957_v13 = vpop.permute.xlu2 %11126 }
 0xc39   :  { %14787 = vmatmul.msk.bf16.gmra.mxu2 %vm1313_vm1, %v15331_v50 }
 0xc3c   :  { %v10816_v35 = vpop.f32.mrf.mxu2 }
 0xc3d   :  { %v19944_v44 = vadd.f32 %v10816_v35, %v19759_v37  ;;  %v19959_v37 = vpop.permute.xlu0 %11131  ;;  %v11082_v23 = vpop.permute.xlu1 %11081 }
 0xc3e   :  { %v11072_v6 = vpop.permute.xlu2 %11071 }
 0xc44   :  { %v10818_v42 = vpop.f32.mrf.mxu2 }
 0xc45   :  { %v19951_v38 = vadd.f32 %v10818_v42, %v19766_v15  ;;  %v15333_v15 = vld [vmem:[%s20084_s5 + $0x7e0] sm:$0xff]  ;;  %v19966_v49 = vpop.permute.xlu0 %11116  ;;  %v11067_v29 = vpop.permute.xlu1 %11066 }
 0xc46   :  { %20310 = vst [vmem:[#allocation26_spill] sm:$0xff] %v19966_v49  ;;  %v11057_v11 = vpop.permute.xlu2 %11056 }
 0xc49   :  { %14788 = vmatmul.msk.bf16.gmra.mxu2 %vm1313_vm1, %v15332_v14 }
 0xc4c   :  { %v10821_v39 = vpop.f32.mrf.mxu2 }
 0xc4d   :  { %v10892_v16 = vadd.f32 %v10821_v39, %v19775_v58  ;;  %v11062_v27 = vpop.permute.xlu0 %11061  ;;  %v19970_v58 = vpop.permute.xlu1 %11121 }
 0xc4e   :  { %v19976_v22 = vpop.permute.xlu2 %11111 }
 0xc4f   :  { %20311 = vst [vmem:[#allocation21_spill] sm:$0xff] %v19976_v22 }
 0xc54   :  { %v10823_v32 = vpop.f32.mrf.mxu2 }
 0xc55   :  { %v10893_v47 = vadd.f32 %v10823_v32, %v19782_v24  ;;  %v15334_v24 = vld [vmem:[%s20084_s5 + $0x7e8] sm:$0xff]  ;;  %v11047_v50 = vpop.permute.xlu0 %11046  ;;  %v19978_v42 = vpop.permute.xlu1 %11106  ;;  %v9639_v32 = vadd.f32 %v19740_v46, %v19491_v41  ;;  %v10269_v41 = vadd.f32 %v19819_v54, %v9640_v59 }
 0xc56   :  { %20312 = vst [vmem:[#allocation29_spill] sm:$0xff] %v19978_v42  ;;  %v19980_v39 = vpop.permute.xlu2 %11096 }
 0xc57   :  { %20313 = vst [vmem:[#allocation30_spill] sm:$0xff] %v19980_v39  ;;  %v10268_v36 = vadd.f32 %v19809_v26, %v9639_v32 }
 0xc59   :  { %14789 = vmatmul.msk.bf16.gmra.mxu2 %vm1313_vm1, %v15333_v15  ;;  %v15335_v15 = vld [vmem:[%s20084_s5 + $0x7f0] sm:$0xff] }
 0xc5c   :  { %v10826_v53 = vpop.f32.mrf.mxu2 }
 0xc5d   :  { %v10894_v62 = vadd.f32 %v10826_v53, %v19793_v7  ;;  %v19982_v7 = vpop.permute.xlu0 %11101  ;;  %v11052_v53 = vpop.permute.xlu1 %11051 }
 0xc5e   :  { %20314 = vst [vmem:[#allocation31_spill] sm:$0xff] %v19982_v7  ;;  %v9637_v7 = vadd.f32 %v19720_v30, %v19477_v3  ;;  %v11042_v26 = vpop.permute.xlu2 %11041 }
 0xc64   :  { %v10828_v0 = vpop.f32.mrf.mxu2 }
 0xc65   :  { %v11027_v32 = vpop.permute.xlu0 %11026  ;;  %v11037_v33 = vpop.permute.xlu1 %11036 }
 0xc69   :  { %14790 = vmatmul.msk.bf16.gmra.mxu2 %vm1313_vm1, %v15334_v24  ;;  %v9638_v24 = vadd.f32 %v19728_v10, %v19484_v2  ;;  %v20315_v2 = vld [vmem:[#allocation19_spill] sm:$0xff] }
 0xc6a   :  { %v10266_v10 = vadd.f32 %v20315_v2, %v9637_v7 }
 0xc6b   :  { %v10267_v39 = vadd.f32 %v19804_v5, %v9638_v24  ;;  %v20316_v5 = vld [vmem:[#allocation9_spill] sm:$0xff] }
 0xc6c   :  { %v10831_v35 = vpop.f32.mrf.mxu2  ;;  %v10895_v60 = vadd.f32 %v10828_v0, %v10266_v10  ;;  %v11180_v0 = vadd.f32 %v11047_v50, %v10892_v16 }
 0xc6d   :  { %v10896_v46 = vadd.f32 %v10831_v35, %v10267_v39  ;;  %v11181_v35 = vadd.f32 %v11052_v53, %v10893_v47  ;;  %v11182_v39 = vadd.f32 %v11057_v11, %v10894_v62  ;;  %v11022_v47 = vpop.permute.xlu0 %11021  ;;  %v11032_v62 = vpop.permute.xlu1 %11031 }
 0xc6e   :  { %v11183_v3 = vadd.f32 %v11062_v27, %v10895_v60  ;;  %v11175_v16 = vadd.f32 %v11022_v47, %v19915_v20  ;;  %v11178_v20 = vadd.f32 %v11037_v33, %v19944_v44 }
 0xc6f   :  { %v11184_v43 = vadd.f32 %v11067_v29, %v10896_v46  ;;  %v15336_v29 = vld [vmem:[%s20084_s5 + $0x7f8] sm:$0xff]  ;;  %v20318_v46 = vld [vmem:[#allocation22_spill] sm:$0xff]  ;;  %v11214_v11 = vmax.f32 %v11182_v39, 0.0 }
 0xc71   :  { %v11216_v59 = vmax.f32 %v11184_v43, 0.0  ;;  %v11017_v43 = vpop.permute.xlu2 %11016 }
 0xc72   :  { %v11174_v60 = vadd.f32 %v11017_v43, %v19908_v8  ;;  %v11176_v8 = vadd.f32 %v11027_v32, %v19922_v40  ;;  %v11210_v40 = vmax.f32 %v11178_v20, 0.0 }
 0xc73   :  { %v11248_v7 = vpack.c.bf16 %v11216_v59, %v11216_v59 }
 0xc74   :  { %v10833_v14 = vpop.f32.mrf.mxu2  ;;  %v11206_v39 = vmax.f32 %v11174_v60, 0.0 }
 0xc75   :  { %v10897_v34 = vadd.f32 %v10833_v14, %v10268_v36  ;;  %v20317_v36 = vld [vmem:[#allocation25_spill] sm:$0xff]  ;;  %v11303_v50 = vunpack.c.l.b16 %v11248_v7 }
 0xc76   :  { %v9641_v14 = vadd.f32 %v20317_v36, %v20316_v5  ;;  %v11177_v36 = vadd.f32 %v11032_v62, %v19931_v17  ;;  %v11238_v33 = vpack.c.bf16 %v11206_v39, %v11206_v39 }
 0xc77   :  { %v11185_v22 = vadd.f32 %v11072_v6, %v10897_v34 }
 0xc78   :  { %v10270_v54 = vadd.f32 %v19828_v48, %v9641_v14  ;;  %v11215_v48 = vmax.f32 %v11183_v3, 0.0  ;;  %v11179_v14 = vadd.f32 %v11042_v26, %v19951_v38  ;;  %v11209_v38 = vmax.f32 %v11177_v36, 0.0 }
 0xc79   :  { %14791 = vmatmul.msk.bf16.gmra.mxu2 %vm1313_vm1, %v15335_v15  ;;  %v11217_v15 = vmax.f32 %v11185_v22, 0.0  ;;  %v20319_v22 = vld [vmem:[#allocation27_spill] sm:$0xff] }
 0xc7a   :  { %v11211_v7 = vmax.f32 %v11179_v14, 0.0 }
 0xc7b   :  { %v11249_v34 = vpack.c.bf16 %v11217_v15, %v11217_v15 }
 0xc7c   :  { %v10836_v42 = vpop.f32.mrf.mxu2 }
 0xc7d   :  { %v10898_v49 = vadd.f32 %v10836_v42, %v10269_v41  ;;  %v11304_v27 = vunpack.c.l.b16 %v11249_v34 }
 0xc7f   :  { %v11186_v24 = vadd.f32 %v11077_v31, %v10898_v49  ;;  %v9642_v31 = vadd.f32 %v20319_v22, %v20318_v46  ;;  %v11213_v49 = vmax.f32 %v11181_v35, 0.0 }
 0xc81   :  { %v11218_v6 = vmax.f32 %v11186_v24, 0.0  ;;  %v10271_v10 = vadd.f32 %v19837_v55, %v9642_v31  ;;  %v11245_v15 = vpack.c.bf16 %v11213_v49, %v11213_v49  ;;  %v11247_v24 = vpack.c.bf16 %v11215_v48, %v11215_v48 }
 0xc82   :  { %v11314_v55 = vpack.c.b16 %v11304_v27, %v11303_v50  ;;  %v11208_v49 = vmax.f32 %v11176_v8, 0.0  ;;  %v11241_v48 = vpack.c.bf16 %v11209_v38, %v11209_v38  ;;  %v11243_v27 = vpack.c.bf16 %v11211_v7, %v11211_v7 }
 0xc83   :  { %v11250_v53 = vpack.c.bf16 %v11218_v6, %v11218_v6  ;;  %v11246_v6 = vpack.c.bf16 %v11214_v11, %v11214_v11  ;;  %v11302_v46 = vunpack.c.l.b16 %v11247_v24 }
 0xc84   :  { %v10838_v30 = vpop.f32.mrf.mxu2  ;;  %v11296_v11 = vunpack.c.l.b16 %v11241_v48  ;;  %v11298_v50 = vunpack.c.l.b16 %v11243_v27  ;;  %v20323_v48 = vld [vmem:[#allocation8_spill] sm:$0xff] }
 0xc85   :  { %v10899_v42 = vadd.f32 %v10838_v30, %v10270_v54  ;;  %v11305_v59 = vunpack.c.l.b16 %v11250_v53  ;;  %v11207_v30 = vmax.f32 %v11175_v16, 0.0  ;;  %v11301_v44 = vunpack.c.l.b16 %v11246_v6 }
 0xc86   :  { %v11242_v16 = vpack.c.bf16 %v11210_v40, %v11210_v40 }
 0xc87   :  { %v11187_v41 = vadd.f32 %v11082_v23, %v10899_v42  ;;  %v11212_v23 = vmax.f32 %v11180_v0, 0.0  ;;  %v20321_v0 = vld [vmem:[#allocation17_spill] sm:$0xff]  ;;  %v11239_v31 = vpack.c.bf16 %v11207_v30, %v11207_v30 }
 0xc89   :  { %v11219_v2 = vmax.f32 %v11187_v41, 0.0  ;;  %14792 = vmatmul.msk.bf16.gmra.mxu2 %vm1313_vm1, %v15336_v29  ;;  %v11244_v34 = vpack.c.bf16 %v11212_v23, %v11212_v23  ;;  %v20320_v29 = vld [vmem:[#allocation20_spill] sm:$0xff]  ;;  %v11300_v41 = vunpack.c.l.b16 %v11245_v15  ;;  %v11294_v60 = vunpack.c.l.b16 %v11239_v31 }
 0xc8a   :  { %v9643_v17 = vadd.f32 %v20321_v0, %v20320_v29  ;;  %v11293_v23 = vunpack.c.l.b16 %v11238_v33  ;;  %v11297_v15 = vunpack.c.l.b16 %v11242_v16  ;;  %v20322_v33 = vld [vmem:[#allocation14_spill] sm:$0xff] }
 0xc8b   :  { %v11251_v5 = vpack.c.bf16 %v11219_v2, %v11219_v2  ;;  %v11299_v32 = vunpack.c.l.b16 %v11244_v34  ;;  %v11313_v2 = vpack.c.b16 %v11302_v46, %v11301_v44 }
 0xc8c   :  { %v10841_v54 = vpop.f32.mrf.mxu2  ;;  %v10272_v22 = vadd.f32 %v19842_v9, %v9643_v17  ;;  %v11309_v36 = vpack.c.b16 %v11294_v60, %v11293_v23  ;;  %v11311_v30 = vpack.c.b16 %v11298_v50, %v11297_v15 }
 0xc8d   :  { %v11306_v35 = vunpack.c.l.b16 %v11251_v5  ;;  %v10900_v3 = vadd.f32 %v10841_v54, %v10271_v10  ;;  %v11312_v10 = vpack.c.b16 %v11300_v41, %v11299_v32 }
 0xc8f   :  { %v11315_v42 = vpack.c.b16 %v11306_v35, %v11305_v59  ;;  %v11188_v26 = vadd.f32 %v19936_v19, %v10900_v3  ;;  %v11240_v19 = vpack.c.bf16 %v11208_v49, %v11208_v49 }
 0xc91   :  { %v11220_v43 = vmax.f32 %v11188_v26, 0.0  ;;  %v11295_v14 = vunpack.c.l.b16 %v11240_v19  ;;  %v9610_v26 = vpop.f32.mrf.mxu0 }
 0xc93   :  { %v11252_v9 = vpack.c.bf16 %v11220_v43, %v11220_v43  ;;  %v11310_v8 = vpack.c.b16 %v11296_v11, %v11295_v14  ;;  %v20324_v43 = vld [vmem:[#allocation28_spill] sm:$0xff] }
 0xc94   :  { %v10843_v47 = vpop.f32.mrf.mxu2 }
 0xc95   :  { %v10901_v53 = vadd.f32 %v10843_v47, %v10272_v22  ;;  %v11307_v54 = vunpack.c.l.b16 %v11252_v9 }
 0xc97   :  { %v11189_v62 = vadd.f32 %v19938_v28, %v10901_v53 }
 0xc99   :  { %v11221_v5 = vmax.f32 %v11189_v62, 0.0  ;;  %v9613_v46 = vpop.f32.mrf.mxu0 }
 0xc9b   :  { %v11253_v24 = vpack.c.bf16 %v11221_v5, %v11221_v5 }
 0xc9c   :  { %v10846_v59 = vpop.f32.mrf.mxu2 }
 0xc9d   :  { %v11308_v35 = vunpack.c.l.b16 %v11253_v24  ;;  %v20022_v3 = vadd.f32 %v10846_v59, %v19848_v25 }
 0xc9f   :  { %v11316_v20 = vpack.c.b16 %v11308_v35, %v11307_v54 }
 0xca1   :  { %11325 = vmatpush.bf16.msra.mxu0 %v11316_v20  ;;  %v9615_v40 = vpop.f32.mrf.mxu0 }
 0xca4   :  { %v10848_v28 = vpop.f32.mrf.mxu2 }
 0xca5   :  { %v20025_v34 = vadd.f32 %v10848_v28, %v19851_v52  ;;  %11326 = vmatpush.bf16.msra.mxu0 %v11315_v42  ;;  %v11270_v52 = vld [vmem:[%s20086_s7] sm:$0xf] }
 0xca9   :  { %11327 = vmatpush.bf16.msra.mxu0 %v11314_v55  ;;  %v9618_v53 = vpop.f32.mrf.mxu0 }
 0xcac   :  { %v10851_v6 = vpop.f32.mrf.mxu2 }
 0xcad   :  { %v20028_v29 = vadd.f32 %v10851_v6, %v19857_v18  ;;  %11328 = vmatpush.bf16.msra.mxu0 %v11313_v2 }
 0xcb1   :  { %11329 = vmatpush.bf16.msra.mxu0 %v11312_v10  ;;  %v20326_v10 = vld [vmem:[#allocation10_spill] sm:$0xff]  ;;  %v9620_v54 = vpop.f32.mrf.mxu0 }
 0xcb4   :  { %v10853_v0 = vpop.f32.mrf.mxu2 }
 0xcb5   :  { %v20031_v25 = vadd.f32 %v10853_v0, %v19861_v45  ;;  %11330 = vmatpush.bf16.msra.mxu0 %v11311_v30  ;;  %v10239_v45 = vpop.f32.mrf.mxu3 }
 0xcb9   :  { %11331 = vmatpush.bf16.msra.mxu0 %v11310_v8 }
 0xcbc   :  { %v10856_v17 = vpop.f32.mrf.mxu2 }
 0xcbd   :  { %v10906_v39 = vadd.f32 %v10856_v17, %v19867_v12  ;;  %11332 = vmatpush.bf16.msra.mxu0 %v11309_v36  ;;  %v10242_v31 = vpop.f32.mrf.mxu3  ;;  %v20327_v36 = vld [vmem:[#allocation16_spill] sm:$0xff] }
 0xcbe   :  { %v9656_v14 = vadd.f32 %v9618_v53, %v20327_v36 }
 0xcc0   :  { %11333 = vmatmul.bf16.vlgmr.msra.gmra.mxu0 %v11270_v52 }
 0xcc4   :  { %v10858_v55 = vpop.f32.mrf.mxu2 }
 0xcc5   :  { %v10907_v18 = vadd.f32 %v10858_v55, %v19871_v4  ;;  %v10244_v32 = vpop.f32.mrf.mxu3  ;;  %v8395_v4 = vadd.f32 %v20323_v48, %v20322_v33  ;;  %v20328_v55 = vld [vmem:[#allocation11_spill] sm:$0xff] }
 0xcc7   :  { %v9024_v47 = vadd.f32 %v20324_v43, %v8395_v4 }
 0xcc9   :  { %v9653_v2 = vadd.f32 %v9610_v26, %v9024_v47  ;;  %v20332_v47 = vld [vmem:[#allocation29_spill] sm:$0xff] }
 0xccb   :  { %v10282_v16 = vadd.f32 %v10239_v45, %v9653_v2  ;;  %v20333_v2 = vld [vmem:[#allocation15_spill] sm:$0xff] }
 0xccc   :  { %v10861_v42 = vpop.f32.mrf.mxu2 }
 0xccd   :  { %v10908_v38 = vadd.f32 %v10861_v42, %v19876_v51  ;;  %v20325_v51 = vld [vmem:[#allocation13_spill] sm:$0xff]  ;;  %v10247_v19 = vpop.f32.mrf.mxu3  ;;  %v9657_v42 = vadd.f32 %v9620_v54, %v20328_v55  ;;  %v20337_v55 = vld [vmem:[#allocation23_spill] sm:$0xff] }
 0xcce   :  { %v9654_v27 = vadd.f32 %v9613_v46, %v20325_v51  ;;  %v10285_v59 = vadd.f32 %v10247_v19, %v9656_v14  ;;  %v11192_v51 = vadd.f32 %v20332_v47, %v20028_v29  ;;  %v11275_v47 = vpop.permute.xlu2 %11274 }
 0xcd0   :  { %v10283_v60 = vadd.f32 %v10242_v31, %v9654_v27 }
 0xcd4   :  { %v10863_v7 = vpop.f32.mrf.mxu2 }
 0xcd5   :  { %v10909_v41 = vadd.f32 %v10863_v7, %v19879_v61  ;;  %v9655_v61 = vadd.f32 %v9615_v40, %v20326_v10  ;;  %v10249_v8 = vpop.f32.mrf.mxu3  ;;  %v9623_v40 = vpop.f32.mrf.mxu0 }
 0xcd7   :  { %v11197_v20 = vadd.f32 %v19959_v37, %v10909_v41 }
 0xcd9   :  { %v11229_v26 = vmax.f32 %v11197_v20, 0.0 }
 0xcdc   :  { %v10866_v22 = vpop.f32.mrf.mxu2 }
 0xcdd   :  { %v10910_v12 = vadd.f32 %v10866_v22, %v19884_v63  ;;  %v10284_v63 = vadd.f32 %v10244_v32, %v9655_v61  ;;  %v10286_v22 = vadd.f32 %v10249_v8, %v9657_v42  ;;  %v10252_v43 = vpop.f32.mrf.mxu3  ;;  %v20334_v61 = vld [vmem:[#allocation7_spill] sm:$0xff] }
 0xcdf   :  { %v11198_v35 = vadd.f32 %v19948_v21, %v10910_v12  ;;  %v20329_v21 = vld [vmem:[#allocation12_spill] sm:$0xff]  ;;  %v20330_v12 = vld [vmem:[#allocation26_spill] sm:$0xff] }
 0xce0   :  { %v11194_v37 = vadd.f32 %v20330_v12, %v10906_v39 }
 0xce2   :  { %v11226_v27 = vmax.f32 %v11194_v37, 0.0 }
 0xce4   :  { %v10868_v49 = vpop.f32.mrf.mxu2  ;;  %v11258_v36 = vpack.c.bf16 %v11226_v27, %v11226_v27  ;;  %v11338_v27 = vld [vmem:[%s20088_s9] sm:$0xf] }
 0xce5   :  { %v10911_v9 = vadd.f32 %v10868_v49, %v10282_v16 }
 0xce7   :  { %v11199_v15 = vadd.f32 %v19946_v1, %v10911_v9  ;;  %v11195_v1 = vadd.f32 %v19970_v58, %v10907_v18 }
 0xce9   :  { %v11231_v6 = vmax.f32 %v11199_v15, 0.0  ;;  %v11227_v32 = vmax.f32 %v11195_v1, 0.0  ;;  %v20336_v15 = vld [vmem:[#allocation30_spill] sm:$0xff] }
 0xceb   :  { %v11263_v45 = vpack.c.bf16 %v11231_v6, %v11231_v6  ;;  %v9625_v6 = vpop.f32.mrf.mxu0 }
 0xcec   :  { %v10871_v44 = vpop.f32.mrf.mxu2  ;;  %v9659_v42 = vadd.f32 %v9625_v6, %v20337_v55 }
 0xced   :  { %v10912_v62 = vadd.f32 %v10871_v44, %v10283_v60  ;;  %v11261_v44 = vpack.c.bf16 %v11229_v26, %v11229_v26  ;;  %v11370_v48 = vunpack.c.l.b16 %v11263_v45  ;;  %v9658_v60 = vadd.f32 %v9623_v40, %v20334_v61  ;;  %v20338_v26 = vld [vmem:[#allocation18_spill] sm:$0xff]  ;;  %v20339_v40 = vld [vmem:[#allocation24_spill] sm:$0xff] }
 0xcef   :  { %v11200_v50 = vadd.f32 %v19926_v56, %v10912_v62  ;;  %v11196_v56 = vadd.f32 %v19957_v13, %v10908_v38  ;;  %v20331_v13 = vld [vmem:[#allocation21_spill] sm:$0xff]  ;;  %v11368_v16 = vunpack.c.l.b16 %v11261_v44  ;;  %v10287_v9 = vadd.f32 %v10252_v43, %v9658_v60 }
 0xcf0   :  { %v11193_v38 = vadd.f32 %v20331_v13, %v20031_v25  ;;  %v11259_v25 = vpack.c.bf16 %v11227_v32, %v11227_v32 }
 0xcf1   :  { %v11232_v30 = vmax.f32 %v11200_v50, 0.0  ;;  %v11228_v41 = vmax.f32 %v11196_v56, 0.0  ;;  %v11365_v56 = vunpack.c.l.b16 %v11258_v36 }
 0xcf2   :  { %v11225_v19 = vmax.f32 %v11193_v38, 0.0 }
 0xcf3   :  { %v11264_v52 = vpack.c.bf16 %v11232_v30, %v11232_v30  ;;  %v11260_v39 = vpack.c.bf16 %v11228_v41, %v11228_v41 }
 0xcf4   :  { %v10873_v23 = vpop.f32.mrf.mxu2  ;;  %v11257_v54 = vpack.c.bf16 %v11225_v19, %v11225_v19 }
 0xcf5   :  { %v10913_v11 = vadd.f32 %v10873_v23, %v10284_v63  ;;  %v11371_v49 = vunpack.c.l.b16 %v11264_v52  ;;  %v11367_v29 = vunpack.c.l.b16 %v11260_v39 }
 0xcf6   :  { %v11364_v1 = vunpack.c.l.b16 %v11257_v54 }
 0xcf7   :  { %v11201_v5 = vadd.f32 %v19941_v57, %v10913_v11  ;;  %v11230_v57 = vmax.f32 %v11198_v35, 0.0  ;;  %v20335_v11 = vld [vmem:[#allocation31_spill] sm:$0xff] }
 0xcf8   :  { %v11191_v50 = vadd.f32 %v20335_v11, %v20025_v34  ;;  %v10254_v34 = vpop.f32.mrf.mxu3 }
 0xcf9   :  { %v11233_v24 = vmax.f32 %v11201_v5, 0.0  ;;  %v11262_v31 = vpack.c.bf16 %v11230_v57, %v11230_v57  ;;  %v11224_v5 = vmax.f32 %v11192_v51, 0.0 }
 0xcfb   :  { %v11265_v0 = vpack.c.bf16 %v11233_v24, %v11233_v24  ;;  %v11369_v53 = vunpack.c.l.b16 %v11262_v31  ;;  %v11190_v24 = vadd.f32 %v20336_v15, %v20022_v3 }
 0xcfc   :  { %v10876_v28 = vpop.f32.mrf.mxu2 }
 0xcfd   :  { %v10914_v17 = vadd.f32 %v10876_v28, %v10285_v59  ;;  %v11372_v7 = vunpack.c.l.b16 %v11265_v0  ;;  %v11381_v23 = vpack.c.b16 %v11370_v48, %v11369_v53  ;;  %v11366_v59 = vunpack.c.l.b16 %v11259_v25  ;;  %v11406_v25 = vld [vmem:[%s20090_s11] sm:$0xff] }
 0xcfe   :  { %v11380_v28 = vpack.c.b16 %v11368_v16, %v11367_v29  ;;  %v11223_v0 = vmax.f32 %v11191_v50, 0.0  ;;  %v11222_v52 = vmax.f32 %v11190_v24, 0.0 }
 0xcff   :  { %v11202_v46 = vadd.f32 %v20329_v21, %v10914_v17  ;;  %v11382_v4 = vpack.c.b16 %v11372_v7, %v11371_v49  ;;  %v11256_v17 = vpack.c.bf16 %v11224_v5, %v11224_v5  ;;  %v11379_v3 = vpack.c.b16 %v11366_v59, %v11365_v56 }
 0xd00   :  { %v11255_v7 = vpack.c.bf16 %v11223_v0, %v11223_v0  ;;  %v10288_v21 = vadd.f32 %v10254_v34, %v9659_v42 }
 0xd01   :  { %v11234_v58 = vmax.f32 %v11202_v46, 0.0  ;;  %v11363_v46 = vunpack.c.l.b16 %v11256_v17 }
 0xd02   :  { %v11362_v49 = vunpack.c.l.b16 %v11255_v7 }
 0xd03   :  { %v11266_v63 = vpack.c.bf16 %v11234_v58, %v11234_v58  ;;  %v11378_v31 = vpack.c.b16 %v11364_v1, %v11363_v46 }
 0xd04   :  { %v10878_v33 = vpop.f32.mrf.mxu2 }
 0xd05   :  { %v10915_v18 = vadd.f32 %v10878_v33, %v10286_v22  ;;  %v11373_v30 = vunpack.c.l.b16 %v11266_v63  ;;  %v11254_v22 = vpack.c.bf16 %v11222_v52, %v11222_v52 }
 0xd07   :  { %v11203_v10 = vadd.f32 %v20333_v2, %v10915_v18  ;;  %v11361_v38 = vunpack.c.l.b16 %v11254_v22  ;;  %v11343_v2 = vpop.permute.xlu1 %11342 }
 0xd09   :  { %v11235_v62 = vmax.f32 %v11203_v10, 0.0  ;;  %v11377_v33 = vpack.c.b16 %v11362_v49, %v11361_v38 }
 0xd0b   :  { %v11267_v14 = vpack.c.bf16 %v11235_v62, %v11235_v62 }
 0xd0c   :  { %v10881_v35 = vpop.f32.mrf.mxu2 }
 0xd0d   :  { %v11374_v8 = vunpack.c.l.b16 %v11267_v14  ;;  %v10916_v20 = vadd.f32 %v10881_v35, %v10287_v9 }
 0xd0f   :  { %v11383_v57 = vpack.c.b16 %v11374_v8, %v11373_v30  ;;  %v11204_v45 = vadd.f32 %v20338_v26, %v10916_v20 }
 0xd11   :  { %v11236_v37 = vmax.f32 %v11204_v45, 0.0 }
 0xd13   :  { %v11268_v32 = vpack.c.bf16 %v11236_v37, %v11236_v37 }
 0xd14   :  { %v10883_v12 = vpop.f32.mrf.mxu2 }
 0xd15   :  { %v10917_v41 = vadd.f32 %v10883_v12, %v10288_v21  ;;  %v11375_v58 = vunpack.c.l.b16 %v11268_v32 }
 0xd17   :  { %v11205_v13 = vadd.f32 %v20339_v40, %v10917_v41 }
 0xd19   :  { %v11237_v44 = vmax.f32 %v11205_v13, 0.0 }
 0xd1b   :  { %v11269_v48 = vpack.c.bf16 %v11237_v44, %v11237_v44 }
 0xd1d   :  { %v11376_v18 = vunpack.c.l.b16 %v11269_v48 }
 0xd1f   :  { %v11384_v43 = vpack.c.b16 %v11376_v18, %v11375_v58 }
 0xd21   :  { %11393 = vmatpush.bf16.msrb.mxu1 %v11384_v43 }
 0xd25   :  { %11394 = vmatpush.bf16.msrb.mxu1 %v11383_v57 }
 0xd29   :  { %11395 = vmatpush.bf16.msrb.mxu1 %v11382_v4 }
 0xd2d   :  { %11396 = vmatpush.bf16.msrb.mxu1 %v11381_v23 }
 0xd31   :  { %11397 = vmatpush.bf16.msrb.mxu1 %v11380_v28 }
 0xd35   :  { %11398 = vmatpush.bf16.msrb.mxu1 %v11379_v3 }
 0xd39   :  { %11399 = vmatpush.bf16.msrb.mxu1 %v11378_v31 }
 0xd3d   :  { %v11334_v51 = vpop.f32.mrf.mxu0  ;;  %11400 = vmatpush.bf16.msrb.mxu1 %v11377_v33 }
 0xd3e   :  { %v11335_v39 = vadd.f32 %v11334_v51, %v11275_v47 }
 0xd40   :  { %11413 = vst [vmem:[#allocation4 + $0x8] sm:$0xff] %v11335_v39  ;;  %11401 = vmatmul.bf16.vlgmr.msrb.gmra.mxu1 %v11338_v27 }
 0xd45   :  { %v11336_v53 = vpop.f32.mrf.mxu0 }
 0xdbd   :  { %v11402_v10 = vpop.f32.mrf.mxu1 }
 0xdbe   :  { %v11403_v61 = vadd.f32 %v11402_v10, %v11343_v2 }
 0xdc0   :  { %v11407_v60 = vmul.f32 0.5, %v11403_v61  ;;  %11414 = vst [vmem:[#allocation4 + $0x10] sm:$0xff] %v11403_v61 }
 0xdc2   :  { %v11408_v4 = vmul.f32 1.442695, %v11407_v60 }
 0xdc4   :  { %15401 = vpow2.f32 %v11408_v4 }
 0xdc5   :  { %v11404_v19 = vpop.f32.mrf.mxu1 }
 0xdca   :  { %v15402_v16 = vpop.eup %15401 }
 0xdcb   :  { %v11410_v63 = vmul.f32 %v15402_v16, %v11406_v25 }
 0xdcd   :  { %v11411_v62 = vadd.f32 %v11410_v63, %v11335_v39 }
 0xdcf   :  { %11412 = vst [vmem:[#allocation4] sm:$0xff] %v11411_v62 }
 0xdd0   :  { %11427 = dma.vmem_to_hbm [thread:$0]  %s11420_s10, 384, %s11422_s23, [#allocation5], %s15433_s24, %s15433_s24, %s15434_s25  }
 0xdd1   :  { %15427 = dma.done.wait [#allocation5], 384  }
 0xdd2   :  { %15428 = vsyncadd [#allocation5], 4294966912 }
 0xdd3   :  { %11432 = vsyncpa [#allocation5], 1 }

</bundles_post_ra>
